<compile_context>
chip_gen: v5e
topology: v5e:2x2
jax: 0.10.0
libtpu: 0.0.40
codegen_flags: <defaults>
</compile_context>

<pallas_src>
import math
import jax
import jax.numpy as jnp
from jax.experimental import pallas as pl
from jax.experimental.pallas import tpu as pltpu


# ---------------------------------------------------------------------------
# Chip-aware knobs
# ---------------------------------------------------------------------------

def _vmem_limit_bytes():
    """Generation-aware VMEM limit: ~3/4 of physical, capped at 96 MiB
    (~48 MiB on v7x's 64 MiB/TC, 96 MiB on v5e/v6e's 128 MiB).  Falls back to a
    universally safe 32 MiB if the query is unavailable."""
    try:
        cap = getattr(pltpu.get_tpu_info(), "vmem_capacity_bytes", None)
        if cap:
            return int(min(96 * 1024 * 1024, (cap * 3) // 4))
    except Exception:
        pass
    return 32 * 1024 * 1024


_VMEM_LIMIT = _vmem_limit_bytes()


def _cparams():
    return pltpu.CompilerParams(dimension_semantics=("parallel",),
                                vmem_limit_bytes=_VMEM_LIMIT)


def _row_tile(m, target=2048):
    """Largest multiple-of-8 divisor of m that is <= target, additionally capped
    at m//2 so every gridded call has >= 2 steps (lets v7x shard the 'parallel'
    row axis across both TensorCores)."""
    if m <= 8:
        return m
    cap = min(target, m // 2 if m >= 16 else m)
    cap -= cap % 8
    tm = cap
    while tm >= 8:
        if m % tm == 0:
            return tm
        tm -= 8
    return m  # awkward m: single-step fallback (tiny shapes only)


def _gfactor(c):
    """Channel packing factor: pack g = 128//C consecutive rows into one
    128-lane row so stores are lane-dense and the MXU N dim is full."""
    return max(1, 128 // c)


def _patch_spec(tm, width, steps):
    # Deeper pipelining on the streamed patches operand once the row grid is
    # long enough to benefit (inactive at CIFAR demo sizes where steps == 2).
    if steps >= 4:
        return pl.BlockSpec((tm, width), lambda i: (i, 0),
                            pipeline_mode=pl.Buffered(3))
    return pl.BlockSpec((tm, width), lambda i: (i, 0))


# ---------------------------------------------------------------------------
# Pallas kernels (all matmul operands bf16, f32 accumulation, f32 epilogues,
# bf16 stores; every load/store block is 128 lanes wide)
# ---------------------------------------------------------------------------

def _conv_post_kernel(p_ref, w_ref, scale_ref, shift_ref, raw_ref, act_ref):
    # stem conv: raw conv output + fused next-stage bn+relu (dual output)
    acc = jnp.dot(p_ref[...], w_ref[...], preferred_element_type=jnp.float32)
    raw_ref[...] = acc.astype(raw_ref.dtype)
    act_ref[...] = jnp.maximum(acc * scale_ref[...] + shift_ref[...],
                               0.0).astype(act_ref.dtype)


def _conv_bnrelu_kernel(p_ref, w_ref, scale_ref, shift_ref, o_ref):
    # block conv1: conv + folded bn2 + relu
    acc = jnp.dot(p_ref[...], w_ref[...], preferred_element_type=jnp.float32)
    o_ref[...] = jnp.maximum(acc * scale_ref[...] + shift_ref[...],
                             0.0).astype(o_ref.dtype)


def _conv_add_post_kernel(p_ref, w_ref, res_ref, scale_ref, shift_ref,
                          raw_ref, act_ref):
    # block conv2 (equal_in_out): conv + residual add + next-stage bn + relu
    acc = jnp.dot(p_ref[...], w_ref[...], preferred_element_type=jnp.float32)
    y = acc + res_ref[...].astype(jnp.float32)
    raw_ref[...] = y.astype(raw_ref.dtype)
    act_ref[...] = jnp.maximum(y * scale_ref[...] + shift_ref[...],
                               0.0).astype(act_ref.dtype)


def _conv_sc_post_kernel(p_ref, w_ref, sp_ref, sw_ref, scale_ref, shift_ref,
                         raw_ref, act_ref):
    # block conv2 (downsampling): conv + fused 1x1 shortcut conv + add
    # + next-stage bn + relu
    acc = jnp.dot(p_ref[...], w_ref[...], preferred_element_type=jnp.float32)
    res = jnp.dot(sp_ref[...], sw_ref[...], preferred_element_type=jnp.float32)
    y = acc + res
    raw_ref[...] = y.astype(raw_ref.dtype)
    act_ref[...] = jnp.maximum(y * scale_ref[...] + shift_ref[...],
                               0.0).astype(act_ref.dtype)


def _head_kernel(x_ref, w_ref, b_ref, fea_ref, logits_ref):
    # x already has the final bn+relu applied (fused into the last conv2)
    y = x_ref[...].astype(jnp.float32)            # [N, HW, C]
    fea = jnp.mean(y, axis=1)                     # global 8x8 avg pool
    fea_ref[...] = fea
    logits_ref[...] = (jnp.dot(fea, w_ref[...],
                               preferred_element_type=jnp.float32)
                       + b_ref[...])


# ---------------------------------------------------------------------------
# Wrappers
# ---------------------------------------------------------------------------

def _im2col(x, kh, kw, stride, padding):
    """x: [N,H,W,C] -> bf16 patches [N*Ho*Wo, kh*kw*C] (rows in (n,ho,wo) order).
    TODO(synk): still XLA-side; an in-kernel halo-tiled load would avoid the
    blown-up patches round-trip through HBM."""
    N, H, W, C = x.shape
    Ho = (H + 2 * padding - kh) // stride + 1
    Wo = (W + 2 * padding - kw) // stride + 1
    xp = jnp.pad(x, ((0, 0), (padding, padding), (padding, padding), (0, 0))) \
        if padding else x
    taps = [xp[:, ky:ky + (Ho - 1) * stride + 1:stride,
               kx:kx + (Wo - 1) * stride + 1:stride, :]
            for ky in range(kh) for kx in range(kw)]
    patches = jnp.concatenate(taps, axis=-1).reshape(N * Ho * Wo, kh * kw * C)
    return patches.astype(jnp.bfloat16), Ho, Wo


def conv_first(x, wp, post_scale, post_shift, cout, g):
    """Stem 3x3 conv.  Emits both the raw output x_0 (residual path of block 1)
    and a_1 = relu(bn1_block1(x_0)) — block 1's bn1+relu fused as an epilogue."""
    N = x.shape[0]
    patches, Ho, Wo = _im2col(x, 3, 3, 1, 1)
    M, KC = patches.shape
    assert M % g == 0
    Mp = M // g
    pp = patches.reshape(Mp, g * KC)
    TM = _row_tile(Mp)
    steps = Mp // TM
    raw, act = pl.pallas_call(
        _conv_post_kernel,
        out_shape=(jax.ShapeDtypeStruct((Mp, g * cout), jnp.bfloat16),
                   jax.ShapeDtypeStruct((Mp, g * cout), jnp.bfloat16)),
        grid=(steps,),
        in_specs=[_patch_spec(TM, g * KC, steps),
                  pl.BlockSpec((g * KC, g * cout), lambda i: (0, 0)),
                  pl.BlockSpec((1, g * cout), lambda i: (0, 0)),
                  pl.BlockSpec((1, g * cout), lambda i: (0, 0))],
        out_specs=(pl.BlockSpec((TM, g * cout), lambda i: (i, 0)),
                   pl.BlockSpec((TM, g * cout), lambda i: (i, 0))),
        compiler_params=_cparams(),
    )(pp, wp, post_scale, post_shift)
    return raw.reshape(N, Ho, Wo, cout), act.reshape(N, Ho, Wo, cout)


def conv_bnrelu(x, wp, stride, scale_p, shift_p, cout, g):
    """Block conv1: 3x3 conv (stride s) + folded bn2 + relu, lane-packed output."""
    N = x.shape[0]
    patches, Ho, Wo = _im2col(x, 3, 3, stride, 1)
    M, KC = patches.shape
    assert M % g == 0
    Mp = M // g
    pp = patches.reshape(Mp, g * KC)
    TM = _row_tile(Mp)
    steps = Mp // TM
    out = pl.pallas_call(
        _conv_bnrelu_kernel,
        out_shape=jax.ShapeDtypeStruct((Mp, g * cout), jnp.bfloat16),
        grid=(steps,),
        in_specs=[_patch_spec(TM, g * KC, steps),
                  pl.BlockSpec((g * KC, g * cout), lambda i: (0, 0)),
                  pl.BlockSpec((1, g * cout), lambda i: (0, 0)),
                  pl.BlockSpec((1, g * cout), lambda i: (0, 0))],
        out_specs=pl.BlockSpec((TM, g * cout), lambda i: (i, 0)),
        compiler_params=_cparams(),
    )(pp, wp, scale_p, shift_p)
    return out.reshape(N, Ho, Wo, cout)


def conv2_add_post(b, wp, cout, g, post_scale, post_shift, *,
                   residual=None, shortcut=None, shortcut_wp=None):
    """Block conv2: 3x3 conv + residual add (either the raw block input or a
    fused 1x1 shortcut conv) + the *next* stage's bn + relu.  Dual output:
    raw block output x_i and its pre-activation a_{i+1}, both bf16 packed."""
    N = b.shape[0]
    patches, Ho, Wo = _im2col(b, 3, 3, 1, 1)
    M, KC = patches.shape
    assert M % g == 0
    Mp = M // g
    pp = patches.reshape(Mp, g * KC)
    TM = _row_tile(Mp)
    steps = Mp // TM

    in_specs = [_patch_spec(TM, g * KC, steps),
                pl.BlockSpec((g * KC, g * cout), lambda i: (0, 0))]
    args = [pp, wp]
    if residual is not None:
        kernel = _conv_add_post_kernel
        in_specs.append(pl.BlockSpec((TM, g * cout), lambda i: (i, 0)))
        args.append(residual.reshape(Mp, g * cout))
    else:
        kernel = _conv_sc_post_kernel
        cin = shortcut.shape[-1]
        in_specs.append(pl.BlockSpec((TM, g * cin), lambda i: (i, 0)))
        in_specs.append(pl.BlockSpec((g * cin, g * cout), lambda i: (0, 0)))
        args += [shortcut.reshape(Mp, g * cin).astype(jnp.bfloat16), shortcut_wp]
    in_specs += [pl.BlockSpec((1, g * cout), lambda i: (0, 0)),
                 pl.BlockSpec((1, g * cout), lambda i: (0, 0))]
    args += [post_scale, post_shift]

    raw, act = pl.pallas_call(
        kernel,
        out_shape=(jax.ShapeDtypeStruct((Mp, g * cout), jnp.bfloat16),
                   jax.ShapeDtypeStruct((Mp, g * cout), jnp.bfloat16)),
        grid=(steps,),
        in_specs=in_specs,
        out_specs=(pl.BlockSpec((TM, g * cout), lambda i: (i, 0)),
                   pl.BlockSpec((TM, g * cout), lambda i: (i, 0))),
        compiler_params=_cparams(),
    )(*args)
    return raw.reshape(N, Ho, Wo, cout), act.reshape(N, Ho, Wo, cout)


def head_fused(h, fc_w, fc_b):
    """avg_pool2d(.,8) + fc on the already bn+relu'd final feature map."""
    N, H, W, C = h.shape
    assert H == 8 and W == 8, "head assumes 32x32 CIFAR input (8x8 final map)"
    O = fc_w.shape[1]
    vmem = pl.BlockSpec(memory_space=pltpu.MemorySpace.VMEM)
    fea, logits = pl.pallas_call(
        _head_kernel,
        out_shape=(jax.ShapeDtypeStruct((N, C), jnp.float32),
                   jax.ShapeDtypeStruct((N, O), jnp.float32)),
        in_specs=[vmem, vmem, vmem],
        out_specs=(vmem, vmem),
        compiler_params=pltpu.CompilerParams(vmem_limit_bytes=_VMEM_LIMIT),
    )(h.reshape(N, H * W, C), fc_w, fc_b)
    return fea, logits


# ---------------------------------------------------------------------------
# Deterministic parameter construction (mirrors WideResNet.__init__)
# ---------------------------------------------------------------------------

def _conv_weight(key, kh, kw, cin, cout):
    n = kh * kw * cout
    return math.sqrt(2.0 / n) * jax.random.normal(key, (kh, kw, cin, cout),
                                                  dtype=jnp.float32)


def _pack_conv(w, g):
    """[kh,kw,cin,cout] -> block-diagonal lane-packed matmul weight
    [g*kh*kw*cin, g*cout] (bf16): g packed output rows per MXU pass, so stores
    are 128-lane dense and the contraction depth is g*kh*kw*cin (216-1152)."""
    kh, kw, cin, cout = w.shape
    K = kh * kw * cin
    wf = w.reshape(K, cout)
    wp = jnp.zeros((g * K, g * cout), jnp.float32)
    for j in range(g):
        wp = wp.at[j * K:(j + 1) * K, j * cout:(j + 1) * cout].set(wf)
    return wp.astype(jnp.bfloat16)


def _fold_bn(c, g, eps=1e-5):
    """Eval-mode BN folded to scale/shift and tiled g times to match the
    channel-packed [*, g*c] activation layout.  Module init stats:
    gamma=1, beta=0, running_mean=0, running_var=1."""
    gamma = jnp.ones((c,), jnp.float32)
    beta = jnp.zeros((c,), jnp.float32)
    mean = jnp.zeros((c,), jnp.float32)
    var = jnp.ones((c,), jnp.float32)
    inv = gamma / jnp.sqrt(var + eps)
    return (jnp.tile(inv, g).reshape(1, g * c),
            jnp.tile(beta - mean * inv, g).reshape(1, g * c))


def make_wideresnet_params(key, depth=10, widen_factor=1, num_classes=10):
    assert (depth - 4) % 6 == 0, "Depth of the model should be 6n + 4"
    n = (depth - 4) // 6
    nb = [16, 16 * widen_factor, 32 * widen_factor, 64 * widen_factor]
    keys = iter(jax.random.split(key, 64))

    params = {'conv1_wp': _pack_conv(_conv_weight(next(keys), 3, 3, 3, nb[0]),
                                     _gfactor(nb[0]))}
    blocks = []
    cfg = [(nb[0], nb[1], 1), (nb[1], nb[2], 2), (nb[2], nb[3], 2)]
    for (in_p, out_p, stride) in cfg:
        for i in range(n):
            cin = in_p if i == 0 else out_p
            s = stride if i == 0 else 1
            gin, gout = _gfactor(cin), _gfactor(out_p)
            s1, t1 = _fold_bn(cin, gin)
            s2, t2 = _fold_bn(out_p, gout)
            blk = {
                'equal': cin == out_p, 'stride': s, 'cin': cin, 'cout': out_p,
                'g_out': gout,
                'bn1_scale_p': s1, 'bn1_shift_p': t1,
                'conv1_wp': _pack_conv(_conv_weight(next(keys), 3, 3, cin, out_p), gout),
                'bn2_scale_p': s2, 'bn2_shift_p': t2,
                'conv2_wp': _pack_conv(_conv_weight(next(keys), 3, 3, out_p, out_p), gout),
                'shortcut_wp': (None if cin == out_p else
                                _pack_conv(_conv_weight(next(keys), 1, 1, cin, out_p), gout)),
            }
            blocks.append(blk)
    params['blocks'] = blocks
    params['bn_final_scale_p'], params['bn_final_shift_p'] = _fold_bn(nb[3], _gfactor(nb[3]))
    # nn.Linear: bias zeroed in the module's init loop, weight default init.
    bound = 1.0 / math.sqrt(nb[3])
    params['fc_w'] = jax.random.uniform(next(keys), (nb[3], num_classes),
                                        jnp.float32, -bound, bound)
    params['fc_b'] = jnp.zeros((1, num_classes), jnp.float32)
    return params


# ---------------------------------------------------------------------------
# Forward pass
# ---------------------------------------------------------------------------

def basic_block_forward(blk, act, raw, post_scale, post_shift):
    """act = relu(bn1(x_{i-1})) (NHWC bf16); raw = x_{i-1} (only used when
    equal_in_out).  post_* is the folded BN of the *next* stage, fused into
    conv2's epilogue.  Returns (x_i, relu(bn_next(x_i)))."""
    s, g, cout = blk['stride'], blk['g_out'], blk['cout']
    # conv1 (3x3, stride s) with bn2 + relu fused
    b = conv_bnrelu(act, blk['conv1_wp'], s, blk['bn2_scale_p'],
                    blk['bn2_shift_p'], cout, g)
    # TODO(synk): dropout omitted (dropRate=0.0 -> identity in the reference).
    if blk['equal']:
        return conv2_add_post(b, blk['conv2_wp'], cout, g, post_scale, post_shift,
                              residual=raw)
    # 1x1 stride-s shortcut conv on the pre-activation, fused into the conv2 kernel
    a_sub = act[:, ::s, ::s, :]
    return conv2_add_post(b, blk['conv2_wp'], cout, g, post_scale, post_shift,
                          shortcut=a_sub, shortcut_wp=blk['shortcut_wp'])


def wideresnet_forward(params, x_nchw, is_feat=False):
    # accept NCHW (PyTorch convention), run kernels in NHWC (channels on lanes)
    x = jnp.transpose(x_nchw.astype(jnp.float32), (0, 2, 3, 1))
    blocks = params['blocks']
    # stem conv; block 1's bn1+relu fused as its epilogue (dual output)
    raw, act = conv_first(x, params['conv1_wp'],
                          blocks[0]['bn1_scale_p'], blocks[0]['bn1_shift_p'],
                          blocks[0]['cin'], _gfactor(blocks[0]['cin']))
    for i, blk in enumerate(blocks):
        if i + 1 < len(blocks):
            post_s, post_t = blocks[i + 1]['bn1_scale_p'], blocks[i + 1]['bn1_shift_p']
        else:
            post_s, post_t = params['bn_final_scale_p'], params['bn_final_shift_p']
        raw, act = basic_block_forward(blk, act, raw, post_s, post_t)
    # `act` is relu(bn_final(x)); head does the 8x8 avg-pool + fc
    fea, logits = head_fused(act, params['fc_w'], params['fc_b'])
    return (fea, logits) if is_feat else logits


# ---------------------------------------------------------------------------
# Demo
# ---------------------------------------------------------------------------

if __name__ == "__main__":
    key = jax.random.PRNGKey(0)
    pkey, xkey = jax.random.split(key)

    # depth=10 -> 1 block per group; widen_factor=1; channels [16, 16, 32, 64]
    params = make_wideresnet_params(pkey, depth=10, widen_factor=1, num_classes=10)

    # CIFAR-style input: 3 channels, 32x32 (final 8x8 map matches avg_pool2d(.,8))
    x = jax.random.normal(xkey, (2, 3, 32, 32), dtype=jnp.float32)

    forward = jax.jit(lambda inp: wideresnet_forward(params, inp))
    logits = forward(x)
    jax.block_until_ready(logits)

    assert logits.shape == (2, 10), logits.shape
    assert jnp.all(jnp.isfinite(logits))
    print("KERNEL_OK")
</pallas_src>

<mosaic_0001>
module attributes {stable_mosaic.version = 11 : i64} {
  func.func @_conv_post_kernel(%arg0: i32, %arg1: memref<128x216xbf16, #tpu.memory_space<vmem>>, %arg2: memref<216x128xbf16, #tpu.memory_space<vmem>>, %arg3: memref<1x128xf32, #tpu.memory_space<vmem>>, %arg4: memref<1x128xf32, #tpu.memory_space<vmem>>, %arg5: memref<128x128xbf16, #tpu.memory_space<vmem>>, %arg6: memref<128x128xbf16, #tpu.memory_space<vmem>>) attributes {dimension_semantics = [#tpu.dimension_semantics<parallel>], iteration_bounds = array<i64: 2>, scalar_prefetch = 0 : i64, scratch_operands = 0 : i64, tpu.core_type = #tpu.core_type<tc>, window_params = [{transform_indices = @transform_0, window_bounds = array<i64: 128, 216>}, {pipeline_mode = #tpu.pipeline_mode<synchronous>, transform_indices = @transform_1, window_bounds = array<i64: 216, 128>}, {pipeline_mode = #tpu.pipeline_mode<synchronous>, transform_indices = @transform_2, window_bounds = array<i64: 1, 128>}, {pipeline_mode = #tpu.pipeline_mode<synchronous>, transform_indices = @transform_3, window_bounds = array<i64: 1, 128>}, {transform_indices = @transform_4, window_bounds = array<i64: 128, 128>}, {transform_indices = @transform_5, window_bounds = array<i64: 128, 128>}]} {
    %c0 = arith.constant 0 : index
    %c0_0 = arith.constant 0 : index
    %0 = vector.load %arg1[%c0, %c0_0] : memref<128x216xbf16, #tpu.memory_space<vmem>>, vector<128x216xbf16>
    %c0_1 = arith.constant 0 : index
    %c0_2 = arith.constant 0 : index
    %1 = vector.load %arg2[%c0_1, %c0_2] : memref<216x128xbf16, #tpu.memory_space<vmem>>, vector<216x128xbf16>
    %cst = arith.constant dense<0.000000e+00> : vector<128x128xf32>
    %2 = tpu.matmul %0, %1, %cst {dimension_numbers = #tpu.dot_dimension_numbers<[1], [0], [0], [1], [0, 0, 1, 1], [], []>} : vector<128x216xbf16>, vector<216x128xbf16>, vector<128x128xf32> -> vector<128x128xf32>
    %3 = arith.truncf %2 : vector<128x128xf32> to vector<128x128xbf16>
    %c0_3 = arith.constant 0 : index
    %c0_4 = arith.constant 0 : index
    %4 = vector.load %arg5[%c0_3, %c0_4] : memref<128x128xbf16, #tpu.memory_space<vmem>>, vector<128x128xbf16>
    tpu.vector_store %arg5[%c0_3, %c0_4], %3 {strides = array<i32>} : memref<128x128xbf16, #tpu.memory_space<vmem>>, vector<128x128xbf16>,
    %c0_5 = arith.constant 0 : index
    %c0_6 = arith.constant 0 : index
    %5 = vector.load %arg3[%c0_5, %c0_6] : memref<1x128xf32, #tpu.memory_space<vmem>>, vector<1x128xf32>
    %6 = vector.broadcast %5 : vector<1x128xf32> to vector<128x128xf32>
    %7 = arith.mulf %2, %6 : vector<128x128xf32>
    %c0_7 = arith.constant 0 : index
    %c0_8 = arith.constant 0 : index
    %8 = vector.load %arg4[%c0_7, %c0_8] : memref<1x128xf32, #tpu.memory_space<vmem>>, vector<1x128xf32>
    %9 = vector.broadcast %8 : vector<1x128xf32> to vector<128x128xf32>
    %10 = arith.addf %7, %9 : vector<128x128xf32>
    %cst_9 = arith.constant 0.000000e+00 : f32
    %11 = vector.broadcast %cst_9 : f32 to vector<128x128xf32>
    %12 = arith.maximumf %10, %11 : vector<128x128xf32>
    %13 = arith.truncf %12 : vector<128x128xf32> to vector<128x128xbf16>
    %c0_10 = arith.constant 0 : index
    %c0_11 = arith.constant 0 : index
    %14 = vector.load %arg6[%c0_10, %c0_11] : memref<128x128xbf16, #tpu.memory_space<vmem>>, vector<128x128xbf16>
    tpu.vector_store %arg6[%c0_10, %c0_11], %13 {strides = array<i32>} : memref<128x128xbf16, #tpu.memory_space<vmem>>, vector<128x128xbf16>,
    return
  }
  func.func @transform_0(%arg0: i32) -> (i32, i32) {
    %c0_i32 = arith.constant 0 : i32
    %c0_i32_0 = arith.constant 0 : i32
    return %arg0, %c0_i32 : i32, i32
  }
  func.func @transform_1(%arg0: i32) -> (i32, i32) {
    %c0_i32 = arith.constant 0 : i32
    %c0_i32_0 = arith.constant 0 : i32
    %c0_i32_1 = arith.constant 0 : i32
    return %c0_i32, %c0_i32_0 : i32, i32
  }
  func.func @transform_2(%arg0: i32) -> (i32, i32) {
    %c0_i32 = arith.constant 0 : i32
    %c0_i32_0 = arith.constant 0 : i32
    %c0_i32_1 = arith.constant 0 : i32
    return %c0_i32, %c0_i32_0 : i32, i32
  }
  func.func @transform_3(%arg0: i32) -> (i32, i32) {
    %c0_i32 = arith.constant 0 : i32
    %c0_i32_0 = arith.constant 0 : i32
    %c0_i32_1 = arith.constant 0 : i32
    return %c0_i32, %c0_i32_0 : i32, i32
  }
  func.func @transform_4(%arg0: i32) -> (i32, i32) {
    %c0_i32 = arith.constant 0 : i32
    %c0_i32_0 = arith.constant 0 : i32
    return %arg0, %c0_i32 : i32, i32
  }
  func.func @transform_5(%arg0: i32) -> (i32, i32) {
    %c0_i32 = arith.constant 0 : i32
    %c0_i32_0 = arith.constant 0 : i32
    return %arg0, %c0_i32 : i32, i32
  }
}

module attributes {stable_mosaic.version = 11 : i64} {
  func.func @_conv_bnrelu_kernel(%arg0: i32, %arg1: memref<128x1152xbf16, #tpu.memory_space<vmem>>, %arg2: memref<1152x128xbf16, #tpu.memory_space<vmem>>, %arg3: memref<1x128xf32, #tpu.memory_space<vmem>>, %arg4: memref<1x128xf32, #tpu.memory_space<vmem>>, %arg5: memref<128x128xbf16, #tpu.memory_space<vmem>>) attributes {dimension_semantics = [#tpu.dimension_semantics<parallel>], iteration_bounds = array<i64: 2>, scalar_prefetch = 0 : i64, scratch_operands = 0 : i64, tpu.core_type = #tpu.core_type<tc>, window_params = [{transform_indices = @transform_0, window_bounds = array<i64: 128, 1152>}, {pipeline_mode = #tpu.pipeline_mode<synchronous>, transform_indices = @transform_1, window_bounds = array<i64: 1152, 128>}, {pipeline_mode = #tpu.pipeline_mode<synchronous>, transform_indices = @transform_2, window_bounds = array<i64: 1, 128>}, {pipeline_mode = #tpu.pipeline_mode<synchronous>, transform_indices = @transform_3, window_bounds = array<i64: 1, 128>}, {transform_indices = @transform_4, window_bounds = array<i64: 128, 128>}]} {
    %c0 = arith.constant 0 : index
    %c0_0 = arith.constant 0 : index
    %0 = vector.load %arg1[%c0, %c0_0] : memref<128x1152xbf16, #tpu.memory_space<vmem>>, vector<128x1152xbf16>
    %c0_1 = arith.constant 0 : index
    %c0_2 = arith.constant 0 : index
    %1 = vector.load %arg2[%c0_1, %c0_2] : memref<1152x128xbf16, #tpu.memory_space<vmem>>, vector<1152x128xbf16>
    %cst = arith.constant dense<0.000000e+00> : vector<128x128xf32>
    %2 = tpu.matmul %0, %1, %cst {dimension_numbers = #tpu.dot_dimension_numbers<[1], [0], [0], [1], [0, 0, 1, 1], [], []>} : vector<128x1152xbf16>, vector<1152x128xbf16>, vector<128x128xf32> -> vector<128x128xf32>
    %c0_3 = arith.constant 0 : index
    %c0_4 = arith.constant 0 : index
    %3 = vector.load %arg3[%c0_3, %c0_4] : memref<1x128xf32, #tpu.memory_space<vmem>>, vector<1x128xf32>
    %4 = vector.broadcast %3 : vector<1x128xf32> to vector<128x128xf32>
    %5 = arith.mulf %2, %4 : vector<128x128xf32>
    %c0_5 = arith.constant 0 : index
    %c0_6 = arith.constant 0 : index
    %6 = vector.load %arg4[%c0_5, %c0_6] : memref<1x128xf32, #tpu.memory_space<vmem>>, vector<1x128xf32>
    %7 = vector.broadcast %6 : vector<1x128xf32> to vector<128x128xf32>
    %8 = arith.addf %5, %7 : vector<128x128xf32>
    %cst_7 = arith.constant 0.000000e+00 : f32
    %9 = vector.broadcast %cst_7 : f32 to vector<128x128xf32>
    %10 = arith.maximumf %8, %9 : vector<128x128xf32>
    %11 = arith.truncf %10 : vector<128x128xf32> to vector<128x128xbf16>
    %c0_8 = arith.constant 0 : index
    %c0_9 = arith.constant 0 : index
    %12 = vector.load %arg5[%c0_8, %c0_9] : memref<128x128xbf16, #tpu.memory_space<vmem>>, vector<128x128xbf16>
    tpu.vector_store %arg5[%c0_8, %c0_9], %11 {strides = array<i32>} : memref<128x128xbf16, #tpu.memory_space<vmem>>, vector<128x128xbf16>,
    return
  }
  func.func @transform_0(%arg0: i32) -> (i32, i32) {
    %c0_i32 = arith.constant 0 : i32
    %c0_i32_0 = arith.constant 0 : i32
    return %arg0, %c0_i32 : i32, i32
  }
  func.func @transform_1(%arg0: i32) -> (i32, i32) {
    %c0_i32 = arith.constant 0 : i32
    %c0_i32_0 = arith.constant 0 : i32
    %c0_i32_1 = arith.constant 0 : i32
    return %c0_i32, %c0_i32_0 : i32, i32
  }
  func.func @transform_2(%arg0: i32) -> (i32, i32) {
    %c0_i32 = arith.constant 0 : i32
    %c0_i32_0 = arith.constant 0 : i32
    %c0_i32_1 = arith.constant 0 : i32
    return %c0_i32, %c0_i32_0 : i32, i32
  }
  func.func @transform_3(%arg0: i32) -> (i32, i32) {
    %c0_i32 = arith.constant 0 : i32
    %c0_i32_0 = arith.constant 0 : i32
    %c0_i32_1 = arith.constant 0 : i32
    return %c0_i32, %c0_i32_0 : i32, i32
  }
  func.func @transform_4(%arg0: i32) -> (i32, i32) {
    %c0_i32 = arith.constant 0 : i32
    %c0_i32_0 = arith.constant 0 : i32
    return %arg0, %c0_i32 : i32, i32
  }
}

module attributes {stable_mosaic.version = 11 : i64} {
  func.func @_conv_add_post_kernel(%arg0: i32, %arg1: memref<128x1152xbf16, #tpu.memory_space<vmem>>, %arg2: memref<1152x128xbf16, #tpu.memory_space<vmem>>, %arg3: memref<128x128xbf16, #tpu.memory_space<vmem>>, %arg4: memref<1x128xf32, #tpu.memory_space<vmem>>, %arg5: memref<1x128xf32, #tpu.memory_space<vmem>>, %arg6: memref<128x128xbf16, #tpu.memory_space<vmem>>, %arg7: memref<128x128xbf16, #tpu.memory_space<vmem>>) attributes {dimension_semantics = [#tpu.dimension_semantics<parallel>], iteration_bounds = array<i64: 2>, scalar_prefetch = 0 : i64, scratch_operands = 0 : i64, tpu.core_type = #tpu.core_type<tc>, window_params = [{transform_indices = @transform_0, window_bounds = array<i64: 128, 1152>}, {pipeline_mode = #tpu.pipeline_mode<synchronous>, transform_indices = @transform_1, window_bounds = array<i64: 1152, 128>}, {transform_indices = @transform_2, window_bounds = array<i64: 128, 128>}, {pipeline_mode = #tpu.pipeline_mode<synchronous>, transform_indices = @transform_3, window_bounds = array<i64: 1, 128>}, {pipeline_mode = #tpu.pipeline_mode<synchronous>, transform_indices = @transform_4, window_bounds = array<i64: 1, 128>}, {transform_indices = @transform_5, window_bounds = array<i64: 128, 128>}, {transform_indices = @transform_6, window_bounds = array<i64: 128, 128>}]} {
    %c0 = arith.constant 0 : index
    %c0_0 = arith.constant 0 : index
    %0 = vector.load %arg1[%c0, %c0_0] : memref<128x1152xbf16, #tpu.memory_space<vmem>>, vector<128x1152xbf16>
    %c0_1 = arith.constant 0 : index
    %c0_2 = arith.constant 0 : index
    %1 = vector.load %arg2[%c0_1, %c0_2] : memref<1152x128xbf16, #tpu.memory_space<vmem>>, vector<1152x128xbf16>
    %cst = arith.constant dense<0.000000e+00> : vector<128x128xf32>
    %2 = tpu.matmul %0, %1, %cst {dimension_numbers = #tpu.dot_dimension_numbers<[1], [0], [0], [1], [0, 0, 1, 1], [], []>} : vector<128x1152xbf16>, vector<1152x128xbf16>, vector<128x128xf32> -> vector<128x128xf32>
    %c0_3 = arith.constant 0 : index
    %c0_4 = arith.constant 0 : index
    %3 = vector.load %arg3[%c0_3, %c0_4] : memref<128x128xbf16, #tpu.memory_space<vmem>>, vector<128x128xbf16>
    %4 = arith.extf %3 : vector<128x128xbf16> to vector<128x128xf32>
    %5 = arith.addf %2, %4 : vector<128x128xf32>
    %6 = arith.truncf %5 : vector<128x128xf32> to vector<128x128xbf16>
    %c0_5 = arith.constant 0 : index
    %c0_6 = arith.constant 0 : index
    %7 = vector.load %arg6[%c0_5, %c0_6] : memref<128x128xbf16, #tpu.memory_space<vmem>>, vector<128x128xbf16>
    tpu.vector_store %arg6[%c0_5, %c0_6], %6 {strides = array<i32>} : memref<128x128xbf16, #tpu.memory_space<vmem>>, vector<128x128xbf16>,
    %c0_7 = arith.constant 0 : index
    %c0_8 = arith.constant 0 : index
    %8 = vector.load %arg4[%c0_7, %c0_8] : memref<1x128xf32, #tpu.memory_space<vmem>>, vector<1x128xf32>
    %9 = vector.broadcast %8 : vector<1x128xf32> to vector<128x128xf32>
    %10 = arith.mulf %5, %9 : vector<128x128xf32>
    %c0_9 = arith.constant 0 : index
    %c0_10 = arith.constant 0 : index
    %11 = vector.load %arg5[%c0_9, %c0_10] : memref<1x128xf32, #tpu.memory_space<vmem>>, vector<1x128xf32>
    %12 = vector.broadcast %11 : vector<1x128xf32> to vector<128x128xf32>
    %13 = arith.addf %10, %12 : vector<128x128xf32>
    %cst_11 = arith.constant 0.000000e+00 : f32
    %14 = vector.broadcast %cst_11 : f32 to vector<128x128xf32>
    %15 = arith.maximumf %13, %14 : vector<128x128xf32>
    %16 = arith.truncf %15 : vector<128x128xf32> to vector<128x128xbf16>
    %c0_12 = arith.constant 0 : index
    %c0_13 = arith.constant 0 : index
    %17 = vector.load %arg7[%c0_12, %c0_13] : memref<128x128xbf16, #tpu.memory_space<vmem>>, vector<128x128xbf16>
    tpu.vector_store %arg7[%c0_12, %c0_13], %16 {strides = array<i32>} : memref<128x128xbf16, #tpu.memory_space<vmem>>, vector<128x128xbf16>,
    return
  }
  func.func @transform_0(%arg0: i32) -> (i32, i32) {
    %c0_i32 = arith.constant 0 : i32
    %c0_i32_0 = arith.constant 0 : i32
    return %arg0, %c0_i32 : i32, i32
  }
  func.func @transform_1(%arg0: i32) -> (i32, i32) {
    %c0_i32 = arith.constant 0 : i32
    %c0_i32_0 = arith.constant 0 : i32
    %c0_i32_1 = arith.constant 0 : i32
    return %c0_i32, %c0_i32_0 : i32, i32
  }
  func.func @transform_2(%arg0: i32) -> (i32, i32) {
    %c0_i32 = arith.constant 0 : i32
    %c0_i32_0 = arith.constant 0 : i32
    return %arg0, %c0_i32 : i32, i32
  }
  func.func @transform_3(%arg0: i32) -> (i32, i32) {
    %c0_i32 = arith.constant 0 : i32
    %c0_i32_0 = arith.constant 0 : i32
    %c0_i32_1 = arith.constant 0 : i32
    return %c0_i32, %c0_i32_0 : i32, i32
  }
  func.func @transform_4(%arg0: i32) -> (i32, i32) {
    %c0_i32 = arith.constant 0 : i32
    %c0_i32_0 = arith.constant 0 : i32
    %c0_i32_1 = arith.constant 0 : i32
    return %c0_i32, %c0_i32_0 : i32, i32
  }
  func.func @transform_5(%arg0: i32) -> (i32, i32) {
    %c0_i32 = arith.constant 0 : i32
    %c0_i32_0 = arith.constant 0 : i32
    return %arg0, %c0_i32 : i32, i32
  }
  func.func @transform_6(%arg0: i32) -> (i32, i32) {
    %c0_i32 = arith.constant 0 : i32
    %c0_i32_0 = arith.constant 0 : i32
    return %arg0, %c0_i32 : i32, i32
  }
}

module attributes {stable_mosaic.version = 11 : i64} {
  func.func @_conv_bnrelu_kernel(%arg0: i32, %arg1: memref<64x576xbf16, #tpu.memory_space<vmem>>, %arg2: memref<576x128xbf16, #tpu.memory_space<vmem>>, %arg3: memref<1x128xf32, #tpu.memory_space<vmem>>, %arg4: memref<1x128xf32, #tpu.memory_space<vmem>>, %arg5: memref<64x128xbf16, #tpu.memory_space<vmem>>) attributes {dimension_semantics = [#tpu.dimension_semantics<parallel>], iteration_bounds = array<i64: 2>, scalar_prefetch = 0 : i64, scratch_operands = 0 : i64, tpu.core_type = #tpu.core_type<tc>, window_params = [{transform_indices = @transform_0, window_bounds = array<i64: 64, 576>}, {pipeline_mode = #tpu.pipeline_mode<synchronous>, transform_indices = @transform_1, window_bounds = array<i64: 576, 128>}, {pipeline_mode = #tpu.pipeline_mode<synchronous>, transform_indices = @transform_2, window_bounds = array<i64: 1, 128>}, {pipeline_mode = #tpu.pipeline_mode<synchronous>, transform_indices = @transform_3, window_bounds = array<i64: 1, 128>}, {transform_indices = @transform_4, window_bounds = array<i64: 64, 128>}]} {
    %c0 = arith.constant 0 : index
    %c0_0 = arith.constant 0 : index
    %0 = vector.load %arg1[%c0, %c0_0] : memref<64x576xbf16, #tpu.memory_space<vmem>>, vector<64x576xbf16>
    %c0_1 = arith.constant 0 : index
    %c0_2 = arith.constant 0 : index
    %1 = vector.load %arg2[%c0_1, %c0_2] : memref<576x128xbf16, #tpu.memory_space<vmem>>, vector<576x128xbf16>
    %cst = arith.constant dense<0.000000e+00> : vector<64x128xf32>
    %2 = tpu.matmul %0, %1, %cst {dimension_numbers = #tpu.dot_dimension_numbers<[1], [0], [0], [1], [0, 0, 1, 1], [], []>} : vector<64x576xbf16>, vector<576x128xbf16>, vector<64x128xf32> -> vector<64x128xf32>
    %c0_3 = arith.constant 0 : index
    %c0_4 = arith.constant 0 : index
    %3 = vector.load %arg3[%c0_3, %c0_4] : memref<1x128xf32, #tpu.memory_space<vmem>>, vector<1x128xf32>
    %4 = vector.broadcast %3 : vector<1x128xf32> to vector<64x128xf32>
    %5 = arith.mulf %2, %4 : vector<64x128xf32>
    %c0_5 = arith.constant 0 : index
    %c0_6 = arith.constant 0 : index
    %6 = vector.load %arg4[%c0_5, %c0_6] : memref<1x128xf32, #tpu.memory_space<vmem>>, vector<1x128xf32>
    %7 = vector.broadcast %6 : vector<1x128xf32> to vector<64x128xf32>
    %8 = arith.addf %5, %7 : vector<64x128xf32>
    %cst_7 = arith.constant 0.000000e+00 : f32
    %9 = vector.broadcast %cst_7 : f32 to vector<64x128xf32>
    %10 = arith.maximumf %8, %9 : vector<64x128xf32>
    %11 = arith.truncf %10 : vector<64x128xf32> to vector<64x128xbf16>
    %c0_8 = arith.constant 0 : index
    %c0_9 = arith.constant 0 : index
    %12 = vector.load %arg5[%c0_8, %c0_9] : memref<64x128xbf16, #tpu.memory_space<vmem>>, vector<64x128xbf16>
    tpu.vector_store %arg5[%c0_8, %c0_9], %11 {strides = array<i32>} : memref<64x128xbf16, #tpu.memory_space<vmem>>, vector<64x128xbf16>,
    return
  }
  func.func @transform_0(%arg0: i32) -> (i32, i32) {
    %c0_i32 = arith.constant 0 : i32
    %c0_i32_0 = arith.constant 0 : i32
    return %arg0, %c0_i32 : i32, i32
  }
  func.func @transform_1(%arg0: i32) -> (i32, i32) {
    %c0_i32 = arith.constant 0 : i32
    %c0_i32_0 = arith.constant 0 : i32
    %c0_i32_1 = arith.constant 0 : i32
    return %c0_i32, %c0_i32_0 : i32, i32
  }
  func.func @transform_2(%arg0: i32) -> (i32, i32) {
    %c0_i32 = arith.constant 0 : i32
    %c0_i32_0 = arith.constant 0 : i32
    %c0_i32_1 = arith.constant 0 : i32
    return %c0_i32, %c0_i32_0 : i32, i32
  }
  func.func @transform_3(%arg0: i32) -> (i32, i32) {
    %c0_i32 = arith.constant 0 : i32
    %c0_i32_0 = arith.constant 0 : i32
    %c0_i32_1 = arith.constant 0 : i32
    return %c0_i32, %c0_i32_0 : i32, i32
  }
  func.func @transform_4(%arg0: i32) -> (i32, i32) {
    %c0_i32 = arith.constant 0 : i32
    %c0_i32_0 = arith.constant 0 : i32
    return %arg0, %c0_i32 : i32, i32
  }
}

module attributes {stable_mosaic.version = 11 : i64} {
  func.func @_conv_sc_post_kernel(%arg0: i32, %arg1: memref<64x1152xbf16, #tpu.memory_space<vmem>>, %arg2: memref<1152x128xbf16, #tpu.memory_space<vmem>>, %arg3: memref<64x64xbf16, #tpu.memory_space<vmem>>, %arg4: memref<64x128xbf16, #tpu.memory_space<vmem>>, %arg5: memref<1x128xf32, #tpu.memory_space<vmem>>, %arg6: memref<1x128xf32, #tpu.memory_space<vmem>>, %arg7: memref<64x128xbf16, #tpu.memory_space<vmem>>, %arg8: memref<64x128xbf16, #tpu.memory_space<vmem>>) attributes {dimension_semantics = [#tpu.dimension_semantics<parallel>], iteration_bounds = array<i64: 2>, scalar_prefetch = 0 : i64, scratch_operands = 0 : i64, tpu.core_type = #tpu.core_type<tc>, window_params = [{transform_indices = @transform_0, window_bounds = array<i64: 64, 1152>}, {pipeline_mode = #tpu.pipeline_mode<synchronous>, transform_indices = @transform_1, window_bounds = array<i64: 1152, 128>}, {transform_indices = @transform_2, window_bounds = array<i64: 64, 64>}, {pipeline_mode = #tpu.pipeline_mode<synchronous>, transform_indices = @transform_3, window_bounds = array<i64: 64, 128>}, {pipeline_mode = #tpu.pipeline_mode<synchronous>, transform_indices = @transform_4, window_bounds = array<i64: 1, 128>}, {pipeline_mode = #tpu.pipeline_mode<synchronous>, transform_indices = @transform_5, window_bounds = array<i64: 1, 128>}, {transform_indices = @transform_6, window_bounds = array<i64: 64, 128>}, {transform_indices = @transform_7, window_bounds = array<i64: 64, 128>}]} {
    %c0 = arith.constant 0 : index
    %c0_0 = arith.constant 0 : index
    %0 = vector.load %arg1[%c0, %c0_0] : memref<64x1152xbf16, #tpu.memory_space<vmem>>, vector<64x1152xbf16>
    %c0_1 = arith.constant 0 : index
    %c0_2 = arith.constant 0 : index
    %1 = vector.load %arg2[%c0_1, %c0_2] : memref<1152x128xbf16, #tpu.memory_space<vmem>>, vector<1152x128xbf16>
    %cst = arith.constant dense<0.000000e+00> : vector<64x128xf32>
    %2 = tpu.matmul %0, %1, %cst {dimension_numbers = #tpu.dot_dimension_numbers<[1], [0], [0], [1], [0, 0, 1, 1], [], []>} : vector<64x1152xbf16>, vector<1152x128xbf16>, vector<64x128xf32> -> vector<64x128xf32>
    %c0_3 = arith.constant 0 : index
    %c0_4 = arith.constant 0 : index
    %3 = vector.load %arg3[%c0_3, %c0_4] : memref<64x64xbf16, #tpu.memory_space<vmem>>, vector<64x64xbf16>
    %c0_5 = arith.constant 0 : index
    %c0_6 = arith.constant 0 : index
    %4 = vector.load %arg4[%c0_5, %c0_6] : memref<64x128xbf16, #tpu.memory_space<vmem>>, vector<64x128xbf16>
    %cst_7 = arith.constant dense<0.000000e+00> : vector<64x128xf32>
    %5 = tpu.matmul %3, %4, %cst_7 {dimension_numbers = #tpu.dot_dimension_numbers<[1], [0], [0], [1], [0, 0, 1, 1], [], []>} : vector<64x64xbf16>, vector<64x128xbf16>, vector<64x128xf32> -> vector<64x128xf32>
    %6 = arith.addf %2, %5 : vector<64x128xf32>
    %7 = arith.truncf %6 : vector<64x128xf32> to vector<64x128xbf16>
    %c0_8 = arith.constant 0 : index
    %c0_9 = arith.constant 0 : index
    %8 = vector.load %arg7[%c0_8, %c0_9] : memref<64x128xbf16, #tpu.memory_space<vmem>>, vector<64x128xbf16>
    tpu.vector_store %arg7[%c0_8, %c0_9], %7 {strides = array<i32>} : memref<64x128xbf16, #tpu.memory_space<vmem>>, vector<64x128xbf16>,
    %c0_10 = arith.constant 0 : index
    %c0_11 = arith.constant 0 : index
    %9 = vector.load %arg5[%c0_10, %c0_11] : memref<1x128xf32, #tpu.memory_space<vmem>>, vector<1x128xf32>
    %10 = vector.broadcast %9 : vector<1x128xf32> to vector<64x128xf32>
    %11 = arith.mulf %6, %10 : vector<64x128xf32>
    %c0_12 = arith.constant 0 : index
    %c0_13 = arith.constant 0 : index
    %12 = vector.load %arg6[%c0_12, %c0_13] : memref<1x128xf32, #tpu.memory_space<vmem>>, vector<1x128xf32>
    %13 = vector.broadcast %12 : vector<1x128xf32> to vector<64x128xf32>
    %14 = arith.addf %11, %13 : vector<64x128xf32>
    %cst_14 = arith.constant 0.000000e+00 : f32
    %15 = vector.broadcast %cst_14 : f32 to vector<64x128xf32>
    %16 = arith.maximumf %14, %15 : vector<64x128xf32>
    %17 = arith.truncf %16 : vector<64x128xf32> to vector<64x128xbf16>
    %c0_15 = arith.constant 0 : index
    %c0_16 = arith.constant 0 : index
    %18 = vector.load %arg8[%c0_15, %c0_16] : memref<64x128xbf16, #tpu.memory_space<vmem>>, vector<64x128xbf16>
    tpu.vector_store %arg8[%c0_15, %c0_16], %17 {strides = array<i32>} : memref<64x128xbf16, #tpu.memory_space<vmem>>, vector<64x128xbf16>,
    return
  }
  func.func @transform_0(%arg0: i32) -> (i32, i32) {
    %c0_i32 = arith.constant 0 : i32
    %c0_i32_0 = arith.constant 0 : i32
    return %arg0, %c0_i32 : i32, i32
  }
  func.func @transform_1(%arg0: i32) -> (i32, i32) {
    %c0_i32 = arith.constant 0 : i32
    %c0_i32_0 = arith.constant 0 : i32
    %c0_i32_1 = arith.constant 0 : i32
    return %c0_i32, %c0_i32_0 : i32, i32
  }
  func.func @transform_2(%arg0: i32) -> (i32, i32) {
    %c0_i32 = arith.constant 0 : i32
    %c0_i32_0 = arith.constant 0 : i32
    return %arg0, %c0_i32 : i32, i32
  }
  func.func @transform_3(%arg0: i32) -> (i32, i32) {
    %c0_i32 = arith.constant 0 : i32
    %c0_i32_0 = arith.constant 0 : i32
    %c0_i32_1 = arith.constant 0 : i32
    return %c0_i32, %c0_i32_0 : i32, i32
  }
  func.func @transform_4(%arg0: i32) -> (i32, i32) {
    %c0_i32 = arith.constant 0 : i32
    %c0_i32_0 = arith.constant 0 : i32
    %c0_i32_1 = arith.constant 0 : i32
    return %c0_i32, %c0_i32_0 : i32, i32
  }
  func.func @transform_5(%arg0: i32) -> (i32, i32) {
    %c0_i32 = arith.constant 0 : i32
    %c0_i32_0 = arith.constant 0 : i32
    %c0_i32_1 = arith.constant 0 : i32
    return %c0_i32, %c0_i32_0 : i32, i32
  }
  func.func @transform_6(%arg0: i32) -> (i32, i32) {
    %c0_i32 = arith.constant 0 : i32
    %c0_i32_0 = arith.constant 0 : i32
    return %arg0, %c0_i32 : i32, i32
  }
  func.func @transform_7(%arg0: i32) -> (i32, i32) {
    %c0_i32 = arith.constant 0 : i32
    %c0_i32_0 = arith.constant 0 : i32
    return %arg0, %c0_i32 : i32, i32
  }
}

module attributes {stable_mosaic.version = 11 : i64} {
  func.func @_conv_bnrelu_kernel(%arg0: i32, %arg1: memref<32x576xbf16, #tpu.memory_space<vmem>>, %arg2: memref<576x128xbf16, #tpu.memory_space<vmem>>, %arg3: memref<1x128xf32, #tpu.memory_space<vmem>>, %arg4: memref<1x128xf32, #tpu.memory_space<vmem>>, %arg5: memref<32x128xbf16, #tpu.memory_space<vmem>>) attributes {dimension_semantics = [#tpu.dimension_semantics<parallel>], iteration_bounds = array<i64: 2>, scalar_prefetch = 0 : i64, scratch_operands = 0 : i64, tpu.core_type = #tpu.core_type<tc>, window_params = [{transform_indices = @transform_0, window_bounds = array<i64: 32, 576>}, {pipeline_mode = #tpu.pipeline_mode<synchronous>, transform_indices = @transform_1, window_bounds = array<i64: 576, 128>}, {pipeline_mode = #tpu.pipeline_mode<synchronous>, transform_indices = @transform_2, window_bounds = array<i64: 1, 128>}, {pipeline_mode = #tpu.pipeline_mode<synchronous>, transform_indices = @transform_3, window_bounds = array<i64: 1, 128>}, {transform_indices = @transform_4, window_bounds = array<i64: 32, 128>}]} {
    %c0 = arith.constant 0 : index
    %c0_0 = arith.constant 0 : index
    %0 = vector.load %arg1[%c0, %c0_0] : memref<32x576xbf16, #tpu.memory_space<vmem>>, vector<32x576xbf16>
    %c0_1 = arith.constant 0 : index
    %c0_2 = arith.constant 0 : index
    %1 = vector.load %arg2[%c0_1, %c0_2] : memref<576x128xbf16, #tpu.memory_space<vmem>>, vector<576x128xbf16>
    %cst = arith.constant dense<0.000000e+00> : vector<32x128xf32>
    %2 = tpu.matmul %0, %1, %cst {dimension_numbers = #tpu.dot_dimension_numbers<[1], [0], [0], [1], [0, 0, 1, 1], [], []>} : vector<32x576xbf16>, vector<576x128xbf16>, vector<32x128xf32> -> vector<32x128xf32>
    %c0_3 = arith.constant 0 : index
    %c0_4 = arith.constant 0 : index
    %3 = vector.load %arg3[%c0_3, %c0_4] : memref<1x128xf32, #tpu.memory_space<vmem>>, vector<1x128xf32>
    %4 = vector.broadcast %3 : vector<1x128xf32> to vector<32x128xf32>
    %5 = arith.mulf %2, %4 : vector<32x128xf32>
    %c0_5 = arith.constant 0 : index
    %c0_6 = arith.constant 0 : index
    %6 = vector.load %arg4[%c0_5, %c0_6] : memref<1x128xf32, #tpu.memory_space<vmem>>, vector<1x128xf32>
    %7 = vector.broadcast %6 : vector<1x128xf32> to vector<32x128xf32>
    %8 = arith.addf %5, %7 : vector<32x128xf32>
    %cst_7 = arith.constant 0.000000e+00 : f32
    %9 = vector.broadcast %cst_7 : f32 to vector<32x128xf32>
    %10 = arith.maximumf %8, %9 : vector<32x128xf32>
    %11 = arith.truncf %10 : vector<32x128xf32> to vector<32x128xbf16>
    %c0_8 = arith.constant 0 : index
    %c0_9 = arith.constant 0 : index
    %12 = vector.load %arg5[%c0_8, %c0_9] : memref<32x128xbf16, #tpu.memory_space<vmem>>, vector<32x128xbf16>
    tpu.vector_store %arg5[%c0_8, %c0_9], %11 {strides = array<i32>} : memref<32x128xbf16, #tpu.memory_space<vmem>>, vector<32x128xbf16>,
    return
  }
  func.func @transform_0(%arg0: i32) -> (i32, i32) {
    %c0_i32 = arith.constant 0 : i32
    %c0_i32_0 = arith.constant 0 : i32
    return %arg0, %c0_i32 : i32, i32
  }
  func.func @transform_1(%arg0: i32) -> (i32, i32) {
    %c0_i32 = arith.constant 0 : i32
    %c0_i32_0 = arith.constant 0 : i32
    %c0_i32_1 = arith.constant 0 : i32
    return %c0_i32, %c0_i32_0 : i32, i32
  }
  func.func @transform_2(%arg0: i32) -> (i32, i32) {
    %c0_i32 = arith.constant 0 : i32
    %c0_i32_0 = arith.constant 0 : i32
    %c0_i32_1 = arith.constant 0 : i32
    return %c0_i32, %c0_i32_0 : i32, i32
  }
  func.func @transform_3(%arg0: i32) -> (i32, i32) {
    %c0_i32 = arith.constant 0 : i32
    %c0_i32_0 = arith.constant 0 : i32
    %c0_i32_1 = arith.constant 0 : i32
    return %c0_i32, %c0_i32_0 : i32, i32
  }
  func.func @transform_4(%arg0: i32) -> (i32, i32) {
    %c0_i32 = arith.constant 0 : i32
    %c0_i32_0 = arith.constant 0 : i32
    return %arg0, %c0_i32 : i32, i32
  }
}

module attributes {stable_mosaic.version = 11 : i64} {
  func.func @_head_kernel(%arg0: memref<2x64x64xbf16, #tpu.memory_space<vmem>>, %arg1: memref<64x10xf32, #tpu.memory_space<vmem>>, %arg2: memref<1x10xf32, #tpu.memory_space<vmem>>, %arg3: memref<2x64xf32, #tpu.memory_space<vmem>>, %arg4: memref<2x10xf32, #tpu.memory_space<vmem>>) attributes {dimension_semantics = [], scalar_prefetch = 0 : i64, scratch_operands = 0 : i64, tpu.core_type = #tpu.core_type<tc>} {
    %c0 = arith.constant 0 : index
    %c0_0 = arith.constant 0 : index
    %c0_1 = arith.constant 0 : index
    %0 = vector.load %arg0[%c0, %c0_0, %c0_1] : memref<2x64x64xbf16, #tpu.memory_space<vmem>>, vector<2x64x64xbf16>
    %1 = arith.extf %0 : vector<2x64x64xbf16> to vector<2x64x64xf32>
    %cst = arith.constant dense<0.000000e+00> : vector<2x64xf32>
    %2 = vector.multi_reduction <add>, %1, %cst [1] : vector<2x64x64xf32> to vector<2x64xf32>
    %cst_2 = arith.constant 6.400000e+01 : f32
    %3 = vector.broadcast %cst_2 : f32 to vector<2x64xf32>
    %4 = arith.divf %2, %3 : vector<2x64xf32>
    %c0_3 = arith.constant 0 : index
    %c0_4 = arith.constant 0 : index
    %5 = vector.load %arg3[%c0_3, %c0_4] : memref<2x64xf32, #tpu.memory_space<vmem>>, vector<2x64xf32>
    tpu.vector_store %arg3[%c0_3, %c0_4], %4 {strides = array<i32>} : memref<2x64xf32, #tpu.memory_space<vmem>>, vector<2x64xf32>,
    %c0_5 = arith.constant 0 : index
    %c0_6 = arith.constant 0 : index
    %6 = vector.load %arg1[%c0_5, %c0_6] : memref<64x10xf32, #tpu.memory_space<vmem>>, vector<64x10xf32>
    %cst_7 = arith.constant dense<0.000000e+00> : vector<2x10xf32>
    %7 = tpu.matmul %4, %6, %cst_7 {dimension_numbers = #tpu.dot_dimension_numbers<[1], [0], [0], [1], [0, 0, 1, 1], [], []>} : vector<2x64xf32>, vector<64x10xf32>, vector<2x10xf32> -> vector<2x10xf32>
    %c0_8 = arith.constant 0 : index
    %c0_9 = arith.constant 0 : index
    %8 = vector.load %arg2[%c0_8, %c0_9] : memref<1x10xf32, #tpu.memory_space<vmem>>, vector<1x10xf32>
    %9 = vector.broadcast %8 : vector<1x10xf32> to vector<2x10xf32>
    %10 = arith.addf %7, %9 : vector<2x10xf32>
    %c0_10 = arith.constant 0 : index
    %c0_11 = arith.constant 0 : index
    %11 = vector.load %arg4[%c0_10, %c0_11] : memref<2x10xf32, #tpu.memory_space<vmem>>, vector<2x10xf32>
    tpu.vector_store %arg4[%c0_10, %c0_11], %10 {strides = array<i32>} : memref<2x10xf32, #tpu.memory_space<vmem>>, vector<2x10xf32>,
    return
  }
}

module attributes {stable_mosaic.version = 11 : i64} {
  func.func @_conv_sc_post_kernel(%arg0: i32, %arg1: memref<32x1152xbf16, #tpu.memory_space<vmem>>, %arg2: memref<1152x128xbf16, #tpu.memory_space<vmem>>, %arg3: memref<32x64xbf16, #tpu.memory_space<vmem>>, %arg4: memref<64x128xbf16, #tpu.memory_space<vmem>>, %arg5: memref<1x128xf32, #tpu.memory_space<vmem>>, %arg6: memref<1x128xf32, #tpu.memory_space<vmem>>, %arg7: memref<32x128xbf16, #tpu.memory_space<vmem>>, %arg8: memref<32x128xbf16, #tpu.memory_space<vmem>>) attributes {dimension_semantics = [#tpu.dimension_semantics<parallel>], iteration_bounds = array<i64: 2>, scalar_prefetch = 0 : i64, scratch_operands = 0 : i64, tpu.core_type = #tpu.core_type<tc>, window_params = [{transform_indices = @transform_0, window_bounds = array<i64: 32, 1152>}, {pipeline_mode = #tpu.pipeline_mode<synchronous>, transform_indices = @transform_1, window_bounds = array<i64: 1152, 128>}, {transform_indices = @transform_2, window_bounds = array<i64: 32, 64>}, {pipeline_mode = #tpu.pipeline_mode<synchronous>, transform_indices = @transform_3, window_bounds = array<i64: 64, 128>}, {pipeline_mode = #tpu.pipeline_mode<synchronous>, transform_indices = @transform_4, window_bounds = array<i64: 1, 128>}, {pipeline_mode = #tpu.pipeline_mode<synchronous>, transform_indices = @transform_5, window_bounds = array<i64: 1, 128>}, {transform_indices = @transform_6, window_bounds = array<i64: 32, 128>}, {transform_indices = @transform_7, window_bounds = array<i64: 32, 128>}]} {
    %c0 = arith.constant 0 : index
    %c0_0 = arith.constant 0 : index
    %0 = vector.load %arg1[%c0, %c0_0] : memref<32x1152xbf16, #tpu.memory_space<vmem>>, vector<32x1152xbf16>
    %c0_1 = arith.constant 0 : index
    %c0_2 = arith.constant 0 : index
    %1 = vector.load %arg2[%c0_1, %c0_2] : memref<1152x128xbf16, #tpu.memory_space<vmem>>, vector<1152x128xbf16>
    %cst = arith.constant dense<0.000000e+00> : vector<32x128xf32>
    %2 = tpu.matmul %0, %1, %cst {dimension_numbers = #tpu.dot_dimension_numbers<[1], [0], [0], [1], [0, 0, 1, 1], [], []>} : vector<32x1152xbf16>, vector<1152x128xbf16>, vector<32x128xf32> -> vector<32x128xf32>
    %c0_3 = arith.constant 0 : index
    %c0_4 = arith.constant 0 : index
    %3 = vector.load %arg3[%c0_3, %c0_4] : memref<32x64xbf16, #tpu.memory_space<vmem>>, vector<32x64xbf16>
    %c0_5 = arith.constant 0 : index
    %c0_6 = arith.constant 0 : index
    %4 = vector.load %arg4[%c0_5, %c0_6] : memref<64x128xbf16, #tpu.memory_space<vmem>>, vector<64x128xbf16>
    %cst_7 = arith.constant dense<0.000000e+00> : vector<32x128xf32>
    %5 = tpu.matmul %3, %4, %cst_7 {dimension_numbers = #tpu.dot_dimension_numbers<[1], [0], [0], [1], [0, 0, 1, 1], [], []>} : vector<32x64xbf16>, vector<64x128xbf16>, vector<32x128xf32> -> vector<32x128xf32>
    %6 = arith.addf %2, %5 : vector<32x128xf32>
    %7 = arith.truncf %6 : vector<32x128xf32> to vector<32x128xbf16>
    %c0_8 = arith.constant 0 : index
    %c0_9 = arith.constant 0 : index
    %8 = vector.load %arg7[%c0_8, %c0_9] : memref<32x128xbf16, #tpu.memory_space<vmem>>, vector<32x128xbf16>
    tpu.vector_store %arg7[%c0_8, %c0_9], %7 {strides = array<i32>} : memref<32x128xbf16, #tpu.memory_space<vmem>>, vector<32x128xbf16>,
    %c0_10 = arith.constant 0 : index
    %c0_11 = arith.constant 0 : index
    %9 = vector.load %arg5[%c0_10, %c0_11] : memref<1x128xf32, #tpu.memory_space<vmem>>, vector<1x128xf32>
    %10 = vector.broadcast %9 : vector<1x128xf32> to vector<32x128xf32>
    %11 = arith.mulf %6, %10 : vector<32x128xf32>
    %c0_12 = arith.constant 0 : index
    %c0_13 = arith.constant 0 : index
    %12 = vector.load %arg6[%c0_12, %c0_13] : memref<1x128xf32, #tpu.memory_space<vmem>>, vector<1x128xf32>
    %13 = vector.broadcast %12 : vector<1x128xf32> to vector<32x128xf32>
    %14 = arith.addf %11, %13 : vector<32x128xf32>
    %cst_14 = arith.constant 0.000000e+00 : f32
    %15 = vector.broadcast %cst_14 : f32 to vector<32x128xf32>
    %16 = arith.maximumf %14, %15 : vector<32x128xf32>
    %17 = arith.truncf %16 : vector<32x128xf32> to vector<32x128xbf16>
    %c0_15 = arith.constant 0 : index
    %c0_16 = arith.constant 0 : index
    %18 = vector.load %arg8[%c0_15, %c0_16] : memref<32x128xbf16, #tpu.memory_space<vmem>>, vector<32x128xbf16>
    tpu.vector_store %arg8[%c0_15, %c0_16], %17 {strides = array<i32>} : memref<32x128xbf16, #tpu.memory_space<vmem>>, vector<32x128xbf16>,
    return
  }
  func.func @transform_0(%arg0: i32) -> (i32, i32) {
    %c0_i32 = arith.constant 0 : i32
    %c0_i32_0 = arith.constant 0 : i32
    return %arg0, %c0_i32 : i32, i32
  }
  func.func @transform_1(%arg0: i32) -> (i32, i32) {
    %c0_i32 = arith.constant 0 : i32
    %c0_i32_0 = arith.constant 0 : i32
    %c0_i32_1 = arith.constant 0 : i32
    return %c0_i32, %c0_i32_0 : i32, i32
  }
  func.func @transform_2(%arg0: i32) -> (i32, i32) {
    %c0_i32 = arith.constant 0 : i32
    %c0_i32_0 = arith.constant 0 : i32
    return %arg0, %c0_i32 : i32, i32
  }
  func.func @transform_3(%arg0: i32) -> (i32, i32) {
    %c0_i32 = arith.constant 0 : i32
    %c0_i32_0 = arith.constant 0 : i32
    %c0_i32_1 = arith.constant 0 : i32
    return %c0_i32, %c0_i32_0 : i32, i32
  }
  func.func @transform_4(%arg0: i32) -> (i32, i32) {
    %c0_i32 = arith.constant 0 : i32
    %c0_i32_0 = arith.constant 0 : i32
    %c0_i32_1 = arith.constant 0 : i32
    return %c0_i32, %c0_i32_0 : i32, i32
  }
  func.func @transform_5(%arg0: i32) -> (i32, i32) {
    %c0_i32 = arith.constant 0 : i32
    %c0_i32_0 = arith.constant 0 : i32
    %c0_i32_1 = arith.constant 0 : i32
    return %c0_i32, %c0_i32_0 : i32, i32
  }
  func.func @transform_6(%arg0: i32) -> (i32, i32) {
    %c0_i32 = arith.constant 0 : i32
    %c0_i32_0 = arith.constant 0 : i32
    return %arg0, %c0_i32 : i32, i32
  }
  func.func @transform_7(%arg0: i32) -> (i32, i32) {
    %c0_i32 = arith.constant 0 : i32
    %c0_i32_0 = arith.constant 0 : i32
    return %arg0, %c0_i32 : i32, i32
  }
}

</mosaic_0001>

<bundles_post_ra>
// kernel: _lambda_.8
= control target key start
LH: loop header
LB: loop body
LE: loop exit
PB: predicated region body
PF: predicated region fallthrough
CT: control target
= control target key end

     0   :  { %s1103_s18 = smov 0   ;;  %s1279_s0 = inlined_call_operand.vmem [shape: bf16[256,216], index: 0, kind: input, shape index: {}]   ;;  %s1280_s1 = inlined_call_operand.vmem [shape: bf16[216,128], index: 1, kind: input, shape index: {}]   ;;  %s1281_s2 = inlined_call_operand.vmem [shape: f32[1,128], index: 2, kind: input, shape index: {}]   ;;  %s1282_s3 = inlined_call_operand.vmem [shape: f32[1,128], index: 3, kind: input, shape index: {}]   ;;  %s1283_s4 = inlined_call_operand.vmem [shape: bf16[256,128], index: 4, kind: output, shape index: {0}]   ;;  %s1284_s5 = inlined_call_operand.vmem [shape: bf16[256,128], index: 5, kind: output, shape index: {1}]  }
   0x1 LB: > { %s779_s19 = sadd.s32 4294967295, %s1071_s18   ;;  %p783_p0 = scmp.ge.s32.totalorder %s1071_s18, 1  ;;  %s1071_s18 = sphi %s1103_s18, %s16_s18  }
   0x2   : > { %p192_p1 = scmp.lt.s32.totalorder %s1071_s18, 3 }
   0x4   : > { %p193_p2 = pnand %p783_p0, %p192_p1 }
   0x5   : > { %s784_s26 = sshll.u32 (!%p193_p2), %s779_s19, 4 }
   0x6   : > { %196 = sbr.rel (%p193_p2) target bundleno = 249 (0xf9), region = 36  ;;  %p227_p3 = scmp.lt.s32.totalorder (!%p193_p2), %s784_s26, 31 }
   0xb   : > { %v941_v0 = vld [vmem:[%s1280_s1 + $0x38] sm:$0xff]  ;;  %v288_v1 = vld [vmem:[%s1280_s1 + $0x68] sm:$0xf]  ;;  %vm467_vm0 = vcmask 1043456   ;;  %v940_v3 = vld [vmem:[%s1280_s1 + $0x30] sm:$0xff]  ;;  %s1286_s26 = smov (!%p227_p3, %s784_s26), 31 }
   0xc   : > { %v414_v2 = vunpack.c.l.b16 %v288_v1  ;;  %471 = vmatpush.bf16.msra.mxu0 %v941_v0  ;;  %1041 = vmatpush.bf16.msra.mxu2 %v941_v0  ;;  %v946_v6 = vld [vmem:[%s1280_s1 + $0x60] sm:$0xff]  ;;  %v939_v7 = vld [vmem:[%s1280_s1 + $0x28] sm:$0xff]  ;;  %v945_v8 = vld [vmem:[%s1280_s1 + $0x58] sm:$0xff]  ;;  %s917_s14 = sshll.u32 %s1286_s26, 3  ;;  %vm442_vm1 = vcmask 719872   ;;  %s788_s9 = sshll.u32 %s1286_s26, 2 }
   0xd   : > { %v938_v9 = vld [vmem:[%s1280_s1 + $0x20] sm:$0xff]  ;;  %v944_v10 = vld [vmem:[%s1280_s1 + $0x50] sm:$0xff]  ;;  %v937_v11 = vld [vmem:[%s1280_s1 + $0x18] sm:$0xff]  ;;  %s1150_s22 = scalar_lea.vmem %s1279_s0, %s917_s14  ;;  %s1218_s12 = scalar_lea.vmem %s1283_s4, %s788_s9 }
   0xe   : > { %v428_v4 = vpack.c.b16 %v414_v2, %v414_v2  ;;  %v943_v12 = vld [vmem:[%s1280_s1 + $0x48] sm:$0xff]  ;;  %v936_v13 = vld [vmem:[%s1280_s1 + $0x10] sm:$0xff]  ;;  %v942_v14 = vld [vmem:[%s1280_s1 + $0x40] sm:$0xff]  ;;  %s1229_s14 = scalar_lea.vmem %s1284_s5, %s788_s9 }
   0xf   : > { %v935_v15 = vld [vmem:[%s1280_s1 + $0x8] sm:$0xff]  ;;  %v918_v16 = vld [vmem:[%s1150_s22 + $0x4] sm:$0xf]  ;;  %v928_v18 = vld [vmem:[%s1150_s22 + $0x54] sm:$0xf] }
  0x10   : > { %v469_v5 = vsel %vm467_vm0, %v428_v4, 0  ;;  %472 = vmatpush.bf16.msra.mxu0 %v940_v3  ;;  %1042 = vmatpush.bf16.msra.mxu2 %v940_v3  ;;  %v795_v17 = vld [vmem:[%s1150_s22 + $0x8] sm:$0xf0]  ;;  %v835_v19 = vld [vmem:[%s1150_s22 + $0x58] sm:$0xf0]  ;;  %v934_v21 = vld [vmem:[%s1280_s1] sm:$0xff] }
  0x11   : > { %522 = vmatpush.bf16.msra.mxu1 %v469_v5  ;;  %1049 = vmatpush.bf16.msra.mxu3 %v469_v5  ;;  %v798_v20 = vor.u32 %v918_v16, %v795_v17  ;;  %v793_v22 = vld [vmem:[%s1150_s22] sm:$0xf]  ;;  %v919_v23 = vld [vmem:[%s1150_s22 + $0x4] sm:$0xf0]  ;;  %v838_v24 = vor.u32 %v928_v18, %v835_v19  ;;  %v920_v29 = vld [vmem:[%s1150_s22 + $0x14] sm:$0xf] }
  0x12   : > { %v825_v25 = vld [vmem:[%s1150_s22 + $0x40] sm:$0xf]  ;;  %v927_v26 = vld [vmem:[%s1150_s22 + $0x44] sm:$0xf0]  ;;  %v794_v27 = vor.u32 %v919_v23, %v793_v22  ;;  %v803_v30 = vld [vmem:[%s1150_s22 + $0x18] sm:$0xf0] }
  0x13   : > { %v826_v28 = vor.u32 %v927_v26, %v825_v25  ;;  %v930_v31 = vld [vmem:[%s1150_s22 + $0x64] sm:$0xf]  ;;  %v843_v32 = vld [vmem:[%s1150_s22 + $0x68] sm:$0xf0]  ;;  %v806_v33 = vor.u32 %v920_v29, %v803_v30  ;;  %v801_v34 = vld [vmem:[%s1150_s22 + $0x10] sm:$0xf] }
  0x14   : > { %473 = vmatpush.bf16.msra.mxu0 %v939_v7  ;;  %1043 = vmatpush.bf16.msra.mxu2 %v939_v7  ;;  %v921_v35 = vld [vmem:[%s1150_s22 + $0x14] sm:$0xf0]  ;;  %v846_v36 = vor.u32 %v930_v31, %v843_v32  ;;  %v833_v37 = vld [vmem:[%s1150_s22 + $0x50] sm:$0xf]  ;;  %v922_v41 = vld [vmem:[%s1150_s22 + $0x24] sm:$0xf] }
  0x15   : > { %523 = vmatpush.bf16.msra.mxu1 %v946_v6  ;;  %1050 = vmatpush.bf16.msra.mxu3 %v946_v6  ;;  %v929_v38 = vld [vmem:[%s1150_s22 + $0x54] sm:$0xf0]  ;;  %v802_v39 = vor.u32 %v921_v35, %v801_v34  ;;  %v811_v42 = vld [vmem:[%s1150_s22 + $0x28] sm:$0xf0]  ;;  %v932_v43 = vld [vmem:[%s1150_s22 + $0x74] sm:$0xf] }
  0x16   : > { %v834_v40 = vor.u32 %v929_v38, %v833_v37  ;;  %v851_v44 = vld [vmem:[%s1150_s22 + $0x78] sm:$0xf0]  ;;  %v814_v45 = vor.u32 %v922_v41, %v811_v42  ;;  %v809_v46 = vld [vmem:[%s1150_s22 + $0x20] sm:$0xf]  ;;  %v923_v47 = vld [vmem:[%s1150_s22 + $0x24] sm:$0xf0] }
  0x17   : > { %v854_v48 = vor.u32 %v932_v43, %v851_v44  ;;  %v841_v49 = vld [vmem:[%s1150_s22 + $0x60] sm:$0xf]  ;;  %v931_v50 = vld [vmem:[%s1150_s22 + $0x64] sm:$0xf0]  ;;  %v810_v51 = vor.u32 %v923_v47, %v809_v46  ;;  %v924_v53 = vld [vmem:[%s1150_s22 + $0x34] sm:$0xf] }
  0x18   : > { %474 = vmatpush.bf16.msra.mxu0 %v938_v9  ;;  %1044 = vmatpush.bf16.msra.mxu2 %v938_v9  ;;  %v842_v52 = vor.u32 %v931_v50, %v841_v49  ;;  %v819_v54 = vld [vmem:[%s1150_s22 + $0x38] sm:$0xf0]  ;;  %v817_v56 = vld [vmem:[%s1150_s22 + $0x30] sm:$0xf]  ;;  %v925_v57 = vld [vmem:[%s1150_s22 + $0x34] sm:$0xf0] }
  0x19   : > { %524 = vmatpush.bf16.msra.mxu1 %v945_v8  ;;  %1051 = vmatpush.bf16.msra.mxu3 %v945_v8  ;;  %v822_v55 = vor.u32 %v924_v53, %v819_v54  ;;  %v849_v58 = vld [vmem:[%s1150_s22 + $0x70] sm:$0xf]  ;;  %v933_v59 = vld [vmem:[%s1150_s22 + $0x74] sm:$0xf0]  ;;  %v818_v60 = vor.u32 %v925_v57, %v817_v56  ;;  %v926_v62 = vld [vmem:[%s1150_s22 + $0x44] sm:$0xf] }
  0x1a   : > { %v850_v61 = vor.u32 %v933_v59, %v849_v58  ;;  %v827_v63 = vld [vmem:[%s1150_s22 + $0x48] sm:$0xf0]  ;;  %v1204_v4 = vld [vmem:[%s1281_s2] ss:$0 sm:$0xff] }
  0x1b   : > { %v830_v0 = vor.u32 %v926_v62, %v827_v63  ;;  %v1210_v7 = vld [vmem:[%s1282_s3] ss:$0 sm:$0xff] }
  0x1c   : > { %475 = vmatpush.bf16.msra.mxu0 %v937_v11  ;;  %1045 = vmatpush.bf16.msra.mxu2 %v937_v11 }
  0x1d   : > { %525 = vmatpush.bf16.msra.mxu1 %v944_v10  ;;  %1052 = vmatpush.bf16.msra.mxu3 %v944_v10 }
  0x20   : > { %476 = vmatpush.bf16.msra.mxu0 %v936_v13  ;;  %1046 = vmatpush.bf16.msra.mxu2 %v936_v13 }
  0x21   : > { %526 = vmatpush.bf16.msra.mxu1 %v943_v12  ;;  %1053 = vmatpush.bf16.msra.mxu3 %v943_v12 }
  0x24   : > { %477 = vmatpush.bf16.msra.mxu0 %v935_v15  ;;  %1047 = vmatpush.bf16.msra.mxu2 %v935_v15 }
  0x25   : > { %527 = vmatpush.bf16.msra.mxu1 %v942_v14  ;;  %1054 = vmatpush.bf16.msra.mxu3 %v942_v14 }
  0x28   : > { %907 = vmatmul.msk.bf16.vlgmr.msra.gmra.mxu1 %vm442_vm1, %v798_v20  ;;  %478 = vmatpush.bf16.msra.mxu0 %v934_v21 }
  0x29   : > { %912 = vmatmul.msk.bf16.vlgmr.msra.gmra.mxu3 %vm442_vm1, %v838_v24  ;;  %1048 = vmatpush.bf16.msra.mxu2 %v934_v21 }
  0x2b   : > { %479 = vmatmul.bf16.vlgmr.msra.gmra.mxu0 %v794_v27 }
  0x2c   : > { %499 = vmatmul.bf16.vlgmr.msra.gmra.mxu2 %v826_v28 }
  0x38   : > { %908 = vmatmul.msk.bf16.gmra.mxu1 %vm442_vm1, %v806_v33 }
  0x39   : > { %913 = vmatmul.msk.bf16.gmra.mxu3 %vm442_vm1, %v846_v36 }
  0x3b   : > { %484 = vmatmul.bf16.gmra.mxu0 %v802_v39 }
  0x3c   : > { %504 = vmatmul.bf16.gmra.mxu2 %v834_v40 }
  0x48   : > { %909 = vmatmul.msk.bf16.gmra.mxu1 %vm442_vm1, %v814_v45 }
  0x49   : > { %914 = vmatmul.msk.bf16.gmra.mxu3 %vm442_vm1, %v854_v48 }
  0x4b   : > { %489 = vmatmul.bf16.gmra.mxu0 %v810_v51 }
  0x4c   : > { %509 = vmatmul.bf16.gmra.mxu2 %v842_v52 }
  0x58   : > { %910 = vmatmul.msk.bf16.gmra.mxu1 %vm442_vm1, %v822_v55 }
  0x5b   : > { %494 = vmatmul.bf16.gmra.mxu0 %v818_v60 }
  0x5c   : > { %514 = vmatmul.bf16.gmra.mxu2 %v850_v61 }
  0x68   : > { %911 = vmatmul.msk.bf16.gmra.mxu1 %vm442_vm1, %v830_v0 }
  0xa5   : > { %v529_v1 = vpop.f32.mrf.mxu1 }
  0xa8   : > { %v480_v2 = vpop.f32.mrf.mxu0 }
  0xa9   : > { %v530_v3 = vadd.f32 %v529_v1, %v480_v2 }
  0xab   : > { %v605_v6 = vmul.f32 %v1204_v4, %v530_v3 }
  0xac   : > { %v554_v16 = vpop.f32.mrf.mxu3 }
  0xad   : > { %v531_v5 = vpop.f32.mrf.mxu1  ;;  %v625_v11 = vadd.f32 %v1210_v7, %v605_v6 }
  0xaf   : > { %v1212_v8 = vpop.f32.mrf.mxu2  ;;  %v641_v17 = vmax.f32 %v625_v11, 0.0 }
  0xb0   : > { %v482_v9 = vpop.f32.mrf.mxu0 }
  0xb1   : > { %v532_v10 = vadd.f32 %v531_v5, %v482_v9 }
  0xb3   : > { %v950_v12 = vpack.c.bf16 %v532_v10, %v530_v3  ;;  %v606_v13 = vmul.f32 %v1204_v4, %v532_v10 }
  0xb4   : > { %v556_v26 = vpop.f32.mrf.mxu3 }
  0xb5   : > { %v534_v14 = vpop.f32.mrf.mxu1  ;;  %951 = vst [vmem:[%s1218_s12] sm:$0xff] %v950_v12   ;;  %v626_v15 = vadd.f32 %v1210_v7, %v606_v13 }
  0xb7   : > { %v642_v18 = vmax.f32 %v626_v15, 0.0  ;;  %v1224_v19 = vpop.f32.mrf.mxu2 }
  0xb8   : > { %v485_v20 = vpop.f32.mrf.mxu0 }
  0xb9   : > { %v990_v21 = vpack.c.bf16 %v642_v18, %v641_v17  ;;  %v535_v22 = vadd.f32 %v534_v14, %v485_v20 }
  0xbb   : > { %991 = vst [vmem:[%s1229_s14] sm:$0xff] %v990_v21   ;;  %v607_v24 = vmul.f32 %v1204_v4, %v535_v22 }
  0xbc   : > { %v559_v42 = vpop.f32.mrf.mxu3 }
  0xbd   : > { %v536_v23 = vpop.f32.mrf.mxu1  ;;  %v627_v30 = vadd.f32 %v1210_v7, %v607_v24 }
  0xbf   : > { %v505_v25 = vpop.f32.mrf.mxu2  ;;  %v643_v36 = vmax.f32 %v627_v30, 0.0 }
  0xc0   : > { %v487_v27 = vpop.f32.mrf.mxu0  ;;  %v555_v29 = vadd.f32 %v554_v16, %v505_v25 }
  0xc1   : > { %v537_v28 = vadd.f32 %v536_v23, %v487_v27 }
  0xc2   : > { %v615_v35 = vmul.f32 %v1204_v4, %v555_v29 }
  0xc3   : > { %v955_v31 = vpack.c.bf16 %v537_v28, %v535_v22  ;;  %v608_v32 = vmul.f32 %v1204_v4, %v537_v28 }
  0xc4   : > { %v635_v43 = vadd.f32 %v1210_v7, %v615_v35  ;;  %v561_v60 = vpop.f32.mrf.mxu3 }
  0xc5   : > { %v539_v33 = vpop.f32.mrf.mxu1  ;;  %1027 = vst [vmem:[%s1218_s12 + $0x8] sm:$0xff] %v955_v31   ;;  %v628_v34 = vadd.f32 %v1210_v7, %v608_v32 }
  0xc6   : > { %v651_v49 = vmax.f32 %v635_v43, 0.0 }
  0xc7   : > { %v644_v37 = vmax.f32 %v628_v34, 0.0  ;;  %v507_v38 = vpop.f32.mrf.mxu2 }
  0xc8   : > { %v557_v39 = vadd.f32 %v556_v26, %v507_v38  ;;  %v490_v40 = vpop.f32.mrf.mxu0 }
  0xc9   : > { %v995_v41 = vpack.c.bf16 %v644_v37, %v643_v36  ;;  %v540_v46 = vadd.f32 %v539_v33, %v490_v40 }
  0xca   : > { %v975_v44 = vpack.c.bf16 %v557_v39, %v555_v29  ;;  %v616_v45 = vmul.f32 %v1204_v4, %v557_v39 }
  0xcb   : > { %1034 = vst [vmem:[%s1229_s14 + $0x8] sm:$0xff] %v995_v41   ;;  %v609_v51 = vmul.f32 %v1204_v4, %v540_v46 }
  0xcc   : > { %1031 = vst [vmem:[%s1218_s12 + $0x28] sm:$0xff] %v975_v44   ;;  %v636_v47 = vadd.f32 %v1210_v7, %v616_v45  ;;  %v564_v15 = vpop.f32.mrf.mxu3 }
  0xcd   : > { %v541_v48 = vpop.f32.mrf.mxu1  ;;  %v629_v57 = vadd.f32 %v1210_v7, %v609_v51 }
  0xce   : > { %v652_v50 = vmax.f32 %v636_v47, 0.0 }
  0xcf   : > { %v510_v52 = vpop.f32.mrf.mxu2  ;;  %v645_v0 = vmax.f32 %v629_v57, 0.0 }
  0xd0   : > { %v1015_v53 = vpack.c.bf16 %v652_v50, %v651_v49  ;;  %v492_v54 = vpop.f32.mrf.mxu0  ;;  %v560_v56 = vadd.f32 %v559_v42, %v510_v52 }
  0xd1   : > { %v542_v55 = vadd.f32 %v541_v48, %v492_v54 }
  0xd2   : > { %1038 = vst [vmem:[%s1229_s14 + $0x28] sm:$0xff] %v1015_v53   ;;  %v617_v63 = vmul.f32 %v1204_v4, %v560_v56 }
  0xd3   : > { %v960_v58 = vpack.c.bf16 %v542_v55, %v540_v46  ;;  %v610_v59 = vmul.f32 %v1204_v4, %v542_v55 }
  0xd4   : > { %v637_v9 = vadd.f32 %v1210_v7, %v617_v63  ;;  %v566_v34 = vpop.f32.mrf.mxu3 }
  0xd5   : > { %v544_v61 = vpop.f32.mrf.mxu1  ;;  %1028 = vst [vmem:[%s1218_s12 + $0x10] sm:$0xff] %v960_v58   ;;  %v630_v62 = vadd.f32 %v1210_v7, %v610_v59 }
  0xd6   : > { %v653_v16 = vmax.f32 %v637_v9, 0.0 }
  0xd7   : > { %v646_v1 = vmax.f32 %v630_v62, 0.0  ;;  %v512_v2 = vpop.f32.mrf.mxu2 }
  0xd8   : > { %v562_v3 = vadd.f32 %v561_v60, %v512_v2  ;;  %v495_v5 = vpop.f32.mrf.mxu0 }
  0xd9   : > { %v1000_v6 = vpack.c.bf16 %v646_v1, %v645_v0  ;;  %v545_v12 = vadd.f32 %v544_v61, %v495_v5 }
  0xda   : > { %v980_v10 = vpack.c.bf16 %v562_v3, %v560_v56  ;;  %v618_v11 = vmul.f32 %v1204_v4, %v562_v3 }
  0xdb   : > { %1035 = vst [vmem:[%s1229_s14 + $0x10] sm:$0xff] %v1000_v6   ;;  %v611_v18 = vmul.f32 %v1204_v4, %v545_v12 }
  0xdc   : > { %1032 = vst [vmem:[%s1218_s12 + $0x30] sm:$0xff] %v980_v10   ;;  %v638_v13 = vadd.f32 %v1210_v7, %v618_v11 }
  0xdd   : > { %v546_v14 = vpop.f32.mrf.mxu1  ;;  %v631_v25 = vadd.f32 %v1210_v7, %v611_v18 }
  0xde   : > { %v654_v17 = vmax.f32 %v638_v13, 0.0 }
  0xdf   : > { %v515_v20 = vpop.f32.mrf.mxu2  ;;  %v647_v31 = vmax.f32 %v631_v25, 0.0 }
  0xe0   : > { %v1020_v21 = vpack.c.bf16 %v654_v17, %v653_v16  ;;  %v497_v22 = vpop.f32.mrf.mxu0  ;;  %v565_v24 = vadd.f32 %v564_v15, %v515_v20 }
  0xe1   : > { %v547_v23 = vadd.f32 %v546_v14, %v497_v22 }
  0xe2   : > { %1039 = vst [vmem:[%s1229_s14 + $0x30] sm:$0xff] %v1020_v21   ;;  %v619_v30 = vmul.f32 %v1204_v4, %v565_v24 }
  0xe3   : > { %v965_v26 = vpack.c.bf16 %v547_v23, %v545_v12  ;;  %v612_v27 = vmul.f32 %v1204_v4, %v547_v23 }
  0xe4   : > { %v639_v38 = vadd.f32 %v1210_v7, %v619_v30 }
  0xe5   : > { %v549_v28 = vpop.f32.mrf.mxu1  ;;  %1029 = vst [vmem:[%s1218_s12 + $0x18] sm:$0xff] %v965_v26   ;;  %v632_v29 = vadd.f32 %v1210_v7, %v612_v27 }
  0xe6   : > { %v550_v33 = vadd.f32 %v549_v28, %v1212_v8  ;;  %v655_v44 = vmax.f32 %v639_v38, 0.0 }
  0xe7   : > { %v648_v32 = vmax.f32 %v632_v29, 0.0  ;;  %v517_v35 = vpop.f32.mrf.mxu2 }
  0xe8   : > { %v567_v36 = vadd.f32 %v566_v34, %v517_v35  ;;  %v613_v41 = vmul.f32 %v1204_v4, %v550_v33 }
  0xe9   : > { %v1005_v37 = vpack.c.bf16 %v648_v32, %v647_v31 }
  0xea   : > { %v985_v39 = vpack.c.bf16 %v567_v36, %v565_v24  ;;  %v620_v40 = vmul.f32 %v1204_v4, %v567_v36  ;;  %v633_v46 = vadd.f32 %v1210_v7, %v613_v41 }
  0xeb   : > { %1036 = vst [vmem:[%s1229_s14 + $0x18] sm:$0xff] %v1005_v37  }
  0xec   : > { %1033 = vst [vmem:[%s1218_s12 + $0x38] sm:$0xff] %v985_v39   ;;  %v640_v42 = vadd.f32 %v1210_v7, %v620_v40  ;;  %v649_v51 = vmax.f32 %v633_v46, 0.0 }
  0xed   : > { %v551_v43 = vpop.f32.mrf.mxu1 }
  0xee   : > { %v552_v8 = vadd.f32 %v551_v43, %v1224_v19  ;;  %v656_v45 = vmax.f32 %v640_v42, 0.0 }
  0xf0   : > { %v970_v47 = vpack.c.bf16 %v552_v8, %v550_v33  ;;  %v614_v48 = vmul.f32 %v1204_v4, %v552_v8  ;;  %v1025_v49 = vpack.c.bf16 %v656_v45, %v655_v44 }
  0xf2   : > { %1030 = vst [vmem:[%s1218_s12 + $0x20] sm:$0xff] %v970_v47   ;;  %v634_v50 = vadd.f32 %v1210_v7, %v614_v48 }
  0xf3   : > { %1040 = vst [vmem:[%s1229_s14 + $0x38] sm:$0xff] %v1025_v49  }
  0xf4   : > { %v650_v52 = vmax.f32 %v634_v50, 0.0 }
  0xf6   : > { %v1010_v53 = vpack.c.bf16 %v650_v52, %v649_v51 }
  0xf8   : > { %1037 = vst [vmem:[%s1229_s14 + $0x20] sm:$0xff] %v1010_v53  }
  0xf9 PF: > { %s16_s18 = sadd.s32 1, %s1071_s18  }
  0xfa   : > { %p13_p4 = scmp.ge.s32.totalorder %s16_s18, 4  }
  0xfc   :  { %15 = sbr.rel (!%p13_p4) target bundleno = 1 (0x1), region = 78 }

// kernel: _lambda_.9
= control target key start
LH: loop header
LB: loop body
LE: loop exit
PB: predicated region body
PF: predicated region fallthrough
CT: control target
= control target key end

     0   :  { %s2659_s15 = smov 0   ;;  %s3178_s0 = inlined_call_operand.vmem [shape: bf16[256,1152], index: 0, kind: input, shape index: {}]   ;;  %s3179_s1 = inlined_call_operand.vmem [shape: bf16[1152,128], index: 1, kind: input, shape index: {}]   ;;  %s3180_s2 = inlined_call_operand.vmem [shape: f32[1,128], index: 2, kind: input, shape index: {}]   ;;  %s3181_s3 = inlined_call_operand.vmem [shape: f32[1,128], index: 3, kind: input, shape index: {}]   ;;  %s3182_s4 = inlined_call_operand.vmem [shape: bf16[256,128], index: 4, kind: output, shape index: {}]  }
   0x1 LB: > { %s1813_s16 = sadd.s32 4294967295, %s2632_s15   ;;  %p1817_p0 = scmp.ge.s32.totalorder %s2632_s15, 1  ;;  %s2632_s15 = sphi %s2659_s15, %s14_s15  }
   0x2   : > { %p164_p1 = scmp.lt.s32.totalorder %s2632_s15, 3 }
   0x4   : > { %p165_p2 = pnand %p1817_p0, %p164_p1 }
   0x5   : > { %s1818_s23 = sshll.u32 (!%p165_p2), %s1813_s16, 4 }
   0x6   : > { %168 = sbr.rel (%p165_p2) target bundleno = 470 (0x1d6), region = 36  ;;  %p192_p3 = scmp.lt.s32.totalorder (!%p165_p2), %s1818_s23, 31 }
   0xb   : > { %v2479_v0 = vld [vmem:[%s3179_s1 + $0x38] sm:$0xff]  ;;  %v2478_v1 = vld [vmem:[%s3179_s1 + $0x30] sm:$0xff]  ;;  %v2477_v2 = vld [vmem:[%s3179_s1 + $0x28] sm:$0xff]  ;;  %s3184_s23 = smov (!%p192_p3, %s1818_s23), 31 }
   0xc   : > { %2591 = vmatpush.bf16.msra.mxu1 %v2479_v0  ;;  %2592 = vmatpush.bf16.msra.mxu2 %v2479_v0  ;;  %v2476_v3 = vld [vmem:[%s3179_s1 + $0x20] sm:$0xff]  ;;  %v2475_v4 = vld [vmem:[%s3179_s1 + $0x18] sm:$0xff]  ;;  %v2474_v5 = vld [vmem:[%s3179_s1 + $0x10] sm:$0xff]  ;;  %s2615_s30 = smul.u32 36, %s3184_s23 }
   0xd   : > { %2593 = vmatpush.bf16.msra.mxu3 %v2479_v0  ;;  %1228 = vmatpush.bf16.msra.mxu0 %v2479_v0  ;;  %v2473_v6 = vld [vmem:[%s3179_s1 + $0x8] sm:$0xff]  ;;  %v2472_v7 = vld [vmem:[%s3179_s1] sm:$0xff]  ;;  %v2495_v16 = vld [vmem:[%s3179_s1 + $0xb8] sm:$0xff] }
   0xe   : > { %s2694_s9 = scalar_lea.vmem %s3178_s0, %s2615_s30  ;;  %v2487_v17 = vld [vmem:[%s3179_s1 + $0x78] sm:$0xff]  ;;  %v2494_v24 = vld [vmem:[%s3179_s1 + $0xb0] sm:$0xff]  ;;  %v2493_v28 = vld [vmem:[%s3179_s1 + $0xa8] sm:$0xff]  ;;  %s1821_s30 = sshll.u32 %s3184_s23, 2 }
   0xf   : > { %v1896_v8 = vld [vmem:[%s2694_s9 + $0x90] sm:$0xf]  ;;  %v2422_v9 = vld [vmem:[%s2694_s9 + $0xb0] sm:$0xf0]  ;;  %v1968_v10 = vld [vmem:[%s2694_s9 + $0x120] sm:$0xf]  ;;  %s3124_s7 = scalar_lea.vmem %s3182_s4, %s1821_s30 }
  0x10   : > { %2594 = vmatpush.bf16.msra.mxu1 %v2478_v1  ;;  %2595 = vmatpush.bf16.msra.mxu2 %v2478_v1  ;;  %v2440_v11 = vld [vmem:[%s2694_s9 + $0x140] sm:$0xf0]  ;;  %v2040_v12 = vld [vmem:[%s2694_s9 + $0x1b0] sm:$0xf]  ;;  %v2458_v13 = vld [vmem:[%s2694_s9 + $0x1d0] sm:$0xf0]  ;;  %v1897_v18 = vor.u32 %v2422_v9, %v1896_v8 }
  0x11   : > { %2596 = vmatpush.bf16.msra.mxu3 %v2478_v1  ;;  %1229 = vmatpush.bf16.msra.mxu0 %v2478_v1  ;;  %v1824_v14 = vld [vmem:[%s2694_s9] sm:$0xf]  ;;  %v2404_v15 = vld [vmem:[%s2694_s9 + $0x20] sm:$0xf0]  ;;  %v1969_v19 = vor.u32 %v2440_v11, %v1968_v10  ;;  %v2041_v20 = vor.u32 %v2458_v13, %v2040_v12  ;;  %v2503_v22 = vld [vmem:[%s3179_s1 + $0xf8] sm:$0xff] }
  0x12   : > { %v1825_v21 = vor.u32 %v2404_v15, %v1824_v14  ;;  %v2511_v23 = vld [vmem:[%s3179_s1 + $0x138] sm:$0xff]  ;;  %v2486_v25 = vld [vmem:[%s3179_s1 + $0x70] sm:$0xff]  ;;  %v2485_v29 = vld [vmem:[%s3179_s1 + $0x68] sm:$0xff] }
  0x13   : > { %v2502_v26 = vld [vmem:[%s3179_s1 + $0xf0] sm:$0xff]  ;;  %v2501_v30 = vld [vmem:[%s3179_s1 + $0xe8] sm:$0xff]  ;;  %v2492_v32 = vld [vmem:[%s3179_s1 + $0xa0] sm:$0xff] }
  0x14   : > { %2597 = vmatpush.bf16.msra.mxu1 %v2477_v2  ;;  %2598 = vmatpush.bf16.msra.mxu2 %v2477_v2  ;;  %v2510_v27 = vld [vmem:[%s3179_s1 + $0x130] sm:$0xff]  ;;  %v2509_v31 = vld [vmem:[%s3179_s1 + $0x128] sm:$0xff]  ;;  %v2484_v33 = vld [vmem:[%s3179_s1 + $0x60] sm:$0xff] }
  0x15   : > { %2599 = vmatpush.bf16.msra.mxu3 %v2477_v2  ;;  %1230 = vmatpush.bf16.msra.mxu0 %v2477_v2  ;;  %v2500_v34 = vld [vmem:[%s3179_s1 + $0xe0] sm:$0xff]  ;;  %v1932_v36 = vld [vmem:[%s2694_s9 + $0xd8] sm:$0xf]  ;;  %v2431_v37 = vld [vmem:[%s2694_s9 + $0xf8] sm:$0xf0] }
  0x16   : > { %v2508_v35 = vld [vmem:[%s3179_s1 + $0x120] sm:$0xff]  ;;  %v2004_v38 = vld [vmem:[%s2694_s9 + $0x168] sm:$0xf]  ;;  %v2449_v39 = vld [vmem:[%s2694_s9 + $0x188] sm:$0xf0]  ;;  %v1933_v46 = vor.u32 %v2431_v37, %v1932_v36 }
  0x17   : > { %v2076_v40 = vld [vmem:[%s2694_s9 + $0x1f8] sm:$0xf]  ;;  %v2467_v41 = vld [vmem:[%s2694_s9 + $0x218] sm:$0xf0]  ;;  %v1860_v42 = vld [vmem:[%s2694_s9 + $0x48] sm:$0xf]  ;;  %v2005_v47 = vor.u32 %v2449_v39, %v2004_v38 }
  0x18   : > { %2600 = vmatpush.bf16.msra.mxu1 %v2476_v3  ;;  %2601 = vmatpush.bf16.msra.mxu2 %v2476_v3  ;;  %v2413_v43 = vld [vmem:[%s2694_s9 + $0x68] sm:$0xf0]  ;;  %v2491_v44 = vld [vmem:[%s3179_s1 + $0x98] sm:$0xff]  ;;  %v2077_v48 = vor.u32 %v2467_v41, %v2076_v40  ;;  %v2490_v52 = vld [vmem:[%s3179_s1 + $0x90] sm:$0xff] }
  0x19   : > { %2602 = vmatpush.bf16.msra.mxu3 %v2476_v3  ;;  %1231 = vmatpush.bf16.msra.mxu0 %v2476_v3  ;;  %v2483_v45 = vld [vmem:[%s3179_s1 + $0x58] sm:$0xff]  ;;  %v1861_v49 = vor.u32 %v2413_v43, %v1860_v42  ;;  %v2482_v53 = vld [vmem:[%s3179_s1 + $0x50] sm:$0xff]  ;;  %v2489_v56 = vld [vmem:[%s3179_s1 + $0x88] sm:$0xff] }
  0x1a   : > { %v2499_v50 = vld [vmem:[%s3179_s1 + $0xd8] sm:$0xff]  ;;  %v2498_v54 = vld [vmem:[%s3179_s1 + $0xd0] sm:$0xff]  ;;  %v2481_v57 = vld [vmem:[%s3179_s1 + $0x48] sm:$0xff] }
  0x1b   : > { %v2507_v51 = vld [vmem:[%s3179_s1 + $0x118] sm:$0xff]  ;;  %v2506_v55 = vld [vmem:[%s3179_s1 + $0x110] sm:$0xff]  ;;  %v2497_v58 = vld [vmem:[%s3179_s1 + $0xc8] sm:$0xff] }
  0x1c   : > { %2603 = vmatpush.bf16.msra.mxu1 %v2475_v4  ;;  %2604 = vmatpush.bf16.msra.mxu2 %v2475_v4  ;;  %v2505_v59 = vld [vmem:[%s3179_s1 + $0x108] sm:$0xff]  ;;  %v2488_v60 = vld [vmem:[%s3179_s1 + $0x80] sm:$0xff]  ;;  %v2527_v2 = vld [vmem:[%s3179_s1 + $0x1b8] sm:$0xff] }
  0x1d   : > { %2605 = vmatpush.bf16.msra.mxu3 %v2475_v4  ;;  %1232 = vmatpush.bf16.msra.mxu0 %v2475_v4  ;;  %v2480_v61 = vld [vmem:[%s3179_s1 + $0x40] sm:$0xff]  ;;  %v1826_v1 = vld [vmem:[%s2694_s9 + $0x24] sm:$0xf0]  ;;  %v2519_v3 = vld [vmem:[%s3179_s1 + $0x178] sm:$0xff] }
  0x1e   : > { %v2400_v62 = vld [vmem:[%s2694_s9 + $0x4] sm:$0xf]  ;;  %v1832_v4 = vld [vmem:[%s2694_s9 + $0x8] sm:$0xf]  ;;  %v1840_v8 = vld [vmem:[%s2694_s9 + $0x10] sm:$0xf] }
  0x1f   : > { %v2496_v63 = vld [vmem:[%s3179_s1 + $0xc0] sm:$0xff]  ;;  %v2406_v9 = vld [vmem:[%s2694_s9 + $0x30] sm:$0xf0]  ;;  %v2535_v10 = vld [vmem:[%s3179_s1 + $0x1f8] sm:$0xff]  ;;  %v1829_v12 = vor.u32 %v2400_v62, %v1826_v1 }
  0x20   : > { %2606 = vmatpush.bf16.msra.mxu1 %v2474_v5  ;;  %2607 = vmatpush.bf16.msra.mxu2 %v2474_v5  ;;  %v2504_v0 = vld [vmem:[%s3179_s1 + $0x100] sm:$0xff]  ;;  %v2543_v11 = vld [vmem:[%s3179_s1 + $0x238] sm:$0xff]  ;;  %v1841_v15 = vor.u32 %v2406_v9, %v1840_v8  ;;  %v2418_v40 = vld [vmem:[%s2694_s9 + $0x94] sm:$0xf] }
  0x21   : > { %2608 = vmatpush.bf16.msra.mxu3 %v2474_v5  ;;  %1233 = vmatpush.bf16.msra.mxu0 %v2474_v5  ;;  %v2405_v5 = vld [vmem:[%s2694_s9 + $0x28] sm:$0xf0]  ;;  %v2524_v36 = vld [vmem:[%s3179_s1 + $0x1a0] sm:$0xff]  ;;  %v1898_v41 = vld [vmem:[%s2694_s9 + $0xb4] sm:$0xf0] }
  0x22   : > { %v1833_v13 = vor.u32 %v2405_v5, %v1832_v4  ;;  %v2532_v37 = vld [vmem:[%s3179_s1 + $0x1e0] sm:$0xff]  ;;  %v1904_v42 = vld [vmem:[%s2694_s9 + $0x98] sm:$0xf]  ;;  %v2423_v43 = vld [vmem:[%s2694_s9 + $0xb8] sm:$0xf0] }
  0x23   : > { %v2516_v38 = vld [vmem:[%s3179_s1 + $0x160] sm:$0xff]  ;;  %v1948_v62 = vld [vmem:[%s2694_s9 + $0xe8] sm:$0xf]  ;;  %v2522_v4 = vld [vmem:[%s3179_s1 + $0x190] sm:$0xff] }
  0x24   : > { %2609 = vmatpush.bf16.msra.mxu1 %v2473_v6  ;;  %2610 = vmatpush.bf16.msra.mxu2 %v2473_v6  ;;  %v2540_v39 = vld [vmem:[%s3179_s1 + $0x220] sm:$0xff]  ;;  %v2530_v5 = vld [vmem:[%s3179_s1 + $0x1d0] sm:$0xff]  ;;  %v1970_v9 = vld [vmem:[%s2694_s9 + $0x144] sm:$0xf0] }
  0x25   : > { %2611 = vmatpush.bf16.msra.mxu3 %v2473_v6  ;;  %1234 = vmatpush.bf16.msra.mxu0 %v2473_v6  ;;  %v2401_v6 = vld [vmem:[%s2694_s9 + $0xc] sm:$0xf]  ;;  %v2436_v8 = vld [vmem:[%s2694_s9 + $0x124] sm:$0xf] }
  0x28   : > { %2612 = vmatpush.bf16.msra.mxu1 %v2472_v7  ;;  %2613 = vmatpush.bf16.msra.mxu2 %v2472_v7 }
  0x29   : > { %2614 = vmatpush.bf16.msra.mxu3 %v2472_v7  ;;  %1235 = vmatpush.bf16.msra.mxu0 %v2472_v7  ;;  %v1834_v7 = vld [vmem:[%s2694_s9 + $0x2c] sm:$0xf0] }
  0x2a   : > { %v1837_v14 = vor.u32 %v2401_v6, %v1834_v7  ;;  %v2514_v6 = vld [vmem:[%s3179_s1 + $0x150] sm:$0xff] }
  0x2b   : > { %1246 = vmatmul.bf16.vlgmr.msra.gmra.mxu1 %v1897_v18  ;;  %1256 = vmatmul.bf16.vlgmr.msra.gmra.mxu2 %v1969_v19  ;;  %v2534_v18 = vld [vmem:[%s3179_s1 + $0x1f0] sm:$0xff] }
  0x2c   : > { %1326 = vmatpush.bf16.msrb.mxu2 %v2495_v16  ;;  %1277 = vmatpush.bf16.msrb.mxu1 %v2487_v17  ;;  %v2526_v16 = vld [vmem:[%s3179_s1 + $0x1b0] sm:$0xff] }
  0x2d   : > { %1266 = vmatmul.bf16.vlgmr.msra.gmra.mxu3 %v2041_v20  ;;  %1236 = vmatmul.bf16.vlgmr.msra.gmra.mxu0 %v1825_v21  ;;  %v2518_v17 = vld [vmem:[%s3179_s1 + $0x170] sm:$0xff]  ;;  %v2525_v20 = vld [vmem:[%s3179_s1 + $0x1a8] sm:$0xff] }
  0x2e   : > { %1375 = vmatpush.bf16.msrb.mxu3 %v2503_v22  ;;  %1424 = vmatpush.bf16.msrb.mxu0 %v2511_v23  ;;  %v2542_v19 = vld [vmem:[%s3179_s1 + $0x230] sm:$0xff]  ;;  %v2517_v21 = vld [vmem:[%s3179_s1 + $0x168] sm:$0xff] }
  0x2f   : > { %v2533_v22 = vld [vmem:[%s3179_s1 + $0x1e8] sm:$0xff]  ;;  %v2538_v7 = vld [vmem:[%s3179_s1 + $0x210] sm:$0xff] }
  0x30   : > { %1327 = vmatpush.bf16.msrb.mxu2 %v2494_v24  ;;  %1278 = vmatpush.bf16.msrb.mxu1 %v2486_v25  ;;  %v2541_v23 = vld [vmem:[%s3179_s1 + $0x228] sm:$0xff]  ;;  %v1862_v25 = vld [vmem:[%s2694_s9 + $0x6c] sm:$0xf0] }
  0x31   : > { %v2409_v24 = vld [vmem:[%s2694_s9 + $0x4c] sm:$0xf] }
  0x32   : > { %1376 = vmatpush.bf16.msrb.mxu3 %v2502_v26  ;;  %1425 = vmatpush.bf16.msrb.mxu0 %v2510_v27  ;;  %v1868_v26 = vld [vmem:[%s2694_s9 + $0x50] sm:$0xf]  ;;  %v2414_v27 = vld [vmem:[%s2694_s9 + $0x70] sm:$0xf0] }
  0x34   : > { %1328 = vmatpush.bf16.msrb.mxu2 %v2493_v28  ;;  %1279 = vmatpush.bf16.msrb.mxu1 %v2485_v29  ;;  %v2410_v28 = vld [vmem:[%s2694_s9 + $0x54] sm:$0xf]  ;;  %v1870_v29 = vld [vmem:[%s2694_s9 + $0x74] sm:$0xf0] }
  0x36   : > { %1377 = vmatpush.bf16.msrb.mxu3 %v2501_v30  ;;  %1426 = vmatpush.bf16.msrb.mxu0 %v2509_v31  ;;  %v1876_v30 = vld [vmem:[%s2694_s9 + $0x58] sm:$0xf]  ;;  %v2415_v31 = vld [vmem:[%s2694_s9 + $0x78] sm:$0xf0] }
  0x38   : > { %1329 = vmatpush.bf16.msrb.mxu2 %v2492_v32  ;;  %1280 = vmatpush.bf16.msrb.mxu1 %v2484_v33  ;;  %v1865_v32 = vor.u32 %v2409_v24, %v1862_v25  ;;  %v1869_v33 = vor.u32 %v2414_v27, %v1868_v26  ;;  %v2445_v24 = vld [vmem:[%s2694_s9 + $0x16c] sm:$0xf]  ;;  %v2006_v25 = vld [vmem:[%s2694_s9 + $0x18c] sm:$0xf0]  ;;  %v2450_v27 = vld [vmem:[%s2694_s9 + $0x190] sm:$0xf0] }
  0x39   : > { %v2012_v26 = vld [vmem:[%s2694_s9 + $0x170] sm:$0xf] }
  0x3a   : > { %1378 = vmatpush.bf16.msrb.mxu3 %v2500_v34  ;;  %1427 = vmatpush.bf16.msrb.mxu0 %v2508_v35  ;;  %v1873_v34 = vor.u32 %v2410_v28, %v1870_v29  ;;  %v1877_v35 = vor.u32 %v2415_v31, %v1876_v30  ;;  %v2446_v28 = vld [vmem:[%s2694_s9 + $0x174] sm:$0xf]  ;;  %v2014_v29 = vld [vmem:[%s2694_s9 + $0x194] sm:$0xf0]  ;;  %v2451_v31 = vld [vmem:[%s2694_s9 + $0x198] sm:$0xf0] }
  0x3b   : > { %1251 = vmatmul.bf16.gmra.mxu1 %v1933_v46  ;;  %1261 = vmatmul.bf16.gmra.mxu2 %v2005_v47  ;;  %v1912_v46 = vld [vmem:[%s2694_s9 + $0xa0] sm:$0xf]  ;;  %v2424_v47 = vld [vmem:[%s2694_s9 + $0xc0] sm:$0xf0]  ;;  %v2020_v30 = vld [vmem:[%s2694_s9 + $0x178] sm:$0xf] }
  0x3c   : > { %1330 = vmatpush.bf16.msrb.mxu2 %v2491_v44  ;;  %1281 = vmatpush.bf16.msrb.mxu1 %v2483_v45  ;;  %v2419_v44 = vld [vmem:[%s2694_s9 + $0x9c] sm:$0xf]  ;;  %v1906_v45 = vld [vmem:[%s2694_s9 + $0xbc] sm:$0xf0] }
  0x3d   : > { %1271 = vmatmul.bf16.gmra.mxu3 %v2077_v48  ;;  %1241 = vmatmul.bf16.gmra.mxu0 %v1861_v49  ;;  %v1901_v48 = vor.u32 %v2418_v40, %v1898_v41  ;;  %v1905_v49 = vor.u32 %v2423_v43, %v1904_v42  ;;  %v2454_v40 = vld [vmem:[%s2694_s9 + $0x1b4] sm:$0xf]  ;;  %v2042_v41 = vld [vmem:[%s2694_s9 + $0x1d4] sm:$0xf0]  ;;  %v2459_v43 = vld [vmem:[%s2694_s9 + $0x1d8] sm:$0xf0] }
  0x3e   : > { %1379 = vmatpush.bf16.msrb.mxu3 %v2499_v50  ;;  %1428 = vmatpush.bf16.msrb.mxu0 %v2507_v51  ;;  %v1909_v50 = vor.u32 %v2419_v44, %v1906_v45  ;;  %v1913_v51 = vor.u32 %v2424_v47, %v1912_v46  ;;  %v2048_v42 = vld [vmem:[%s2694_s9 + $0x1b8] sm:$0xf]  ;;  %v2455_v44 = vld [vmem:[%s2694_s9 + $0x1bc] sm:$0xf]  ;;  %v2050_v45 = vld [vmem:[%s2694_s9 + $0x1dc] sm:$0xf0] }
  0x3f   : > { %v2056_v46 = vld [vmem:[%s2694_s9 + $0x1c0] sm:$0xf]  ;;  %v2460_v47 = vld [vmem:[%s2694_s9 + $0x1e0] sm:$0xf0] }
  0x40   : > { %1331 = vmatpush.bf16.msrb.mxu2 %v2490_v52  ;;  %1282 = vmatpush.bf16.msrb.mxu1 %v2482_v53  ;;  %v2523_v52 = vld [vmem:[%s3179_s1 + $0x198] sm:$0xff] }
  0x41   : > { %v2531_v53 = vld [vmem:[%s3179_s1 + $0x1d8] sm:$0xff] }
  0x42   : > { %1380 = vmatpush.bf16.msrb.mxu3 %v2498_v54  ;;  %1429 = vmatpush.bf16.msrb.mxu0 %v2506_v55  ;;  %v2515_v54 = vld [vmem:[%s3179_s1 + $0x158] sm:$0xff] }
  0x43   : > { %v2539_v55 = vld [vmem:[%s3179_s1 + $0x218] sm:$0xff] }
  0x44   : > { %1332 = vmatpush.bf16.msrb.mxu2 %v2489_v56  ;;  %1283 = vmatpush.bf16.msrb.mxu1 %v2481_v57  ;;  %v2427_v56 = vld [vmem:[%s2694_s9 + $0xdc] sm:$0xf]  ;;  %v1934_v57 = vld [vmem:[%s2694_s9 + $0xfc] sm:$0xf0] }
  0x46   : > { %1381 = vmatpush.bf16.msrb.mxu3 %v2497_v58  ;;  %1430 = vmatpush.bf16.msrb.mxu0 %v2505_v59  ;;  %v1940_v58 = vld [vmem:[%s2694_s9 + $0xe0] sm:$0xf]  ;;  %v2432_v59 = vld [vmem:[%s2694_s9 + $0x100] sm:$0xf0] }
  0x47   : > { %v1941_v1 = vor.u32 %v2432_v59, %v1940_v58  ;;  %v2463_v58 = vld [vmem:[%s2694_s9 + $0x1fc] sm:$0xf]  ;;  %v2078_v59 = vld [vmem:[%s2694_s9 + $0x21c] sm:$0xf0] }
  0x48   : > { %1333 = vmatpush.bf16.msrb.mxu2 %v2488_v60  ;;  %1284 = vmatpush.bf16.msrb.mxu1 %v2480_v61  ;;  %v2428_v60 = vld [vmem:[%s2694_s9 + $0xe4] sm:$0xf]  ;;  %v1942_v61 = vld [vmem:[%s2694_s9 + $0x104] sm:$0xf0] }
  0x4a   : > { %1382 = vmatpush.bf16.msrb.mxu3 %v2496_v63  ;;  %1431 = vmatpush.bf16.msrb.mxu0 %v2504_v0  ;;  %v2433_v63 = vld [vmem:[%s2694_s9 + $0x108] sm:$0xf0]  ;;  %v1937_v0 = vor.u32 %v2427_v56, %v1934_v57 }
  0x4b   : > { %1285 = vmatmul.bf16.vlgmr.msrb.gmra.mxu1 %v1829_v12  ;;  %1334 = vmatmul.bf16.vlgmr.msrb.gmra.mxu2 %v1833_v13  ;;  %v2437_v12 = vld [vmem:[%s2694_s9 + $0x12c] sm:$0xf]  ;;  %v1978_v13 = vld [vmem:[%s2694_s9 + $0x14c] sm:$0xf0] }
  0x4c   : > { %1522 = vmatpush.bf16.msra.mxu2 %v2527_v2  ;;  %1473 = vmatpush.bf16.msra.mxu1 %v2519_v3  ;;  %v1945_v2 = vor.u32 %v2428_v60, %v1942_v61  ;;  %v1949_v3 = vor.u32 %v2433_v63, %v1948_v62  ;;  %v2084_v60 = vld [vmem:[%s2694_s9 + $0x200] sm:$0xf]  ;;  %v2468_v61 = vld [vmem:[%s2694_s9 + $0x220] sm:$0xf0]  ;;  %v2086_v63 = vld [vmem:[%s2694_s9 + $0x224] sm:$0xf0] }
  0x4d   : > { %1383 = vmatmul.bf16.vlgmr.msrb.gmra.mxu3 %v1837_v14  ;;  %1432 = vmatmul.bf16.vlgmr.msrb.gmra.mxu0 %v1841_v15  ;;  %v1984_v14 = vld [vmem:[%s2694_s9 + $0x130] sm:$0xf]  ;;  %v2442_v15 = vld [vmem:[%s2694_s9 + $0x150] sm:$0xf0]  ;;  %v2464_v62 = vld [vmem:[%s2694_s9 + $0x204] sm:$0xf] }
  0x4e   : > { %1571 = vmatpush.bf16.msra.mxu3 %v2535_v10  ;;  %1620 = vmatpush.bf16.msra.mxu0 %v2543_v11  ;;  %v1976_v10 = vld [vmem:[%s2694_s9 + $0x128] sm:$0xf]  ;;  %v2441_v11 = vld [vmem:[%s2694_s9 + $0x148] sm:$0xf0] }
  0x50   : > { %1523 = vmatpush.bf16.msra.mxu2 %v2526_v16  ;;  %1474 = vmatpush.bf16.msra.mxu1 %v2518_v17  ;;  %v1973_v16 = vor.u32 %v2436_v8, %v1970_v9  ;;  %v1977_v17 = vor.u32 %v2441_v11, %v1976_v10 }
  0x52   : > { %1572 = vmatpush.bf16.msra.mxu3 %v2534_v18  ;;  %1621 = vmatpush.bf16.msra.mxu0 %v2542_v19  ;;  %v1981_v18 = vor.u32 %v2437_v12, %v1978_v13  ;;  %v1985_v19 = vor.u32 %v2442_v15, %v1984_v14  ;;  %v2402_v14 = vld [vmem:[%s2694_s9 + $0x14] sm:$0xf]  ;;  %v1842_v15 = vld [vmem:[%s2694_s9 + $0x34] sm:$0xf0] }
  0x54   : > { %1524 = vmatpush.bf16.msra.mxu2 %v2525_v20  ;;  %1475 = vmatpush.bf16.msra.mxu1 %v2517_v21  ;;  %v2521_v20 = vld [vmem:[%s3179_s1 + $0x188] sm:$0xff] }
  0x55   : > { %v2529_v21 = vld [vmem:[%s3179_s1 + $0x1c8] sm:$0xff] }
  0x56   : > { %1573 = vmatpush.bf16.msra.mxu3 %v2533_v22  ;;  %1622 = vmatpush.bf16.msra.mxu0 %v2541_v23  ;;  %v2513_v22 = vld [vmem:[%s3179_s1 + $0x148] sm:$0xff] }
  0x57   : > { %v2537_v23 = vld [vmem:[%s3179_s1 + $0x208] sm:$0xff] }
  0x58   : > { %1525 = vmatpush.bf16.msra.mxu2 %v2524_v36  ;;  %1476 = vmatpush.bf16.msra.mxu1 %v2516_v38  ;;  %v2520_v36 = vld [vmem:[%s3179_s1 + $0x180] sm:$0xff] }
  0x59   : > { %v2512_v38 = vld [vmem:[%s3179_s1 + $0x140] sm:$0xff] }
  0x5a   : > { %1574 = vmatpush.bf16.msra.mxu3 %v2532_v37  ;;  %1623 = vmatpush.bf16.msra.mxu0 %v2540_v39  ;;  %v2528_v37 = vld [vmem:[%s3179_s1 + $0x1c0] sm:$0xff] }
  0x5b   : > { %1290 = vmatmul.bf16.gmra.mxu1 %v1865_v32  ;;  %1339 = vmatmul.bf16.gmra.mxu2 %v1869_v33  ;;  %v2009_v32 = vor.u32 %v2445_v24, %v2006_v25  ;;  %v2013_v33 = vor.u32 %v2450_v27, %v2012_v26  ;;  %v2536_v39 = vld [vmem:[%s3179_s1 + $0x200] sm:$0xff]  ;;  %v1845_v24 = vor.u32 %v2402_v14, %v1842_v15  ;;  %v1914_v14 = vld [vmem:[%s2694_s9 + $0xc4] sm:$0xf0] }
  0x5c   : > { %1526 = vmatpush.bf16.msra.mxu2 %v2523_v52  ;;  %1477 = vmatpush.bf16.msra.mxu1 %v2515_v54  ;;  %v2057_v52 = vor.u32 %v2460_v47, %v2056_v46  ;;  %v2417_v46 = vld [vmem:[%s2694_s9 + $0x88] sm:$0xf0] }
  0x5d   : > { %1388 = vmatmul.bf16.gmra.mxu3 %v1873_v34  ;;  %1437 = vmatmul.bf16.gmra.mxu0 %v1877_v35  ;;  %v2017_v34 = vor.u32 %v2446_v28, %v2014_v29  ;;  %v2021_v35 = vor.u32 %v2451_v31, %v2020_v30 }
  0x5e   : > { %1575 = vmatpush.bf16.msra.mxu3 %v2531_v53  ;;  %1624 = vmatpush.bf16.msra.mxu0 %v2539_v55 }
  0x60   : > { %1527 = vmatpush.bf16.msra.mxu2 %v2522_v4  ;;  %1478 = vmatpush.bf16.msra.mxu1 %v2514_v6  ;;  %v2081_v4 = vor.u32 %v2463_v58, %v2078_v59 }
  0x62   : > { %1576 = vmatpush.bf16.msra.mxu3 %v2530_v5  ;;  %1625 = vmatpush.bf16.msra.mxu0 %v2538_v7  ;;  %v2085_v5 = vor.u32 %v2468_v61, %v2084_v60  ;;  %v2089_v7 = vor.u32 %v2464_v62, %v2086_v63 }
  0x64   : > { %1528 = vmatpush.bf16.msra.mxu2 %v2521_v20  ;;  %1479 = vmatpush.bf16.msra.mxu1 %v2513_v22  ;;  %v1856_v20 = vld [vmem:[%s2694_s9 + $0x20] sm:$0xf] }
  0x66   : > { %1577 = vmatpush.bf16.msra.mxu3 %v2529_v21  ;;  %1626 = vmatpush.bf16.msra.mxu0 %v2537_v23  ;;  %v2408_v21 = vld [vmem:[%s2694_s9 + $0x40] sm:$0xf0] }
  0x67   : > { %v1857_v28 = vor.u32 %v2408_v21, %v1856_v20  ;;  %v1928_v20 = vld [vmem:[%s2694_s9 + $0xb0] sm:$0xf]  ;;  %v2426_v21 = vld [vmem:[%s2694_s9 + $0xd0] sm:$0xf0] }
  0x68   : > { %1529 = vmatpush.bf16.msra.mxu2 %v2520_v36  ;;  %1480 = vmatpush.bf16.msra.mxu1 %v2512_v38  ;;  %v2411_v38 = vld [vmem:[%s2694_s9 + $0x5c] sm:$0xf] }
  0x6a   : > { %1578 = vmatpush.bf16.msra.mxu3 %v2528_v37  ;;  %1627 = vmatpush.bf16.msra.mxu0 %v2536_v39  ;;  %v1878_v39 = vld [vmem:[%s2694_s9 + $0x7c] sm:$0xf0] }
  0x6b   : > { %1295 = vmatmul.bf16.gmra.mxu1 %v1901_v48  ;;  %1344 = vmatmul.bf16.gmra.mxu2 %v1905_v49  ;;  %v2045_v48 = vor.u32 %v2454_v40, %v2042_v41  ;;  %v2049_v49 = vor.u32 %v2459_v43, %v2048_v42  ;;  %v1884_v41 = vld [vmem:[%s2694_s9 + $0x60] sm:$0xf]  ;;  %v2416_v42 = vld [vmem:[%s2694_s9 + $0x80] sm:$0xf0] }
  0x6c   : > { %v2412_v43 = vld [vmem:[%s2694_s9 + $0x64] sm:$0xf] }
  0x6d   : > { %1393 = vmatmul.bf16.gmra.mxu3 %v1909_v50  ;;  %1442 = vmatmul.bf16.gmra.mxu0 %v1913_v51  ;;  %v2053_v51 = vor.u32 %v2455_v44, %v2050_v45  ;;  %v1886_v44 = vld [vmem:[%s2694_s9 + $0x84] sm:$0xf0] }
  0x6e   : > { %v1892_v45 = vld [vmem:[%s2694_s9 + $0x68] sm:$0xf]  ;;  %v1889_v58 = vor.u32 %v2412_v43, %v1886_v44  ;;  %v1950_v43 = vld [vmem:[%s2694_s9 + $0x10c] sm:$0xf0] }
  0x6f   : > { %v1893_v59 = vor.u32 %v2417_v46, %v1892_v45  ;;  %v1956_v45 = vld [vmem:[%s2694_s9 + $0xf0] sm:$0xf]  ;;  %v2434_v46 = vld [vmem:[%s2694_s9 + $0x110] sm:$0xf0] }
  0x7b   : > { %1300 = vmatmul.bf16.gmra.mxu1 %v1937_v0  ;;  %1349 = vmatmul.bf16.gmra.mxu2 %v1941_v1  ;;  %v2092_v0 = vld [vmem:[%s2694_s9 + $0x208] sm:$0xf]  ;;  %v2469_v1 = vld [vmem:[%s2694_s9 + $0x228] sm:$0xf0] }
  0x7c   : > { %v2093_v8 = vor.u32 %v2469_v1, %v2092_v0 }
  0x7d   : > { %1398 = vmatmul.bf16.gmra.mxu3 %v1945_v2  ;;  %1447 = vmatmul.bf16.gmra.mxu0 %v1949_v3 }
  0x8b   : > { %1305 = vmatmul.bf16.gmra.mxu1 %v1973_v16  ;;  %1354 = vmatmul.bf16.gmra.mxu2 %v1977_v17  ;;  %v1848_v16 = vld [vmem:[%s2694_s9 + $0x18] sm:$0xf]  ;;  %v2407_v17 = vld [vmem:[%s2694_s9 + $0x38] sm:$0xf0] }
  0x8c   : > { %v1849_v25 = vor.u32 %v2407_v17, %v1848_v16  ;;  %v1920_v16 = vld [vmem:[%s2694_s9 + $0xa8] sm:$0xf]  ;;  %v2425_v17 = vld [vmem:[%s2694_s9 + $0xc8] sm:$0xf0] }
  0x8d   : > { %1403 = vmatmul.bf16.gmra.mxu3 %v1981_v18  ;;  %1452 = vmatmul.bf16.gmra.mxu0 %v1985_v19  ;;  %v2403_v18 = vld [vmem:[%s2694_s9 + $0x1c] sm:$0xf]  ;;  %v1850_v19 = vld [vmem:[%s2694_s9 + $0x3c] sm:$0xf0] }
  0x8e   : > { %v1853_v27 = vor.u32 %v2403_v18, %v1850_v19  ;;  %v2421_v18 = vld [vmem:[%s2694_s9 + $0xac] sm:$0xf]  ;;  %v1922_v19 = vld [vmem:[%s2694_s9 + $0xcc] sm:$0xf0] }
  0x9b   : > { %1310 = vmatmul.bf16.gmra.mxu1 %v2009_v32  ;;  %1359 = vmatmul.bf16.gmra.mxu2 %v2013_v33 }
  0x9d   : > { %1408 = vmatmul.bf16.gmra.mxu3 %v2017_v34  ;;  %1457 = vmatmul.bf16.gmra.mxu0 %v2021_v35 }
  0xa8   : > { %v2963_v50 = vpop.f32.mrf.mxu1 }
  0xaa   : > { %v1237_v53 = vpop.f32.mrf.mxu0 }
  0xab   : > { %1315 = vmatmul.bf16.gmra.mxu1 %v2045_v48  ;;  %1364 = vmatmul.bf16.gmra.mxu2 %v2049_v49 }
  0xad   : > { %1413 = vmatmul.bf16.gmra.mxu3 %v2053_v51  ;;  %1462 = vmatmul.bf16.gmra.mxu0 %v2057_v52  ;;  %v1881_v51 = vor.u32 %v2411_v38, %v1878_v39  ;;  %v1885_v52 = vor.u32 %v2416_v42, %v1884_v41  ;;  %v2429_v42 = vld [vmem:[%s2694_s9 + $0xec] sm:$0xf] }
  0xae   : > { %v2965_v54 = vpop.f32.mrf.mxu2 }
  0xb0   : > { %v2967_v55 = vpop.f32.mrf.mxu3  ;;  %v2969_v56 = vpop.f32.mrf.mxu1 }
  0xb2   : > { %v1239_v57 = vpop.f32.mrf.mxu0 }
  0xb6   : > { %v2979_v2 = vpop.f32.mrf.mxu2 }
  0xb8   : > { %v2981_v3 = vpop.f32.mrf.mxu3  ;;  %v2983_v6 = vpop.f32.mrf.mxu1 }
  0xba   : > { %v1242_v9 = vpop.f32.mrf.mxu0 }
  0xbb   : > { %1320 = vmatmul.bf16.gmra.mxu1 %v2081_v4  ;;  %1369 = vmatmul.bf16.gmra.mxu2 %v2085_v5 }
  0xbd   : > { %1418 = vmatmul.bf16.gmra.mxu3 %v2089_v7  ;;  %1467 = vmatmul.bf16.gmra.mxu0 %v2093_v8 }
  0xbe   : > { %v2985_v10 = vpop.f32.mrf.mxu2 }
  0xc0   : > { %v2987_v11 = vpop.f32.mrf.mxu3  ;;  %v2989_v12 = vpop.f32.mrf.mxu1 }
  0xc2   : > { %v1244_v13 = vpop.f32.mrf.mxu0 }
  0xc6   : > { %v2999_v22 = vpop.f32.mrf.mxu2 }
  0xc8   : > { %v3001_v23 = vpop.f32.mrf.mxu3  ;;  %v1286_v26 = vpop.f32.mrf.mxu1 }
  0xc9   : > { %v1287_v29 = vadd.f32 %v1286_v26, %v1237_v53 }
  0xca   : > { %v1433_v30 = vpop.f32.mrf.mxu0 }
  0xcb   : > { %1481 = vmatmul.bf16.vlgmr.msra.gmra.mxu1 %v1845_v24  ;;  %1530 = vmatmul.bf16.vlgmr.msra.gmra.mxu2 %v1849_v25 }
  0xcd   : > { %1579 = vmatmul.bf16.vlgmr.msra.gmra.mxu3 %v1853_v27  ;;  %1628 = vmatmul.bf16.vlgmr.msra.gmra.mxu0 %v1857_v28  ;;  %v1921_v28 = vor.u32 %v2425_v17, %v1920_v16  ;;  %v2438_v17 = vld [vmem:[%s2694_s9 + $0x134] sm:$0xf] }
  0xce   : > { %v1335_v31 = vpop.f32.mrf.mxu2 }
  0xcf   : > { %v1336_v32 = vadd.f32 %v1335_v31, %v1287_v29  ;;  %v1929_v31 = vor.u32 %v2426_v21, %v1928_v20  ;;  %v1992_v20 = vld [vmem:[%s2694_s9 + $0x138] sm:$0xf]  ;;  %v2443_v21 = vld [vmem:[%s2694_s9 + $0x158] sm:$0xf0] }
  0xd0   : > { %v1384_v33 = vpop.f32.mrf.mxu3  ;;  %v1288_v34 = vpop.f32.mrf.mxu1 }
  0xd1   : > { %v1385_v35 = vadd.f32 %v1384_v33, %v1336_v32  ;;  %v1289_v36 = vadd.f32 %v1288_v34, %v1239_v57 }
  0xd2   : > { %v1435_v37 = vpop.f32.mrf.mxu0 }
  0xd3   : > { %v3005_v40 = vadd.f32 %v1433_v30, %v1385_v35  ;;  %v1925_v30 = vor.u32 %v2421_v18, %v1922_v19  ;;  %v1986_v18 = vld [vmem:[%s2694_s9 + $0x154] sm:$0xf0] }
  0xd6   : > { %v1337_v47 = vpop.f32.mrf.mxu2 }
  0xd7   : > { %v1338_v48 = vadd.f32 %v1337_v47, %v1289_v36  ;;  %v2430_v47 = vld [vmem:[%s2694_s9 + $0xf4] sm:$0xf] }
  0xd8   : > { %v1386_v49 = vpop.f32.mrf.mxu3  ;;  %v1291_v53 = vpop.f32.mrf.mxu1 }
  0xd9   : > { %v1387_v57 = vadd.f32 %v1386_v49, %v1338_v48  ;;  %v1292_v60 = vadd.f32 %v1291_v53, %v1242_v9  ;;  %v2420_v9 = vld [vmem:[%s2694_s9 + $0xa4] sm:$0xf]  ;;  %v1958_v48 = vld [vmem:[%s2694_s9 + $0x114] sm:$0xf0] }
  0xda   : > { %v1438_v61 = vpop.f32.mrf.mxu0  ;;  %v1917_v27 = vor.u32 %v2420_v9, %v1914_v14  ;;  %v1964_v49 = vld [vmem:[%s2694_s9 + $0xf8] sm:$0xf] }
  0xdb   : > { %1486 = vmatmul.bf16.gmra.mxu1 %v1881_v51  ;;  %1535 = vmatmul.bf16.gmra.mxu2 %v1885_v52  ;;  %v3013_v62 = vadd.f32 %v1435_v37, %v1387_v57  ;;  %v2435_v51 = vld [vmem:[%s2694_s9 + $0x118] sm:$0xf0]  ;;  %v1957_v57 = vor.u32 %v2434_v46, %v1956_v45 }
  0xdc   : > { %v2447_v46 = vld [vmem:[%s2694_s9 + $0x17c] sm:$0xf] }
  0xdd   : > { %1584 = vmatmul.bf16.gmra.mxu3 %v1889_v58  ;;  %1633 = vmatmul.bf16.gmra.mxu0 %v1893_v59  ;;  %v1953_v59 = vor.u32 %v2429_v42, %v1950_v43 }
  0xde   : > { %v1340_v63 = vpop.f32.mrf.mxu2 }
  0xdf   : > { %v1341_v0 = vadd.f32 %v1340_v63, %v1292_v60  ;;  %v1965_v63 = vor.u32 %v2435_v51, %v1964_v49  ;;  %v2028_v49 = vld [vmem:[%s2694_s9 + $0x180] sm:$0xf]  ;;  %v2452_v51 = vld [vmem:[%s2694_s9 + $0x1a0] sm:$0xf0] }
  0xe0   : > { %v1389_v1 = vpop.f32.mrf.mxu3  ;;  %v1293_v4 = vpop.f32.mrf.mxu1 }
  0xe1   : > { %v1390_v5 = vadd.f32 %v1389_v1, %v1341_v0  ;;  %v1294_v7 = vadd.f32 %v1293_v4, %v1244_v13 }
  0xe2   : > { %v1440_v8 = vpop.f32.mrf.mxu0 }
  0xe3   : > { %v3017_v15 = vadd.f32 %v1438_v61, %v1390_v5  ;;  %v1961_v61 = vor.u32 %v2430_v47, %v1958_v48  ;;  %v2022_v47 = vld [vmem:[%s2694_s9 + $0x19c] sm:$0xf0] }
  0xe6   : > { %v1342_v24 = vpop.f32.mrf.mxu2 }
  0xe7   : > { %v1343_v25 = vadd.f32 %v1342_v24, %v1294_v7  ;;  %v2439_v24 = vld [vmem:[%s2694_s9 + $0x13c] sm:$0xf] }
  0xe8   : > { %v1391_v26 = vpop.f32.mrf.mxu3  ;;  %v1296_v29 = vpop.f32.mrf.mxu1 }
  0xe9   : > { %v1392_v13 = vadd.f32 %v1391_v26, %v1343_v25  ;;  %v1297_v32 = vadd.f32 %v1296_v29, %v2963_v50  ;;  %v1994_v25 = vld [vmem:[%s2694_s9 + $0x15c] sm:$0xf0] }
  0xea   : > { %v1443_v33 = vpop.f32.mrf.mxu0  ;;  %v2000_v26 = vld [vmem:[%s2694_s9 + $0x140] sm:$0xf] }
  0xeb   : > { %1491 = vmatmul.bf16.gmra.mxu1 %v1917_v27  ;;  %1540 = vmatmul.bf16.gmra.mxu2 %v1921_v28  ;;  %v3026_v34 = vadd.f32 %v1440_v8, %v1392_v13  ;;  %v2444_v27 = vld [vmem:[%s2694_s9 + $0x160] sm:$0xf0]  ;;  %v1993_v13 = vor.u32 %v2443_v21, %v1992_v20 }
  0xec   : > { %v2456_v21 = vld [vmem:[%s2694_s9 + $0x1c4] sm:$0xf] }
  0xed   : > { %1589 = vmatmul.bf16.gmra.mxu3 %v1925_v30  ;;  %1638 = vmatmul.bf16.gmra.mxu0 %v1929_v31  ;;  %v1989_v31 = vor.u32 %v2438_v17, %v1986_v18 }
  0xee   : > { %v1345_v35 = vpop.f32.mrf.mxu2 }
  0xef   : > { %v1346_v36 = vadd.f32 %v1345_v35, %v1297_v32 }
  0xf0   : > { %v1394_v37 = vpop.f32.mrf.mxu3  ;;  %v1298_v38 = vpop.f32.mrf.mxu1 }
  0xf1   : > { %v1395_v39 = vadd.f32 %v1394_v37, %v1346_v36  ;;  %v1299_v50 = vadd.f32 %v1298_v38, %v2969_v56 }
  0xf2   : > { %v1445_v41 = vpop.f32.mrf.mxu0 }
  0xf3   : > { %v3031_v44 = vadd.f32 %v1443_v33, %v1395_v39  ;;  %v1997_v33 = vor.u32 %v2439_v24, %v1994_v25  ;;  %v2058_v24 = vld [vmem:[%s2694_s9 + $0x1e4] sm:$0xf0] }
  0xf6   : > { %v1347_v52 = vpop.f32.mrf.mxu2 }
  0xf7   : > { %v1348_v53 = vadd.f32 %v1347_v52, %v1299_v50  ;;  %v2448_v52 = vld [vmem:[%s2694_s9 + $0x184] sm:$0xf] }
  0xf8   : > { %v1396_v58 = vpop.f32.mrf.mxu3  ;;  %v1301_v60 = vpop.f32.mrf.mxu1 }
  0xf9   : > { %v1397_v56 = vadd.f32 %v1396_v58, %v1348_v53  ;;  %v1302_v0 = vadd.f32 %v1301_v60, %v2983_v6  ;;  %v2030_v58 = vld [vmem:[%s2694_s9 + $0x1a4] sm:$0xf0] }
  0xfa   : > { %v1448_v1 = vpop.f32.mrf.mxu0 }
  0xfb   : > { %1496 = vmatmul.bf16.gmra.mxu1 %v1953_v59  ;;  %1545 = vmatmul.bf16.gmra.mxu2 %v1957_v57  ;;  %v3040_v4 = vadd.f32 %v1445_v41, %v1397_v56  ;;  %v2036_v59 = vld [vmem:[%s2694_s9 + $0x188] sm:$0xf]  ;;  %v2453_v57 = vld [vmem:[%s2694_s9 + $0x1a8] sm:$0xf0]  ;;  %v2029_v56 = vor.u32 %v2452_v51, %v2028_v49 }
  0xfd   : > { %1594 = vmatmul.bf16.gmra.mxu3 %v1961_v61  ;;  %1643 = vmatmul.bf16.gmra.mxu0 %v1965_v63  ;;  %v2025_v63 = vor.u32 %v2447_v46, %v2022_v47 }
  0xfe   : > { %v1350_v5 = vpop.f32.mrf.mxu2 }
  0xff   : > { %v1351_v7 = vadd.f32 %v1350_v5, %v1302_v0  ;;  %v2037_v5 = vor.u32 %v2453_v57, %v2036_v59  ;;  %v2100_v59 = vld [vmem:[%s2694_s9 + $0x210] sm:$0xf]  ;;  %v2470_v57 = vld [vmem:[%s2694_s9 + $0x230] sm:$0xf0] }
 0x100   : > { %v1399_v8 = vpop.f32.mrf.mxu3  ;;  %v1303_v9 = vpop.f32.mrf.mxu1 }
 0x101   : > { %v1400_v14 = vadd.f32 %v1399_v8, %v1351_v7  ;;  %v1304_v6 = vadd.f32 %v1303_v9, %v2989_v12  ;;  %v2001_v12 = vor.u32 %v2444_v27, %v2000_v26  ;;  %v2064_v26 = vld [vmem:[%s2694_s9 + $0x1c8] sm:$0xf]  ;;  %v2461_v27 = vld [vmem:[%s2694_s9 + $0x1e8] sm:$0xf0] }
 0x102   : > { %v1450_v16 = vpop.f32.mrf.mxu0 }
 0x103   : > { %v3045_v19 = vadd.f32 %v1448_v1, %v1400_v14  ;;  %v2033_v1 = vor.u32 %v2448_v52, %v2030_v58  ;;  %v2465_v52 = vld [vmem:[%s2694_s9 + $0x20c] sm:$0xf] }
 0x106   : > { %v1352_v28 = vpop.f32.mrf.mxu2 }
 0x107   : > { %v1353_v29 = vadd.f32 %v1352_v28, %v1304_v6  ;;  %v2457_v28 = vld [vmem:[%s2694_s9 + $0x1cc] sm:$0xf] }
 0x108   : > { %v1401_v30 = vpop.f32.mrf.mxu3  ;;  %v1306_v32 = vpop.f32.mrf.mxu1 }
 0x109   : > { %v1402_v35 = vadd.f32 %v1401_v30, %v1353_v29  ;;  %v1307_v38 = vadd.f32 %v1306_v32, %v2965_v54  ;;  %v2066_v30 = vld [vmem:[%s2694_s9 + $0x1ec] sm:$0xf0] }
 0x10a   : > { %v1453_v36 = vpop.f32.mrf.mxu0 }
 0x10b   : > { %1501 = vmatmul.bf16.gmra.mxu1 %v1989_v31  ;;  %1550 = vmatmul.bf16.gmra.mxu2 %v1993_v13  ;;  %v3053_v37 = vadd.f32 %v1450_v16, %v1402_v35  ;;  %v2072_v31 = vld [vmem:[%s2694_s9 + $0x1d0] sm:$0xf]  ;;  %v2462_v13 = vld [vmem:[%s2694_s9 + $0x1f0] sm:$0xf0]  ;;  %v2065_v35 = vor.u32 %v2461_v27, %v2064_v26 }
 0x10d   : > { %1599 = vmatmul.bf16.gmra.mxu3 %v1997_v33  ;;  %1648 = vmatmul.bf16.gmra.mxu0 %v2001_v12  ;;  %v2061_v12 = vor.u32 %v2456_v21, %v2058_v24 }
 0x10e   : > { %v1355_v39 = vpop.f32.mrf.mxu2 }
 0x10f   : > { %v1356_v50 = vadd.f32 %v1355_v39, %v1307_v38  ;;  %v2069_v38 = vor.u32 %v2457_v28, %v2066_v30  ;;  %v2073_v39 = vor.u32 %v2462_v13, %v2072_v31 }
 0x110   : > { %v1404_v41 = vpop.f32.mrf.mxu3  ;;  %v1308_v42 = vpop.f32.mrf.mxu1 }
 0x111   : > { %v1405_v43 = vadd.f32 %v1404_v41, %v1356_v50  ;;  %v1309_v53 = vadd.f32 %v1308_v42, %v2979_v2 }
 0x112   : > { %v1455_v45 = vpop.f32.mrf.mxu0 }
 0x113   : > { %v3058_v48 = vadd.f32 %v1453_v36, %v1405_v43 }
 0x116   : > { %v1357_v54 = vpop.f32.mrf.mxu2 }
 0x117   : > { %v1358_v60 = vadd.f32 %v1357_v54, %v1309_v53  ;;  %v2094_v53 = vld [vmem:[%s2694_s9 + $0x22c] sm:$0xf0]  ;;  %v2466_v54 = vld [vmem:[%s2694_s9 + $0x214] sm:$0xf] }
 0x118   : > { %v1406_v61 = vpop.f32.mrf.mxu3  ;;  %v1311_v0 = vpop.f32.mrf.mxu1 }
 0x119   : > { %v1407_v7 = vadd.f32 %v1406_v61, %v1358_v60  ;;  %v1312_v9 = vadd.f32 %v1311_v0, %v2985_v10  ;;  %v2102_v61 = vld [vmem:[%s2694_s9 + $0x234] sm:$0xf0] }
 0x11a   : > { %v1458_v8 = vpop.f32.mrf.mxu0 }
 0x11b   : > { %1506 = vmatmul.bf16.gmra.mxu1 %v2025_v63  ;;  %1555 = vmatmul.bf16.gmra.mxu2 %v2029_v56  ;;  %v3067_v2 = vadd.f32 %v1455_v45, %v1407_v7  ;;  %v2108_v63 = vld [vmem:[%s2694_s9 + $0x218] sm:$0xf]  ;;  %v2471_v56 = vld [vmem:[%s2694_s9 + $0x238] sm:$0xf0]  ;;  %v2101_v7 = vor.u32 %v2470_v57, %v2100_v59 }
 0x11d   : > { %1604 = vmatmul.bf16.gmra.mxu3 %v2033_v1  ;;  %1653 = vmatmul.bf16.gmra.mxu0 %v2037_v5  ;;  %v2097_v5 = vor.u32 %v2465_v52, %v2094_v53 }
 0x11e   : > { %v1360_v14 = vpop.f32.mrf.mxu2 }
 0x11f   : > { %v1361_v6 = vadd.f32 %v1360_v14, %v1312_v9  ;;  %v2105_v9 = vor.u32 %v2466_v54, %v2102_v61  ;;  %v2109_v14 = vor.u32 %v2471_v56, %v2108_v63 }
 0x120   : > { %v1409_v16 = vpop.f32.mrf.mxu3  ;;  %v1313_v17 = vpop.f32.mrf.mxu1 }
 0x121   : > { %v1410_v18 = vadd.f32 %v1409_v16, %v1361_v6  ;;  %v1314_v29 = vadd.f32 %v1313_v17, %v2999_v22 }
 0x122   : > { %v1460_v20 = vpop.f32.mrf.mxu0 }
 0x123   : > { %v3072_v25 = vadd.f32 %v1458_v8, %v1410_v18 }
 0x126   : > { %v1362_v10 = vpop.f32.mrf.mxu2 }
 0x127   : > { %v1363_v32 = vadd.f32 %v1362_v10, %v1314_v29 }
 0x128   : > { %v1411_v33 = vpop.f32.mrf.mxu3  ;;  %v1316_v36 = vpop.f32.mrf.mxu1 }
 0x129   : > { %v1412_v50 = vadd.f32 %v1411_v33, %v1363_v32  ;;  %v1317_v42 = vadd.f32 %v1316_v36, %v2967_v55 }
 0x12a   : > { %v1463_v41 = vpop.f32.mrf.mxu0 }
 0x12b   : > { %1511 = vmatmul.bf16.gmra.mxu1 %v2061_v12  ;;  %1560 = vmatmul.bf16.gmra.mxu2 %v2065_v35  ;;  %v3081_v22 = vadd.f32 %v1460_v20, %v1412_v50 }
 0x12d   : > { %1609 = vmatmul.bf16.gmra.mxu3 %v2069_v38  ;;  %1658 = vmatmul.bf16.gmra.mxu0 %v2073_v39 }
 0x12e   : > { %v1365_v43 = vpop.f32.mrf.mxu2 }
 0x12f   : > { %v1366_v45 = vadd.f32 %v1365_v43, %v1317_v42 }
 0x130   : > { %v1414_v46 = vpop.f32.mrf.mxu3  ;;  %v1318_v47 = vpop.f32.mrf.mxu1 }
 0x131   : > { %v1415_v49 = vadd.f32 %v1414_v46, %v1366_v45  ;;  %v1319_v60 = vadd.f32 %v1318_v47, %v2981_v3 }
 0x132   : > { %v1465_v51 = vpop.f32.mrf.mxu0 }
 0x133   : > { %v3086_v58 = vadd.f32 %v1463_v41, %v1415_v49 }
 0x136   : > { %v1367_v55 = vpop.f32.mrf.mxu2 }
 0x137   : > { %v1368_v0 = vadd.f32 %v1367_v55, %v1319_v60 }
 0x138   : > { %v1416_v1 = vpop.f32.mrf.mxu3  ;;  %v1321_v8 = vpop.f32.mrf.mxu1 }
 0x139   : > { %v1417_v6 = vadd.f32 %v1416_v1, %v1368_v0  ;;  %v1322_v3 = vadd.f32 %v1321_v8, %v2987_v11 }
 0x13a   : > { %v1468_v16 = vpop.f32.mrf.mxu0 }
 0x13b   : > { %1516 = vmatmul.bf16.gmra.mxu1 %v2097_v5  ;;  %1565 = vmatmul.bf16.gmra.mxu2 %v2101_v7  ;;  %v3095_v17 = vadd.f32 %v1465_v51, %v1417_v6  ;;  %v3114_v51 = vld [vmem:[%s3181_s3] ss:$0 sm:$0xff] }
 0x13d   : > { %1614 = vmatmul.bf16.gmra.mxu3 %v2105_v9  ;;  %1663 = vmatmul.bf16.gmra.mxu0 %v2109_v14 }
 0x13e   : > { %v1370_v18 = vpop.f32.mrf.mxu2 }
 0x13f   : > { %v1371_v20 = vadd.f32 %v1370_v18, %v1322_v3 }
 0x140   : > { %v1419_v21 = vpop.f32.mrf.mxu3  ;;  %v1323_v24 = vpop.f32.mrf.mxu1 }
 0x141   : > { %v1420_v26 = vadd.f32 %v1419_v21, %v1371_v20  ;;  %v1324_v29 = vadd.f32 %v1323_v24, %v3001_v23  ;;  %v3107_v23 = vld [vmem:[%s3180_s2] ss:$0 sm:$0xff] }
 0x142   : > { %v1470_v27 = vpop.f32.mrf.mxu0 }
 0x143   : > { %v3098_v28 = vadd.f32 %v1468_v16, %v1420_v26 }
 0x146   : > { %v1372_v30 = vpop.f32.mrf.mxu2 }
 0x147   : > { %v1373_v31 = vadd.f32 %v1372_v30, %v1324_v29 }
 0x148   : > { %v1421_v13 = vpop.f32.mrf.mxu3  ;;  %v1482_v10 = vpop.f32.mrf.mxu1 }
 0x149   : > { %v1422_v32 = vadd.f32 %v1421_v13, %v1373_v31  ;;  %v1483_v11 = vadd.f32 %v1482_v10, %v3005_v40 }
 0x14a   : > { %v1629_v33 = vpop.f32.mrf.mxu0 }
 0x14b   : > { %v3101_v12 = vadd.f32 %v1470_v27, %v1422_v32 }
 0x14e   : > { %v1531_v35 = vpop.f32.mrf.mxu2 }
 0x14f   : > { %v1532_v36 = vadd.f32 %v1531_v35, %v1483_v11 }
 0x150   : > { %v1580_v38 = vpop.f32.mrf.mxu3  ;;  %v1484_v39 = vpop.f32.mrf.mxu1 }
 0x151   : > { %v1581_v50 = vadd.f32 %v1580_v38, %v1532_v36  ;;  %v1485_v43 = vadd.f32 %v1484_v39, %v3013_v62 }
 0x152   : > { %v1631_v41 = vpop.f32.mrf.mxu0 }
 0x153   : > { %v1630_v42 = vadd.f32 %v1629_v33, %v1581_v50 }
 0x155   : > { %v1673_v40 = vmul.f32 %v3107_v23, %v1630_v42 }
 0x156   : > { %v1533_v45 = vpop.f32.mrf.mxu2 }
 0x157   : > { %v1534_v46 = vadd.f32 %v1533_v45, %v1485_v43  ;;  %v1693_v57 = vadd.f32 %v3114_v51, %v1673_v40 }
 0x158   : > { %v1582_v47 = vpop.f32.mrf.mxu3  ;;  %v1487_v49 = vpop.f32.mrf.mxu1 }
 0x159   : > { %v1583_v52 = vadd.f32 %v1582_v47, %v1534_v46  ;;  %v1488_v62 = vadd.f32 %v1487_v49, %v3017_v15  ;;  %v1709_v0 = vmax.f32 %v1693_v57, 0.0 }
 0x15a   : > { %v1634_v53 = vpop.f32.mrf.mxu0 }
 0x15b   : > { %v1632_v59 = vadd.f32 %v1631_v41, %v1583_v52 }
 0x15d   : > { %v1674_v54 = vmul.f32 %v3107_v23, %v1632_v59 }
 0x15e   : > { %v1536_v60 = vpop.f32.mrf.mxu2 }
 0x15f   : > { %v1694_v61 = vadd.f32 %v3114_v51, %v1674_v54  ;;  %v1537_v63 = vadd.f32 %v1536_v60, %v1488_v62 }
 0x160   : > { %v1585_v56 = vpop.f32.mrf.mxu3  ;;  %v1489_v55 = vpop.f32.mrf.mxu1 }
 0x161   : > { %v1710_v1 = vmax.f32 %v1694_v61, 0.0  ;;  %v1586_v5 = vadd.f32 %v1585_v56, %v1537_v63  ;;  %v1490_v9 = vadd.f32 %v1489_v55, %v3026_v34 }
 0x162   : > { %v1636_v7 = vpop.f32.mrf.mxu0 }
 0x163   : > { %v2547_v8 = vpack.c.bf16 %v1710_v1, %v1709_v0  ;;  %v1635_v15 = vadd.f32 %v1634_v53, %v1586_v5 }
 0x165   : > { %2548 = vst [vmem:[%s3124_s7] sm:$0xff] %v2547_v8   ;;  %v1675_v18 = vmul.f32 %v3107_v23, %v1635_v15 }
 0x166   : > { %v1538_v14 = vpop.f32.mrf.mxu2 }
 0x167   : > { %v1539_v6 = vadd.f32 %v1538_v14, %v1490_v9  ;;  %v1695_v26 = vadd.f32 %v3114_v51, %v1675_v18 }
 0x168   : > { %v1587_v16 = vpop.f32.mrf.mxu3  ;;  %v1492_v3 = vpop.f32.mrf.mxu1 }
 0x169   : > { %v1588_v20 = vadd.f32 %v1587_v16, %v1539_v6  ;;  %v1493_v29 = vadd.f32 %v1492_v3, %v3031_v44  ;;  %v1711_v32 = vmax.f32 %v1695_v26, 0.0 }
 0x16a   : > { %v1639_v21 = vpop.f32.mrf.mxu0 }
 0x16b   : > { %v1637_v24 = vadd.f32 %v1636_v7, %v1588_v20 }
 0x16d   : > { %v1676_v27 = vmul.f32 %v3107_v23, %v1637_v24 }
 0x16e   : > { %v1541_v30 = vpop.f32.mrf.mxu2 }
 0x16f   : > { %v1696_v31 = vadd.f32 %v3114_v51, %v1676_v27  ;;  %v1542_v34 = vadd.f32 %v1541_v30, %v1493_v29 }
 0x170   : > { %v1590_v13 = vpop.f32.mrf.mxu3  ;;  %v1494_v10 = vpop.f32.mrf.mxu1 }
 0x171   : > { %v1712_v33 = vmax.f32 %v1696_v31, 0.0  ;;  %v1591_v11 = vadd.f32 %v1590_v13, %v1542_v34  ;;  %v1495_v39 = vadd.f32 %v1494_v10, %v3040_v4 }
 0x172   : > { %v1641_v35 = vpop.f32.mrf.mxu0 }
 0x173   : > { %v2552_v36 = vpack.c.bf16 %v1712_v33, %v1711_v32  ;;  %v1640_v38 = vadd.f32 %v1639_v21, %v1591_v11 }
 0x175   : > { %2584 = vst [vmem:[%s3124_s7 + $0x8] sm:$0xff] %v2552_v36   ;;  %v1677_v44 = vmul.f32 %v3107_v23, %v1640_v38 }
 0x176   : > { %v1543_v50 = vpop.f32.mrf.mxu2 }
 0x177   : > { %v1544_v41 = vadd.f32 %v1543_v50, %v1495_v39  ;;  %v1697_v49 = vadd.f32 %v3114_v51, %v1677_v44 }
 0x178   : > { %v1592_v42 = vpop.f32.mrf.mxu3  ;;  %v1497_v43 = vpop.f32.mrf.mxu1 }
 0x179   : > { %v1593_v45 = vadd.f32 %v1592_v42, %v1544_v41  ;;  %v1498_v52 = vadd.f32 %v1497_v43, %v3045_v19  ;;  %v1713_v62 = vmax.f32 %v1697_v49, 0.0 }
 0x17a   : > { %v1644_v46 = vpop.f32.mrf.mxu0 }
 0x17b   : > { %v1642_v47 = vadd.f32 %v1641_v35, %v1593_v45 }
 0x17d   : > { %v1678_v40 = vmul.f32 %v3107_v23, %v1642_v47 }
 0x17e   : > { %v1546_v53 = vpop.f32.mrf.mxu2 }
 0x17f   : > { %v1698_v59 = vadd.f32 %v3114_v51, %v1678_v40  ;;  %v1547_v4 = vadd.f32 %v1546_v53, %v1498_v52 }
 0x180   : > { %v1595_v57 = vpop.f32.mrf.mxu3  ;;  %v1499_v54 = vpop.f32.mrf.mxu1 }
 0x181   : > { %v1714_v60 = vmax.f32 %v1698_v59, 0.0  ;;  %v1596_v61 = vadd.f32 %v1595_v57, %v1547_v4  ;;  %v1500_v0 = vadd.f32 %v1499_v54, %v3053_v37 }
 0x182   : > { %v1646_v63 = vpop.f32.mrf.mxu0 }
 0x183   : > { %v2557_v56 = vpack.c.bf16 %v1714_v60, %v1713_v62  ;;  %v1645_v55 = vadd.f32 %v1644_v46, %v1596_v61 }
 0x185   : > { %2585 = vst [vmem:[%s3124_s7 + $0x10] sm:$0xff] %v2557_v56   ;;  %v1679_v19 = vmul.f32 %v3107_v23, %v1645_v55 }
 0x186   : > { %v1548_v1 = vpop.f32.mrf.mxu2 }
 0x187   : > { %v1549_v5 = vadd.f32 %v1548_v1, %v1500_v0  ;;  %v1699_v6 = vadd.f32 %v3114_v51, %v1679_v19 }
 0x188   : > { %v1597_v7 = vpop.f32.mrf.mxu3  ;;  %v1502_v8 = vpop.f32.mrf.mxu1 }
 0x189   : > { %v1598_v15 = vadd.f32 %v1597_v7, %v1549_v5  ;;  %v1503_v3 = vadd.f32 %v1502_v8, %v3058_v48  ;;  %v1715_v26 = vmax.f32 %v1699_v6, 0.0 }
 0x18a   : > { %v1649_v9 = vpop.f32.mrf.mxu0 }
 0x18b   : > { %v1647_v14 = vadd.f32 %v1646_v63, %v1598_v15 }
 0x18d   : > { %v1680_v16 = vmul.f32 %v3107_v23, %v1647_v14 }
 0x18e   : > { %v1551_v18 = vpop.f32.mrf.mxu2 }
 0x18f   : > { %v1700_v20 = vadd.f32 %v3114_v51, %v1680_v16  ;;  %v1552_v37 = vadd.f32 %v1551_v18, %v1503_v3 }
 0x190   : > { %v1600_v21 = vpop.f32.mrf.mxu3  ;;  %v1504_v24 = vpop.f32.mrf.mxu1 }
 0x191   : > { %v1716_v27 = vmax.f32 %v1700_v20, 0.0  ;;  %v1601_v29 = vadd.f32 %v1600_v21, %v1552_v37  ;;  %v1505_v13 = vadd.f32 %v1504_v24, %v3067_v2 }
 0x192   : > { %v1651_v30 = vpop.f32.mrf.mxu0 }
 0x193   : > { %v2562_v31 = vpack.c.bf16 %v1716_v27, %v1715_v26  ;;  %v1650_v34 = vadd.f32 %v1649_v9, %v1601_v29 }
 0x195   : > { %2586 = vst [vmem:[%s3124_s7 + $0x18] sm:$0xff] %v2562_v31   ;;  %v1681_v48 = vmul.f32 %v3107_v23, %v1650_v34 }
 0x196   : > { %v1553_v10 = vpop.f32.mrf.mxu2 }
 0x197   : > { %v1554_v32 = vadd.f32 %v1553_v10, %v1505_v13  ;;  %v1701_v39 = vadd.f32 %v3114_v51, %v1681_v48 }
 0x198   : > { %v1602_v33 = vpop.f32.mrf.mxu3  ;;  %v1507_v11 = vpop.f32.mrf.mxu1 }
 0x199   : > { %v1603_v35 = vadd.f32 %v1602_v33, %v1554_v32  ;;  %v1508_v41 = vadd.f32 %v1507_v11, %v3072_v25  ;;  %v1717_v46 = vmax.f32 %v1701_v39, 0.0 }
 0x19a   : > { %v1654_v36 = vpop.f32.mrf.mxu0 }
 0x19b   : > { %v1652_v38 = vadd.f32 %v1651_v30, %v1603_v35 }
 0x19d   : > { %v1682_v50 = vmul.f32 %v3107_v23, %v1652_v38 }
 0x19e   : > { %v1556_v42 = vpop.f32.mrf.mxu2 }
 0x19f   : > { %v1702_v43 = vadd.f32 %v3114_v51, %v1682_v50  ;;  %v1557_v2 = vadd.f32 %v1556_v42, %v1508_v41 }
 0x1a0   : > { %v1605_v44 = vpop.f32.mrf.mxu3  ;;  %v1509_v45 = vpop.f32.mrf.mxu1 }
 0x1a1   : > { %v1718_v47 = vmax.f32 %v1702_v43, 0.0  ;;  %v1606_v49 = vadd.f32 %v1605_v44, %v1557_v2  ;;  %v1510_v59 = vadd.f32 %v1509_v45, %v3081_v22 }
 0x1a2   : > { %v1656_v40 = vpop.f32.mrf.mxu0 }
 0x1a3   : > { %v2567_v52 = vpack.c.bf16 %v1718_v47, %v1717_v46  ;;  %v1655_v53 = vadd.f32 %v1654_v36, %v1606_v49 }
 0x1a5   : > { %2587 = vst [vmem:[%s3124_s7 + $0x20] sm:$0xff] %v2567_v52   ;;  %v1683_v25 = vmul.f32 %v3107_v23, %v1655_v53 }
 0x1a6   : > { %v1558_v4 = vpop.f32.mrf.mxu2 }
 0x1a7   : > { %v1559_v57 = vadd.f32 %v1558_v4, %v1510_v59  ;;  %v1703_v56 = vadd.f32 %v3114_v51, %v1683_v25 }
 0x1a8   : > { %v1607_v54 = vpop.f32.mrf.mxu3  ;;  %v1512_v62 = vpop.f32.mrf.mxu1 }
 0x1a9   : > { %v1608_v60 = vadd.f32 %v1607_v54, %v1559_v57  ;;  %v1513_v0 = vadd.f32 %v1512_v62, %v3086_v58  ;;  %v1719_v19 = vmax.f32 %v1703_v56, 0.0 }
 0x1aa   : > { %v1659_v63 = vpop.f32.mrf.mxu0 }
 0x1ab   : > { %v1657_v61 = vadd.f32 %v1656_v40, %v1608_v60 }
 0x1ad   : > { %v1684_v55 = vmul.f32 %v3107_v23, %v1657_v61 }
 0x1ae   : > { %v1561_v1 = vpop.f32.mrf.mxu2 }
 0x1af   : > { %v1704_v5 = vadd.f32 %v3114_v51, %v1684_v55  ;;  %v1562_v22 = vadd.f32 %v1561_v1, %v1513_v0 }
 0x1b0   : > { %v1610_v7 = vpop.f32.mrf.mxu3  ;;  %v1514_v8 = vpop.f32.mrf.mxu1 }
 0x1b1   : > { %v1720_v15 = vmax.f32 %v1704_v5, 0.0  ;;  %v1611_v9 = vadd.f32 %v1610_v7, %v1562_v22  ;;  %v1515_v16 = vadd.f32 %v1514_v8, %v3095_v17 }
 0x1b2   : > { %v1661_v3 = vpop.f32.mrf.mxu0 }
 0x1b3   : > { %v2572_v14 = vpack.c.bf16 %v1720_v15, %v1719_v19  ;;  %v1660_v6 = vadd.f32 %v1659_v63, %v1611_v9 }
 0x1b5   : > { %2588 = vst [vmem:[%s3124_s7 + $0x28] sm:$0xff] %v2572_v14   ;;  %v1685_v58 = vmul.f32 %v3107_v23, %v1660_v6 }
 0x1b6   : > { %v1563_v18 = vpop.f32.mrf.mxu2 }
 0x1b7   : > { %v1564_v20 = vadd.f32 %v1563_v18, %v1515_v16  ;;  %v1705_v27 = vadd.f32 %v3114_v51, %v1685_v58 }
 0x1b8   : > { %v1612_v37 = vpop.f32.mrf.mxu3  ;;  %v1517_v21 = vpop.f32.mrf.mxu1 }
 0x1b9   : > { %v1613_v24 = vadd.f32 %v1612_v37, %v1564_v20  ;;  %v1518_v30 = vadd.f32 %v1517_v21, %v3098_v28  ;;  %v1721_v32 = vmax.f32 %v1705_v27, 0.0 }
 0x1ba   : > { %v1664_v10 = vpop.f32.mrf.mxu0 }
 0x1bb   : > { %v1662_v26 = vadd.f32 %v1661_v3, %v1613_v24 }
 0x1bd   : > { %v1686_v29 = vmul.f32 %v3107_v23, %v1662_v26 }
 0x1be   : > { %v1566_v31 = vpop.f32.mrf.mxu2 }
 0x1bf   : > { %v1706_v34 = vadd.f32 %v3114_v51, %v1686_v29  ;;  %v1567_v17 = vadd.f32 %v1566_v31, %v1518_v30 }
 0x1c0   : > { %v1615_v13 = vpop.f32.mrf.mxu3  ;;  %v1519_v48 = vpop.f32.mrf.mxu1 }
 0x1c1   : > { %v1722_v33 = vmax.f32 %v1706_v34, 0.0  ;;  %v1616_v11 = vadd.f32 %v1615_v13, %v1567_v17  ;;  %v1520_v38 = vadd.f32 %v1519_v48, %v3101_v12 }
 0x1c2   : > { %v1666_v43 = vpop.f32.mrf.mxu0 }
 0x1c3   : > { %v2577_v35 = vpack.c.bf16 %v1722_v33, %v1721_v32  ;;  %v1665_v36 = vadd.f32 %v1664_v10, %v1616_v11 }
 0x1c5   : > { %2589 = vst [vmem:[%s3124_s7 + $0x30] sm:$0xff] %v2577_v35   ;;  %v1687_v28 = vmul.f32 %v3107_v23, %v1665_v36 }
 0x1c6   : > { %v1568_v39 = vpop.f32.mrf.mxu2 }
 0x1c7   : > { %v1569_v50 = vadd.f32 %v1568_v39, %v1520_v38  ;;  %v1707_v44 = vadd.f32 %v3114_v51, %v1687_v28 }
 0x1c8   : > { %v1617_v41 = vpop.f32.mrf.mxu3 }
 0x1c9   : > { %v1618_v42 = vadd.f32 %v1617_v41, %v1569_v50  ;;  %v1723_v47 = vmax.f32 %v1707_v44, 0.0 }
 0x1cb   : > { %v1667_v2 = vadd.f32 %v1666_v43, %v1618_v42 }
 0x1cd   : > { %v1688_v45 = vmul.f32 %v3107_v23, %v1667_v2 }
 0x1cf   : > { %v1708_v46 = vadd.f32 %v3114_v51, %v1688_v45 }
 0x1d1   : > { %v1724_v49 = vmax.f32 %v1708_v46, 0.0 }
 0x1d3   : > { %v2582_v40 = vpack.c.bf16 %v1724_v49, %v1723_v47 }
 0x1d5   : > { %2590 = vst [vmem:[%s3124_s7 + $0x38] sm:$0xff] %v2582_v40  }
 0x1d6 PF: > { %s14_s15 = sadd.s32 1, %s2632_s15  }
 0x1d7   : > { %p11_p4 = scmp.ge.s32.totalorder %s14_s15, 4  }
 0x1d9   :  { %13 = sbr.rel (!%p11_p4) target bundleno = 1 (0x1), region = 66 }

// kernel: _lambda_.10
= control target key start
LH: loop header
LB: loop body
LE: loop exit
PB: predicated region body
PF: predicated region fallthrough
CT: control target
= control target key end

     0   :  { %12 = vsyncpa [#allocation3], 0  ;;  %s3705_s0 = inlined_call_operand.vmem [shape: bf16[256,1152], index: 0, kind: input, shape index: {}]   ;;  %s3706_s1 = inlined_call_operand.vmem [shape: bf16[1152,128], index: 1, kind: input, shape index: {}]   ;;  %s3707_s2 = inlined_call_operand.vmem [shape: bf16[256,128], index: 2, kind: input, shape index: {}]   ;;  %s3708_s3 = inlined_call_operand.vmem [shape: f32[1,128], index: 3, kind: input, shape index: {}]   ;;  %s3709_s4 = inlined_call_operand.vmem [shape: f32[1,128], index: 4, kind: input, shape index: {}]   ;;  %s3710_s5 = inlined_call_operand.hbm [shape: bf16[256,128], index: 5, kind: output, shape index: {0}]   ;;  %s3711_s6 = inlined_call_operand.vmem [shape: bf16[256,128], index: 6, kind: output, shape index: {1}]  }
   0x1   :  { %14 = vsyncpa [#allocation3 + $0x1], 0  ;;  %s3072_s21 = smov 0   ;;  %s3074_s22 = smov 0  }
   0x2   :  { %s3076_s23 = smov 0   ;;  %s3078_s24 = smov 0  }
   0x3 LB: > { %s3093_s25 = sadd.s32 4294967295, %s3033_s24   ;;  %s2033_s26 = sadd.s32 4294967294, %s3033_s24   ;;  %s3033_s24 = sphi %s3078_s24, %s3717_s24   ;;  %s3029_s23 = sphi %s3076_s23, %s3716_s23   ;;  %s3025_s22 = sphi %s3074_s22, %s3715_s22   ;;  %s3021_s21 = sphi %s3072_s21, %s3714_s21  }
   0x4   : > { %s3097_s27 = sadd.s32 1, %s3033_s24   ;;  %s142_s28 = sadd.s32 1, %s3029_s23 }
   0x5   : > { %s139_s29 = ssub.s32 %s3033_s24, %s3097_s27  ;;  %p152_p0 = scmp.ne.s32.totalorder %s3029_s23, %s3025_s22 }
   0x6   : > { %p140_p1 = scmp.eq.s32.totalorder %s139_s29, 0  ;;  %p153_p2 = scmp.eq.s32.totalorder %s3093_s25, 1 }
   0x7   : > { %p158_p3 = scmp.ne.s32.totalorder %s3025_s22, %s3021_s21  ;;  %p159_p4 = scmp.eq.s32.totalorder %s2033_s26, 1 }
   0x8   : > { %s3108_s30 = scalar_select %p140_p1, %s3029_s23, %s142_s28  }
   0x9   : > { %p3110_p5 = por %p153_p2, %p152_p0  ;;  %p3114_p6 = por %p159_p4, %p158_p3 }
   0xa   : > { %p2036_p7 = scmp.ge.s32.totalorder %s3033_s24, 1  ;;  %p231_p8 = scmp.lt.s32.totalorder %s3033_s24, 3 }
   0xc   : > { %p232_p9 = pnand %p2036_p7, %p231_p8 }
   0xd   : > { %s2038_s15 = sshll.u32 (!%p232_p9), %s3093_s25, 4  ;;  %s262_s20 = sand.u32 (!%p232_p9), 1, %s3025_s22  }
   0xe   : > { %235 = sbr.rel (%p232_p9) target bundleno = 478 (0x1de), region = 40  ;;  %p273_p10 = scmp.lt.s32.totalorder (!%p232_p9), %s2038_s15, 31 }
   0xf   : > { %s2037_s29 = sshll.u32 (!%p232_p9), %s262_s20, 6  ;;  %s2991_s10 = scalar_lea.hbm (!%p232_p9), %s3710_s5, 128 }
  0x10   : > { %s3604_s9 = scalar_lea.vmem (!%p232_p9), [#allocation2], %s2037_s29 }
  0x11   : > { %s1927_s17 = sshll.u32 (!%p232_p9), %s3604_s9, 4  ;;  %s1928_s17 = int_to_ptr.vmem [resolvable:$true] %s1927_s17 }
  0x13   : > { %v2704_v0 = vld [vmem:[%s3706_s1 + $0x38] sm:$0xff]  ;;  %v2703_v1 = vld [vmem:[%s3706_s1 + $0x30] sm:$0xff]  ;;  %v2702_v2 = vld [vmem:[%s3706_s1 + $0x28] sm:$0xff]  ;;  %s3719_s15 = smov (!%p273_p10, %s2038_s15), 31 }
  0x14   : > { %2903 = vmatpush.bf16.msra.mxu1 %v2704_v0  ;;  %2904 = vmatpush.bf16.msra.mxu2 %v2704_v0  ;;  %v2701_v3 = vld [vmem:[%s3706_s1 + $0x20] sm:$0xff]  ;;  %v2700_v4 = vld [vmem:[%s3706_s1 + $0x18] sm:$0xff]  ;;  %v2699_v5 = vld [vmem:[%s3706_s1 + $0x10] sm:$0xff]  ;;  %s2927_s28 = smul.u32 36, %s3719_s15  ;;  %s2041_s19 = sshll.u32 %s3719_s15, 2 }
  0x15   : > { %2905 = vmatpush.bf16.msra.mxu3 %v2704_v0  ;;  %1348 = vmatpush.bf16.msra.mxu0 %v2704_v0  ;;  %v2698_v6 = vld [vmem:[%s3706_s1 + $0x8] sm:$0xff]  ;;  %v2697_v7 = vld [vmem:[%s3706_s1] sm:$0xff]  ;;  %v2720_v16 = vld [vmem:[%s3706_s1 + $0xb8] sm:$0xff]  ;;  %s3409_s11 = scalar_lea.vmem %s3707_s2, %s2041_s19  ;;  %s3613_s13 = scalar_lea.vmem %s3711_s6, %s2041_s19 }
  0x16   : > { %s3148_s12 = scalar_lea.vmem %s3705_s0, %s2927_s28  ;;  %v2712_v17 = vld [vmem:[%s3706_s1 + $0x78] sm:$0xff]  ;;  %v2719_v24 = vld [vmem:[%s3706_s1 + $0xb0] sm:$0xff]  ;;  %v2718_v28 = vld [vmem:[%s3706_s1 + $0xa8] sm:$0xff]  ;;  %s2769_s15 = sshll.u32 %s3093_s25, 6 }
  0x17   : > { %v2118_v8 = vld [vmem:[%s3148_s12 + $0x90] sm:$0xf]  ;;  %v2647_v9 = vld [vmem:[%s3148_s12 + $0xb0] sm:$0xf0]  ;;  %v2190_v10 = vld [vmem:[%s3148_s12 + $0x120] sm:$0xf]  ;;  %s1926_s16 = scalar_lea.hbm %s3710_s5, %s2769_s15 }
  0x18   : > { %2906 = vmatpush.bf16.msra.mxu1 %v2703_v1  ;;  %2907 = vmatpush.bf16.msra.mxu2 %v2703_v1  ;;  %v2665_v11 = vld [vmem:[%s3148_s12 + $0x140] sm:$0xf0]  ;;  %v2262_v12 = vld [vmem:[%s3148_s12 + $0x1b0] sm:$0xf]  ;;  %v2683_v13 = vld [vmem:[%s3148_s12 + $0x1d0] sm:$0xf0]  ;;  %v2119_v18 = vor.u32 %v2647_v9, %v2118_v8 }
  0x19   : > { %2908 = vmatpush.bf16.msra.mxu3 %v2703_v1  ;;  %1349 = vmatpush.bf16.msra.mxu0 %v2703_v1  ;;  %v2046_v14 = vld [vmem:[%s3148_s12] sm:$0xf]  ;;  %v2629_v15 = vld [vmem:[%s3148_s12 + $0x20] sm:$0xf0]  ;;  %v2191_v19 = vor.u32 %v2665_v11, %v2190_v10  ;;  %v2263_v20 = vor.u32 %v2683_v13, %v2262_v12  ;;  %v2728_v22 = vld [vmem:[%s3706_s1 + $0xf8] sm:$0xff]  ;;  %s1910_s25 = scalar_lea.sflag [#allocation3], %s262_s20 }
  0x1a   : > { %v2047_v21 = vor.u32 %v2629_v15, %v2046_v14  ;;  %v2736_v23 = vld [vmem:[%s3706_s1 + $0x138] sm:$0xff]  ;;  %v2711_v25 = vld [vmem:[%s3706_s1 + $0x70] sm:$0xff]  ;;  %v2710_v29 = vld [vmem:[%s3706_s1 + $0x68] sm:$0xff] }
  0x1b   : > { %v2727_v26 = vld [vmem:[%s3706_s1 + $0xf0] sm:$0xff]  ;;  %v2726_v30 = vld [vmem:[%s3706_s1 + $0xe8] sm:$0xff]  ;;  %v2717_v32 = vld [vmem:[%s3706_s1 + $0xa0] sm:$0xff] }
  0x1c   : > { %2909 = vmatpush.bf16.msra.mxu1 %v2702_v2  ;;  %2910 = vmatpush.bf16.msra.mxu2 %v2702_v2  ;;  %v2735_v27 = vld [vmem:[%s3706_s1 + $0x130] sm:$0xff]  ;;  %v2734_v31 = vld [vmem:[%s3706_s1 + $0x128] sm:$0xff]  ;;  %v2709_v33 = vld [vmem:[%s3706_s1 + $0x60] sm:$0xff] }
  0x1d   : > { %2911 = vmatpush.bf16.msra.mxu3 %v2702_v2  ;;  %1350 = vmatpush.bf16.msra.mxu0 %v2702_v2  ;;  %v2725_v34 = vld [vmem:[%s3706_s1 + $0xe0] sm:$0xff]  ;;  %v2154_v36 = vld [vmem:[%s3148_s12 + $0xd8] sm:$0xf]  ;;  %v2656_v37 = vld [vmem:[%s3148_s12 + $0xf8] sm:$0xf0] }
  0x1e   : > { %v2733_v35 = vld [vmem:[%s3706_s1 + $0x120] sm:$0xff]  ;;  %v2226_v38 = vld [vmem:[%s3148_s12 + $0x168] sm:$0xf]  ;;  %v2674_v39 = vld [vmem:[%s3148_s12 + $0x188] sm:$0xf0]  ;;  %v2155_v46 = vor.u32 %v2656_v37, %v2154_v36 }
  0x1f   : > { %v2298_v40 = vld [vmem:[%s3148_s12 + $0x1f8] sm:$0xf]  ;;  %v2692_v41 = vld [vmem:[%s3148_s12 + $0x218] sm:$0xf0]  ;;  %v2082_v42 = vld [vmem:[%s3148_s12 + $0x48] sm:$0xf]  ;;  %v2227_v47 = vor.u32 %v2674_v39, %v2226_v38 }
  0x20   : > { %2912 = vmatpush.bf16.msra.mxu1 %v2701_v3  ;;  %2913 = vmatpush.bf16.msra.mxu2 %v2701_v3  ;;  %v2638_v43 = vld [vmem:[%s3148_s12 + $0x68] sm:$0xf0]  ;;  %v2716_v44 = vld [vmem:[%s3706_s1 + $0x98] sm:$0xff]  ;;  %v2299_v48 = vor.u32 %v2692_v41, %v2298_v40  ;;  %v2715_v52 = vld [vmem:[%s3706_s1 + $0x90] sm:$0xff] }
  0x21   : > { %2914 = vmatpush.bf16.msra.mxu3 %v2701_v3  ;;  %1351 = vmatpush.bf16.msra.mxu0 %v2701_v3  ;;  %v2708_v45 = vld [vmem:[%s3706_s1 + $0x58] sm:$0xff]  ;;  %v2083_v49 = vor.u32 %v2638_v43, %v2082_v42  ;;  %v2707_v53 = vld [vmem:[%s3706_s1 + $0x50] sm:$0xff]  ;;  %v2714_v56 = vld [vmem:[%s3706_s1 + $0x88] sm:$0xff] }
  0x22   : > { %v2724_v50 = vld [vmem:[%s3706_s1 + $0xd8] sm:$0xff]  ;;  %v2723_v54 = vld [vmem:[%s3706_s1 + $0xd0] sm:$0xff]  ;;  %v2706_v57 = vld [vmem:[%s3706_s1 + $0x48] sm:$0xff] }
  0x23   : > { %v2732_v51 = vld [vmem:[%s3706_s1 + $0x118] sm:$0xff]  ;;  %v2731_v55 = vld [vmem:[%s3706_s1 + $0x110] sm:$0xff]  ;;  %v2722_v58 = vld [vmem:[%s3706_s1 + $0xc8] sm:$0xff] }
  0x24   : > { %2915 = vmatpush.bf16.msra.mxu1 %v2700_v4  ;;  %2916 = vmatpush.bf16.msra.mxu2 %v2700_v4  ;;  %v2730_v59 = vld [vmem:[%s3706_s1 + $0x108] sm:$0xff]  ;;  %v2713_v60 = vld [vmem:[%s3706_s1 + $0x80] sm:$0xff]  ;;  %v2752_v2 = vld [vmem:[%s3706_s1 + $0x1b8] sm:$0xff] }
  0x25   : > { %2917 = vmatpush.bf16.msra.mxu3 %v2700_v4  ;;  %1352 = vmatpush.bf16.msra.mxu0 %v2700_v4  ;;  %v2705_v61 = vld [vmem:[%s3706_s1 + $0x40] sm:$0xff]  ;;  %v2048_v1 = vld [vmem:[%s3148_s12 + $0x24] sm:$0xf0]  ;;  %v2744_v3 = vld [vmem:[%s3706_s1 + $0x178] sm:$0xff] }
  0x26   : > { %v2625_v62 = vld [vmem:[%s3148_s12 + $0x4] sm:$0xf]  ;;  %v2054_v4 = vld [vmem:[%s3148_s12 + $0x8] sm:$0xf]  ;;  %v2062_v8 = vld [vmem:[%s3148_s12 + $0x10] sm:$0xf] }
  0x27   : > { %v2721_v63 = vld [vmem:[%s3706_s1 + $0xc0] sm:$0xff]  ;;  %v2631_v9 = vld [vmem:[%s3148_s12 + $0x30] sm:$0xf0]  ;;  %v2760_v10 = vld [vmem:[%s3706_s1 + $0x1f8] sm:$0xff]  ;;  %v2051_v12 = vor.u32 %v2625_v62, %v2048_v1 }
  0x28   : > { %2918 = vmatpush.bf16.msra.mxu1 %v2699_v5  ;;  %2919 = vmatpush.bf16.msra.mxu2 %v2699_v5  ;;  %v2729_v0 = vld [vmem:[%s3706_s1 + $0x100] sm:$0xff]  ;;  %v2768_v11 = vld [vmem:[%s3706_s1 + $0x238] sm:$0xff]  ;;  %v2063_v15 = vor.u32 %v2631_v9, %v2062_v8  ;;  %v2643_v40 = vld [vmem:[%s3148_s12 + $0x94] sm:$0xf] }
  0x29   : > { %2920 = vmatpush.bf16.msra.mxu3 %v2699_v5  ;;  %1353 = vmatpush.bf16.msra.mxu0 %v2699_v5  ;;  %v2630_v5 = vld [vmem:[%s3148_s12 + $0x28] sm:$0xf0]  ;;  %v2749_v36 = vld [vmem:[%s3706_s1 + $0x1a0] sm:$0xff]  ;;  %v2120_v41 = vld [vmem:[%s3148_s12 + $0xb4] sm:$0xf0] }
  0x2a   : > { %v2055_v13 = vor.u32 %v2630_v5, %v2054_v4  ;;  %v2757_v37 = vld [vmem:[%s3706_s1 + $0x1e0] sm:$0xff]  ;;  %v2126_v42 = vld [vmem:[%s3148_s12 + $0x98] sm:$0xf]  ;;  %v2648_v43 = vld [vmem:[%s3148_s12 + $0xb8] sm:$0xf0] }
  0x2b   : > { %v2741_v38 = vld [vmem:[%s3706_s1 + $0x160] sm:$0xff]  ;;  %v2170_v62 = vld [vmem:[%s3148_s12 + $0xe8] sm:$0xf]  ;;  %v2747_v4 = vld [vmem:[%s3706_s1 + $0x190] sm:$0xff] }
  0x2c   : > { %2921 = vmatpush.bf16.msra.mxu1 %v2698_v6  ;;  %2922 = vmatpush.bf16.msra.mxu2 %v2698_v6  ;;  %v2765_v39 = vld [vmem:[%s3706_s1 + $0x220] sm:$0xff]  ;;  %v2755_v5 = vld [vmem:[%s3706_s1 + $0x1d0] sm:$0xff]  ;;  %v2192_v9 = vld [vmem:[%s3148_s12 + $0x144] sm:$0xf0] }
  0x2d   : > { %2923 = vmatpush.bf16.msra.mxu3 %v2698_v6  ;;  %1354 = vmatpush.bf16.msra.mxu0 %v2698_v6  ;;  %v2626_v6 = vld [vmem:[%s3148_s12 + $0xc] sm:$0xf]  ;;  %v2661_v8 = vld [vmem:[%s3148_s12 + $0x124] sm:$0xf] }
  0x30   : > { %2924 = vmatpush.bf16.msra.mxu1 %v2697_v7  ;;  %2925 = vmatpush.bf16.msra.mxu2 %v2697_v7 }
  0x31   : > { %2926 = vmatpush.bf16.msra.mxu3 %v2697_v7  ;;  %1355 = vmatpush.bf16.msra.mxu0 %v2697_v7  ;;  %v2056_v7 = vld [vmem:[%s3148_s12 + $0x2c] sm:$0xf0] }
  0x32   : > { %v2059_v14 = vor.u32 %v2626_v6, %v2056_v7  ;;  %v2739_v6 = vld [vmem:[%s3706_s1 + $0x150] sm:$0xff] }
  0x33   : > { %1366 = vmatmul.bf16.vlgmr.msra.gmra.mxu1 %v2119_v18  ;;  %1376 = vmatmul.bf16.vlgmr.msra.gmra.mxu2 %v2191_v19  ;;  %v2759_v18 = vld [vmem:[%s3706_s1 + $0x1f0] sm:$0xff] }
  0x34   : > { %1446 = vmatpush.bf16.msrb.mxu2 %v2720_v16  ;;  %1397 = vmatpush.bf16.msrb.mxu1 %v2712_v17  ;;  %v2751_v16 = vld [vmem:[%s3706_s1 + $0x1b0] sm:$0xff] }
  0x35   : > { %1386 = vmatmul.bf16.vlgmr.msra.gmra.mxu3 %v2263_v20  ;;  %1356 = vmatmul.bf16.vlgmr.msra.gmra.mxu0 %v2047_v21  ;;  %v2743_v17 = vld [vmem:[%s3706_s1 + $0x170] sm:$0xff]  ;;  %v2750_v20 = vld [vmem:[%s3706_s1 + $0x1a8] sm:$0xff] }
  0x36   : > { %1495 = vmatpush.bf16.msrb.mxu3 %v2728_v22  ;;  %1544 = vmatpush.bf16.msrb.mxu0 %v2736_v23  ;;  %v2767_v19 = vld [vmem:[%s3706_s1 + $0x230] sm:$0xff]  ;;  %v2742_v21 = vld [vmem:[%s3706_s1 + $0x168] sm:$0xff] }
  0x37   : > { %v2758_v22 = vld [vmem:[%s3706_s1 + $0x1e8] sm:$0xff]  ;;  %v2763_v7 = vld [vmem:[%s3706_s1 + $0x210] sm:$0xff] }
  0x38   : > { %1447 = vmatpush.bf16.msrb.mxu2 %v2719_v24  ;;  %1398 = vmatpush.bf16.msrb.mxu1 %v2711_v25  ;;  %v2766_v23 = vld [vmem:[%s3706_s1 + $0x228] sm:$0xff]  ;;  %v2084_v25 = vld [vmem:[%s3148_s12 + $0x6c] sm:$0xf0] }
  0x39   : > { %v2634_v24 = vld [vmem:[%s3148_s12 + $0x4c] sm:$0xf] }
  0x3a   : > { %1496 = vmatpush.bf16.msrb.mxu3 %v2727_v26  ;;  %1545 = vmatpush.bf16.msrb.mxu0 %v2735_v27  ;;  %v2090_v26 = vld [vmem:[%s3148_s12 + $0x50] sm:$0xf]  ;;  %v2639_v27 = vld [vmem:[%s3148_s12 + $0x70] sm:$0xf0] }
  0x3c   : > { %1448 = vmatpush.bf16.msrb.mxu2 %v2718_v28  ;;  %1399 = vmatpush.bf16.msrb.mxu1 %v2710_v29  ;;  %v2635_v28 = vld [vmem:[%s3148_s12 + $0x54] sm:$0xf]  ;;  %v2092_v29 = vld [vmem:[%s3148_s12 + $0x74] sm:$0xf0] }
  0x3e   : > { %1497 = vmatpush.bf16.msrb.mxu3 %v2726_v30  ;;  %1546 = vmatpush.bf16.msrb.mxu0 %v2734_v31  ;;  %v2098_v30 = vld [vmem:[%s3148_s12 + $0x58] sm:$0xf]  ;;  %v2640_v31 = vld [vmem:[%s3148_s12 + $0x78] sm:$0xf0] }
  0x40   : > { %1449 = vmatpush.bf16.msrb.mxu2 %v2717_v32  ;;  %1400 = vmatpush.bf16.msrb.mxu1 %v2709_v33  ;;  %v2087_v32 = vor.u32 %v2634_v24, %v2084_v25  ;;  %v2091_v33 = vor.u32 %v2639_v27, %v2090_v26  ;;  %v2670_v24 = vld [vmem:[%s3148_s12 + $0x16c] sm:$0xf]  ;;  %v2228_v25 = vld [vmem:[%s3148_s12 + $0x18c] sm:$0xf0]  ;;  %v2675_v27 = vld [vmem:[%s3148_s12 + $0x190] sm:$0xf0] }
  0x41   : > { %v2234_v26 = vld [vmem:[%s3148_s12 + $0x170] sm:$0xf] }
  0x42   : > { %1498 = vmatpush.bf16.msrb.mxu3 %v2725_v34  ;;  %1547 = vmatpush.bf16.msrb.mxu0 %v2733_v35  ;;  %v2095_v34 = vor.u32 %v2635_v28, %v2092_v29  ;;  %v2099_v35 = vor.u32 %v2640_v31, %v2098_v30  ;;  %v2671_v28 = vld [vmem:[%s3148_s12 + $0x174] sm:$0xf]  ;;  %v2236_v29 = vld [vmem:[%s3148_s12 + $0x194] sm:$0xf0]  ;;  %v2676_v31 = vld [vmem:[%s3148_s12 + $0x198] sm:$0xf0] }
  0x43   : > { %1371 = vmatmul.bf16.gmra.mxu1 %v2155_v46  ;;  %1381 = vmatmul.bf16.gmra.mxu2 %v2227_v47  ;;  %v2134_v46 = vld [vmem:[%s3148_s12 + $0xa0] sm:$0xf]  ;;  %v2649_v47 = vld [vmem:[%s3148_s12 + $0xc0] sm:$0xf0]  ;;  %v2242_v30 = vld [vmem:[%s3148_s12 + $0x178] sm:$0xf] }
  0x44   : > { %1450 = vmatpush.bf16.msrb.mxu2 %v2716_v44  ;;  %1401 = vmatpush.bf16.msrb.mxu1 %v2708_v45  ;;  %v2644_v44 = vld [vmem:[%s3148_s12 + $0x9c] sm:$0xf]  ;;  %v2128_v45 = vld [vmem:[%s3148_s12 + $0xbc] sm:$0xf0] }
  0x45   : > { %1391 = vmatmul.bf16.gmra.mxu3 %v2299_v48  ;;  %1361 = vmatmul.bf16.gmra.mxu0 %v2083_v49  ;;  %v2123_v48 = vor.u32 %v2643_v40, %v2120_v41  ;;  %v2127_v49 = vor.u32 %v2648_v43, %v2126_v42  ;;  %v2761_v40 = vld [vmem:[%s3706_s1 + $0x200] sm:$0xff]  ;;  %v2679_v42 = vld [vmem:[%s3148_s12 + $0x1b4] sm:$0xf]  ;;  %v2264_v43 = vld [vmem:[%s3148_s12 + $0x1d4] sm:$0xf0] }
  0x46   : > { %1499 = vmatpush.bf16.msrb.mxu3 %v2724_v50  ;;  %1548 = vmatpush.bf16.msrb.mxu0 %v2732_v51  ;;  %v2131_v50 = vor.u32 %v2644_v44, %v2128_v45  ;;  %v2135_v51 = vor.u32 %v2649_v47, %v2134_v46  ;;  %v2771_v41 = vld [vmem:[%s3409_s11] sm:$0xff]   ;;  %v2270_v44 = vld [vmem:[%s3148_s12 + $0x1b8] sm:$0xf]  ;;  %v2684_v45 = vld [vmem:[%s3148_s12 + $0x1d8] sm:$0xf0] }
  0x47   : > { %v2680_v46 = vld [vmem:[%s3148_s12 + $0x1bc] sm:$0xf] }
  0x48   : > { %1451 = vmatpush.bf16.msrb.mxu2 %v2715_v52  ;;  %1402 = vmatpush.bf16.msrb.mxu1 %v2707_v53  ;;  %v2748_v52 = vld [vmem:[%s3706_s1 + $0x198] sm:$0xff] }
  0x49   : > { %v2756_v53 = vld [vmem:[%s3706_s1 + $0x1d8] sm:$0xff] }
  0x4a   : > { %1500 = vmatpush.bf16.msrb.mxu3 %v2723_v54  ;;  %1549 = vmatpush.bf16.msrb.mxu0 %v2731_v55  ;;  %v2740_v54 = vld [vmem:[%s3706_s1 + $0x158] sm:$0xff] }
  0x4b   : > { %v2764_v55 = vld [vmem:[%s3706_s1 + $0x218] sm:$0xff] }
  0x4c   : > { %1452 = vmatpush.bf16.msrb.mxu2 %v2714_v56  ;;  %1403 = vmatpush.bf16.msrb.mxu1 %v2706_v57  ;;  %v2652_v56 = vld [vmem:[%s3148_s12 + $0xdc] sm:$0xf]  ;;  %v2156_v57 = vld [vmem:[%s3148_s12 + $0xfc] sm:$0xf0] }
  0x4e   : > { %1501 = vmatpush.bf16.msrb.mxu3 %v2722_v58  ;;  %1550 = vmatpush.bf16.msrb.mxu0 %v2730_v59  ;;  %v2162_v58 = vld [vmem:[%s3148_s12 + $0xe0] sm:$0xf]  ;;  %v2657_v59 = vld [vmem:[%s3148_s12 + $0x100] sm:$0xf0] }
  0x4f   : > { %v2163_v1 = vor.u32 %v2657_v59, %v2162_v58 }
  0x50   : > { %1453 = vmatpush.bf16.msrb.mxu2 %v2713_v60  ;;  %1404 = vmatpush.bf16.msrb.mxu1 %v2705_v61  ;;  %v2653_v60 = vld [vmem:[%s3148_s12 + $0xe4] sm:$0xf]  ;;  %v2164_v61 = vld [vmem:[%s3148_s12 + $0x104] sm:$0xf0] }
  0x52   : > { %1502 = vmatpush.bf16.msrb.mxu3 %v2721_v63  ;;  %1551 = vmatpush.bf16.msrb.mxu0 %v2729_v0  ;;  %v2658_v63 = vld [vmem:[%s3148_s12 + $0x108] sm:$0xf0]  ;;  %v2159_v0 = vor.u32 %v2652_v56, %v2156_v57  ;;  %v2885_v57 = vld [vmem:[%s3409_s11 + $0x20] sm:$0xff]  }
  0x53   : > { %1405 = vmatmul.bf16.vlgmr.msrb.gmra.mxu1 %v2051_v12  ;;  %1454 = vmatmul.bf16.vlgmr.msrb.gmra.mxu2 %v2055_v13  ;;  %v2662_v12 = vld [vmem:[%s3148_s12 + $0x12c] sm:$0xf]  ;;  %v2200_v13 = vld [vmem:[%s3148_s12 + $0x14c] sm:$0xf0] }
  0x54   : > { %1642 = vmatpush.bf16.msra.mxu2 %v2752_v2  ;;  %1593 = vmatpush.bf16.msra.mxu1 %v2744_v3  ;;  %v2167_v2 = vor.u32 %v2653_v60, %v2164_v61  ;;  %v2171_v3 = vor.u32 %v2658_v63, %v2170_v62  ;;  %v2887_v60 = vld [vmem:[%s3409_s11 + $0x30] sm:$0xff]   ;;  %v2788_v62 = vunpack.c.l.bf16 %v2885_v57 }
  0x55   : > { %1503 = vmatmul.bf16.vlgmr.msrb.gmra.mxu3 %v2059_v14  ;;  %1552 = vmatmul.bf16.vlgmr.msrb.gmra.mxu0 %v2063_v15  ;;  %v2206_v14 = vld [vmem:[%s3148_s12 + $0x130] sm:$0xf]  ;;  %v2667_v15 = vld [vmem:[%s3148_s12 + $0x150] sm:$0xf0]  ;;  %v2796_v63 = vunpack.c.l.bf16 %v2887_v60 }
  0x56   : > { %1691 = vmatpush.bf16.msra.mxu3 %v2760_v10  ;;  %1740 = vmatpush.bf16.msra.mxu0 %v2768_v11  ;;  %v2198_v10 = vld [vmem:[%s3148_s12 + $0x128] sm:$0xf]  ;;  %v2666_v11 = vld [vmem:[%s3148_s12 + $0x148] sm:$0xf0] }
  0x58   : > { %1643 = vmatpush.bf16.msra.mxu2 %v2751_v16  ;;  %1594 = vmatpush.bf16.msra.mxu1 %v2743_v17  ;;  %v2195_v16 = vor.u32 %v2661_v8, %v2192_v9  ;;  %v2199_v17 = vor.u32 %v2666_v11, %v2198_v10  ;;  %v2884_v10 = vld [vmem:[%s3409_s11 + $0x18] sm:$0xff]   ;;  %v2789_v11 = vunpack.c.h.bf16 %v2885_v57  ;;  %v2072_v57 = vld [vmem:[%s3148_s12 + $0x3c] sm:$0xf0] }
  0x5a   : > { %1692 = vmatpush.bf16.msra.mxu3 %v2759_v18  ;;  %1741 = vmatpush.bf16.msra.mxu0 %v2767_v19  ;;  %v2203_v18 = vor.u32 %v2662_v12, %v2200_v13  ;;  %v2207_v19 = vor.u32 %v2667_v15, %v2206_v14  ;;  %v2882_v12 = vld [vmem:[%s3409_s11 + $0x8] sm:$0xff]   ;;  %v2688_v13 = vld [vmem:[%s3148_s12 + $0x1fc] sm:$0xf]  ;;  %v2300_v14 = vld [vmem:[%s3148_s12 + $0x21c] sm:$0xf0]  ;;  %v2797_v15 = vunpack.c.h.bf16 %v2887_v60 }
  0x5b   : > { %v2633_v60 = vld [vmem:[%s3148_s12 + $0x40] sm:$0xf0] }
  0x5c   : > { %1644 = vmatpush.bf16.msra.mxu2 %v2750_v20  ;;  %1595 = vmatpush.bf16.msra.mxu1 %v2742_v21  ;;  %v2746_v20 = vld [vmem:[%s3706_s1 + $0x188] sm:$0xff] }
  0x5d   : > { %v2754_v21 = vld [vmem:[%s3706_s1 + $0x1c8] sm:$0xff] }
  0x5e   : > { %1693 = vmatpush.bf16.msra.mxu3 %v2758_v22  ;;  %1742 = vmatpush.bf16.msra.mxu0 %v2766_v23  ;;  %v2738_v22 = vld [vmem:[%s3706_s1 + $0x148] sm:$0xff] }
  0x5f   : > { %v2762_v23 = vld [vmem:[%s3706_s1 + $0x208] sm:$0xff] }
  0x60   : > { %1645 = vmatpush.bf16.msra.mxu2 %v2749_v36  ;;  %1596 = vmatpush.bf16.msra.mxu1 %v2741_v38  ;;  %v2745_v36 = vld [vmem:[%s3706_s1 + $0x180] sm:$0xff] }
  0x61   : > { %v2737_v38 = vld [vmem:[%s3706_s1 + $0x140] sm:$0xff] }
  0x62   : > { %1694 = vmatpush.bf16.msra.mxu3 %v2757_v37  ;;  %1743 = vmatpush.bf16.msra.mxu0 %v2765_v39  ;;  %v2753_v37 = vld [vmem:[%s3706_s1 + $0x1c0] sm:$0xff]  ;;  %v2883_v39 = vld [vmem:[%s3409_s11 + $0x10] sm:$0xff]  }
  0x63   : > { %1410 = vmatmul.bf16.gmra.mxu1 %v2087_v32  ;;  %1459 = vmatmul.bf16.gmra.mxu2 %v2091_v33  ;;  %v2231_v32 = vor.u32 %v2670_v24, %v2228_v25  ;;  %v2235_v33 = vor.u32 %v2675_v27, %v2234_v26  ;;  %v2780_v47 = vunpack.c.l.bf16 %v2883_v39  ;;  %v2776_v24 = vunpack.c.l.bf16 %v2882_v12 }
  0x64   : > { %1646 = vmatpush.bf16.msra.mxu2 %v2748_v52  ;;  %1597 = vmatpush.bf16.msra.mxu1 %v2740_v54  ;;  %v2267_v52 = vor.u32 %v2679_v42, %v2264_v43  ;;  %v2303_v27 = vor.u32 %v2688_v13, %v2300_v14  ;;  %v2777_v42 = vunpack.c.h.bf16 %v2882_v12 }
  0x65   : > { %1508 = vmatmul.bf16.gmra.mxu3 %v2095_v34  ;;  %1557 = vmatmul.bf16.gmra.mxu0 %v2099_v35  ;;  %v2239_v34 = vor.u32 %v2671_v28, %v2236_v29  ;;  %v2243_v35 = vor.u32 %v2676_v31, %v2242_v30 }
  0x66   : > { %1695 = vmatpush.bf16.msra.mxu3 %v2756_v53  ;;  %1744 = vmatpush.bf16.msra.mxu0 %v2764_v55  ;;  %v2271_v53 = vor.u32 %v2684_v45, %v2270_v44 }
  0x68   : > { %1647 = vmatpush.bf16.msra.mxu2 %v2747_v4  ;;  %1598 = vmatpush.bf16.msra.mxu1 %v2739_v6 }
  0x6a   : > { %1696 = vmatpush.bf16.msra.mxu3 %v2755_v5  ;;  %1745 = vmatpush.bf16.msra.mxu0 %v2763_v7 }
  0x6c   : > { %1648 = vmatpush.bf16.msra.mxu2 %v2746_v20  ;;  %1599 = vmatpush.bf16.msra.mxu1 %v2738_v22  ;;  %v2308_v20 = vld [vmem:[%s3148_s12 + $0x224] sm:$0xf0]  ;;  %v2694_v22 = vld [vmem:[%s3148_s12 + $0x228] sm:$0xf0] }
  0x6e   : > { %1697 = vmatpush.bf16.msra.mxu3 %v2754_v21  ;;  %1746 = vmatpush.bf16.msra.mxu0 %v2762_v23  ;;  %v2314_v21 = vld [vmem:[%s3148_s12 + $0x208] sm:$0xf] }
  0x70   : > { %1649 = vmatpush.bf16.msra.mxu2 %v2745_v36  ;;  %1600 = vmatpush.bf16.msra.mxu1 %v2737_v38  ;;  %v2888_v36 = vld [vmem:[%s3409_s11 + $0x38] sm:$0xff]  }
  0x72   : > { %1698 = vmatpush.bf16.msra.mxu3 %v2753_v37  ;;  %1747 = vmatpush.bf16.msra.mxu0 %v2761_v40  ;;  %v2785_v40 = vunpack.c.h.bf16 %v2884_v10 }
  0x73   : > { %1415 = vmatmul.bf16.gmra.mxu1 %v2123_v48  ;;  %1464 = vmatmul.bf16.gmra.mxu2 %v2127_v49  ;;  %v2272_v48 = vld [vmem:[%s3148_s12 + $0x1dc] sm:$0xf0] }
  0x74   : > { %v2278_v49 = vld [vmem:[%s3148_s12 + $0x1c0] sm:$0xf]  ;;  %v2275_v55 = vor.u32 %v2680_v46, %v2272_v48 }
  0x75   : > { %1513 = vmatmul.bf16.gmra.mxu3 %v2131_v50  ;;  %1562 = vmatmul.bf16.gmra.mxu0 %v2135_v51  ;;  %v2685_v50 = vld [vmem:[%s3148_s12 + $0x1e0] sm:$0xf0]  ;;  %v2772_v51 = vunpack.c.l.bf16 %v2771_v41 }
  0x76   : > { %v2279_v56 = vor.u32 %v2685_v50, %v2278_v49 }
  0x83   : > { %1420 = vmatmul.bf16.gmra.mxu1 %v2159_v0  ;;  %1469 = vmatmul.bf16.gmra.mxu2 %v2163_v1  ;;  %v2781_v0 = vunpack.c.h.bf16 %v2883_v39  ;;  %v2800_v39 = vunpack.c.l.bf16 %v2888_v36 }
  0x85   : > { %1518 = vmatmul.bf16.gmra.mxu3 %v2167_v2  ;;  %1567 = vmatmul.bf16.gmra.mxu0 %v2171_v3  ;;  %v2773_v2 = vunpack.c.h.bf16 %v2771_v41 }
  0x93   : > { %1425 = vmatmul.bf16.gmra.mxu1 %v2195_v16  ;;  %1474 = vmatmul.bf16.gmra.mxu2 %v2199_v17  ;;  %v2306_v16 = vld [vmem:[%s3148_s12 + $0x200] sm:$0xf]  ;;  %v2693_v17 = vld [vmem:[%s3148_s12 + $0x220] sm:$0xf0] }
  0x94   : > { %v2307_v28 = vor.u32 %v2693_v17, %v2306_v16 }
  0x95   : > { %1523 = vmatmul.bf16.gmra.mxu3 %v2203_v18  ;;  %1572 = vmatmul.bf16.gmra.mxu0 %v2207_v19  ;;  %v2689_v18 = vld [vmem:[%s3148_s12 + $0x204] sm:$0xf]  ;;  %v2784_v19 = vunpack.c.l.bf16 %v2884_v10 }
  0x96   : > { %v2311_v31 = vor.u32 %v2689_v18, %v2308_v20  ;;  %v2100_v20 = vld [vmem:[%s3148_s12 + $0x7c] sm:$0xf0] }
  0xa3   : > { %1430 = vmatmul.bf16.gmra.mxu1 %v2231_v32  ;;  %1479 = vmatmul.bf16.gmra.mxu2 %v2235_v33  ;;  %v2315_v32 = vor.u32 %v2694_v22, %v2314_v21  ;;  %v2886_v33 = vld [vmem:[%s3409_s11 + $0x28] sm:$0xff]   ;;  %v2106_v22 = vld [vmem:[%s3148_s12 + $0x60] sm:$0xf] }
  0xa4   : > { %v2792_v38 = vunpack.c.l.bf16 %v2886_v33  ;;  %v2793_v50 = vunpack.c.h.bf16 %v2886_v33 }
  0xa5   : > { %1528 = vmatmul.bf16.gmra.mxu3 %v2239_v34  ;;  %1577 = vmatmul.bf16.gmra.mxu0 %v2243_v35 }
  0xb0   : > { %v1367_v54 = vpop.f32.mrf.mxu1 }
  0xb1   : > { %v3428_v58 = vadd.f32 %v2780_v47, %v1367_v54  ;;  %v2070_v54 = vld [vmem:[%s3148_s12 + $0x18] sm:$0xf] }
  0xb2   : > { %v1357_v59 = vpop.f32.mrf.mxu0 }
  0xb3   : > { %v3431_v61 = vadd.f32 %v2772_v51, %v1357_v59  ;;  %1435 = vmatmul.bf16.gmra.mxu1 %v2267_v52  ;;  %1484 = vmatmul.bf16.gmra.mxu2 %v2271_v53  ;;  %v2627_v51 = vld [vmem:[%s3148_s12 + $0x14] sm:$0xf]  ;;  %v2064_v52 = vld [vmem:[%s3148_s12 + $0x34] sm:$0xf0]  ;;  %v2801_v53 = vunpack.c.h.bf16 %v2888_v36  ;;  %v2078_v59 = vld [vmem:[%s3148_s12 + $0x20] sm:$0xf] }
  0xb4   : > { %v2079_v10 = vor.u32 %v2633_v60, %v2078_v59  ;;  %v2646_v59 = vld [vmem:[%s3148_s12 + $0xac] sm:$0xf]  ;;  %v2144_v60 = vld [vmem:[%s3148_s12 + $0xcc] sm:$0xf0] }
  0xb5   : > { %1533 = vmatmul.bf16.gmra.mxu3 %v2275_v55  ;;  %1582 = vmatmul.bf16.gmra.mxu0 %v2279_v56  ;;  %v2632_v55 = vld [vmem:[%s3148_s12 + $0x38] sm:$0xf0] }
  0xb6   : > { %v1377_v1 = vpop.f32.mrf.mxu2  ;;  %v2628_v56 = vld [vmem:[%s3148_s12 + $0x1c] sm:$0xf] }
  0xb7   : > { %v3433_v3 = vadd.f32 %v2788_v62, %v1377_v1  ;;  %v2067_v1 = vor.u32 %v2627_v51, %v2064_v52 }
  0xb8   : > { %v1387_v4 = vpop.f32.mrf.mxu3  ;;  %v1369_v6 = vpop.f32.mrf.mxu1 }
  0xb9   : > { %v3435_v5 = vadd.f32 %v2796_v63, %v1387_v4  ;;  %v3437_v7 = vadd.f32 %v2781_v0, %v1369_v6 }
  0xba   : > { %v1359_v8 = vpop.f32.mrf.mxu0 }
  0xbb   : > { %v3439_v9 = vadd.f32 %v2773_v2, %v1359_v8  ;;  %v2071_v2 = vor.u32 %v2632_v55, %v2070_v54  ;;  %v2075_v8 = vor.u32 %v2628_v56, %v2072_v57  ;;  %v2136_v54 = vld [vmem:[%s3148_s12 + $0xc4] sm:$0xf0]  ;;  %v2650_v57 = vld [vmem:[%s3148_s12 + $0xc8] sm:$0xf0] }
  0xbc   : > { %v2142_v56 = vld [vmem:[%s3148_s12 + $0xa8] sm:$0xf] }
  0xbe   : > { %v1379_v23 = vpop.f32.mrf.mxu2 }
  0xbf   : > { %v3451_v25 = vadd.f32 %v2789_v11, %v1379_v23  ;;  %v2641_v23 = vld [vmem:[%s3148_s12 + $0x80] sm:$0xf0] }
  0xc0   : > { %v1389_v26 = vpop.f32.mrf.mxu3  ;;  %v1372_v30 = vpop.f32.mrf.mxu1 }
  0xc1   : > { %v3453_v29 = vadd.f32 %v2797_v15, %v1389_v26  ;;  %v3456_v34 = vadd.f32 %v2784_v19, %v1372_v30  ;;  %v2108_v26 = vld [vmem:[%s3148_s12 + $0x84] sm:$0xf0] }
  0xc2   : > { %v1362_v35 = vpop.f32.mrf.mxu0 }
  0xc3   : > { %v3459_v37 = vadd.f32 %v2776_v24, %v1362_v35  ;;  %1440 = vmatmul.bf16.gmra.mxu1 %v2303_v27  ;;  %1489 = vmatmul.bf16.gmra.mxu2 %v2307_v28  ;;  %v2637_v24 = vld [vmem:[%s3148_s12 + $0x64] sm:$0xf]  ;;  %v2114_v27 = vld [vmem:[%s3148_s12 + $0x68] sm:$0xf]  ;;  %v2642_v28 = vld [vmem:[%s3148_s12 + $0x88] sm:$0xf0]  ;;  %v2107_v35 = vor.u32 %v2641_v23, %v2106_v22 }
  0xc4   : > { %v2654_v23 = vld [vmem:[%s3148_s12 + $0xec] sm:$0xf] }
  0xc5   : > { %1538 = vmatmul.bf16.gmra.mxu3 %v2311_v31  ;;  %1587 = vmatmul.bf16.gmra.mxu0 %v2315_v32 }
  0xc6   : > { %v1382_v41 = vpop.f32.mrf.mxu2 }
  0xc7   : > { %v3461_v43 = vadd.f32 %v2792_v38, %v1382_v41  ;;  %v2111_v38 = vor.u32 %v2637_v24, %v2108_v26  ;;  %v2172_v24 = vld [vmem:[%s3148_s12 + $0x10c] sm:$0xf0] }
  0xc8   : > { %v1392_v44 = vpop.f32.mrf.mxu3  ;;  %v1374_v46 = vpop.f32.mrf.mxu1 }
  0xc9   : > { %v3463_v45 = vadd.f32 %v2800_v39, %v1392_v44  ;;  %v3465_v47 = vadd.f32 %v2785_v40, %v1374_v46  ;;  %v2115_v39 = vor.u32 %v2642_v28, %v2114_v27  ;;  %v2178_v27 = vld [vmem:[%s3148_s12 + $0xf0] sm:$0xf]  ;;  %v2659_v28 = vld [vmem:[%s3148_s12 + $0x110] sm:$0xf0] }
  0xca   : > { %v1364_v48 = vpop.f32.mrf.mxu0 }
  0xcb   : > { %v3467_v49 = vadd.f32 %v2777_v42, %v1364_v48 }
  0xce   : > { %v1384_v62 = vpop.f32.mrf.mxu2 }
  0xcf   : > { %v3477_v63 = vadd.f32 %v2793_v50, %v1384_v62  ;;  %v2150_v62 = vld [vmem:[%s3148_s12 + $0xb0] sm:$0xf] }
  0xd0   : > { %v1394_v0 = vpop.f32.mrf.mxu3  ;;  %v1406_v6 = vpop.f32.mrf.mxu1 }
  0xd1   : > { %v3479_v4 = vadd.f32 %v2801_v53, %v1394_v0  ;;  %v1407_v11 = vadd.f32 %v1406_v6, %v3431_v61  ;;  %v2636_v61 = vld [vmem:[%s3148_s12 + $0x5c] sm:$0xf]  ;;  %v2645_v53 = vld [vmem:[%s3148_s12 + $0xa4] sm:$0xf]  ;;  %v2651_v0 = vld [vmem:[%s3148_s12 + $0xd0] sm:$0xf0] }
  0xd2   : > { %v1553_v12 = vpop.f32.mrf.mxu0  ;;  %v2103_v33 = vor.u32 %v2636_v61, %v2100_v20 }
  0xd3   : > { %1601 = vmatmul.bf16.vlgmr.msra.gmra.mxu1 %v2067_v1  ;;  %1650 = vmatmul.bf16.vlgmr.msra.gmra.mxu2 %v2071_v2 }
  0xd5   : > { %1699 = vmatmul.bf16.vlgmr.msra.gmra.mxu3 %v2075_v8  ;;  %1748 = vmatmul.bf16.vlgmr.msra.gmra.mxu0 %v2079_v10  ;;  %v2139_v8 = vor.u32 %v2645_v53, %v2136_v54  ;;  %v2143_v10 = vor.u32 %v2650_v57, %v2142_v56  ;;  %v2663_v57 = vld [vmem:[%s3148_s12 + $0x134] sm:$0xf] }
  0xd6   : > { %v1455_v13 = vpop.f32.mrf.mxu2 }
  0xd7   : > { %v1456_v14 = vadd.f32 %v1455_v13, %v1407_v11  ;;  %v2151_v13 = vor.u32 %v2651_v0, %v2150_v62  ;;  %v2214_v62 = vld [vmem:[%s3148_s12 + $0x138] sm:$0xf]  ;;  %v2668_v0 = vld [vmem:[%s3148_s12 + $0x158] sm:$0xf0] }
  0xd8   : > { %v1504_v15 = vpop.f32.mrf.mxu3  ;;  %v1408_v16 = vpop.f32.mrf.mxu1 }
  0xd9   : > { %v1505_v17 = vadd.f32 %v1504_v15, %v1456_v14  ;;  %v1409_v18 = vadd.f32 %v1408_v16, %v3439_v9 }
  0xda   : > { %v1555_v19 = vpop.f32.mrf.mxu0 }
  0xdb   : > { %v3485_v21 = vadd.f32 %v1553_v12, %v1505_v17  ;;  %v2147_v12 = vor.u32 %v2646_v59, %v2144_v60  ;;  %v2208_v59 = vld [vmem:[%s3148_s12 + $0x154] sm:$0xf0] }
  0xde   : > { %v1457_v30 = vpop.f32.mrf.mxu2 }
  0xdf   : > { %v1458_v31 = vadd.f32 %v1457_v30, %v1409_v18  ;;  %v2655_v30 = vld [vmem:[%s3148_s12 + $0xf4] sm:$0xf] }
  0xe0   : > { %v1506_v32 = vpop.f32.mrf.mxu3  ;;  %v1411_v36 = vpop.f32.mrf.mxu1 }
  0xe1   : > { %v1507_v9 = vadd.f32 %v1506_v32, %v1458_v31  ;;  %v1412_v40 = vadd.f32 %v1411_v36, %v3459_v37  ;;  %v2180_v31 = vld [vmem:[%s3148_s12 + $0x114] sm:$0xf0] }
  0xe2   : > { %v1558_v41 = vpop.f32.mrf.mxu0  ;;  %v2186_v32 = vld [vmem:[%s3148_s12 + $0xf8] sm:$0xf] }
  0xe3   : > { %1606 = vmatmul.bf16.gmra.mxu1 %v2103_v33  ;;  %1655 = vmatmul.bf16.gmra.mxu2 %v2107_v35  ;;  %v3494_v42 = vadd.f32 %v1555_v19, %v1507_v9  ;;  %v2660_v33 = vld [vmem:[%s3148_s12 + $0x118] sm:$0xf0]  ;;  %v2179_v9 = vor.u32 %v2659_v28, %v2178_v27 }
  0xe4   : > { %v2672_v28 = vld [vmem:[%s3148_s12 + $0x17c] sm:$0xf] }
  0xe5   : > { %1704 = vmatmul.bf16.gmra.mxu3 %v2111_v38  ;;  %1753 = vmatmul.bf16.gmra.mxu0 %v2115_v39  ;;  %v2175_v39 = vor.u32 %v2654_v23, %v2172_v24 }
  0xe6   : > { %v1460_v44 = vpop.f32.mrf.mxu2 }
  0xe7   : > { %v1461_v46 = vadd.f32 %v1460_v44, %v1412_v40  ;;  %v2187_v44 = vor.u32 %v2660_v33, %v2186_v32  ;;  %v2250_v32 = vld [vmem:[%s3148_s12 + $0x180] sm:$0xf]  ;;  %v2677_v33 = vld [vmem:[%s3148_s12 + $0x1a0] sm:$0xf0] }
  0xe8   : > { %v1509_v48 = vpop.f32.mrf.mxu3  ;;  %v1413_v50 = vpop.f32.mrf.mxu1 }
  0xe9   : > { %v1510_v51 = vadd.f32 %v1509_v48, %v1461_v46  ;;  %v1414_v37 = vadd.f32 %v1413_v50, %v3467_v49 }
  0xea   : > { %v1560_v52 = vpop.f32.mrf.mxu0 }
  0xeb   : > { %v3499_v55 = vadd.f32 %v1558_v41, %v1510_v51  ;;  %v2183_v41 = vor.u32 %v2655_v30, %v2180_v31  ;;  %v2244_v30 = vld [vmem:[%s3148_s12 + $0x19c] sm:$0xf0] }
  0xee   : > { %v1462_v1 = vpop.f32.mrf.mxu2 }
  0xef   : > { %v1463_v2 = vadd.f32 %v1462_v1, %v1414_v37  ;;  %v2664_v1 = vld [vmem:[%s3148_s12 + $0x13c] sm:$0xf] }
  0xf0   : > { %v1511_v6 = vpop.f32.mrf.mxu3  ;;  %v1416_v11 = vpop.f32.mrf.mxu1 }
  0xf1   : > { %v1512_v49 = vadd.f32 %v1511_v6, %v1463_v2  ;;  %v1417_v14 = vadd.f32 %v1416_v11, %v3428_v58  ;;  %v2216_v2 = vld [vmem:[%s3148_s12 + $0x15c] sm:$0xf0] }
  0xf2   : > { %v1563_v15 = vpop.f32.mrf.mxu0  ;;  %v2222_v6 = vld [vmem:[%s3148_s12 + $0x140] sm:$0xf] }
  0xf3   : > { %1611 = vmatmul.bf16.gmra.mxu1 %v2139_v8  ;;  %1660 = vmatmul.bf16.gmra.mxu2 %v2143_v10  ;;  %v3508_v16 = vadd.f32 %v1560_v52, %v1512_v49  ;;  %v2669_v8 = vld [vmem:[%s3148_s12 + $0x160] sm:$0xf0]  ;;  %v2215_v49 = vor.u32 %v2668_v0, %v2214_v62 }
  0xf4   : > { %v2681_v0 = vld [vmem:[%s3148_s12 + $0x1c4] sm:$0xf] }
  0xf5   : > { %1709 = vmatmul.bf16.gmra.mxu3 %v2147_v12  ;;  %1758 = vmatmul.bf16.gmra.mxu0 %v2151_v13  ;;  %v2211_v13 = vor.u32 %v2663_v57, %v2208_v59 }
  0xf6   : > { %v1465_v17 = vpop.f32.mrf.mxu2 }
  0xf7   : > { %v1466_v18 = vadd.f32 %v1465_v17, %v1417_v14  ;;  %v2223_v17 = vor.u32 %v2669_v8, %v2222_v6  ;;  %v2286_v6 = vld [vmem:[%s3148_s12 + $0x1c8] sm:$0xf]  ;;  %v2686_v8 = vld [vmem:[%s3148_s12 + $0x1e8] sm:$0xf0] }
  0xf8   : > { %v1514_v19 = vpop.f32.mrf.mxu3  ;;  %v1418_v61 = vpop.f32.mrf.mxu1 }
  0xf9   : > { %v1515_v20 = vadd.f32 %v1514_v19, %v1466_v18  ;;  %v1419_v58 = vadd.f32 %v1418_v61, %v3437_v7 }
  0xfa   : > { %v1565_v22 = vpop.f32.mrf.mxu0 }
  0xfb   : > { %v3513_v26 = vadd.f32 %v1563_v15, %v1515_v20  ;;  %v2219_v15 = vor.u32 %v2664_v1, %v2216_v2  ;;  %v2280_v1 = vld [vmem:[%s3148_s12 + $0x1e4] sm:$0xf0] }
  0xfe   : > { %v1467_v35 = vpop.f32.mrf.mxu2 }
  0xff   : > { %v1468_v36 = vadd.f32 %v1467_v35, %v1419_v58  ;;  %v2673_v35 = vld [vmem:[%s3148_s12 + $0x184] sm:$0xf] }
 0x100   : > { %v1516_v38 = vpop.f32.mrf.mxu3  ;;  %v1421_v40 = vpop.f32.mrf.mxu1 }
 0x101   : > { %v1517_v7 = vadd.f32 %v1516_v38, %v1468_v36  ;;  %v1422_v46 = vadd.f32 %v1421_v40, %v3456_v34  ;;  %v2252_v36 = vld [vmem:[%s3148_s12 + $0x1a4] sm:$0xf0] }
 0x102   : > { %v1568_v48 = vpop.f32.mrf.mxu0  ;;  %v2258_v38 = vld [vmem:[%s3148_s12 + $0x188] sm:$0xf] }
 0x103   : > { %1616 = vmatmul.bf16.gmra.mxu1 %v2175_v39  ;;  %1665 = vmatmul.bf16.gmra.mxu2 %v2179_v9  ;;  %v3522_v50 = vadd.f32 %v1565_v22, %v1517_v7  ;;  %v2678_v39 = vld [vmem:[%s3148_s12 + $0x1a8] sm:$0xf0]  ;;  %v2251_v7 = vor.u32 %v2677_v33, %v2250_v32 }
 0x104   : > { %v2690_v33 = vld [vmem:[%s3148_s12 + $0x20c] sm:$0xf] }
 0x105   : > { %1714 = vmatmul.bf16.gmra.mxu3 %v2183_v41  ;;  %1763 = vmatmul.bf16.gmra.mxu0 %v2187_v44  ;;  %v2247_v44 = vor.u32 %v2672_v28, %v2244_v30 }
 0x106   : > { %v1470_v51 = vpop.f32.mrf.mxu2 }
 0x107   : > { %v1471_v37 = vadd.f32 %v1470_v51, %v1422_v46  ;;  %v2259_v51 = vor.u32 %v2678_v39, %v2258_v38  ;;  %v2322_v38 = vld [vmem:[%s3148_s12 + $0x210] sm:$0xf]  ;;  %v2695_v39 = vld [vmem:[%s3148_s12 + $0x230] sm:$0xf0] }
 0x108   : > { %v1519_v52 = vpop.f32.mrf.mxu3  ;;  %v1423_v53 = vpop.f32.mrf.mxu1 }
 0x109   : > { %v1520_v54 = vadd.f32 %v1519_v52, %v1471_v37  ;;  %v1424_v34 = vadd.f32 %v1423_v53, %v3465_v47 }
 0x10a   : > { %v1570_v56 = vpop.f32.mrf.mxu0 }
 0x10b   : > { %v3527_v60 = vadd.f32 %v1568_v48, %v1520_v54  ;;  %v2255_v48 = vor.u32 %v2673_v35, %v2252_v36  ;;  %v2316_v35 = vld [vmem:[%s3148_s12 + $0x22c] sm:$0xf0] }
 0x10e   : > { %v1472_v10 = vpop.f32.mrf.mxu2 }
 0x10f   : > { %v1473_v11 = vadd.f32 %v1472_v10, %v1424_v34  ;;  %v2682_v10 = vld [vmem:[%s3148_s12 + $0x1cc] sm:$0xf] }
 0x110   : > { %v1521_v12 = vpop.f32.mrf.mxu3  ;;  %v1426_v14 = vpop.f32.mrf.mxu1 }
 0x111   : > { %v1522_v47 = vadd.f32 %v1521_v12, %v1473_v11  ;;  %v1427_v18 = vadd.f32 %v1426_v14, %v3433_v3  ;;  %v2288_v11 = vld [vmem:[%s3148_s12 + $0x1ec] sm:$0xf0] }
 0x112   : > { %v1573_v19 = vpop.f32.mrf.mxu0  ;;  %v2294_v12 = vld [vmem:[%s3148_s12 + $0x1d0] sm:$0xf] }
 0x113   : > { %1621 = vmatmul.bf16.gmra.mxu1 %v2211_v13  ;;  %1670 = vmatmul.bf16.gmra.mxu2 %v2215_v49  ;;  %v3536_v61 = vadd.f32 %v1570_v56, %v1522_v47  ;;  %v2687_v13 = vld [vmem:[%s3148_s12 + $0x1f0] sm:$0xf0]  ;;  %v2287_v47 = vor.u32 %v2686_v8, %v2286_v6 }
 0x115   : > { %1719 = vmatmul.bf16.gmra.mxu3 %v2219_v15  ;;  %1768 = vmatmul.bf16.gmra.mxu0 %v2223_v17  ;;  %v2283_v17 = vor.u32 %v2681_v0, %v2280_v1 }
 0x116   : > { %v1475_v20 = vpop.f32.mrf.mxu2 }
 0x117   : > { %v1476_v58 = vadd.f32 %v1475_v20, %v1427_v18  ;;  %v2295_v20 = vor.u32 %v2687_v13, %v2294_v12 }
 0x118   : > { %v1524_v22 = vpop.f32.mrf.mxu3  ;;  %v1428_v23 = vpop.f32.mrf.mxu1 }
 0x119   : > { %v1525_v24 = vadd.f32 %v1524_v22, %v1476_v58  ;;  %v1429_v3 = vadd.f32 %v1428_v23, %v3451_v25 }
 0x11a   : > { %v1575_v27 = vpop.f32.mrf.mxu0 }
 0x11b   : > { %v3541_v31 = vadd.f32 %v1573_v19, %v1525_v24  ;;  %v2291_v19 = vor.u32 %v2682_v10, %v2288_v11 }
 0x11e   : > { %v1477_v9 = vpop.f32.mrf.mxu2 }
 0x11f   : > { %v1478_v40 = vadd.f32 %v1477_v9, %v1429_v3  ;;  %v2691_v9 = vld [vmem:[%s3148_s12 + $0x214] sm:$0xf] }
 0x120   : > { %v1526_v41 = vpop.f32.mrf.mxu3  ;;  %v1431_v46 = vpop.f32.mrf.mxu1 }
 0x121   : > { %v1527_v25 = vadd.f32 %v1526_v41, %v1478_v40  ;;  %v1432_v37 = vadd.f32 %v1431_v46, %v3461_v43  ;;  %v2324_v40 = vld [vmem:[%s3148_s12 + $0x234] sm:$0xf0] }
 0x122   : > { %v1578_v52 = vpop.f32.mrf.mxu0  ;;  %v2330_v41 = vld [vmem:[%s3148_s12 + $0x218] sm:$0xf] }
 0x123   : > { %1626 = vmatmul.bf16.gmra.mxu1 %v2247_v44  ;;  %1675 = vmatmul.bf16.gmra.mxu2 %v2251_v7  ;;  %v3550_v53 = vadd.f32 %v1575_v27, %v1527_v25  ;;  %v2696_v44 = vld [vmem:[%s3148_s12 + $0x238] sm:$0xf0]  ;;  %v2323_v25 = vor.u32 %v2695_v39, %v2322_v38  ;;  %s1929_s12 = sshll.u32 %s1926_s16, 4  ;;  %s1930_s12 = int_to_ptr.hbm [resolvable:$true] %s1929_s12 }
 0x124   : > { %s2985_s18 = sshra.s32 %s1930_s12, 4  ;;  %s2986_s18 = int_to_ptr.hbm [resolvable:$true] %s2985_s18 }
 0x125   : > { %1724 = vmatmul.bf16.gmra.mxu3 %v2255_v48  ;;  %1773 = vmatmul.bf16.gmra.mxu0 %v2259_v51  ;;  %v2319_v51 = vor.u32 %v2690_v33, %v2316_v35  ;;  %s2987_s26 = scalar_lea.hbm %s2986_s18, 64  ;;  %p2992_p0 = scmp.lt.s32.totalorder %s2986_s18, %s3710_s5 }
 0x126   : > { %v1480_v54 = vpop.f32.mrf.mxu2  ;;  %p2988_p11 = scmp.ne.s32.totalorder %s2986_s18, %s2987_s26  ;;  %p2993_p1 = scmp.lt.s32.totalorder %s2991_s10, %s2987_s26 }
 0x127   : > { %v1481_v34 = vadd.f32 %v1480_v54, %v1432_v37  ;;  %v2331_v54 = vor.u32 %v2696_v44, %v2330_v41 }
 0x128   : > { %v1529_v56 = vpop.f32.mrf.mxu3  ;;  %v1433_v57 = vpop.f32.mrf.mxu1  ;;  %p2989_p12 = pnand %p2988_p11, %p3110_p5  ;;  %p2994_p2 = por %p2993_p1, %p2992_p0 }
 0x129   : > { %v1530_v59 = vadd.f32 %v1529_v56, %v1481_v34  ;;  %v1434_v43 = vadd.f32 %v1433_v57, %v3477_v63 }
 0x12a   : > { %v1580_v62 = vpop.f32.mrf.mxu0  ;;  %p2990_p13 = pneg %p2989_p12 }
 0x12b   : > { %v3555_v2 = vadd.f32 %v1578_v52, %v1530_v59  ;;  %v2327_v52 = vor.u32 %v2691_v9, %v2324_v40 }
 0x12c   : > { %p2995_p3 = pnand %p2994_p2, %p2990_p13 }
 0x12e   : > { %v1482_v49 = vpop.f32.mrf.mxu2 }
 0x12f   : > { %v1483_v14 = vadd.f32 %v1482_v49, %v1434_v43 }
 0x130   : > { %v1531_v15 = vpop.f32.mrf.mxu3  ;;  %v1436_v18 = vpop.f32.mrf.mxu1 }
 0x131   : > { %v1532_v63 = vadd.f32 %v1531_v15, %v1483_v14  ;;  %v1437_v58 = vadd.f32 %v1436_v18, %v3435_v5 }
 0x132   : > { %v1583_v22 = vpop.f32.mrf.mxu0 }
 0x133   : > { %1631 = vmatmul.bf16.gmra.mxu1 %v2283_v17  ;;  %1680 = vmatmul.bf16.gmra.mxu2 %v2287_v47  ;;  %v3564_v23 = vadd.f32 %v1580_v62, %v1532_v63 }
 0x135   : > { %1729 = vmatmul.bf16.gmra.mxu3 %v2291_v19  ;;  %1778 = vmatmul.bf16.gmra.mxu0 %v2295_v20 }
 0x136   : > { %v1485_v24 = vpop.f32.mrf.mxu2 }
 0x137   : > { %v1486_v3 = vadd.f32 %v1485_v24, %v1437_v58 }
 0x138   : > { %v1534_v27 = vpop.f32.mrf.mxu3  ;;  %v1438_v28 = vpop.f32.mrf.mxu1 }
 0x139   : > { %v1535_v30 = vadd.f32 %v1534_v27, %v1486_v3  ;;  %v1439_v5 = vadd.f32 %v1438_v28, %v3453_v29 }
 0x13a   : > { %v1585_v32 = vpop.f32.mrf.mxu0 }
 0x13b   : > { %v3569_v36 = vadd.f32 %v1583_v22, %v1535_v30  ;;  %v3589_v22 = vld [vmem:[%s3708_s3] ss:$0 sm:$0xff] }
 0x13e   : > { %v1487_v7 = vpop.f32.mrf.mxu2 }
 0x13f   : > { %v1488_v46 = vadd.f32 %v1487_v7, %v1439_v5  ;;  %v3597_v5 = vld [vmem:[%s3709_s4] ss:$0 sm:$0xff] }
 0x140   : > { %v1536_v48 = vpop.f32.mrf.mxu3  ;;  %v1441_v37 = vpop.f32.mrf.mxu1 }
 0x141   : > { %v1537_v29 = vadd.f32 %v1536_v48, %v1488_v46  ;;  %v1442_v34 = vadd.f32 %v1441_v37, %v3463_v45 }
 0x142   : > { %v1588_v56 = vpop.f32.mrf.mxu0 }
 0x143   : > { %1636 = vmatmul.bf16.gmra.mxu1 %v2319_v51  ;;  %1685 = vmatmul.bf16.gmra.mxu2 %v2323_v25  ;;  %v3578_v57 = vadd.f32 %v1585_v32, %v1537_v29 }
 0x145   : > { %1734 = vmatmul.bf16.gmra.mxu3 %v2327_v52  ;;  %1783 = vmatmul.bf16.gmra.mxu0 %v2331_v54 }
 0x146   : > { %v1490_v59 = vpop.f32.mrf.mxu2 }
 0x147   : > { %v1491_v43 = vadd.f32 %v1490_v59, %v1442_v34 }
 0x148   : > { %v1539_v62 = vpop.f32.mrf.mxu3  ;;  %v1443_v0 = vpop.f32.mrf.mxu1 }
 0x149   : > { %v1540_v1 = vadd.f32 %v1539_v62, %v1491_v43  ;;  %v1444_v6 = vadd.f32 %v1443_v0, %v3479_v4 }
 0x14a   : > { %v1590_v8 = vpop.f32.mrf.mxu0 }
 0x14b   : > { %v3581_v10 = vadd.f32 %v1588_v56, %v1540_v1 }
 0x14e   : > { %v1492_v11 = vpop.f32.mrf.mxu2 }
 0x14f   : > { %v1493_v12 = vadd.f32 %v1492_v11, %v1444_v6 }
 0x150   : > { %v1541_v45 = vpop.f32.mrf.mxu3  ;;  %v1602_v13 = vpop.f32.mrf.mxu1 }
 0x151   : > { %v1542_v49 = vadd.f32 %v1541_v45, %v1493_v12  ;;  %v1603_v17 = vadd.f32 %v1602_v13, %v3485_v21 }
 0x152   : > { %v1749_v14 = vpop.f32.mrf.mxu0 }
 0x153   : > { %v3583_v15 = vadd.f32 %v1590_v8, %v1542_v49 }
 0x156   : > { %v1651_v47 = vpop.f32.mrf.mxu2 }
 0x157   : > { %v1652_v18 = vadd.f32 %v1651_v47, %v1603_v17 }
 0x158   : > { %v1700_v19 = vpop.f32.mrf.mxu3  ;;  %v1604_v20 = vpop.f32.mrf.mxu1 }
 0x159   : > { %v1701_v4 = vadd.f32 %v1700_v19, %v1652_v18  ;;  %v1605_v24 = vadd.f32 %v1604_v20, %v3494_v42 }
 0x15a   : > { %v1751_v63 = vpop.f32.mrf.mxu0 }
 0x15b   : > { %v1750_v58 = vadd.f32 %v1749_v14, %v1701_v4 }
 0x15d   : > { %v1825_v30 = vmul.f32 %v3589_v22, %v1750_v58 }
 0x15e   : > { %v1653_v3 = vpop.f32.mrf.mxu2 }
 0x15f   : > { %v1654_v27 = vadd.f32 %v1653_v3, %v1605_v24  ;;  %v1845_v42 = vadd.f32 %v3597_v5, %v1825_v30 }
 0x160   : > { %v1702_v28 = vpop.f32.mrf.mxu3  ;;  %v1607_v21 = vpop.f32.mrf.mxu1 }
 0x161   : > { %v1703_v32 = vadd.f32 %v1702_v28, %v1654_v27  ;;  %v1608_v9 = vadd.f32 %v1607_v21, %v3499_v55  ;;  %v1861_v48 = vmax.f32 %v1845_v42, 0.0 }
 0x162   : > { %v1754_v33 = vpop.f32.mrf.mxu0 }
 0x163   : > { %v1752_v35 = vadd.f32 %v1751_v63, %v1703_v32 }
 0x165   : > { %v2805_v38 = vpack.c.bf16 %v1752_v35, %v1750_v58  ;;  %v1826_v39 = vmul.f32 %v3589_v22, %v1752_v35 }
 0x166   : > { %v1656_v40 = vpop.f32.mrf.mxu2 }
 0x167   : > { %2806 = vst [vmem:[%s3604_s9] sm:$0xff] %v2805_v38   ;;  %v1846_v41 = vadd.f32 %v3597_v5, %v1826_v39  ;;  %v1657_v44 = vadd.f32 %v1656_v40, %v1608_v9 }
 0x168   : > { %v1705_v7 = vpop.f32.mrf.mxu3  ;;  %v1609_v46 = vpop.f32.mrf.mxu1 }
 0x169   : > { %v1862_v51 = vmax.f32 %v1846_v41, 0.0  ;;  %v1706_v25 = vadd.f32 %v1705_v7, %v1657_v44  ;;  %v1610_v54 = vadd.f32 %v1609_v46, %v3508_v16 }
 0x16a   : > { %v1756_v37 = vpop.f32.mrf.mxu0 }
 0x16b   : > { %v2845_v55 = vpack.c.bf16 %v1862_v51, %v1861_v48  ;;  %v1755_v52 = vadd.f32 %v1754_v33, %v1706_v25 }
 0x16d   : > { %2846 = vst [vmem:[%s3613_s13] sm:$0xff] %v2845_v55   ;;  %v1827_v43 = vmul.f32 %v3589_v22, %v1755_v52 }
 0x16e   : > { %v1658_v29 = vpop.f32.mrf.mxu2 }
 0x16f   : > { %v1659_v34 = vadd.f32 %v1658_v29, %v1610_v54  ;;  %v1847_v6 = vadd.f32 %v3597_v5, %v1827_v43 }
 0x170   : > { %v1707_v56 = vpop.f32.mrf.mxu3  ;;  %v1612_v59 = vpop.f32.mrf.mxu1 }
 0x171   : > { %v1708_v62 = vadd.f32 %v1707_v56, %v1659_v34  ;;  %v1613_v12 = vadd.f32 %v1612_v59, %v3513_v26  ;;  %v1863_v17 = vmax.f32 %v1847_v6, 0.0 }
 0x172   : > { %v1759_v0 = vpop.f32.mrf.mxu0 }
 0x173   : > { %v1757_v1 = vadd.f32 %v1756_v37, %v1708_v62 }
 0x175   : > { %v2810_v8 = vpack.c.bf16 %v1757_v1, %v1755_v52  ;;  %v1828_v11 = vmul.f32 %v3589_v22, %v1757_v1 }
 0x176   : > { %v1661_v45 = vpop.f32.mrf.mxu2 }
 0x177   : > { %2889 = vst [vmem:[%s3604_s9 + $0x8] sm:$0xff] %v2810_v8   ;;  %v1848_v16 = vadd.f32 %v3597_v5, %v1828_v11  ;;  %v1662_v13 = vadd.f32 %v1661_v45, %v1613_v12 }
 0x178   : > { %v1710_v49 = vpop.f32.mrf.mxu3  ;;  %v1614_v14 = vpop.f32.mrf.mxu1 }
 0x179   : > { %v1864_v47 = vmax.f32 %v1848_v16, 0.0  ;;  %v1711_v18 = vadd.f32 %v1710_v49, %v1662_v13  ;;  %v1615_v63 = vadd.f32 %v1614_v14, %v3522_v50 }
 0x17a   : > { %v1761_v19 = vpop.f32.mrf.mxu0 }
 0x17b   : > { %v2850_v20 = vpack.c.bf16 %v1864_v47, %v1863_v17  ;;  %v1760_v4 = vadd.f32 %v1759_v0, %v1711_v18 }
 0x17d   : > { %2896 = vst [vmem:[%s3613_s13 + $0x8] sm:$0xff] %v2850_v20   ;;  %v1829_v27 = vmul.f32 %v3589_v22, %v1760_v4 }
 0x17e   : > { %v1663_v58 = vpop.f32.mrf.mxu2 }
 0x17f   : > { %v1664_v24 = vadd.f32 %v1663_v58, %v1615_v63  ;;  %v1849_v32 = vadd.f32 %v3597_v5, %v1829_v27 }
 0x180   : > { %v1712_v26 = vpop.f32.mrf.mxu3  ;;  %v1617_v3 = vpop.f32.mrf.mxu1 }
 0x181   : > { %v1713_v28 = vadd.f32 %v1712_v26, %v1664_v24  ;;  %v1618_v42 = vadd.f32 %v1617_v3, %v3527_v60  ;;  %v1865_v41 = vmax.f32 %v1849_v32, 0.0 }
 0x182   : > { %v1764_v21 = vpop.f32.mrf.mxu0 }
 0x183   : > { %v1762_v30 = vadd.f32 %v1761_v19, %v1713_v28 }
 0x185   : > { %v2815_v33 = vpack.c.bf16 %v1762_v30, %v1760_v4  ;;  %v1830_v35 = vmul.f32 %v3589_v22, %v1762_v30 }
 0x186   : > { %v1666_v38 = vpop.f32.mrf.mxu2 }
 0x187   : > { %2890 = vst [vmem:[%s3604_s9 + $0x10] sm:$0xff] %v2815_v33   ;;  %v1850_v50 = vadd.f32 %v3597_v5, %v1830_v35  ;;  %v1667_v39 = vadd.f32 %v1666_v38, %v1618_v42 }
 0x188   : > { %v1715_v9 = vpop.f32.mrf.mxu3  ;;  %v1619_v40 = vpop.f32.mrf.mxu1 }
 0x189   : > { %v1866_v44 = vmax.f32 %v1850_v50, 0.0  ;;  %v1716_v7 = vadd.f32 %v1715_v9, %v1667_v39  ;;  %v1620_v25 = vadd.f32 %v1619_v40, %v3536_v61 }
 0x18a   : > { %v1766_v46 = vpop.f32.mrf.mxu0 }
 0x18b   : > { %v2855_v48 = vpack.c.bf16 %v1866_v44, %v1865_v41  ;;  %v1765_v51 = vadd.f32 %v1764_v21, %v1716_v7 }
 0x18d   : > { %2897 = vst [vmem:[%s3613_s13 + $0x10] sm:$0xff] %v2855_v48   ;;  %v1831_v54 = vmul.f32 %v3589_v22, %v1765_v51 }
 0x18e   : > { %v1668_v37 = vpop.f32.mrf.mxu2 }
 0x18f   : > { %v1669_v55 = vadd.f32 %v1668_v37, %v1620_v25  ;;  %v1851_v59 = vadd.f32 %v3597_v5, %v1831_v54 }
 0x190   : > { %v1717_v60 = vpop.f32.mrf.mxu3  ;;  %v1622_v52 = vpop.f32.mrf.mxu1 }
 0x191   : > { %v1718_v29 = vadd.f32 %v1717_v60, %v1669_v55  ;;  %v1623_v0 = vadd.f32 %v1622_v52, %v3541_v31  ;;  %v1867_v12 = vmax.f32 %v1851_v59, 0.0 }
 0x192   : > { %v1769_v34 = vpop.f32.mrf.mxu0 }
 0x193   : > { %v1767_v56 = vadd.f32 %v1766_v46, %v1718_v29 }
 0x195   : > { %v2820_v43 = vpack.c.bf16 %v1767_v56, %v1765_v51  ;;  %v1832_v62 = vmul.f32 %v3589_v22, %v1767_v56 }
 0x196   : > { %v1671_v1 = vpop.f32.mrf.mxu2 }
 0x197   : > { %2891 = vst [vmem:[%s3604_s9 + $0x18] sm:$0xff] %v2820_v43   ;;  %v1852_v61 = vadd.f32 %v3597_v5, %v1832_v62  ;;  %v1672_v6 = vadd.f32 %v1671_v1, %v1623_v0 }
 0x198   : > { %v1720_v8 = vpop.f32.mrf.mxu3  ;;  %v1624_v11 = vpop.f32.mrf.mxu1 }
 0x199   : > { %v1868_v45 = vmax.f32 %v1852_v61, 0.0  ;;  %v1721_v16 = vadd.f32 %v1720_v8, %v1672_v6  ;;  %v1625_v17 = vadd.f32 %v1624_v11, %v3550_v53 }
 0x19a   : > { %v1771_v13 = vpop.f32.mrf.mxu0 }
 0x19b   : > { %v2860_v49 = vpack.c.bf16 %v1868_v45, %v1867_v12  ;;  %v1770_v14 = vadd.f32 %v1769_v34, %v1721_v16 }
 0x19d   : > { %2898 = vst [vmem:[%s3613_s13 + $0x18] sm:$0xff] %v2860_v49   ;;  %v1833_v20 = vmul.f32 %v3589_v22, %v1770_v14 }
 0x19e   : > { %v1673_v47 = vpop.f32.mrf.mxu2 }
 0x19f   : > { %v1674_v18 = vadd.f32 %v1673_v47, %v1625_v17  ;;  %v1853_v24 = vadd.f32 %v3597_v5, %v1833_v20 }
 0x1a0   : > { %v1722_v31 = vpop.f32.mrf.mxu3  ;;  %v1627_v19 = vpop.f32.mrf.mxu1 }
 0x1a1   : > { %v1723_v4 = vadd.f32 %v1722_v31, %v1674_v18  ;;  %v1628_v27 = vadd.f32 %v1627_v19, %v3555_v2  ;;  %v1869_v33 = vmax.f32 %v1853_v24, 0.0 }
 0x1a2   : > { %v1774_v63 = vpop.f32.mrf.mxu0 }
 0x1a3   : > { %v1772_v58 = vadd.f32 %v1771_v13, %v1723_v4 }
 0x1a5   : > { %v2825_v26 = vpack.c.bf16 %v1772_v58, %v1770_v14  ;;  %v1834_v3 = vmul.f32 %v3589_v22, %v1772_v58 }
 0x1a6   : > { %v1676_v28 = vpop.f32.mrf.mxu2 }
 0x1a7   : > { %2892 = vst [vmem:[%s3604_s9 + $0x20] sm:$0xff] %v2825_v26   ;;  %v1854_v53 = vadd.f32 %v3597_v5, %v1834_v3  ;;  %v1677_v21 = vadd.f32 %v1676_v28, %v1628_v27 }
 0x1a8   : > { %v1725_v30 = vpop.f32.mrf.mxu3  ;;  %v1629_v32 = vpop.f32.mrf.mxu1 }
 0x1a9   : > { %v1870_v35 = vmax.f32 %v1854_v53, 0.0  ;;  %v1726_v42 = vadd.f32 %v1725_v30, %v1677_v21  ;;  %v1630_v9 = vadd.f32 %v1629_v32, %v3564_v23 }
 0x1aa   : > { %v1776_v38 = vpop.f32.mrf.mxu0 }
 0x1ab   : > { %v2865_v50 = vpack.c.bf16 %v1870_v35, %v1869_v33  ;;  %v1775_v39 = vadd.f32 %v1774_v63, %v1726_v42 }
 0x1ad   : > { %2899 = vst [vmem:[%s3613_s13 + $0x20] sm:$0xff] %v2865_v50   ;;  %v1835_v7 = vmul.f32 %v3589_v22, %v1775_v39 }
 0x1ae   : > { %v1678_v40 = vpop.f32.mrf.mxu2 }
 0x1af   : > { %v1679_v41 = vadd.f32 %v1678_v40, %v1630_v9  ;;  %v1855_v25 = vadd.f32 %v3597_v5, %v1835_v7 }
 0x1b0   : > { %v1727_v2 = vpop.f32.mrf.mxu3  ;;  %v1632_v44 = vpop.f32.mrf.mxu1 }
 0x1b1   : > { %v1728_v46 = vadd.f32 %v1727_v2, %v1679_v41  ;;  %v1633_v60 = vadd.f32 %v1632_v44, %v3569_v36  ;;  %v1871_v56 = vmax.f32 %v1855_v25, 0.0 }
 0x1b2   : > { %v1779_v51 = vpop.f32.mrf.mxu0 }
 0x1b3   : > { %v1777_v48 = vadd.f32 %v1776_v38, %v1728_v46 }
 0x1b5   : > { %v2830_v37 = vpack.c.bf16 %v1777_v48, %v1775_v39  ;;  %v1836_v55 = vmul.f32 %v3589_v22, %v1777_v48 }
 0x1b6   : > { %v1681_v52 = vpop.f32.mrf.mxu2 }
 0x1b7   : > { %2893 = vst [vmem:[%s3604_s9 + $0x28] sm:$0xff] %v2830_v37   ;;  %v1856_v23 = vadd.f32 %v3597_v5, %v1836_v55  ;;  %v1682_v54 = vadd.f32 %v1681_v52, %v1633_v60 }
 0x1b8   : > { %v1730_v29 = vpop.f32.mrf.mxu3  ;;  %v1634_v34 = vpop.f32.mrf.mxu1 }
 0x1b9   : > { %v1872_v59 = vmax.f32 %v1856_v23, 0.0  ;;  %v1731_v43 = vadd.f32 %v1730_v29, %v1682_v54  ;;  %v1635_v1 = vadd.f32 %v1634_v34, %v3578_v57 }
 0x1ba   : > { %v1781_v61 = vpop.f32.mrf.mxu0 }
 0x1bb   : > { %v2870_v62 = vpack.c.bf16 %v1872_v59, %v1871_v56  ;;  %v1780_v0 = vadd.f32 %v1779_v51, %v1731_v43 }
 0x1bd   : > { %2900 = vst [vmem:[%s3613_s13 + $0x28] sm:$0xff] %v2870_v62   ;;  %v1837_v12 = vmul.f32 %v3589_v22, %v1780_v0 }
 0x1be   : > { %v1683_v6 = vpop.f32.mrf.mxu2 }
 0x1bf   : > { %v1684_v8 = vadd.f32 %v1683_v6, %v1635_v1  ;;  %v1857_v13 = vadd.f32 %v3597_v5, %v1837_v12 }
 0x1c0   : > { %v1732_v36 = vpop.f32.mrf.mxu3  ;;  %v1637_v11 = vpop.f32.mrf.mxu1 }
 0x1c1   : > { %v1733_v45 = vadd.f32 %v1732_v36, %v1684_v8  ;;  %v1638_v17 = vadd.f32 %v1637_v11, %v3581_v10  ;;  %v1873_v20 = vmax.f32 %v1857_v13, 0.0 }
 0x1c2   : > { %v1784_v19 = vpop.f32.mrf.mxu0 }
 0x1c3   : > { %v1782_v16 = vadd.f32 %v1781_v61, %v1733_v45 }
 0x1c5   : > { %v2835_v49 = vpack.c.bf16 %v1782_v16, %v1780_v0  ;;  %v1838_v14 = vmul.f32 %v3589_v22, %v1782_v16 }
 0x1c6   : > { %v1686_v47 = vpop.f32.mrf.mxu2 }
 0x1c7   : > { %2894 = vst [vmem:[%s3604_s9 + $0x30] sm:$0xff] %v2835_v49   ;;  %v1858_v57 = vadd.f32 %v3597_v5, %v1838_v14  ;;  %v1687_v18 = vadd.f32 %v1686_v47, %v1638_v17 }
 0x1c8   : > { %v1735_v31 = vpop.f32.mrf.mxu3  ;;  %v1639_v58 = vpop.f32.mrf.mxu1 }
 0x1c9   : > { %v1874_v4 = vmax.f32 %v1858_v57, 0.0  ;;  %v1736_v63 = vadd.f32 %v1735_v31, %v1687_v18  ;;  %v1640_v3 = vadd.f32 %v1639_v58, %v3583_v15 }
 0x1ca   : > { %v1786_v30 = vpop.f32.mrf.mxu0 }
 0x1cb   : > { %v2875_v24 = vpack.c.bf16 %v1874_v4, %v1873_v20  ;;  %v1785_v26 = vadd.f32 %v1784_v19, %v1736_v63 }
 0x1cd   : > { %2901 = vst [vmem:[%s3613_s13 + $0x30] sm:$0xff] %v2875_v24   ;;  %v1839_v53 = vmul.f32 %v3589_v22, %v1785_v26 }
 0x1ce   : > { %v1688_v10 = vpop.f32.mrf.mxu2 }
 0x1cf   : > { %v1689_v27 = vadd.f32 %v1688_v10, %v1640_v3  ;;  %v1859_v15 = vadd.f32 %v3597_v5, %v1839_v53 }
 0x1d0   : > { %v1737_v28 = vpop.f32.mrf.mxu3 }
 0x1d1   : > { %v1738_v21 = vadd.f32 %v1737_v28, %v1689_v27 }
 0x1d3   : > { %v1787_v32 = vadd.f32 %v1786_v30, %v1738_v21 }
 0x1d5   : > { %v2840_v33 = vpack.c.bf16 %v1787_v32, %v1785_v26  ;;  %v1840_v35 = vmul.f32 %v3589_v22, %v1787_v32 }
 0x1d7   : > { %2895 = vst [vmem:[%s3604_s9 + $0x38] sm:$0xff] %v2840_v33   ;;  %v1860_v42 = vadd.f32 %v3597_v5, %v1840_v35 }
 0x1d8   : > { %2998 = shalt.err (!%p2995_p3)
}
 0x1d9   : > { %s3035_s20 = smov 64   ;;  %s3036_s9 = smov 4   ;;  %v1875_v22 = vmax.f32 %v1859_v15, 0.0  ;;  %v1876_v5 = vmax.f32 %v1860_v42, 0.0 }
 0x1da   : > { %2928 = dma.vmem_to_hbm [thread:$0]  (%p3110_p5), %s1928_s17, 1024, %s1930_s12, %s1910_s25, %s3035_s20, %s3035_s20, %s3036_s9  }
 0x1db   : > { %v2880_v38 = vpack.c.bf16 %v1876_v5, %v1875_v22 }
 0x1dd   : > { %2902 = vst [vmem:[%s3613_s13 + $0x38] sm:$0xff] %v2880_v38  }
 0x1de PF: > { %p2934_p4 = scmp.ge.s32.totalorder %s3033_s24, 2  ;;  %s1948_s19 = sand.u32 1, %s3021_s21  }
 0x1df   : > { %s1949_s14 = scalar_lea.sflag [#allocation3], %s1948_s19 }
 0x1e0   : > { %p2931_p7 = pnand %p2934_p4, %p3114_p6 }
 0x1e2   : > { %p2932_p8 = pneg %p2931_p7 }
 0x1e4   : > { %3016 = dma.done.wait (%p2932_p8), %s1949_s14, 1024  }
 0x1e5   : > { %3018 = vsyncadd (%p2932_p8), %s1949_s14, 4294966272  ;;  %p17_p5 = scmp.ge.s32.totalorder %s3097_s27, 4   ;;  %s3714_s21 = smov %s3025_s22 }
 0x1e6   : > { %s3715_s22 = smov %s3029_s23  ;;  %s3716_s23 = smov %s3108_s30 }
 0x1e7   : > { %s3717_s24 = smov %s3097_s27  ;;  %19 = sbr.rel (!%p17_p5) target bundleno = 3 (0x3), region = 90 }
 0x1ec   :  { %1963 = vsyncpa [#allocation3], 1 }
 0x1ed   :  { %1965 = vsyncpa [#allocation3 + $0x1], 1 }

// kernel: _lambda_.11
= control target key start
LH: loop header
LB: loop body
LE: loop exit
PB: predicated region body
PF: predicated region fallthrough
CT: control target
= control target key end

     0   :  { %s1257_s15 = smov 0   ;;  %s1470_s0 = inlined_call_operand.vmem [shape: bf16[128,576], index: 0, kind: input, shape index: {}]   ;;  %s1471_s1 = inlined_call_operand.vmem [shape: bf16[576,128], index: 1, kind: input, shape index: {}]   ;;  %s1472_s2 = inlined_call_operand.vmem [shape: f32[1,128], index: 2, kind: input, shape index: {}]   ;;  %s1473_s3 = inlined_call_operand.vmem [shape: f32[1,128], index: 3, kind: input, shape index: {}]   ;;  %s1474_s4 = inlined_call_operand.vmem [shape: bf16[128,128], index: 4, kind: output, shape index: {}]  }
   0x1 LB: > { %s879_s16 = sadd.s32 4294967295, %s1230_s15   ;;  %p883_p0 = scmp.ge.s32.totalorder %s1230_s15, 1  ;;  %s1230_s15 = sphi %s1257_s15, %s14_s15  }
   0x2   : > { %p164_p1 = scmp.lt.s32.totalorder %s1230_s15, 3 }
   0x4   : > { %p165_p2 = pnand %p883_p0, %p164_p1 }
   0x5   : > { %s884_s27 = sshll.u32 (!%p165_p2), %s879_s16, 3 }
   0x6   : > { %168 = sbr.rel (%p165_p2) target bundleno = 278 (0x116), region = 36  ;;  %p192_p3 = scmp.lt.s32.totalorder (!%p165_p2), %s884_s27, 15 }
   0xb   : > { %v1145_v0 = vld [vmem:[%s1471_s1 + $0x38] sm:$0xff]  ;;  %v1144_v1 = vld [vmem:[%s1471_s1 + $0x30] sm:$0xff]  ;;  %v1143_v4 = vld [vmem:[%s1471_s1 + $0x28] sm:$0xff]  ;;  %s1476_s27 = smov (!%p192_p3, %s884_s27), 15  ;;  %vm617_vm0 = vcmask 523264  }
   0xc   : > { %1197 = vmatpush.bf16.msra.mxu1 %v1145_v0  ;;  %1198 = vmatpush.bf16.msra.mxu2 %v1145_v0  ;;  %v1169_v2 = vld [vmem:[%s1471_s1 + $0xf8] sm:$0xff]  ;;  %v1168_v3 = vld [vmem:[%s1471_s1 + $0xf0] sm:$0xff]  ;;  %v1167_v5 = vld [vmem:[%s1471_s1 + $0xe8] sm:$0xff]  ;;  %s1213_s14 = smul.u32 20, %s1476_s27  ;;  %s887_s26 = sshll.u32 %s1476_s27, 2 }
   0xd   : > { %630 = vmatpush.bf16.msra.mxu0 %v1145_v0  ;;  %717 = vmatpush.bf16.msra.mxu3 %v1169_v2  ;;  %v1142_v6 = vld [vmem:[%s1471_s1 + $0x20] sm:$0xff]  ;;  %v1141_v8 = vld [vmem:[%s1471_s1 + $0x18] sm:$0xff]  ;;  %v1140_v10 = vld [vmem:[%s1471_s1 + $0x10] sm:$0xff]  ;;  %s1447_s30 = scalar_lea.vmem %s1474_s4, %s887_s26 }
   0xe   : > { %v1166_v7 = vld [vmem:[%s1471_s1 + $0xe0] sm:$0xff]  ;;  %v1165_v9 = vld [vmem:[%s1471_s1 + $0xd8] sm:$0xff]  ;;  %v1164_v11 = vld [vmem:[%s1471_s1 + $0xd0] sm:$0xff]  ;;  %s1310_s22 = scalar_lea.vmem %s1470_s0, %s1213_s14 }
   0xf   : > { %v1139_v12 = vld [vmem:[%s1471_s1 + $0x8] sm:$0xff]  ;;  %v1138_v14 = vld [vmem:[%s1471_s1] sm:$0xff]  ;;  %v1125_v16 = vld [vmem:[%s1310_s22 + $0x38] sm:$0xf0] }
  0x10   : > { %1199 = vmatpush.bf16.msra.mxu1 %v1144_v1  ;;  %1200 = vmatpush.bf16.msra.mxu2 %v1144_v1  ;;  %v1163_v13 = vld [vmem:[%s1471_s1 + $0xc8] sm:$0xff]  ;;  %v950_v17 = vld [vmem:[%s1310_s22 + $0x78] sm:$0xf]  ;;  %v890_v21 = vld [vmem:[%s1310_s22] sm:$0xf] }
  0x11   : > { %631 = vmatpush.bf16.msra.mxu0 %v1144_v1  ;;  %718 = vmatpush.bf16.msra.mxu3 %v1168_v3  ;;  %v910_v15 = vld [vmem:[%s1310_s22 + $0x28] sm:$0xf]  ;;  %v1135_v18 = vld [vmem:[%s1310_s22 + $0x88] sm:$0xf0]  ;;  %v1161_v19 = vld [vmem:[%s1471_s1 + $0xb8] sm:$0xff] }
  0x12   : > { %v1153_v20 = vld [vmem:[%s1471_s1 + $0x78] sm:$0xff]  ;;  %v1162_v22 = vld [vmem:[%s1471_s1 + $0xc0] sm:$0xff]  ;;  %v911_v23 = vor.u32 %v1125_v16, %v910_v15  ;;  %v951_v24 = vor.u32 %v1135_v18, %v950_v17  ;;  %v1120_v25 = vld [vmem:[%s1310_s22 + $0x10] sm:$0xf0] }
  0x13   : > { %v1119_v26 = vld [vmem:[%s1310_s22 + $0xc] sm:$0xf]  ;;  %v900_v27 = vld [vmem:[%s1310_s22 + $0x1c] sm:$0xf0]  ;;  %v1173_v28 = vld [vmem:[%s1471_s1 + $0x118] sm:$0xff]  ;;  %v891_v31 = vor.u32 %v1120_v25, %v890_v21 }
  0x14   : > { %1201 = vmatpush.bf16.msra.mxu1 %v1143_v4  ;;  %1202 = vmatpush.bf16.msra.mxu2 %v1143_v4  ;;  %v1160_v29 = vld [vmem:[%s1471_s1 + $0xb0] sm:$0xff]  ;;  %v903_v32 = vor.u32 %v1119_v26, %v900_v27  ;;  %v1159_v34 = vld [vmem:[%s1471_s1 + $0xa8] sm:$0xff]  ;;  %v1158_v37 = vld [vmem:[%s1471_s1 + $0xa0] sm:$0xff] }
  0x15   : > { %632 = vmatpush.bf16.msra.mxu0 %v1143_v4  ;;  %719 = vmatpush.bf16.msra.mxu3 %v1167_v5  ;;  %v1152_v30 = vld [vmem:[%s1471_s1 + $0x70] sm:$0xff]  ;;  %v1151_v35 = vld [vmem:[%s1471_s1 + $0x68] sm:$0xff]  ;;  %v1150_v38 = vld [vmem:[%s1471_s1 + $0x60] sm:$0xff] }
  0x16   : > { %v1172_v33 = vld [vmem:[%s1471_s1 + $0x110] sm:$0xff]  ;;  %v1171_v36 = vld [vmem:[%s1471_s1 + $0x108] sm:$0xff]  ;;  %v1130_v40 = vld [vmem:[%s1310_s22 + $0x60] sm:$0xf0] }
  0x17   : > { %v930_v39 = vld [vmem:[%s1310_s22 + $0x50] sm:$0xf]  ;;  %v1170_v41 = vld [vmem:[%s1471_s1 + $0x100] sm:$0xff]  ;;  %v1157_v42 = vld [vmem:[%s1471_s1 + $0x98] sm:$0xff] }
  0x18   : > { %1203 = vmatpush.bf16.msra.mxu1 %v1142_v6  ;;  %1204 = vmatpush.bf16.msra.mxu2 %v1142_v6  ;;  %v1149_v43 = vld [vmem:[%s1471_s1 + $0x58] sm:$0xff]  ;;  %v906_v44 = vld [vmem:[%s1310_s22 + $0x10] sm:$0xf]  ;;  %v931_v45 = vor.u32 %v1130_v40, %v930_v39  ;;  %v1122_v46 = vld [vmem:[%s1310_s22 + $0x20] sm:$0xf0] }
  0x19   : > { %633 = vmatpush.bf16.msra.mxu0 %v1142_v6  ;;  %720 = vmatpush.bf16.msra.mxu3 %v1166_v7  ;;  %v1124_v47 = vld [vmem:[%s1310_s22 + $0x34] sm:$0xf]  ;;  %v920_v48 = vld [vmem:[%s1310_s22 + $0x44] sm:$0xf0]  ;;  %v907_v51 = vor.u32 %v1122_v46, %v906_v44  ;;  %v1154_v55 = vld [vmem:[%s1471_s1 + $0x80] sm:$0xff] }
  0x1a   : > { %v1156_v49 = vld [vmem:[%s1471_s1 + $0x90] sm:$0xff]  ;;  %v923_v52 = vor.u32 %v1124_v47, %v920_v48  ;;  %v1155_v53 = vld [vmem:[%s1471_s1 + $0x88] sm:$0xff]  ;;  %v1146_v56 = vld [vmem:[%s1471_s1 + $0x40] sm:$0xff] }
  0x1b   : > { %v1148_v50 = vld [vmem:[%s1471_s1 + $0x50] sm:$0xff]  ;;  %v1147_v54 = vld [vmem:[%s1471_s1 + $0x48] sm:$0xff]  ;;  %v1121_v58 = vld [vmem:[%s1310_s22 + $0x18] sm:$0xf0] }
  0x1c   : > { %1205 = vmatpush.bf16.msra.mxu1 %v1141_v8  ;;  %1206 = vmatpush.bf16.msra.mxu2 %v1141_v8  ;;  %v898_v57 = vld [vmem:[%s1310_s22 + $0x8] sm:$0xf]  ;;  %v1118_v60 = vld [vmem:[%s1310_s22 + $0x4] sm:$0xf]  ;;  %v892_v61 = vld [vmem:[%s1310_s22 + $0x14] sm:$0xf0] }
  0x1d   : > { %634 = vmatpush.bf16.msra.mxu0 %v1141_v8  ;;  %721 = vmatpush.bf16.msra.mxu3 %v1165_v9  ;;  %v899_v59 = vor.u32 %v1121_v58, %v898_v57  ;;  %v926_v62 = vld [vmem:[%s1310_s22 + $0x38] sm:$0xf]  ;;  %v895_v63 = vor.u32 %v1118_v60, %v892_v61  ;;  %v1127_v0 = vld [vmem:[%s1310_s22 + $0x48] sm:$0xf0]  ;;  %v1129_v1 = vld [vmem:[%s1310_s22 + $0x5c] sm:$0xf] }
  0x1e   : > { %v940_v2 = vld [vmem:[%s1310_s22 + $0x6c] sm:$0xf0]  ;;  %v927_v3 = vor.u32 %v1127_v0, %v926_v62  ;;  %v1126_v6 = vld [vmem:[%s1310_s22 + $0x40] sm:$0xf0]  ;;  %v1123_v8 = vld [vmem:[%s1310_s22 + $0x2c] sm:$0xf] }
  0x1f   : > { %v943_v4 = vor.u32 %v1129_v1, %v940_v2  ;;  %v918_v5 = vld [vmem:[%s1310_s22 + $0x30] sm:$0xf]  ;;  %v912_v9 = vld [vmem:[%s1310_s22 + $0x3c] sm:$0xf0]  ;;  %v938_v17 = vld [vmem:[%s1310_s22 + $0x58] sm:$0xf] }
  0x20   : > { %1207 = vmatpush.bf16.msra.mxu1 %v1140_v10  ;;  %1208 = vmatpush.bf16.msra.mxu2 %v1140_v10  ;;  %v919_v7 = vor.u32 %v1126_v6, %v918_v5  ;;  %v1131_v18 = vld [vmem:[%s1310_s22 + $0x68] sm:$0xf0]  ;;  %v932_v21 = vld [vmem:[%s1310_s22 + $0x64] sm:$0xf0]  ;;  %v958_v26 = vld [vmem:[%s1310_s22 + $0x80] sm:$0xf] }
  0x21   : > { %635 = vmatpush.bf16.msra.mxu0 %v1140_v10  ;;  %722 = vmatpush.bf16.msra.mxu3 %v1164_v11  ;;  %v946_v10 = vld [vmem:[%s1310_s22 + $0x60] sm:$0xf]  ;;  %v915_v11 = vor.u32 %v1123_v8, %v912_v9  ;;  %v1136_v27 = vld [vmem:[%s1310_s22 + $0x90] sm:$0xf0] }
  0x22   : > { %v1438_v58 = vld [vmem:[%s1473_s3] ss:$0 sm:$0xff] }
  0x24   : > { %1209 = vmatpush.bf16.msra.mxu1 %v1139_v12  ;;  %1210 = vmatpush.bf16.msra.mxu2 %v1139_v12 }
  0x25   : > { %636 = vmatpush.bf16.msra.mxu0 %v1139_v12  ;;  %723 = vmatpush.bf16.msra.mxu3 %v1163_v13  ;;  %v1132_v12 = vld [vmem:[%s1310_s22 + $0x70] sm:$0xf0]  ;;  %v1134_v13 = vld [vmem:[%s1310_s22 + $0x84] sm:$0xf] }
  0x26   : > { %v947_v15 = vor.u32 %v1132_v12, %v946_v10 }
  0x28   : > { %1211 = vmatpush.bf16.msra.mxu1 %v1138_v14  ;;  %1212 = vmatpush.bf16.msra.mxu2 %v1138_v14 }
  0x29   : > { %637 = vmatpush.bf16.msra.mxu0 %v1138_v14  ;;  %724 = vmatpush.bf16.msra.mxu3 %v1162_v22  ;;  %v960_v14 = vld [vmem:[%s1310_s22 + $0x94] sm:$0xf0] }
  0x2a   : > { %v963_v16 = vor.u32 %v1134_v13, %v960_v14 }
  0x2b   : > { %643 = vmatmul.bf16.vlgmr.msra.gmra.mxu1 %v911_v23  ;;  %653 = vmatmul.bf16.vlgmr.msra.gmra.mxu2 %v951_v24  ;;  %v966_v23 = vld [vmem:[%s1310_s22 + $0x88] sm:$0xf]  ;;  %v1137_v24 = vld [vmem:[%s1310_s22 + $0x98] sm:$0xf0] }
  0x2c   : > { %688 = vmatpush.bf16.msrb.mxu2 %v1161_v19  ;;  %659 = vmatpush.bf16.msrb.mxu1 %v1153_v20  ;;  %v939_v19 = vor.u32 %v1131_v18, %v938_v17  ;;  %v1128_v20 = vld [vmem:[%s1310_s22 + $0x54] sm:$0xf]  ;;  %v967_v25 = vor.u32 %v1137_v24, %v966_v23 }
  0x2d   : > { %750 = vmatpush.bf16.msrb.mxu0 %v1173_v28  ;;  %725 = vmatmul.bf16.vlgmr.msra.gmra.mxu3 %v903_v32  ;;  %v935_v22 = vor.u32 %v1128_v20, %v932_v21  ;;  %v959_v28 = vor.u32 %v1136_v27, %v958_v26 }
  0x2e   : > { %638 = vmatmul.bf16.vlgmr.msra.gmra.mxu0 %v891_v31 }
  0x30   : > { %689 = vmatpush.bf16.msrb.mxu2 %v1160_v29  ;;  %660 = vmatpush.bf16.msrb.mxu1 %v1152_v30  ;;  %v1133_v29 = vld [vmem:[%s1310_s22 + $0x7c] sm:$0xf]  ;;  %v952_v30 = vld [vmem:[%s1310_s22 + $0x8c] sm:$0xf0] }
  0x31   : > { %751 = vmatpush.bf16.msrb.mxu0 %v1172_v33  ;;  %v955_v31 = vor.u32 %v1133_v29, %v952_v30 }
  0x34   : > { %690 = vmatpush.bf16.msrb.mxu2 %v1159_v34  ;;  %661 = vmatpush.bf16.msrb.mxu1 %v1151_v35 }
  0x35   : > { %752 = vmatpush.bf16.msrb.mxu0 %v1171_v36 }
  0x38   : > { %691 = vmatpush.bf16.msrb.mxu2 %v1158_v37  ;;  %662 = vmatpush.bf16.msrb.mxu1 %v1150_v38 }
  0x39   : > { %753 = vmatpush.bf16.msrb.mxu0 %v1170_v41 }
  0x3b   : > { %648 = vmatmul.bf16.gmra.mxu1 %v931_v45 }
  0x3c   : > { %692 = vmatpush.bf16.msrb.mxu2 %v1157_v42  ;;  %663 = vmatpush.bf16.msrb.mxu1 %v1149_v43 }
  0x3d   : > { %730 = vmatmul.bf16.gmra.mxu3 %v923_v52  ;;  %v1432_v52 = vld [vmem:[%s1472_s2] ss:$0 sm:$0xff] }
  0x3e   : > { %1112 = vmatmul.msk.bf16.vlgmr.msrb.gmra.mxu0 %vm617_vm0, %v907_v51 }
  0x40   : > { %693 = vmatpush.bf16.msrb.mxu2 %v1156_v49  ;;  %664 = vmatpush.bf16.msrb.mxu1 %v1148_v50 }
  0x44   : > { %694 = vmatpush.bf16.msrb.mxu2 %v1155_v53  ;;  %665 = vmatpush.bf16.msrb.mxu1 %v1147_v54 }
  0x48   : > { %695 = vmatpush.bf16.msrb.mxu2 %v1154_v55  ;;  %666 = vmatpush.bf16.msrb.mxu1 %v1146_v56 }
  0x4b   : > { %696 = vmatmul.bf16.vlgmr.msrb.gmra.mxu2 %v899_v59  ;;  %667 = vmatmul.bf16.vlgmr.msrb.gmra.mxu1 %v895_v63 }
  0x4d   : > { %735 = vmatmul.bf16.gmra.mxu3 %v943_v4 }
  0x4e   : > { %1113 = vmatmul.msk.bf16.gmra.mxu0 %vm617_vm0, %v927_v3 }
  0x5b   : > { %701 = vmatmul.bf16.gmra.mxu2 %v919_v7  ;;  %672 = vmatmul.bf16.gmra.mxu1 %v915_v11 }
  0x5d   : > { %740 = vmatmul.bf16.gmra.mxu3 %v963_v16 }
  0x5e   : > { %1114 = vmatmul.msk.bf16.gmra.mxu0 %vm617_vm0, %v947_v15 }
  0x6b   : > { %706 = vmatmul.bf16.gmra.mxu2 %v939_v19  ;;  %677 = vmatmul.bf16.gmra.mxu1 %v935_v22 }
  0x6e   : > { %1115 = vmatmul.msk.bf16.gmra.mxu0 %vm617_vm0, %v967_v25 }
  0x7b   : > { %711 = vmatmul.bf16.gmra.mxu2 %v959_v28  ;;  %682 = vmatmul.bf16.gmra.mxu1 %v955_v31 }
  0xa8   : > { %v644_v32 = vpop.f32.mrf.mxu1 }
  0xab   : > { %v639_v33 = vpop.f32.mrf.mxu0 }
  0xae   : > { %v1425_v37 = vpop.f32.mrf.mxu2 }
  0xb0   : > { %v646_v34 = vpop.f32.mrf.mxu1  ;;  %v726_v38 = vpop.f32.mrf.mxu3 }
  0xb3   : > { %v641_v35 = vpop.f32.mrf.mxu0 }
  0xb6   : > { %v1427_v41 = vpop.f32.mrf.mxu2 }
  0xb8   : > { %v649_v36 = vpop.f32.mrf.mxu1  ;;  %v728_v44 = vpop.f32.mrf.mxu3 }
  0xbb   : > { %v755_v40 = vpop.f32.mrf.mxu0 }
  0xc0   : > { %v651_v39 = vpop.f32.mrf.mxu1  ;;  %v731_v54 = vpop.f32.mrf.mxu3 }
  0xc3   : > { %v757_v46 = vpop.f32.mrf.mxu0 }
  0xc8   : > { %v668_v42 = vpop.f32.mrf.mxu1  ;;  %v733_v4 = vpop.f32.mrf.mxu3 }
  0xc9   : > { %v669_v43 = vadd.f32 %v668_v42, %v639_v33 }
  0xcb   : > { %v760_v56 = vpop.f32.mrf.mxu0 }
  0xce   : > { %v697_v45 = vpop.f32.mrf.mxu2 }
  0xcf   : > { %v698_v47 = vadd.f32 %v697_v45, %v669_v43 }
  0xd0   : > { %v670_v49 = vpop.f32.mrf.mxu1  ;;  %v736_v17 = vpop.f32.mrf.mxu3 }
  0xd1   : > { %v727_v48 = vadd.f32 %v726_v38, %v698_v47  ;;  %v671_v50 = vadd.f32 %v670_v49, %v641_v35 }
  0xd3   : > { %v756_v51 = vadd.f32 %v755_v40, %v727_v48  ;;  %v762_v8 = vpop.f32.mrf.mxu0 }
  0xd5   : > { %v779_v57 = vmul.f32 %v1432_v52, %v756_v51 }
  0xd6   : > { %v699_v53 = vpop.f32.mrf.mxu2 }
  0xd7   : > { %v700_v55 = vadd.f32 %v699_v53, %v671_v50  ;;  %v791_v63 = vadd.f32 %v1438_v58, %v779_v57 }
  0xd8   : > { %v673_v61 = vpop.f32.mrf.mxu1 }
  0xd9   : > { %v729_v59 = vadd.f32 %v728_v44, %v700_v55  ;;  %v674_v62 = vadd.f32 %v673_v61, %v644_v32  ;;  %v799_v5 = vmax.f32 %v791_v63, 0.0  ;;  %v738_v32 = vpop.f32.mrf.mxu3 }
  0xdb   : > { %v758_v60 = vadd.f32 %v757_v46, %v729_v59  ;;  %v765_v20 = vpop.f32.mrf.mxu0 }
  0xdd   : > { %v780_v0 = vmul.f32 %v1432_v52, %v758_v60 }
  0xde   : > { %v702_v1 = vpop.f32.mrf.mxu2 }
  0xdf   : > { %v792_v2 = vadd.f32 %v1438_v58, %v780_v0  ;;  %v703_v3 = vadd.f32 %v702_v1, %v674_v62 }
  0xe0   : > { %v675_v10 = vpop.f32.mrf.mxu1 }
  0xe1   : > { %v800_v6 = vmax.f32 %v792_v2, 0.0  ;;  %v732_v7 = vadd.f32 %v731_v54, %v703_v3  ;;  %v676_v11 = vadd.f32 %v675_v10, %v646_v34  ;;  %v741_v48 = vpop.f32.mrf.mxu3 }
  0xe3   : > { %v1177_v9 = vpack.c.bf16 %v800_v6, %v799_v5  ;;  %v761_v12 = vadd.f32 %v760_v56, %v732_v7  ;;  %v767_v35 = vpop.f32.mrf.mxu0 }
  0xe5   : > { %1178 = vst [vmem:[%s1447_s30] sm:$0xff] %v1177_v9   ;;  %v781_v15 = vmul.f32 %v1432_v52, %v761_v12 }
  0xe6   : > { %v704_v13 = vpop.f32.mrf.mxu2 }
  0xe7   : > { %v705_v14 = vadd.f32 %v704_v13, %v676_v11  ;;  %v793_v22 = vadd.f32 %v1438_v58, %v781_v15 }
  0xe8   : > { %v678_v19 = vpop.f32.mrf.mxu1 }
  0xe9   : > { %v734_v16 = vadd.f32 %v733_v4, %v705_v14  ;;  %v679_v21 = vadd.f32 %v678_v19, %v649_v36  ;;  %v801_v27 = vmax.f32 %v793_v22, 0.0  ;;  %v743_v62 = vpop.f32.mrf.mxu3 }
  0xeb   : > { %v763_v18 = vadd.f32 %v762_v8, %v734_v16  ;;  %v770_v51 = vpop.f32.mrf.mxu0 }
  0xed   : > { %v782_v23 = vmul.f32 %v1432_v52, %v763_v18 }
  0xee   : > { %v707_v24 = vpop.f32.mrf.mxu2 }
  0xef   : > { %v794_v25 = vadd.f32 %v1438_v58, %v782_v23  ;;  %v708_v26 = vadd.f32 %v707_v24, %v679_v21 }
  0xf0   : > { %v680_v31 = vpop.f32.mrf.mxu1 }
  0xf1   : > { %v802_v28 = vmax.f32 %v794_v25, 0.0  ;;  %v737_v29 = vadd.f32 %v736_v17, %v708_v26  ;;  %v681_v33 = vadd.f32 %v680_v31, %v651_v39 }
  0xf3   : > { %v1182_v30 = vpack.c.bf16 %v802_v28, %v801_v27  ;;  %v766_v34 = vadd.f32 %v765_v20, %v737_v29  ;;  %v772_v1 = vpop.f32.mrf.mxu0 }
  0xf5   : > { %1194 = vst [vmem:[%s1447_s30 + $0x8] sm:$0xff] %v1182_v30   ;;  %v783_v40 = vmul.f32 %v1432_v52, %v766_v34 }
  0xf6   : > { %v709_v38 = vpop.f32.mrf.mxu2 }
  0xf7   : > { %v710_v36 = vadd.f32 %v709_v38, %v681_v33  ;;  %v795_v46 = vadd.f32 %v1438_v58, %v783_v40 }
  0xf8   : > { %v683_v44 = vpop.f32.mrf.mxu1 }
  0xf9   : > { %v739_v42 = vadd.f32 %v738_v32, %v710_v36  ;;  %v684_v45 = vadd.f32 %v683_v44, %v1425_v37  ;;  %v803_v53 = vmax.f32 %v795_v46, 0.0 }
  0xfb   : > { %v768_v43 = vadd.f32 %v767_v35, %v739_v42 }
  0xfd   : > { %v784_v47 = vmul.f32 %v1432_v52, %v768_v43 }
  0xfe   : > { %v712_v49 = vpop.f32.mrf.mxu2 }
  0xff   : > { %v796_v39 = vadd.f32 %v1438_v58, %v784_v47  ;;  %v713_v50 = vadd.f32 %v712_v49, %v684_v45 }
 0x100   : > { %v685_v57 = vpop.f32.mrf.mxu1 }
 0x101   : > { %v804_v54 = vmax.f32 %v796_v39, 0.0  ;;  %v742_v55 = vadd.f32 %v741_v48, %v713_v50  ;;  %v686_v59 = vadd.f32 %v685_v57, %v1427_v41 }
 0x103   : > { %v1187_v56 = vpack.c.bf16 %v804_v54, %v803_v53  ;;  %v771_v37 = vadd.f32 %v770_v51, %v742_v55 }
 0x105   : > { %1195 = vst [vmem:[%s1447_s30 + $0x10] sm:$0xff] %v1187_v56   ;;  %v785_v63 = vmul.f32 %v1432_v52, %v771_v37 }
 0x106   : > { %v714_v60 = vpop.f32.mrf.mxu2 }
 0x107   : > { %v715_v61 = vadd.f32 %v714_v60, %v686_v59  ;;  %v797_v3 = vadd.f32 %v1438_v58, %v785_v63 }
 0x109   : > { %v744_v0 = vadd.f32 %v743_v62, %v715_v61  ;;  %v805_v6 = vmax.f32 %v797_v3, 0.0 }
 0x10b   : > { %v773_v2 = vadd.f32 %v772_v1, %v744_v0 }
 0x10d   : > { %v786_v4 = vmul.f32 %v1432_v52, %v773_v2 }
 0x10f   : > { %v798_v5 = vadd.f32 %v1438_v58, %v786_v4 }
 0x111   : > { %v806_v7 = vmax.f32 %v798_v5, 0.0 }
 0x113   : > { %v1192_v41 = vpack.c.bf16 %v806_v7, %v805_v6 }
 0x115   : > { %1196 = vst [vmem:[%s1447_s30 + $0x18] sm:$0xff] %v1192_v41  }
 0x116 PF: > { %s14_s15 = sadd.s32 1, %s1230_s15  }
 0x117   : > { %p11_p4 = scmp.ge.s32.totalorder %s14_s15, 4  }
 0x119   :  { %13 = sbr.rel (!%p11_p4) target bundleno = 1 (0x1), region = 66 }

// kernel: _lambda_.12
= control target key start
LH: loop header
LB: loop body
LE: loop exit
PB: predicated region body
PF: predicated region fallthrough
CT: control target
= control target key end

     0   :  { %13 = vsyncpa [#allocation3], 0  ;;  %s2981_s0 = inlined_call_operand.vmem [shape: bf16[128,1152], index: 0, kind: input, shape index: {}]   ;;  %s2982_s1 = inlined_call_operand.vmem [shape: bf16[1152,128], index: 1, kind: input, shape index: {}]   ;;  %s2983_s2 = inlined_call_operand.vmem [shape: bf16[128,64], index: 2, kind: input, shape index: {}]   ;;  %s2984_s3 = inlined_call_operand.vmem [shape: bf16[64,128], index: 3, kind: input, shape index: {}]   ;;  %s2985_s4 = inlined_call_operand.vmem [shape: f32[1,128], index: 4, kind: input, shape index: {}]   ;;  %s2986_s5 = inlined_call_operand.vmem [shape: f32[1,128], index: 5, kind: input, shape index: {}]   ;;  %s2987_s6 = inlined_call_operand.hbm [shape: bf16[128,128], index: 6, kind: output, shape index: {0}]   ;;  %s2988_s7 = inlined_call_operand.vmem [shape: bf16[128,128], index: 7, kind: output, shape index: {1}]  }
   0x1   :  { %15 = vsyncpa [#allocation3 + $0x1], 0  ;;  %s2480_s24 = smov 0   ;;  %s2482_s25 = smov 0  }
   0x2   :  { %s2484_s26 = smov 0   ;;  %s2486_s27 = smov 0  }
   0x3 LB: > { %s2501_s28 = sadd.s32 4294967295, %s2436_s27   ;;  %s1671_s29 = sadd.s32 4294967294, %s2436_s27   ;;  %s2436_s27 = sphi %s2486_s27, %s2994_s27   ;;  %s2432_s26 = sphi %s2484_s26, %s2993_s26   ;;  %s2428_s25 = sphi %s2482_s25, %s2992_s25   ;;  %s2424_s24 = sphi %s2480_s24, %s2991_s24  }
   0x4   : > { %s2505_s30 = sadd.s32 1, %s2436_s27   ;;  %s164_s8 = sadd.s32 1, %s2432_s26 }
   0x5   : > { %s161_s9 = ssub.s32 %s2436_s27, %s2505_s30  ;;  %p174_p0 = scmp.ne.s32.totalorder %s2432_s26, %s2428_s25 }
   0x6   : > { %p162_p1 = scmp.eq.s32.totalorder %s161_s9, 0  ;;  %p175_p2 = scmp.eq.s32.totalorder %s2501_s28, 1 }
   0x7   : > { %p180_p3 = scmp.ne.s32.totalorder %s2428_s25, %s2424_s24  ;;  %p181_p4 = scmp.eq.s32.totalorder %s1671_s29, 1 }
   0x8   : > { %s2516_s10 = scalar_select %p162_p1, %s2432_s26, %s164_s8  }
   0x9   : > { %p2518_p5 = por %p175_p2, %p174_p0  ;;  %p2522_p6 = por %p181_p4, %p180_p3 }
   0xa   : > { %p1674_p7 = scmp.ge.s32.totalorder %s2436_s27, 1  ;;  %p256_p8 = scmp.lt.s32.totalorder %s2436_s27, 3 }
   0xc   : > { %p257_p9 = pnand %p1674_p7, %p256_p8 }
   0xd   : > { %s1676_s15 = sshll.u32 (!%p257_p9), %s2501_s28, 3  ;;  %s289_s21 = sand.u32 (!%p257_p9), 1, %s2428_s25  }
   0xe   : > { %260 = sbr.rel (%p257_p9) target bundleno = 352 (0x160), region = 44  ;;  %p300_p10 = scmp.lt.s32.totalorder (!%p257_p9), %s1676_s15, 15 }
   0xf   : > { %s1675_s8 = sshll.u32 (!%p257_p9), %s289_s21, 5  ;;  %s2394_s14 = scalar_lea.hbm (!%p257_p9), %s2987_s6, 64 }
  0x13   : > { %v2198_v0 = vld [vmem:[%s2982_s1 + $0x38] sm:$0xff]  ;;  %v2197_v2 = vld [vmem:[%s2982_s1 + $0x30] sm:$0xff]  ;;  %s2996_s15 = smov (!%p300_p10, %s1676_s15), 15  ;;  %v2196_v4 = vld [vmem:[%s2982_s1 + $0x28] sm:$0xff]  ;;  %vm564_vm0 = vcmask 523264  }
  0x14   : > { %v2270_v1 = vld [vmem:[%s2984_s3 + $0x18] sm:$0xff]  ;;  %2322 = vmatpush.bf16.msra.mxu2 %v2198_v0  ;;  %1222 = vmatpush.bf16.msra.mxu1 %v2198_v0  ;;  %v2269_v3 = vld [vmem:[%s2984_s3 + $0x10] sm:$0xff]  ;;  %v2268_v5 = vld [vmem:[%s2984_s3 + $0x8] sm:$0xff]  ;;  %s1679_s9 = sshll.u32 %s2996_s15, 2  ;;  %s2330_s22 = smul.u32 36, %s2996_s15 }
  0x15   : > { %2318 = vmatpush.bf16.msra.mxu3 %v2270_v1  ;;  %581 = vmatpush.bf16.msra.mxu0 %v2270_v1  ;;  %v2195_v6 = vld [vmem:[%s2982_s1 + $0x20] sm:$0xff]  ;;  %s2561_s20 = scalar_lea.vmem %s2983_s2, %s1679_s9  ;;  %v2214_v8 = vld [vmem:[%s2982_s1 + $0xb8] sm:$0xff]  ;;  %v2213_v13 = vld [vmem:[%s2982_s1 + $0xb0] sm:$0xff]  ;;  %s2271_s15 = sshll.u32 %s2501_s28, 5 }
  0x16   : > { %v2267_v7 = vld [vmem:[%s2984_s3] sm:$0xff]  ;;  %v2222_v9 = vld [vmem:[%s2982_s1 + $0xf8] sm:$0xff]  ;;  %v2265_v11 = vld [vmem:[%s2561_s20 + $0x10] sm:$0xff]  ;;  %s2598_s19 = scalar_lea.vmem %s2981_s0, %s2330_s22  ;;  %s2913_s22 = scalar_lea.vmem %s2988_s7, %s1679_s9 }
  0x17   : > { %v2194_v10 = vld [vmem:[%s2982_s1 + $0x18] sm:$0xff]  ;;  %v2263_v12 = vld [vmem:[%s2561_s20] sm:$0xff]  ;;  %v2221_v14 = vld [vmem:[%s2982_s1 + $0xf0] sm:$0xff]  ;;  %s1564_s17 = scalar_lea.hbm %s2987_s6, %s2271_s15  ;;  %s1548_s28 = scalar_lea.sflag [#allocation3], %s289_s21 }
  0x18   : > { %2323 = vmatpush.bf16.msra.mxu2 %v2197_v2  ;;  %1223 = vmatpush.bf16.msra.mxu1 %v2197_v2  ;;  %v2193_v15 = vld [vmem:[%s2982_s1 + $0x10] sm:$0xff]  ;;  %v2212_v16 = vld [vmem:[%s2982_s1 + $0xa8] sm:$0xff]  ;;  %v2211_v19 = vld [vmem:[%s2982_s1 + $0xa0] sm:$0xff]  ;;  %s1567_s18 = sshll.u32 %s1564_s17, 4  ;;  %s1568_s18 = int_to_ptr.hbm [resolvable:$true] %s1567_s18 }
  0x19   : > { %2319 = vmatpush.bf16.msra.mxu3 %v2269_v3  ;;  %582 = vmatpush.bf16.msra.mxu0 %v2269_v3  ;;  %v2220_v17 = vld [vmem:[%s2982_s1 + $0xe8] sm:$0xff]  ;;  %v2219_v20 = vld [vmem:[%s2982_s1 + $0xe0] sm:$0xff]  ;;  %v1792_v22 = vld [vmem:[%s2598_s19 + $0x90] sm:$0xf]  ;;  %s2388_s23 = sshra.s32 %s1568_s18, 4  ;;  %s2389_s23 = int_to_ptr.hbm [resolvable:$true] %s2388_s23 }
  0x1a   : > { %v2192_v18 = vld [vmem:[%s2982_s1 + $0x8] sm:$0xff]  ;;  %v2191_v21 = vld [vmem:[%s2982_s1] sm:$0xff]  ;;  %v2177_v23 = vld [vmem:[%s2598_s19 + $0xb0] sm:$0xf0]  ;;  %s2390_s29 = scalar_lea.hbm %s2389_s23, 32  ;;  %p2395_p0 = scmp.lt.s32.totalorder %s2389_s23, %s2987_s6 }
  0x1b   : > { %v1720_v24 = vld [vmem:[%s2598_s19] sm:$0xf]  ;;  %v2159_v25 = vld [vmem:[%s2598_s19 + $0x20] sm:$0xf0]  ;;  %v2206_v26 = vld [vmem:[%s2982_s1 + $0x78] sm:$0xff]  ;;  %v1793_v30 = vor.u32 %v2177_v23, %v1792_v22  ;;  %p2391_p11 = scmp.ne.s32.totalorder %s2389_s23, %s2390_s29  ;;  %p2396_p1 = scmp.lt.s32.totalorder %s2394_s14, %s2390_s29 }
  0x1c   : > { %2324 = vmatpush.bf16.msra.mxu2 %v2196_v4  ;;  %1224 = vmatpush.bf16.msra.mxu1 %v2196_v4  ;;  %v2230_v27 = vld [vmem:[%s2982_s1 + $0x138] sm:$0xff]  ;;  %v1721_v31 = vor.u32 %v2159_v25, %v1720_v24  ;;  %v2205_v32 = vld [vmem:[%s2982_s1 + $0x70] sm:$0xff]  ;;  %v2264_v35 = vld [vmem:[%s2561_s20 + $0x8] sm:$0xff] }
  0x1d   : > { %2320 = vmatpush.bf16.msra.mxu3 %v2268_v5  ;;  %583 = vmatpush.bf16.msra.mxu0 %v2268_v5  ;;  %v2210_v28 = vld [vmem:[%s2982_s1 + $0x98] sm:$0xff]  ;;  %v2229_v33 = vld [vmem:[%s2982_s1 + $0x130] sm:$0xff]  ;;  %v2204_v38 = vld [vmem:[%s2982_s1 + $0x68] sm:$0xff]  ;;  %p2392_p12 = pnand %p2391_p11, %p2518_p5  ;;  %p2397_p2 = por %p2396_p1, %p2395_p0 }
  0x1e   : > { %v2218_v29 = vld [vmem:[%s2982_s1 + $0xd8] sm:$0xff]  ;;  %v2209_v36 = vld [vmem:[%s2982_s1 + $0x90] sm:$0xff]  ;;  %v2228_v39 = vld [vmem:[%s2982_s1 + $0x128] sm:$0xff] }
  0x1f   : > { %v2266_v34 = vld [vmem:[%s2561_s20 + $0x18] sm:$0xff]  ;;  %v2217_v37 = vld [vmem:[%s2982_s1 + $0xd0] sm:$0xff]  ;;  %v2208_v40 = vld [vmem:[%s2982_s1 + $0x88] sm:$0xff]  ;;  %s2903_s20 = scalar_lea.vmem [#allocation2], %s1675_s8  ;;  %p2393_p13 = pneg %p2392_p12 }
  0x20   : > { %2325 = vmatpush.bf16.msra.mxu2 %v2195_v6  ;;  %1225 = vmatpush.bf16.msra.mxu1 %v2195_v6  ;;  %v2216_v41 = vld [vmem:[%s2982_s1 + $0xc8] sm:$0xff]  ;;  %v2203_v42 = vld [vmem:[%s2982_s1 + $0x60] sm:$0xff]  ;;  %v1828_v44 = vld [vmem:[%s2598_s19 + $0xd8] sm:$0xf] }
  0x21   : > { %2321 = vmatpush.bf16.msra.mxu3 %v2267_v7  ;;  %584 = vmatpush.bf16.msra.mxu0 %v2267_v7  ;;  %v2227_v43 = vld [vmem:[%s2982_s1 + $0x120] sm:$0xff]  ;;  %v2186_v45 = vld [vmem:[%s2598_s19 + $0xf8] sm:$0xf0]  ;;  %v1756_v46 = vld [vmem:[%s2598_s19 + $0x48] sm:$0xf]  ;;  %p2398_p3 = pnand %p2397_p2, %p2393_p13 }
  0x22   : > { %v2207_v47 = vld [vmem:[%s2982_s1 + $0x80] sm:$0xff]  ;;  %v2168_v49 = vld [vmem:[%s2598_s19 + $0x68] sm:$0xf0]  ;;  %v2246_v50 = vld [vmem:[%s2982_s1 + $0x1b8] sm:$0xff]  ;;  %v1829_v55 = vor.u32 %v2186_v45, %v1828_v44 }
  0x23   : > { %v2215_v48 = vld [vmem:[%s2982_s1 + $0xc0] sm:$0xff]  ;;  %v2254_v51 = vld [vmem:[%s2982_s1 + $0x1f8] sm:$0xff]  ;;  %v1728_v54 = vld [vmem:[%s2598_s19 + $0x8] sm:$0xf]  ;;  %v1757_v56 = vor.u32 %v2168_v49, %v1756_v46 }
  0x24   : > { %2326 = vmatpush.bf16.msra.mxu2 %v2194_v10  ;;  %1226 = vmatpush.bf16.msra.mxu1 %v2194_v10  ;;  %v2202_v52 = vld [vmem:[%s2982_s1 + $0x58] sm:$0xff]  ;;  %v2160_v57 = vld [vmem:[%s2598_s19 + $0x28] sm:$0xf0]  ;;  %v1730_v59 = vld [vmem:[%s2598_s19 + $0x2c] sm:$0xf0] }
  0x25   : > { %1280 = vmatpush.bf16.msrb.mxu3 %v2214_v8  ;;  %1309 = vmatpush.bf16.msrb.mxu0 %v2222_v9  ;;  %v2226_v53 = vld [vmem:[%s2982_s1 + $0x118] sm:$0xff]  ;;  %v2156_v58 = vld [vmem:[%s2598_s19 + $0xc] sm:$0xf]  ;;  %v2245_v60 = vld [vmem:[%s2982_s1 + $0x1b0] sm:$0xff]  ;;  %v1729_v63 = vor.u32 %v2160_v57, %v1728_v54 }
  0x26   : > { %1716 = vmatmul.msk.bf16.vlgmr.msra.gmra.mxu3 %vm564_vm0, %v2265_v11  ;;  %1714 = vmatmul.msk.bf16.vlgmr.msra.gmra.mxu0 %vm564_vm0, %v2263_v12  ;;  %v2201_v61 = vld [vmem:[%s2982_s1 + $0x50] sm:$0xff]  ;;  %v1733_v0 = vor.u32 %v2156_v58, %v1730_v59  ;;  %v2244_v2 = vld [vmem:[%s2982_s1 + $0x1a8] sm:$0xff]  ;;  %v2243_v6 = vld [vmem:[%s2982_s1 + $0x1a0] sm:$0xff] }
  0x27   : > { %v2225_v62 = vld [vmem:[%s2982_s1 + $0x110] sm:$0xff]  ;;  %v2200_v3 = vld [vmem:[%s2982_s1 + $0x48] sm:$0xff]  ;;  %v2199_v7 = vld [vmem:[%s2982_s1 + $0x40] sm:$0xff] }
  0x28   : > { %2327 = vmatpush.bf16.msra.mxu2 %v2193_v15  ;;  %1227 = vmatpush.bf16.msra.mxu1 %v2193_v15  ;;  %v2253_v1 = vld [vmem:[%s2982_s1 + $0x1f0] sm:$0xff]  ;;  %v2224_v4 = vld [vmem:[%s2982_s1 + $0x108] sm:$0xff]  ;;  %v2223_v8 = vld [vmem:[%s2982_s1 + $0x100] sm:$0xff] }
  0x29   : > { %1281 = vmatpush.bf16.msrb.mxu3 %v2213_v13  ;;  %1310 = vmatpush.bf16.msrb.mxu0 %v2221_v14  ;;  %v2252_v5 = vld [vmem:[%s2982_s1 + $0x1e8] sm:$0xff]  ;;  %v2238_v9 = vld [vmem:[%s2982_s1 + $0x178] sm:$0xff]  ;;  %v2155_v11 = vld [vmem:[%s2598_s19 + $0x4] sm:$0xf] }
  0x2a   : > { %v2262_v10 = vld [vmem:[%s2982_s1 + $0x238] sm:$0xff]  ;;  %v1722_v12 = vld [vmem:[%s2598_s19 + $0x24] sm:$0xf0]  ;;  %v1736_v13 = vld [vmem:[%s2598_s19 + $0x10] sm:$0xf] }
  0x2b   : > { %v2161_v14 = vld [vmem:[%s2598_s19 + $0x30] sm:$0xf0]  ;;  %v1766_v22 = vld [vmem:[%s2598_s19 + $0x74] sm:$0xf0]  ;;  %v2236_v24 = vld [vmem:[%s2982_s1 + $0x168] sm:$0xff] }
  0x2c   : > { %2328 = vmatpush.bf16.msra.mxu2 %v2192_v18  ;;  %1228 = vmatpush.bf16.msra.mxu1 %v2192_v18  ;;  %v2237_v15 = vld [vmem:[%s2982_s1 + $0x170] sm:$0xff]  ;;  %v1737_v18 = vor.u32 %v2161_v14, %v1736_v13  ;;  %v2174_v44 = vld [vmem:[%s2598_s19 + $0x9c] sm:$0xf]  ;;  %v1802_v45 = vld [vmem:[%s2598_s19 + $0xbc] sm:$0xf0] }
  0x2d   : > { %1282 = vmatpush.bf16.msrb.mxu3 %v2212_v16  ;;  %1311 = vmatpush.bf16.msrb.mxu0 %v2220_v17  ;;  %v2261_v16 = vld [vmem:[%s2982_s1 + $0x230] sm:$0xff]  ;;  %v1725_v17 = vor.u32 %v2155_v11, %v1722_v12  ;;  %v2240_v49 = vld [vmem:[%s2982_s1 + $0x188] sm:$0xff]  ;;  %v1794_v58 = vld [vmem:[%s2598_s19 + $0xb4] sm:$0xf0] }
  0x2e   : > { %v2248_v54 = vld [vmem:[%s2982_s1 + $0x1c8] sm:$0xff]  ;;  %v2173_v57 = vld [vmem:[%s2598_s19 + $0x94] sm:$0xf]  ;;  %v1808_v59 = vld [vmem:[%s2598_s19 + $0xa0] sm:$0xf] }
  0x2f   : > { %v1744_v12 = vld [vmem:[%s2598_s19 + $0x18] sm:$0xf]  ;;  %v2162_v13 = vld [vmem:[%s2598_s19 + $0x38] sm:$0xf0] }
  0x30   : > { %2329 = vmatpush.bf16.msra.mxu2 %v2191_v21  ;;  %1229 = vmatpush.bf16.msra.mxu1 %v2191_v21  ;;  %v2165_v21 = vld [vmem:[%s2598_s19 + $0x54] sm:$0xf]  ;;  %v2158_v14 = vld [vmem:[%s2598_s19 + $0x1c] sm:$0xf] }
  0x31   : > { %1283 = vmatpush.bf16.msrb.mxu3 %v2211_v19  ;;  %1312 = vmatpush.bf16.msrb.mxu0 %v2219_v20  ;;  %v1764_v19 = vld [vmem:[%s2598_s19 + $0x50] sm:$0xf]  ;;  %v2169_v20 = vld [vmem:[%s2598_s19 + $0x70] sm:$0xf0]  ;;  %v1769_v25 = vor.u32 %v2165_v21, %v1766_v22  ;;  %v2163_v21 = vld [vmem:[%s2598_s19 + $0x40] sm:$0xf0] }
  0x32   : > { %v1765_v23 = vor.u32 %v2169_v20, %v1764_v19  ;;  %v1738_v19 = vld [vmem:[%s2598_s19 + $0x34] sm:$0xf0]  ;;  %v1752_v20 = vld [vmem:[%s2598_s19 + $0x20] sm:$0xf] }
  0x33   : > { %1240 = vmatmul.bf16.vlgmr.msra.gmra.mxu2 %v1793_v30  ;;  %1230 = vmatmul.bf16.vlgmr.msra.gmra.mxu1 %v1721_v31  ;;  %v2241_v30 = vld [vmem:[%s2982_s1 + $0x190] sm:$0xff]  ;;  %v2250_v31 = vld [vmem:[%s2982_s1 + $0x1d8] sm:$0xff] }
  0x34   : > { %1251 = vmatpush.bf16.msrb.mxu2 %v2206_v26  ;;  %1338 = vmatpush.bf16.msrb.mxu1 %v2230_v27  ;;  %v2260_v26 = vld [vmem:[%s2982_s1 + $0x228] sm:$0xff]  ;;  %v2242_v27 = vld [vmem:[%s2982_s1 + $0x198] sm:$0xff] }
  0x35   : > { %1284 = vmatpush.bf16.msrb.mxu3 %v2210_v28  ;;  %1313 = vmatpush.bf16.msrb.mxu0 %v2218_v29  ;;  %v2251_v28 = vld [vmem:[%s2982_s1 + $0x1e0] sm:$0xff] }
  0x36   : > { %1717 = vmatmul.msk.bf16.gmra.mxu3 %vm564_vm0, %v2266_v34  ;;  %1715 = vmatmul.msk.bf16.gmra.mxu0 %vm564_vm0, %v2264_v35  ;;  %v2235_v29 = vld [vmem:[%s2982_s1 + $0x160] sm:$0xff]  ;;  %v2164_v34 = vld [vmem:[%s2598_s19 + $0x4c] sm:$0xf]  ;;  %v2258_v35 = vld [vmem:[%s2982_s1 + $0x218] sm:$0xff] }
  0x38   : > { %1252 = vmatpush.bf16.msrb.mxu2 %v2205_v32  ;;  %1339 = vmatpush.bf16.msrb.mxu1 %v2229_v33  ;;  %v2259_v32 = vld [vmem:[%s2982_s1 + $0x220] sm:$0xff]  ;;  %v2234_v33 = vld [vmem:[%s2982_s1 + $0x158] sm:$0xff] }
  0x39   : > { %1285 = vmatpush.bf16.msrb.mxu3 %v2209_v36  ;;  %1314 = vmatpush.bf16.msrb.mxu0 %v2217_v37  ;;  %v1758_v36 = vld [vmem:[%s2598_s19 + $0x6c] sm:$0xf0]  ;;  %v1772_v37 = vld [vmem:[%s2598_s19 + $0x58] sm:$0xf] }
  0x3c   : > { %1253 = vmatpush.bf16.msrb.mxu2 %v2204_v38  ;;  %1340 = vmatpush.bf16.msrb.mxu1 %v2228_v39  ;;  %v2170_v38 = vld [vmem:[%s2598_s19 + $0x78] sm:$0xf0]  ;;  %v2233_v39 = vld [vmem:[%s2982_s1 + $0x150] sm:$0xff] }
  0x3d   : > { %1286 = vmatpush.bf16.msrb.mxu3 %v2208_v40  ;;  %1315 = vmatpush.bf16.msrb.mxu0 %v2216_v41  ;;  %v1761_v40 = vor.u32 %v2164_v34, %v1758_v36  ;;  %v1773_v41 = vor.u32 %v2170_v38, %v1772_v37  ;;  %v1816_v36 = vld [vmem:[%s2598_s19 + $0xa8] sm:$0xf]  ;;  %v2180_v37 = vld [vmem:[%s2598_s19 + $0xc8] sm:$0xf0] }
  0x3e   : > { %v2176_v38 = vld [vmem:[%s2598_s19 + $0xac] sm:$0xf] }
  0x40   : > { %1254 = vmatpush.bf16.msrb.mxu2 %v2203_v42  ;;  %1341 = vmatpush.bf16.msrb.mxu1 %v2227_v43  ;;  %v1800_v42 = vld [vmem:[%s2598_s19 + $0x98] sm:$0xf]  ;;  %v2178_v43 = vld [vmem:[%s2598_s19 + $0xb8] sm:$0xf0] }
  0x41   : > { %1287 = vmatpush.bf16.msrb.mxu3 %v2207_v47  ;;  %1316 = vmatpush.bf16.msrb.mxu0 %v2215_v48  ;;  %v1801_v46 = vor.u32 %v2178_v43, %v1800_v42  ;;  %v1805_v47 = vor.u32 %v2174_v44, %v1802_v45  ;;  %v2232_v48 = vld [vmem:[%s2982_s1 + $0x148] sm:$0xff]  ;;  %v2175_v45 = vld [vmem:[%s2598_s19 + $0xa4] sm:$0xf] }
  0x43   : > { %1245 = vmatmul.bf16.gmra.mxu2 %v1829_v55  ;;  %1235 = vmatmul.bf16.gmra.mxu1 %v1757_v56  ;;  %v2256_v55 = vld [vmem:[%s2982_s1 + $0x208] sm:$0xff]  ;;  %v2247_v56 = vld [vmem:[%s2982_s1 + $0x1c0] sm:$0xff] }
  0x44   : > { %1255 = vmatpush.bf16.msrb.mxu2 %v2202_v52  ;;  %1342 = vmatpush.bf16.msrb.mxu1 %v2226_v53  ;;  %v2239_v52 = vld [vmem:[%s2982_s1 + $0x180] sm:$0xff] }
  0x45   : > { %1396 = vmatpush.bf16.msra.mxu3 %v2246_v50  ;;  %1425 = vmatpush.bf16.msra.mxu0 %v2254_v51  ;;  %v2249_v50 = vld [vmem:[%s2982_s1 + $0x1d0] sm:$0xff]  ;;  %v2231_v53 = vld [vmem:[%s2982_s1 + $0x140] sm:$0xff] }
  0x46   : > { %1288 = vmatmul.bf16.vlgmr.msrb.gmra.mxu3 %v1729_v63  ;;  %1317 = vmatmul.bf16.vlgmr.msrb.gmra.mxu0 %v1733_v0  ;;  %v2257_v51 = vld [vmem:[%s2982_s1 + $0x210] sm:$0xff]  ;;  %v1836_v63 = vld [vmem:[%s2598_s19 + $0xe0] sm:$0xf]  ;;  %v2187_v0 = vld [vmem:[%s2598_s19 + $0x100] sm:$0xf0] }
  0x48   : > { %1256 = vmatpush.bf16.msrb.mxu2 %v2201_v61  ;;  %1343 = vmatpush.bf16.msrb.mxu1 %v2225_v62  ;;  %v1797_v61 = vor.u32 %v2173_v57, %v1794_v58 }
  0x49   : > { %1397 = vmatpush.bf16.msra.mxu3 %v2245_v60  ;;  %1426 = vmatpush.bf16.msra.mxu0 %v2253_v1  ;;  %v2179_v60 = vld [vmem:[%s2598_s19 + $0xc0] sm:$0xf0] }
  0x4a   : > { %v1809_v62 = vor.u32 %v2179_v60, %v1808_v59  ;;  %v2183_v1 = vld [vmem:[%s2598_s19 + $0xe4] sm:$0xf] }
  0x4c   : > { %1257 = vmatpush.bf16.msrb.mxu2 %v2200_v3  ;;  %1344 = vmatpush.bf16.msrb.mxu1 %v2224_v4  ;;  %v1837_v3 = vor.u32 %v2187_v0, %v1836_v63  ;;  %v2255_v4 = vld [vmem:[%s2982_s1 + $0x200] sm:$0xff] }
  0x4d   : > { %1398 = vmatpush.bf16.msra.mxu3 %v2244_v2  ;;  %1427 = vmatpush.bf16.msra.mxu0 %v2252_v5  ;;  %v1838_v2 = vld [vmem:[%s2598_s19 + $0x104] sm:$0xf0] }
  0x4e   : > { %v1841_v5 = vor.u32 %v2183_v1, %v1838_v2  ;;  %v2184_v2 = vld [vmem:[%s2598_s19 + $0xec] sm:$0xf] }
  0x50   : > { %1258 = vmatpush.bf16.msrb.mxu2 %v2199_v7  ;;  %1345 = vmatpush.bf16.msrb.mxu1 %v2223_v8  ;;  %v1830_v7 = vld [vmem:[%s2598_s19 + $0xfc] sm:$0xf0]  ;;  %v1844_v8 = vld [vmem:[%s2598_s19 + $0xe8] sm:$0xf] }
  0x51   : > { %1399 = vmatpush.bf16.msra.mxu3 %v2243_v6  ;;  %1428 = vmatpush.bf16.msra.mxu0 %v2251_v28  ;;  %v2182_v6 = vld [vmem:[%s2598_s19 + $0xdc] sm:$0xf] }
  0x53   : > { %1259 = vmatmul.bf16.vlgmr.msrb.gmra.mxu2 %v1725_v17  ;;  %1346 = vmatmul.bf16.vlgmr.msrb.gmra.mxu1 %v1737_v18  ;;  %v2157_v18 = vld [vmem:[%s2598_s19 + $0x14] sm:$0xf] }
  0x54   : > { %1367 = vmatpush.bf16.msra.mxu2 %v2238_v9  ;;  %1454 = vmatpush.bf16.msra.mxu1 %v2262_v10  ;;  %v2188_v9 = vld [vmem:[%s2598_s19 + $0x108] sm:$0xf0]  ;;  %v1833_v10 = vor.u32 %v2182_v6, %v1830_v7  ;;  %v1741_v22 = vor.u32 %v2157_v18, %v1738_v19  ;;  %v2190_v6 = vld [vmem:[%s2598_s19 + $0x118] sm:$0xf0] }
  0x55   : > { %1400 = vmatpush.bf16.msra.mxu3 %v2242_v27  ;;  %1429 = vmatpush.bf16.msra.mxu0 %v2250_v31  ;;  %v1845_v11 = vor.u32 %v2188_v9, %v1844_v8  ;;  %v1782_v27 = vld [vmem:[%s2598_s19 + $0x84] sm:$0xf0]  ;;  %v1774_v31 = vld [vmem:[%s2598_s19 + $0x7c] sm:$0xf0] }
  0x56   : > { %1293 = vmatmul.bf16.gmra.mxu3 %v1765_v23  ;;  %1322 = vmatmul.bf16.gmra.mxu0 %v1769_v25  ;;  %v1753_v23 = vor.u32 %v2163_v21, %v1752_v20  ;;  %v2171_v25 = vld [vmem:[%s2598_s19 + $0x80] sm:$0xf0] }
  0x58   : > { %1368 = vmatpush.bf16.msra.mxu2 %v2237_v15  ;;  %1455 = vmatpush.bf16.msra.mxu1 %v2261_v16  ;;  %v1746_v15 = vld [vmem:[%s2598_s19 + $0x3c] sm:$0xf0]  ;;  %v1745_v16 = vor.u32 %v2162_v13, %v1744_v12 }
  0x59   : > { %1401 = vmatpush.bf16.msra.mxu3 %v2241_v30  ;;  %1430 = vmatpush.bf16.msra.mxu0 %v2249_v50  ;;  %v1749_v17 = vor.u32 %v2158_v14, %v1746_v15  ;;  %v2166_v30 = vld [vmem:[%s2598_s19 + $0x5c] sm:$0xf] }
  0x5a   : > { %v1777_v34 = vor.u32 %v2166_v30, %v1774_v31 }
  0x5c   : > { %1369 = vmatpush.bf16.msra.mxu2 %v2236_v24  ;;  %1456 = vmatpush.bf16.msra.mxu1 %v2260_v26  ;;  %v1780_v24 = vld [vmem:[%s2598_s19 + $0x60] sm:$0xf]  ;;  %v2167_v26 = vld [vmem:[%s2598_s19 + $0x64] sm:$0xf] }
  0x5d   : > { %1402 = vmatpush.bf16.msra.mxu3 %v2240_v49  ;;  %1431 = vmatpush.bf16.msra.mxu0 %v2248_v54  ;;  %v1781_v28 = vor.u32 %v2171_v25, %v1780_v24 }
  0x60   : > { %1370 = vmatpush.bf16.msra.mxu2 %v2235_v29  ;;  %1457 = vmatpush.bf16.msra.mxu1 %v2259_v32  ;;  %v1785_v29 = vor.u32 %v2167_v26, %v1782_v27  ;;  %v1788_v32 = vld [vmem:[%s2598_s19 + $0x68] sm:$0xf] }
  0x61   : > { %1403 = vmatpush.bf16.msra.mxu3 %v2239_v52  ;;  %1432 = vmatpush.bf16.msra.mxu0 %v2247_v56  ;;  %v2189_v52 = vld [vmem:[%s2598_s19 + $0x110] sm:$0xf0]  ;;  %v1854_v56 = vld [vmem:[%s2598_s19 + $0x114] sm:$0xf0] }
  0x63   : > { %1264 = vmatmul.bf16.gmra.mxu2 %v1761_v40  ;;  %1351 = vmatmul.bf16.gmra.mxu1 %v1773_v41  ;;  %v1817_v40 = vor.u32 %v2180_v37, %v1816_v36 }
  0x64   : > { %1371 = vmatpush.bf16.msra.mxu2 %v2234_v33  ;;  %1458 = vmatpush.bf16.msra.mxu1 %v2258_v35  ;;  %v2172_v33 = vld [vmem:[%s2598_s19 + $0x88] sm:$0xf0] }
  0x65   : > { %v1789_v35 = vor.u32 %v2172_v33, %v1788_v32 }
  0x66   : > { %1298 = vmatmul.bf16.gmra.mxu3 %v1801_v46  ;;  %1327 = vmatmul.bf16.gmra.mxu0 %v1805_v47  ;;  %v1810_v46 = vld [vmem:[%s2598_s19 + $0xc4] sm:$0xf0]  ;;  %v1824_v47 = vld [vmem:[%s2598_s19 + $0xb0] sm:$0xf] }
  0x67   : > { %v1813_v49 = vor.u32 %v2175_v45, %v1810_v46 }
  0x68   : > { %1372 = vmatpush.bf16.msra.mxu2 %v2233_v39  ;;  %1459 = vmatpush.bf16.msra.mxu1 %v2257_v51  ;;  %v1818_v39 = vld [vmem:[%s2598_s19 + $0xcc] sm:$0xf0] }
  0x69   : > { %v1821_v42 = vor.u32 %v2176_v38, %v1818_v39  ;;  %v1852_v51 = vld [vmem:[%s2598_s19 + $0xf0] sm:$0xf] }
  0x6a   : > { %v1853_v58 = vor.u32 %v2189_v52, %v1852_v51 }
  0x6c   : > { %1373 = vmatpush.bf16.msra.mxu2 %v2232_v48  ;;  %1460 = vmatpush.bf16.msra.mxu1 %v2256_v55  ;;  %v2181_v48 = vld [vmem:[%s2598_s19 + $0xd0] sm:$0xf0] }
  0x6d   : > { %v1825_v50 = vor.u32 %v2181_v48, %v1824_v47  ;;  %v2185_v55 = vld [vmem:[%s2598_s19 + $0xf4] sm:$0xf] }
  0x6e   : > { %v1857_v60 = vor.u32 %v2185_v55, %v1854_v56 }
  0x70   : > { %1374 = vmatpush.bf16.msra.mxu2 %v2231_v53  ;;  %1461 = vmatpush.bf16.msra.mxu1 %v2255_v4  ;;  %v1846_v4 = vld [vmem:[%s2598_s19 + $0x10c] sm:$0xf0] }
  0x71   : > { %v1849_v9 = vor.u32 %v2184_v2, %v1846_v4 }
  0x73   : > { %1269 = vmatmul.bf16.gmra.mxu2 %v1797_v61  ;;  %1356 = vmatmul.bf16.gmra.mxu1 %v1809_v62 }
  0x76   : > { %1303 = vmatmul.bf16.gmra.mxu3 %v1837_v3  ;;  %1332 = vmatmul.bf16.gmra.mxu0 %v1841_v5  ;;  %v1860_v5 = vld [vmem:[%s2598_s19 + $0xf8] sm:$0xf]  ;;  %s1565_s19 = sshll.u32 %s2903_s20, 4  ;;  %s1566_s19 = int_to_ptr.vmem [resolvable:$true] %s1565_s19 }
  0x83   : > { %1274 = vmatmul.bf16.gmra.mxu2 %v1833_v10  ;;  %1361 = vmatmul.bf16.gmra.mxu1 %v1845_v11  ;;  %v1861_v10 = vor.u32 %v2190_v6, %v1860_v5 }
  0x86   : > { %1404 = vmatmul.bf16.vlgmr.msra.gmra.mxu3 %v1745_v16  ;;  %1433 = vmatmul.bf16.vlgmr.msra.gmra.mxu0 %v1749_v17 }
  0x93   : > { %1375 = vmatmul.bf16.vlgmr.msra.gmra.mxu2 %v1741_v22  ;;  %1462 = vmatmul.bf16.vlgmr.msra.gmra.mxu1 %v1753_v23 }
  0x96   : > { %1409 = vmatmul.bf16.gmra.mxu3 %v1781_v28  ;;  %1438 = vmatmul.bf16.gmra.mxu0 %v1785_v29 }
  0xa3   : > { %v586_v41 = vpop.f32.mrf.mxu0  ;;  %1380 = vmatmul.bf16.gmra.mxu2 %v1777_v34  ;;  %1467 = vmatmul.bf16.gmra.mxu1 %v1789_v35 }
  0xa6   : > { %1414 = vmatmul.bf16.gmra.mxu3 %v1817_v40  ;;  %1443 = vmatmul.bf16.gmra.mxu0 %v1821_v42 }
  0xa9   : > { %v596_v43 = vpop.f32.mrf.mxu3 }
  0xab   : > { %v588_v44 = vpop.f32.mrf.mxu0 }
  0xb0   : > { %v1231_v53 = vpop.f32.mrf.mxu1 }
  0xb1   : > { %v598_v54 = vpop.f32.mrf.mxu3  ;;  %v1232_v57 = vadd.f32 %v1231_v53, %v586_v41 }
  0xb3   : > { %1385 = vmatmul.bf16.gmra.mxu2 %v1813_v49  ;;  %1472 = vmatmul.bf16.gmra.mxu1 %v1825_v50  ;;  %v591_v59 = vpop.f32.mrf.mxu0 }
  0xb6   : > { %v1241_v61 = vpop.f32.mrf.mxu2  ;;  %1419 = vmatmul.bf16.gmra.mxu3 %v1853_v58  ;;  %1448 = vmatmul.bf16.gmra.mxu0 %v1857_v60 }
  0xb7   : > { %v1242_v62 = vadd.f32 %v1241_v61, %v596_v43 }
  0xb8   : > { %v1233_v63 = vpop.f32.mrf.mxu1 }
  0xb9   : > { %v2849_v0 = vadd.f32 %v1233_v63, %v588_v44  ;;  %v601_v1 = vpop.f32.mrf.mxu3 }
  0xbb   : > { %v593_v3 = vpop.f32.mrf.mxu0 }
  0xbe   : > { %v1243_v7 = vpop.f32.mrf.mxu2 }
  0xbf   : > { %v2855_v8 = vadd.f32 %v1243_v7, %v598_v54 }
  0xc0   : > { %v1236_v11 = vpop.f32.mrf.mxu1 }
  0xc1   : > { %v1237_v12 = vadd.f32 %v1236_v11, %v591_v59  ;;  %v603_v13 = vpop.f32.mrf.mxu3 }
  0xc3   : > { %1390 = vmatmul.bf16.gmra.mxu2 %v1849_v9  ;;  %1477 = vmatmul.bf16.gmra.mxu1 %v1861_v10  ;;  %v1318_v14 = vpop.f32.mrf.mxu0 }
  0xc6   : > { %v1246_v15 = vpop.f32.mrf.mxu2 }
  0xc7   : > { %v1247_v16 = vadd.f32 %v1246_v15, %v601_v1 }
  0xc8   : > { %v1238_v17 = vpop.f32.mrf.mxu1 }
  0xc9   : > { %v2857_v18 = vadd.f32 %v1238_v17, %v593_v3  ;;  %v1289_v19 = vpop.f32.mrf.mxu3 }
  0xcb   : > { %v1320_v20 = vpop.f32.mrf.mxu0 }
  0xce   : > { %v1248_v21 = vpop.f32.mrf.mxu2 }
  0xcf   : > { %v2859_v22 = vadd.f32 %v1248_v21, %v603_v13 }
  0xd0   : > { %v1347_v23 = vpop.f32.mrf.mxu1 }
  0xd1   : > { %v1291_v24 = vpop.f32.mrf.mxu3 }
  0xd3   : > { %v1323_v25 = vpop.f32.mrf.mxu0 }
  0xd6   : > { %v1260_v26 = vpop.f32.mrf.mxu2 }
  0xd7   : > { %v1261_v27 = vadd.f32 %v1260_v26, %v1232_v57 }
  0xd8   : > { %v1349_v28 = vpop.f32.mrf.mxu1 }
  0xd9   : > { %v1290_v29 = vadd.f32 %v1289_v19, %v1261_v27  ;;  %v1294_v30 = vpop.f32.mrf.mxu3  ;;  %v2889_v27 = vld [vmem:[%s2985_s4] ss:$0 sm:$0xff] }
  0xdb   : > { %v1319_v31 = vadd.f32 %v1318_v14, %v1290_v29  ;;  %v2861_v32 = vpop.f32.mrf.mxu0 }
  0xdd   : > { %v1348_v33 = vadd.f32 %v1347_v23, %v1319_v31 }
  0xde   : > { %v1262_v34 = vpop.f32.mrf.mxu2 }
  0xdf   : > { %v1263_v9 = vadd.f32 %v1262_v34, %v2849_v0 }
  0xe0   : > { %v1352_v35 = vpop.f32.mrf.mxu1 }
  0xe1   : > { %v1296_v36 = vpop.f32.mrf.mxu3  ;;  %v1292_v11 = vadd.f32 %v1291_v24, %v1263_v9 }
  0xe3   : > { %v1328_v37 = vpop.f32.mrf.mxu0  ;;  %v1321_v17 = vadd.f32 %v1320_v20, %v1292_v11  ;;  %v2897_v20 = vld [vmem:[%s2986_s5] ss:$0 sm:$0xff] }
  0xe5   : > { %v1350_v21 = vadd.f32 %v1349_v28, %v1321_v17 }
  0xe6   : > { %v1265_v38 = vpop.f32.mrf.mxu2 }
  0xe7   : > { %v1266_v39 = vadd.f32 %v1265_v38, %v1237_v12 }
  0xe8   : > { %v2863_v40 = vpop.f32.mrf.mxu1 }
  0xe9   : > { %v1295_v41 = vadd.f32 %v1294_v30, %v1266_v39  ;;  %v1299_v42 = vpop.f32.mrf.mxu3 }
  0xeb   : > { %v1324_v43 = vadd.f32 %v1323_v25, %v1295_v41  ;;  %v2865_v46 = vpop.f32.mrf.mxu0 }
  0xed   : > { %v1353_v44 = vadd.f32 %v1352_v35, %v1324_v43 }
  0xee   : > { %v1267_v45 = vpop.f32.mrf.mxu2 }
  0xef   : > { %v1268_v29 = vadd.f32 %v1267_v45, %v2857_v18 }
  0xf0   : > { %v1357_v47 = vpop.f32.mrf.mxu1 }
  0xf1   : > { %v2867_v48 = vpop.f32.mrf.mxu3  ;;  %v1297_v34 = vadd.f32 %v1296_v36, %v1268_v29 }
  0xf3   : > { %v1333_v52 = vpop.f32.mrf.mxu0 }
  0xf6   : > { %v1270_v49 = vpop.f32.mrf.mxu2 }
  0xf7   : > { %v1271_v50 = vadd.f32 %v1270_v49, %v1242_v62 }
  0xf8   : > { %v2869_v51 = vpop.f32.mrf.mxu1 }
  0xf9   : > { %v1300_v53 = vadd.f32 %v1299_v42, %v1271_v50  ;;  %v1304_v54 = vpop.f32.mrf.mxu3 }
  0xfb   : > { %v1329_v55 = vadd.f32 %v1328_v37, %v1300_v53  ;;  %v2877_v60 = vpop.f32.mrf.mxu0 }
  0xfd   : > { %v2871_v56 = vadd.f32 %v1357_v47, %v1329_v55  ;;  %v1326_v47 = vadd.f32 %v2861_v32, %v1297_v34 }
  0xfe   : > { %v2873_v57 = vpop.f32.mrf.mxu2 }
 0x100   : > { %v1362_v58 = vpop.f32.mrf.mxu1 }
 0x101   : > { %v2875_v59 = vpop.f32.mrf.mxu3 }
 0x103   : > { %v1434_v4 = vpop.f32.mrf.mxu0 }
 0x106   : > { %v1275_v61 = vpop.f32.mrf.mxu2 }
 0x107   : > { %v1276_v63 = vadd.f32 %v1275_v61, %v1247_v16  ;;  %v1273_v61 = vadd.f32 %v2873_v57, %v2855_v8 }
 0x108   : > { %v2879_v1 = vpop.f32.mrf.mxu1 }
 0x109   : > { %v1305_v62 = vadd.f32 %v1304_v54, %v1276_v63  ;;  %v1405_v2 = vpop.f32.mrf.mxu3  ;;  %v1355_v54 = vadd.f32 %v2863_v40, %v1326_v47 }
 0x10b   : > { %v1334_v3 = vadd.f32 %v1333_v52, %v1305_v62  ;;  %v1436_v13 = vpop.f32.mrf.mxu0 }
 0x10d   : > { %v2881_v5 = vadd.f32 %v1362_v58, %v1334_v3 }
 0x10e   : > { %v2883_v6 = vpop.f32.mrf.mxu2 }
 0x10f   : > { %v1278_v29 = vadd.f32 %v2883_v6, %v2859_v22 }
 0x110   : > { %v1463_v7 = vpop.f32.mrf.mxu1 }
 0x111   : > { %v1407_v10 = vpop.f32.mrf.mxu3 }
 0x113   : > { %v1439_v24 = vpop.f32.mrf.mxu0 }
 0x116   : > { %v1376_v12 = vpop.f32.mrf.mxu2 }
 0x117   : > { %v1377_v14 = vadd.f32 %v1376_v12, %v1348_v33 }
 0x118   : > { %v1465_v15 = vpop.f32.mrf.mxu1 }
 0x119   : > { %v1406_v16 = vadd.f32 %v1405_v2, %v1377_v14  ;;  %v1410_v25 = vpop.f32.mrf.mxu3 }
 0x11b   : > { %v1435_v19 = vadd.f32 %v1434_v4, %v1406_v16  ;;  %v1441_v36 = vpop.f32.mrf.mxu0 }
 0x11d   : > { %v1464_v26 = vadd.f32 %v1463_v7, %v1435_v19  ;;  %v1302_v7 = vadd.f32 %v2867_v48, %v1273_v61 }
 0x11e   : > { %v1378_v23 = vpop.f32.mrf.mxu2 }
 0x11f   : > { %v1379_v0 = vadd.f32 %v1378_v23, %v1350_v21  ;;  %v1503_v33 = vmul.f32 %v2889_v27, %v1464_v26 }
 0x120   : > { %v1468_v31 = vpop.f32.mrf.mxu1 }
 0x121   : > { %v1408_v30 = vadd.f32 %v1407_v10, %v1379_v0  ;;  %v1515_v38 = vadd.f32 %v2897_v20, %v1503_v33  ;;  %v1412_v42 = vpop.f32.mrf.mxu3  ;;  %v1307_v33 = vadd.f32 %v2875_v59, %v1278_v29 }
 0x123   : > { %v1437_v28 = vadd.f32 %v1436_v13, %v1408_v30  ;;  %v1523_v49 = vmax.f32 %v1515_v38, 0.0  ;;  %v1444_v4 = vpop.f32.mrf.mxu0 }
 0x125   : > { %v1466_v35 = vadd.f32 %v1465_v15, %v1437_v28  ;;  %v1331_v15 = vadd.f32 %v2865_v46, %v1302_v7 }
 0x126   : > { %v1381_v37 = vpop.f32.mrf.mxu2 }
 0x127   : > { %v2275_v39 = vpack.c.bf16 %v1466_v35, %v1464_v26  ;;  %v1504_v18 = vmul.f32 %v2889_v27, %v1466_v35  ;;  %v1382_v41 = vadd.f32 %v1381_v37, %v1353_v44  ;;  %v1360_v23 = vadd.f32 %v2869_v51, %v1331_v15 }
 0x128   : > { %v1470_v44 = vpop.f32.mrf.mxu1 }
 0x129   : > { %2276 = vst [vmem:[%s2903_s20] sm:$0xff] %v2275_v39   ;;  %v1516_v43 = vadd.f32 %v2897_v20, %v1504_v18  ;;  %v1411_v45 = vadd.f32 %v1410_v25, %v1382_v41  ;;  %v1415_v62 = vpop.f32.mrf.mxu3  ;;  %v1336_v41 = vadd.f32 %v2877_v60, %v1307_v33 }
 0x12b   : > { %v1524_v50 = vmax.f32 %v1516_v43, 0.0  ;;  %v1440_v52 = vadd.f32 %v1439_v24, %v1411_v45  ;;  %v1446_v25 = vpop.f32.mrf.mxu0 }
 0x12d   : > { %v2295_v53 = vpack.c.bf16 %v1524_v50, %v1523_v49  ;;  %v1469_v58 = vadd.f32 %v1468_v31, %v1440_v52 }
 0x12e   : > { %v1383_v55 = vpop.f32.mrf.mxu2 }
 0x12f   : > { %2296 = vst [vmem:[%s2913_s22] sm:$0xff] %v2295_v53   ;;  %v1384_v32 = vadd.f32 %v1383_v55, %v1355_v54  ;;  %v1505_v2 = vmul.f32 %v2889_v27, %v1469_v58 }
 0x130   : > { %v1473_v10 = vpop.f32.mrf.mxu1 }
 0x131   : > { %v1413_v63 = vadd.f32 %v1412_v42, %v1384_v32  ;;  %v1517_v40 = vadd.f32 %v2897_v20, %v1505_v2  ;;  %v1417_v19 = vpop.f32.mrf.mxu3 }
 0x133   : > { %v1442_v3 = vadd.f32 %v1441_v36, %v1413_v63  ;;  %v1525_v16 = vmax.f32 %v1517_v40, 0.0  ;;  %v1449_v18 = vpop.f32.mrf.mxu0  ;;  %v1365_v36 = vadd.f32 %v2879_v1, %v1336_v41 }
 0x135   : > { %v1471_v9 = vadd.f32 %v1470_v44, %v1442_v3 }
 0x136   : > { %v1386_v11 = vpop.f32.mrf.mxu2 }
 0x137   : > { %v2280_v12 = vpack.c.bf16 %v1471_v9, %v1469_v58  ;;  %v1506_v13 = vmul.f32 %v2889_v27, %v1471_v9  ;;  %v1387_v14 = vadd.f32 %v1386_v11, %v2871_v56 }
 0x138   : > { %v1475_v56 = vpop.f32.mrf.mxu1 }
 0x139   : > { %2312 = vst [vmem:[%s2903_s20 + $0x8] sm:$0xff] %v2280_v12   ;;  %v1518_v8 = vadd.f32 %v2897_v20, %v1506_v13  ;;  %v1416_v57 = vadd.f32 %v1415_v62, %v1387_v14  ;;  %v1420_v34 = vpop.f32.mrf.mxu3 }
 0x13b   : > { %v1526_v17 = vmax.f32 %v1518_v8, 0.0  ;;  %v1445_v48 = vadd.f32 %v1444_v4, %v1416_v57  ;;  %v1451_v44 = vpop.f32.mrf.mxu0 }
 0x13d   : > { %v2300_v21 = vpack.c.bf16 %v1526_v17, %v1525_v16  ;;  %v1474_v0 = vadd.f32 %v1473_v10, %v1445_v48 }
 0x13e   : > { %v1388_v26 = vpop.f32.mrf.mxu2 }
 0x13f   : > { %2315 = vst [vmem:[%s2913_s22 + $0x8] sm:$0xff] %v2300_v21   ;;  %v1389_v24 = vadd.f32 %v1388_v26, %v1360_v23  ;;  %v1507_v46 = vmul.f32 %v2889_v27, %v1474_v0 }
 0x140   : > { %v1478_v59 = vpop.f32.mrf.mxu1 }
 0x141   : > { %v1418_v30 = vadd.f32 %v1417_v19, %v1389_v24  ;;  %v1519_v51 = vadd.f32 %v2897_v20, %v1507_v46  ;;  %v1422_v52 = vpop.f32.mrf.mxu3 }
 0x143   : > { %v1447_v31 = vadd.f32 %v1446_v25, %v1418_v30  ;;  %v1527_v42 = vmax.f32 %v1519_v51, 0.0 }
 0x145   : > { %v1476_v28 = vadd.f32 %v1475_v56, %v1447_v31 }
 0x146   : > { %v1391_v35 = vpop.f32.mrf.mxu2 }
 0x147   : > { %v2285_v37 = vpack.c.bf16 %v1476_v28, %v1474_v0  ;;  %v1508_v38 = vmul.f32 %v2889_v27, %v1476_v28  ;;  %v1392_v39 = vadd.f32 %v1391_v35, %v2881_v5 }
 0x148   : > { %v1480_v1 = vpop.f32.mrf.mxu1 }
 0x149   : > { %2313 = vst [vmem:[%s2903_s20 + $0x10] sm:$0xff] %v2285_v37   ;;  %v1520_v22 = vadd.f32 %v2897_v20, %v1508_v38  ;;  %v1421_v6 = vadd.f32 %v1420_v34, %v1392_v39 }
 0x14b   : > { %v1528_v43 = vmax.f32 %v1520_v22, 0.0  ;;  %v1450_v45 = vadd.f32 %v1449_v18, %v1421_v6 }
 0x14d   : > { %v2305_v47 = vpack.c.bf16 %v1528_v43, %v1527_v42  ;;  %v1479_v50 = vadd.f32 %v1478_v59, %v1450_v45 }
 0x14e   : > { %v1393_v49 = vpop.f32.mrf.mxu2 }
 0x14f   : > { %2316 = vst [vmem:[%s2913_s22 + $0x10] sm:$0xff] %v2305_v47   ;;  %v1394_v5 = vadd.f32 %v1393_v49, %v1365_v36  ;;  %v1509_v53 = vmul.f32 %v2889_v27, %v1479_v50 }
 0x151   : > { %v1423_v60 = vadd.f32 %v1422_v52, %v1394_v5  ;;  %v1521_v58 = vadd.f32 %v2897_v20, %v1509_v53 }
 0x153   : > { %v1452_v54 = vadd.f32 %v1451_v44, %v1423_v60 }
 0x155   : > { %v1481_v55 = vadd.f32 %v1480_v1, %v1452_v54 }
 0x157   : > { %v2290_v32 = vpack.c.bf16 %v1481_v55, %v1479_v50  ;;  %v1510_v61 = vmul.f32 %v2889_v27, %v1481_v55 }
 0x159   : > { %2314 = vst [vmem:[%s2903_s20 + $0x18] sm:$0xff] %v2290_v32   ;;  %v1522_v63 = vadd.f32 %v2897_v20, %v1510_v61 }
 0x15a   : > { %2401 = shalt.err (!%p2398_p3)
}
 0x15b   : > { %s2438_s21 = smov 64   ;;  %s2439_s20 = smov 4   ;;  %v1529_v27 = vmax.f32 %v1521_v58, 0.0  ;;  %v1530_v20 = vmax.f32 %v1522_v63, 0.0 }
 0x15c   : > { %2331 = dma.vmem_to_hbm [thread:$0]  (%p2518_p5), %s1566_s19, 512, %s1568_s18, %s1548_s28, %s2438_s21, %s2438_s21, %s2439_s20  }
 0x15d   : > { %v2310_v62 = vpack.c.bf16 %v1530_v20, %v1529_v27 }
 0x15f   : > { %2317 = vst [vmem:[%s2913_s22 + $0x18] sm:$0xff] %v2310_v62  }
 0x160 PF: > { %p2337_p4 = scmp.ge.s32.totalorder %s2436_s27, 2  ;;  %s1586_s16 = sand.u32 1, %s2424_s24  }
 0x161   : > { %s1587_s17 = scalar_lea.sflag [#allocation3], %s1586_s16 }
 0x162   : > { %p2334_p7 = pnand %p2337_p4, %p2522_p6 }
 0x164   : > { %p2335_p8 = pneg %p2334_p7 }
 0x166   : > { %2419 = dma.done.wait (%p2335_p8), %s1587_s17, 512  }
 0x167   : > { %2421 = vsyncadd (%p2335_p8), %s1587_s17, 4294966784  ;;  %p18_p5 = scmp.ge.s32.totalorder %s2505_s30, 4   ;;  %s2991_s24 = smov %s2428_s25 }
 0x168   : > { %s2992_s25 = smov %s2432_s26  ;;  %s2993_s26 = smov %s2516_s10 }
 0x169   : > { %s2994_s27 = smov %s2505_s30  ;;  %20 = sbr.rel (!%p18_p5) target bundleno = 3 (0x3), region = 94 }
 0x16e   :  { %1601 = vsyncpa [#allocation3], 1 }
 0x16f   :  { %1603 = vsyncpa [#allocation3 + $0x1], 1 }

// kernel: _lambda_.13
= control target key start
LH: loop header
LB: loop body
LE: loop exit
PB: predicated region body
PF: predicated region fallthrough
CT: control target
= control target key end

     0   :  { %s1043_s15 = smov 0   ;;  %s1200_s0 = inlined_call_operand.vmem [shape: bf16[64,576], index: 0, kind: input, shape index: {}]   ;;  %s1201_s1 = inlined_call_operand.vmem [shape: bf16[576,128], index: 1, kind: input, shape index: {}]   ;;  %s1202_s2 = inlined_call_operand.vmem [shape: f32[1,128], index: 2, kind: input, shape index: {}]   ;;  %s1203_s3 = inlined_call_operand.vmem [shape: f32[1,128], index: 3, kind: input, shape index: {}]   ;;  %s1204_s4 = inlined_call_operand.vmem [shape: bf16[64,128], index: 4, kind: output, shape index: {}]  }
   0x1 LB: > { %s741_s16 = sadd.s32 4294967295, %s1016_s15   ;;  %p745_p0 = scmp.ge.s32.totalorder %s1016_s15, 1  ;;  %s1016_s15 = sphi %s1043_s15, %s14_s15  }
   0x2   : > { %p164_p1 = scmp.lt.s32.totalorder %s1016_s15, 3 }
   0x4   : > { %p165_p2 = pnand %p745_p0, %p164_p1 }
   0x5   : > { %s746_s17 = sshll.u32 (!%p165_p2), %s741_s16, 2 }
   0x6   : > { %168 = sbr.rel (%p165_p2) target bundleno = 221 (0xdd), region = 36  ;;  %p192_p3 = scmp.lt.s32.totalorder (!%p165_p2), %s746_s17, 7 }
   0xb   : > { %v955_v0 = vld [vmem:[%s1201_s1 + $0x38] sm:$0xff]  ;;  %v954_v4 = vld [vmem:[%s1201_s1 + $0x30] sm:$0xff]  ;;  %v953_v8 = vld [vmem:[%s1201_s1 + $0x28] sm:$0xff]  ;;  %s1206_s17 = smov (!%p192_p3, %s746_s17), 7  ;;  %vm555_vm0 = vcmask 523264  }
   0xc   : > { %v963_v1 = vld [vmem:[%s1201_s1 + $0x78] sm:$0xff]  ;;  %562 = vmatpush.bf16.msra.mxu0 %v955_v0  ;;  %v962_v5 = vld [vmem:[%s1201_s1 + $0x70] sm:$0xff]  ;;  %v961_v9 = vld [vmem:[%s1201_s1 + $0x68] sm:$0xff]  ;;  %s999_s11 = smul.u32 20, %s1206_s17  ;;  %s749_s16 = sshll.u32 %s1206_s17, 2 }
   0xd   : > { %v971_v2 = vld [vmem:[%s1201_s1 + $0xb8] sm:$0xff]  ;;  %581 = vmatpush.bf16.msra.mxu1 %v963_v1  ;;  %v970_v6 = vld [vmem:[%s1201_s1 + $0xb0] sm:$0xff]  ;;  %v969_v10 = vld [vmem:[%s1201_s1 + $0xa8] sm:$0xff]  ;;  %s202_s28 = scalar_lea.vmem %s1204_s4, %s749_s16 }
   0xe   : > { %v979_v3 = vld [vmem:[%s1201_s1 + $0xf8] sm:$0xff]  ;;  %600 = vmatpush.bf16.msra.mxu2 %v971_v2  ;;  %v978_v7 = vld [vmem:[%s1201_s1 + $0xf0] sm:$0xff]  ;;  %v977_v11 = vld [vmem:[%s1201_s1 + $0xe8] sm:$0xff]  ;;  %s1135_s25 = scalar_lea.vmem %s1200_s0, %s999_s11 }
   0xf   : > { %619 = vmatpush.bf16.msra.mxu3 %v979_v3  ;;  %v952_v12 = vld [vmem:[%s1201_s1 + $0x20] sm:$0xff]  ;;  %v951_v16 = vld [vmem:[%s1201_s1 + $0x18] sm:$0xff]  ;;  %v950_v20 = vld [vmem:[%s1201_s1 + $0x10] sm:$0xff] }
  0x10   : > { %563 = vmatpush.bf16.msra.mxu0 %v954_v4  ;;  %v960_v13 = vld [vmem:[%s1201_s1 + $0x60] sm:$0xff]  ;;  %v959_v17 = vld [vmem:[%s1201_s1 + $0x58] sm:$0xff]  ;;  %v958_v21 = vld [vmem:[%s1201_s1 + $0x50] sm:$0xff] }
  0x11   : > { %582 = vmatpush.bf16.msra.mxu1 %v962_v5  ;;  %v968_v14 = vld [vmem:[%s1201_s1 + $0xa0] sm:$0xff]  ;;  %v967_v18 = vld [vmem:[%s1201_s1 + $0x98] sm:$0xff]  ;;  %v966_v22 = vld [vmem:[%s1201_s1 + $0x90] sm:$0xff] }
  0x12   : > { %601 = vmatpush.bf16.msra.mxu2 %v970_v6  ;;  %v976_v15 = vld [vmem:[%s1201_s1 + $0xe0] sm:$0xff]  ;;  %v975_v19 = vld [vmem:[%s1201_s1 + $0xd8] sm:$0xff]  ;;  %v974_v23 = vld [vmem:[%s1201_s1 + $0xd0] sm:$0xff] }
  0x13   : > { %620 = vmatpush.bf16.msra.mxu3 %v978_v7  ;;  %v949_v24 = vld [vmem:[%s1201_s1 + $0x8] sm:$0xff]  ;;  %v948_v28 = vld [vmem:[%s1201_s1] sm:$0xff]  ;;  %v940_v33 = vld [vmem:[%s1135_s25 + $0x10] sm:$0xf0] }
  0x14   : > { %564 = vmatpush.bf16.msra.mxu0 %v953_v8  ;;  %v957_v25 = vld [vmem:[%s1201_s1 + $0x48] sm:$0xff]  ;;  %v956_v29 = vld [vmem:[%s1201_s1 + $0x40] sm:$0xff]  ;;  %v754_v35 = vld [vmem:[%s1135_s25 + $0x14] sm:$0xf0] }
  0x15   : > { %583 = vmatpush.bf16.msra.mxu1 %v961_v9  ;;  %v965_v26 = vld [vmem:[%s1201_s1 + $0x88] sm:$0xff]  ;;  %v964_v30 = vld [vmem:[%s1201_s1 + $0x80] sm:$0xff]  ;;  %v941_v37 = vld [vmem:[%s1135_s25 + $0x18] sm:$0xf0] }
  0x16   : > { %602 = vmatpush.bf16.msra.mxu2 %v969_v10  ;;  %v973_v27 = vld [vmem:[%s1201_s1 + $0xc8] sm:$0xff]  ;;  %v972_v31 = vld [vmem:[%s1201_s1 + $0xc0] sm:$0xff]  ;;  %v983_v40 = vld [vmem:[%s1201_s1 + $0x118] sm:$0xff] }
  0x17   : > { %621 = vmatpush.bf16.msra.mxu3 %v977_v11  ;;  %v752_v32 = vld [vmem:[%s1135_s25] sm:$0xf]  ;;  %v938_v34 = vld [vmem:[%s1135_s25 + $0x4] sm:$0xf]  ;;  %v760_v36 = vld [vmem:[%s1135_s25 + $0x8] sm:$0xf] }
  0x18   : > { %565 = vmatpush.bf16.msra.mxu0 %v952_v12  ;;  %v939_v38 = vld [vmem:[%s1135_s25 + $0xc] sm:$0xf]  ;;  %v762_v39 = vld [vmem:[%s1135_s25 + $0x1c] sm:$0xf0]  ;;  %v753_v41 = vor.u32 %v940_v33, %v752_v32  ;;  %v757_v42 = vor.u32 %v938_v34, %v754_v35  ;;  %v761_v43 = vor.u32 %v941_v37, %v760_v36  ;;  %v982_v45 = vld [vmem:[%s1201_s1 + $0x110] sm:$0xff] }
  0x19   : > { %584 = vmatpush.bf16.msra.mxu1 %v960_v13  ;;  %v765_v44 = vor.u32 %v939_v38, %v762_v39  ;;  %v981_v46 = vld [vmem:[%s1201_s1 + $0x108] sm:$0xff]  ;;  %v980_v47 = vld [vmem:[%s1201_s1 + $0x100] sm:$0xff]  ;;  %v945_v49 = vld [vmem:[%s1135_s25 + $0x38] sm:$0xf0] }
  0x1a   : > { %603 = vmatpush.bf16.msra.mxu2 %v968_v14  ;;  %v772_v48 = vld [vmem:[%s1135_s25 + $0x28] sm:$0xf]  ;;  %v943_v50 = vld [vmem:[%s1135_s25 + $0x2c] sm:$0xf]  ;;  %v774_v51 = vld [vmem:[%s1135_s25 + $0x3c] sm:$0xf0] }
  0x1b   : > { %622 = vmatpush.bf16.msra.mxu3 %v976_v15  ;;  %v780_v52 = vld [vmem:[%s1135_s25 + $0x30] sm:$0xf]  ;;  %v946_v53 = vld [vmem:[%s1135_s25 + $0x40] sm:$0xf0]  ;;  %v944_v54 = vld [vmem:[%s1135_s25 + $0x34] sm:$0xf]  ;;  %v773_v56 = vor.u32 %v945_v49, %v772_v48  ;;  %v777_v57 = vor.u32 %v943_v50, %v774_v51 }
  0x1c   : > { %566 = vmatpush.bf16.msra.mxu0 %v951_v16  ;;  %v782_v55 = vld [vmem:[%s1135_s25 + $0x44] sm:$0xf0]  ;;  %v781_v58 = vor.u32 %v946_v53, %v780_v52  ;;  %v768_v60 = vld [vmem:[%s1135_s25 + $0x10] sm:$0xf]  ;;  %v942_v61 = vld [vmem:[%s1135_s25 + $0x20] sm:$0xf0] }
  0x1d   : > { %585 = vmatpush.bf16.msra.mxu1 %v959_v17  ;;  %v785_v59 = vor.u32 %v944_v54, %v782_v55  ;;  %v788_v62 = vld [vmem:[%s1135_s25 + $0x38] sm:$0xf]  ;;  %v947_v63 = vld [vmem:[%s1135_s25 + $0x48] sm:$0xf0]  ;;  %v769_v0 = vor.u32 %v942_v61, %v768_v60  ;;  %v1009_v36 = vld [vmem:[%s1203_s3] ss:$0 sm:$0xff] }
  0x1e   : > { %604 = vmatpush.bf16.msra.mxu2 %v967_v18  ;;  %v789_v1 = vor.u32 %v947_v63, %v788_v62 }
  0x1f   : > { %623 = vmatpush.bf16.msra.mxu3 %v975_v19 }
  0x20   : > { %567 = vmatpush.bf16.msra.mxu0 %v950_v20 }
  0x21   : > { %586 = vmatpush.bf16.msra.mxu1 %v958_v21 }
  0x22   : > { %605 = vmatpush.bf16.msra.mxu2 %v966_v22 }
  0x23   : > { %624 = vmatpush.bf16.msra.mxu3 %v974_v23 }
  0x24   : > { %568 = vmatpush.bf16.msra.mxu0 %v949_v24 }
  0x25   : > { %587 = vmatpush.bf16.msra.mxu1 %v957_v25 }
  0x26   : > { %606 = vmatpush.bf16.msra.mxu2 %v965_v26 }
  0x27   : > { %625 = vmatpush.bf16.msra.mxu3 %v973_v27 }
  0x28   : > { %569 = vmatpush.bf16.msra.mxu0 %v948_v28 }
  0x29   : > { %588 = vmatpush.bf16.msra.mxu1 %v956_v29 }
  0x2a   : > { %607 = vmatpush.bf16.msra.mxu2 %v964_v30  ;;  %v1008_v30 = vld [vmem:[%s1202_s2] ss:$0 sm:$0xff] }
  0x2b   : > { %626 = vmatpush.bf16.msra.mxu3 %v972_v31  ;;  %570 = vmatmul.bf16.vlgmr.msra.gmra.mxu0 %v753_v41 }
  0x2c   : > { %642 = vmatpush.bf16.msrb.mxu0 %v983_v40  ;;  %589 = vmatmul.bf16.vlgmr.msra.gmra.mxu1 %v757_v42 }
  0x2d   : > { %995 = vmatpush.bf16.msrb.mxu1 %v983_v40  ;;  %608 = vmatmul.bf16.vlgmr.msra.gmra.mxu2 %v761_v43 }
  0x2e   : > { %627 = vmatmul.bf16.vlgmr.msra.gmra.mxu3 %v765_v44 }
  0x30   : > { %643 = vmatpush.bf16.msrb.mxu0 %v982_v45 }
  0x31   : > { %996 = vmatpush.bf16.msrb.mxu1 %v982_v45 }
  0x34   : > { %644 = vmatpush.bf16.msrb.mxu0 %v981_v46 }
  0x35   : > { %997 = vmatpush.bf16.msrb.mxu1 %v981_v46 }
  0x38   : > { %645 = vmatpush.bf16.msrb.mxu0 %v980_v47 }
  0x39   : > { %998 = vmatpush.bf16.msrb.mxu1 %v980_v47 }
  0x3b   : > { %575 = vmatmul.bf16.gmra.mxu0 %v773_v56 }
  0x3c   : > { %594 = vmatmul.bf16.gmra.mxu1 %v777_v57 }
  0x3d   : > { %613 = vmatmul.bf16.gmra.mxu2 %v781_v58 }
  0x3e   : > { %632 = vmatmul.bf16.gmra.mxu3 %v785_v59 }
  0x4b   : > { %934 = vmatmul.msk.bf16.vlgmr.msrb.gmra.mxu0 %vm555_vm0, %v769_v0 }
  0x4c   : > { %935 = vmatmul.msk.bf16.vlgmr.msrb.gmra.mxu1 %vm555_vm0, %v789_v1 }
  0xa8   : > { %v571_v2 = vpop.f32.mrf.mxu0 }
  0xa9   : > { %v590_v3 = vpop.f32.mrf.mxu1 }
  0xaa   : > { %v591_v16 = vadd.f32 %v590_v3, %v571_v2 }
  0xb0   : > { %v609_v4 = vpop.f32.mrf.mxu2  ;;  %v573_v6 = vpop.f32.mrf.mxu0 }
  0xb1   : > { %v628_v5 = vpop.f32.mrf.mxu3  ;;  %v592_v7 = vpop.f32.mrf.mxu1  ;;  %v610_v18 = vadd.f32 %v609_v4, %v591_v16 }
  0xb2   : > { %v593_v24 = vadd.f32 %v592_v7, %v573_v6 }
  0xb3   : > { %v629_v23 = vadd.f32 %v628_v5, %v610_v18 }
  0xb8   : > { %v611_v8 = vpop.f32.mrf.mxu2  ;;  %v576_v10 = vpop.f32.mrf.mxu0 }
  0xb9   : > { %v630_v9 = vpop.f32.mrf.mxu3  ;;  %v595_v11 = vpop.f32.mrf.mxu1  ;;  %v612_v27 = vadd.f32 %v611_v8, %v593_v24 }
  0xba   : > { %v596_v17 = vadd.f32 %v595_v11, %v576_v10 }
  0xbb   : > { %v631_v33 = vadd.f32 %v630_v9, %v612_v27 }
  0xc0   : > { %v614_v12 = vpop.f32.mrf.mxu2  ;;  %v578_v13 = vpop.f32.mrf.mxu0 }
  0xc1   : > { %v597_v14 = vpop.f32.mrf.mxu1  ;;  %v633_v15 = vpop.f32.mrf.mxu3  ;;  %v615_v19 = vadd.f32 %v614_v12, %v596_v17 }
  0xc2   : > { %v598_v26 = vadd.f32 %v597_v14, %v578_v13 }
  0xc3   : > { %v634_v25 = vadd.f32 %v633_v15, %v615_v19 }
  0xc8   : > { %v616_v20 = vpop.f32.mrf.mxu2  ;;  %v647_v21 = vpop.f32.mrf.mxu0 }
  0xc9   : > { %v652_v22 = vpop.f32.mrf.mxu1  ;;  %v617_v28 = vadd.f32 %v616_v20, %v598_v26  ;;  %v648_v29 = vadd.f32 %v647_v21, %v629_v23  ;;  %v635_v32 = vpop.f32.mrf.mxu3 }
  0xca   : > { %v653_v31 = vadd.f32 %v652_v22, %v634_v25 }
  0xcb   : > { %v636_v34 = vadd.f32 %v635_v32, %v617_v28  ;;  %v661_v35 = vmul.f32 %v1008_v30, %v648_v29 }
  0xcc   : > { %v663_v37 = vmul.f32 %v1008_v30, %v653_v31 }
  0xcd   : > { %v669_v42 = vadd.f32 %v1009_v36, %v661_v35 }
  0xce   : > { %v671_v43 = vadd.f32 %v1009_v36, %v663_v37 }
  0xcf   : > { %v673_v48 = vmax.f32 %v669_v42, 0.0 }
  0xd0   : > { %v649_v38 = vpop.f32.mrf.mxu0  ;;  %v675_v49 = vmax.f32 %v671_v43, 0.0 }
  0xd1   : > { %v654_v39 = vpop.f32.mrf.mxu1  ;;  %v650_v40 = vadd.f32 %v649_v38, %v631_v33 }
  0xd2   : > { %v655_v41 = vadd.f32 %v654_v39, %v636_v34 }
  0xd3   : > { %v662_v44 = vmul.f32 %v1008_v30, %v650_v40 }
  0xd4   : > { %v664_v45 = vmul.f32 %v1008_v30, %v655_v41 }
  0xd5   : > { %v670_v46 = vadd.f32 %v1009_v36, %v662_v44 }
  0xd6   : > { %v672_v47 = vadd.f32 %v1009_v36, %v664_v45 }
  0xd7   : > { %v674_v50 = vmax.f32 %v670_v46, 0.0 }
  0xd8   : > { %v676_v51 = vmax.f32 %v672_v47, 0.0 }
  0xd9   : > { %v987_v52 = vpack.c.bf16 %v674_v50, %v673_v48 }
  0xda   : > { %v992_v53 = vpack.c.bf16 %v676_v51, %v675_v49 }
  0xdb   : > { %988 = vst [vmem:[%s202_s28] sm:$0xff] %v987_v52  }
  0xdc   : > { %994 = vst [vmem:[%s202_s28 + $0x8] sm:$0xff] %v992_v53  }
  0xdd PF: > { %s14_s15 = sadd.s32 1, %s1016_s15  }
  0xde   : > { %p11_p4 = scmp.ge.s32.totalorder %s14_s15, 4  }
  0xe0   :  { %13 = sbr.rel (!%p11_p4) target bundleno = 1 (0x1), region = 66 }

// kernel: _lambda_.15
= control target key start
LH: loop header
LB: loop body
LE: loop exit
PB: predicated region body
PF: predicated region fallthrough
CT: control target
= control target key end

     0   :  { %10 = vsyncpa [#allocation3], 0  ;;  %vm50_vm0 = vcmask 523264   ;;  %s377_s0 = inlined_call_operand.vmem [shape: bf16[2,64,64], index: 0, kind: input, shape index: {}]   ;;  %s378_s1 = inlined_call_operand.vmem [shape: f32[64,10], index: 1, kind: input, shape index: {}]   ;;  %s379_s2 = inlined_call_operand.vmem [shape: f32[1,10], index: 2, kind: input, shape index: {}]   ;;  %s380_s3 = inlined_call_operand.hbm [shape: f32[2,64], index: 3, kind: output, shape index: {0}]   ;;  %s381_s4 = inlined_call_operand.hbm [shape: f32[2,10], index: 4, kind: output, shape index: {1}]  }
   0x1   :  { %v116_v0 = vld [vmem:[%s378_s1 + $0x38] sm:$0xff]  ;;  %v115_v1 = vld [vmem:[%s378_s1 + $0x30] sm:$0xff]  ;;  %v114_v2 = vld [vmem:[%s378_s1 + $0x28] sm:$0xff] }
   0x2   :  { %131 = vmatpush.msra.mxu0 %v116_v0  ;;  %v179_v3 = vld [vmem:[%s377_s0] sm:$0xff]   ;;  %v210_v7 = vld [vmem:[%s377_s0 + $0x8] sm:$0xff]   ;;  %v211_v9 = vld [vmem:[%s377_s0 + $0x10] sm:$0xff]  }
   0x3   :  { %v113_v4 = vld [vmem:[%s378_s1 + $0x20] sm:$0xff]  ;;  %v180_v5 = vunpack.c.l.bf16 %v179_v3  ;;  %v181_v6 = vunpack.c.h.bf16 %v179_v3  ;;  %v184_v8 = vunpack.c.l.bf16 %v210_v7  ;;  %v214_v11 = vld [vmem:[%s377_s0 + $0x28] sm:$0xff]   ;;  %v185_v12 = vunpack.c.h.bf16 %v210_v7 }
   0x4   :  { %132 = vmatpush.msra.mxu0 %v115_v1  ;;  %v213_v10 = vld [vmem:[%s377_s0 + $0x20] sm:$0xff]  }
   0x5   :  { %v196_v13 = vunpack.c.l.bf16 %v213_v10 }
   0x6   :  { %133 = vmatpush.msra.mxu0 %v114_v2 }
   0x7   :  { %11 = vsyncpa [#allocation5], 0  ;;  %v112_v14 = vld [vmem:[%s378_s1 + $0x18] sm:$0xff]  ;;  %v197_v15 = vunpack.c.h.bf16 %v213_v10  ;;  %v200_v16 = vunpack.c.l.bf16 %v214_v11  ;;  %v188_v17 = vunpack.c.l.bf16 %v211_v9  ;;  %v215_v18 = vld [vmem:[%s377_s0 + $0x30] sm:$0xff]   ;;  %v51_v19 = vsel %vm50_vm0, %v180_v5, 0.0  ;;  %s152_s23 = sshll.u32 %s380_s3, 4  ;;  %s153_s23 = int_to_ptr.hbm [resolvable:$true] %s152_s23 }
   0x8   :  { %134 = vmatpush.msra.mxu0 %v113_v4  ;;  %v52_v20 = vsel %vm50_vm0, %v181_v6, 0.0  ;;  %v275_v21 = vmov 64.0   ;;  %v111_v22 = vld [vmem:[%s378_s1 + $0x10] sm:$0xff]  ;;  %v212_v23 = vld [vmem:[%s377_s0 + $0x18] sm:$0xff]   ;;  %v201_v24 = vunpack.c.h.bf16 %v214_v11  ;;  %v54_v26 = vsel %vm50_vm0, %v184_v8, 0.0  ;;  %v110_v30 = vld [vmem:[%s378_s1 + $0x8] sm:$0xff] }
   0x9   :  { %221 = vrcp.f32 %v275_v21  ;;  %v53_v25 = vadd.f32 %v52_v20, %v51_v19  ;;  %v189_v27 = vunpack.c.h.bf16 %v211_v9  ;;  %v56_v28 = vsel %vm50_vm0, %v185_v12, 0.0  ;;  %v216_v36 = vld [vmem:[%s377_s0 + $0x38] sm:$0xff]   ;;  %v109_v39 = vld [vmem:[%s378_s1] sm:$0xff]  ;;  %s276_s0 = smov [#allocation2]   ;;  %s277_s26 = smov [#allocation4]  }
   0xa   :  { %135 = vmatpush.msra.mxu0 %v112_v14  ;;  %v72_v29 = vsel %vm50_vm0, %v196_v13, 0.0  ;;  %v204_v31 = vunpack.c.l.bf16 %v215_v18  ;;  %v73_v33 = vsel %vm50_vm0, %v197_v15, 0.0  ;;  %v75_v34 = vsel %vm50_vm0, %v200_v16, 0.0  ;;  %s150_s1 = sshll.u32 %s276_s0, 4  ;;  %v220_v20 = vld [vmem:[%s379_s2] ss:$0 sm:$0xff]  ;;  %s151_s1 = int_to_ptr.vmem [resolvable:$true] %s150_s1 }
   0xb   :  { %v55_v32 = vadd.f32 %v54_v26, %v53_v25  ;;  %v192_v35 = vunpack.c.l.bf16 %v212_v23  ;;  %v58_v37 = vsel %vm50_vm0, %v188_v17, 0.0  ;;  %v74_v38 = vadd.f32 %v73_v33, %v72_v29  ;;  %s161_s27 = sshll.u32 %s277_s26, 4  ;;  %s163_s30 = sshll.u32 %s381_s4, 4  ;;  %s162_s27 = int_to_ptr.vmem [resolvable:$true] %s161_s27  ;;  %s164_s30 = int_to_ptr.hbm [resolvable:$true] %s163_s30 }
   0xc   :  { %136 = vmatpush.msra.mxu0 %v111_v22  ;;  %v205_v40 = vunpack.c.h.bf16 %v215_v18  ;;  %v77_v42 = vsel %vm50_vm0, %v201_v24, 0.0  ;;  %v193_v44 = vunpack.c.h.bf16 %v212_v23  ;;  %v60_v45 = vsel %vm50_vm0, %v189_v27, 0.0 }
   0xd   :  { %v57_v41 = vadd.f32 %v56_v28, %v55_v32  ;;  %v76_v46 = vadd.f32 %v75_v34, %v74_v38  ;;  %v208_v47 = vunpack.c.l.bf16 %v216_v36  ;;  %v79_v49 = vsel %vm50_vm0, %v204_v31, 0.0 }
   0xe   :  { %137 = vmatpush.msra.mxu0 %v110_v30  ;;  %v62_v50 = vsel %vm50_vm0, %v192_v35, 0.0  ;;  %v209_v52 = vunpack.c.h.bf16 %v216_v36  ;;  %v81_v54 = vsel %vm50_vm0, %v205_v40, 0.0  ;;  %v64_v56 = vsel %vm50_vm0, %v193_v44, 0.0 }
   0xf   :  { %v222_v43 = vpop.eup %221  ;;  %v59_v48 = vadd.f32 %v58_v37, %v57_v41  ;;  %v78_v51 = vadd.f32 %v77_v42, %v76_v46  ;;  %v83_v59 = vsel %vm50_vm0, %v208_v47, 0.0  ;;  %vm104_vm2 = vcmask 1041409  }
  0x10   :  { %138 = vmatpush.msra.mxu0 %v109_v39  ;;  %v94_v55 = vmul.f32 64.0, %v222_v43  ;;  %v85_v62 = vsel %vm50_vm0, %v209_v52, 0.0  ;;  %vm98_vm1 = vweird.f32 %v222_v43  ;;  %vm107_vm3 = vcmask 517120  }
  0x11   :  { %v61_v53 = vadd.f32 %v60_v45, %v59_v48  ;;  %v80_v57 = vadd.f32 %v79_v49, %v78_v51  ;;  %vm143_vm4 = vcmask 74752  }
  0x12   :  { %v95_v63 = vsub.f32 1.0, %v94_v55 }
  0x13   :  { %v63_v58 = vadd.f32 %v62_v50, %v61_v53  ;;  %v82_v60 = vadd.f32 %v81_v54, %v80_v57 }
  0x14   :  { %v96_v4 = vmul.f32 %v222_v43, %v95_v63 }
  0x15   :  { %v65_v61 = vadd.f32 %v64_v56, %v63_v58  ;;  %v84_v0 = vadd.f32 %v83_v59, %v82_v60 }
  0x16   :  { %v97_v9 = vadd.f32 %v222_v43, %v96_v4 }
  0x17   :  { %v66_v1 = vrot.slane %v65_v61, 4  ;;  %v86_v2 = vadd.f32 %v85_v62, %v84_v0 }
  0x18   :  { %v99_v14 = vsel %vm98_vm1, %v222_v43, %v97_v9 }
  0x19   :  { %v67_v3 = vadd.f32 %v66_v1, %v65_v61  ;;  %v87_v5 = vrot.slane %v86_v2, 4 }
  0x1b   :  { %v68_v6 = vrot.slane %v67_v3, 2  ;;  %v88_v7 = vadd.f32 %v87_v5, %v86_v2 }
  0x1d   :  { %v69_v8 = vadd.f32 %v68_v6, %v67_v3  ;;  %v89_v10 = vrot.slane %v88_v7, 2 }
  0x1f   :  { %v70_v11 = vrot.slane %v69_v8, 1  ;;  %v90_v12 = vadd.f32 %v89_v10, %v88_v7 }
  0x21   :  { %v71_v13 = vadd.f32 %v70_v11, %v69_v8  ;;  %v91_v15 = vrot.slane %v90_v12, 1 }
  0x23   :  { %v92_v16 = vadd.f32 %v91_v15, %v90_v12  ;;  %v100_v17 = vmul.f32 %v99_v14, %v71_v13 }
  0x25   :  { %v101_v18 = vmul.f32 %v99_v14, %v92_v16 }
  0x27   :  { %v105_v19 = vsel %vm104_vm2, %v101_v18, %v100_v17 }
  0x28   :  { %177 = vmatmul.msk.f32.vlgmr.msra.gmra.mxu0 %vm50_vm0, %v105_v19  ;;  %108 = vst.msk [vmem:[#allocation2] sm:$0x3] %vm107_vm3, %v105_v19 }
  0x29   :  { %155 = dma.vmem_to_hbm [thread:$0]  %s151_s1, 32, %s153_s23, [#allocation3]  }
  0xa5   :  { %v140_v21 = vpop.f32.mrf.mxu0 }
  0xa6   :  { %v141_v22 = vadd.f32 %v220_v20, %v140_v21 }
  0xa8   :  { %144 = vst.msk [vmem:[#allocation4] sm:$0x3] %vm143_vm4, %v141_v22 }
  0xa9   :  { %166 = dma.vmem_to_hbm [thread:$0]  %s162_s27, 32, %s164_s30, [#allocation5]  }
  0xaa   :  { %271 = dma.done.wait [#allocation3], 32  }
  0xab   :  { %272 = vsyncadd [#allocation3], 4294967264 }
  0xac   :  { %273 = dma.done.wait [#allocation5], 32  }
  0xad   :  { %274 = vsyncadd [#allocation5], 4294967264 }
  0xae   :  { %175 = vsyncpa [#allocation3], 1 }
  0xaf   :  { %176 = vsyncpa [#allocation5], 1 }

// kernel: _lambda_.14
= control target key start
LH: loop header
LB: loop body
LE: loop exit
PB: predicated region body
PF: predicated region fallthrough
CT: control target
= control target key end

     0   :  { %13 = vsyncpa [#allocation3], 0  ;;  %s2474_s0 = inlined_call_operand.vmem [shape: bf16[64,1152], index: 0, kind: input, shape index: {}]   ;;  %s2475_s1 = inlined_call_operand.vmem [shape: bf16[1152,128], index: 1, kind: input, shape index: {}]   ;;  %s2476_s2 = inlined_call_operand.vmem [shape: bf16[64,64], index: 2, kind: input, shape index: {}]   ;;  %s2477_s3 = inlined_call_operand.vmem [shape: bf16[64,128], index: 3, kind: input, shape index: {}]   ;;  %s2478_s4 = inlined_call_operand.vmem [shape: f32[1,128], index: 4, kind: input, shape index: {}]   ;;  %s2479_s5 = inlined_call_operand.vmem [shape: f32[1,128], index: 5, kind: input, shape index: {}]   ;;  %s2480_s6 = inlined_call_operand.hbm [shape: bf16[64,128], index: 6, kind: output, shape index: {0}]   ;;  %s2481_s7 = inlined_call_operand.vmem [shape: bf16[64,128], index: 7, kind: output, shape index: {1}]  }
   0x1   :  { %15 = vsyncpa [#allocation3 + $0x1], 0  ;;  %s2090_s24 = smov 0   ;;  %s2092_s25 = smov 0  }
   0x2   :  { %s2094_s26 = smov 0   ;;  %s2096_s27 = smov 0  }
   0x3 LB: > { %s2111_s28 = sadd.s32 4294967295, %s2046_s27   ;;  %s1411_s29 = sadd.s32 4294967294, %s2046_s27   ;;  %s2046_s27 = sphi %s2096_s27, %s2489_s27   ;;  %s2042_s26 = sphi %s2094_s26, %s2488_s26   ;;  %s2038_s25 = sphi %s2092_s25, %s2487_s25   ;;  %s2034_s24 = sphi %s2090_s24, %s2486_s24  }
   0x4   : > { %s2115_s30 = sadd.s32 1, %s2046_s27   ;;  %s164_s8 = sadd.s32 1, %s2042_s26 }
   0x5   : > { %s161_s9 = ssub.s32 %s2046_s27, %s2115_s30  ;;  %p174_p0 = scmp.ne.s32.totalorder %s2042_s26, %s2038_s25 }
   0x6   : > { %p162_p1 = scmp.eq.s32.totalorder %s161_s9, 0  ;;  %p175_p2 = scmp.eq.s32.totalorder %s2111_s28, 1 }
   0x7   : > { %p180_p3 = scmp.ne.s32.totalorder %s2038_s25, %s2034_s24  ;;  %p181_p4 = scmp.eq.s32.totalorder %s1411_s29, 1 }
   0x8   : > { %s2126_s10 = scalar_select %p162_p1, %s2042_s26, %s164_s8  }
   0x9   : > { %p2128_p5 = por %p175_p2, %p174_p0  ;;  %p2132_p6 = por %p181_p4, %p180_p3 }
   0xa   : > { %p1414_p7 = scmp.ge.s32.totalorder %s2046_s27, 1  ;;  %p256_p8 = scmp.lt.s32.totalorder %s2046_s27, 3 }
   0xc   : > { %p257_p9 = pnand %p1414_p7, %p256_p8 }
   0xd   : > { %s1416_s19 = sshll.u32 (!%p257_p9), %s2111_s28, 2  ;;  %s1909_s29 = sshll.u32 (!%p257_p9), %s2111_s28, 4 }
   0xe   : > { %260 = sbr.rel (%p257_p9) target bundleno = 268 (0x10c), region = 44  ;;  %p300_p10 = scmp.lt.s32.totalorder (!%p257_p9), %s1416_s19, 7 }
   0xf   : > { %s1304_s14 = scalar_lea.hbm (!%p257_p9), %s2480_s6, %s1909_s29  ;;  %s2004_s13 = scalar_lea.hbm (!%p257_p9), %s2480_s6, 32 }
  0x10   : > { %s1307_s28 = sshll.u32 (!%p257_p9), %s1304_s14, 4  ;;  %s1308_s28 = int_to_ptr.hbm [resolvable:$true] %s1307_s28 }
  0x13   : > { %v1908_v0 = vld [vmem:[%s2477_s3 + $0x18] sm:$0xff]  ;;  %v1907_v4 = vld [vmem:[%s2477_s3 + $0x10] sm:$0xff]  ;;  %s2491_s19 = smov (!%p300_p10, %s1416_s19), 7  ;;  %v1906_v8 = vld [vmem:[%s2477_s3 + $0x8] sm:$0xff]  ;;  %vm530_vm0 = vcmask 523264  }
  0x14   : > { %v1838_v1 = vld [vmem:[%s2475_s1 + $0x38] sm:$0xff]  ;;  %541 = vmatpush.bf16.msra.mxu0 %v1908_v0  ;;  %v1837_v5 = vld [vmem:[%s2475_s1 + $0x30] sm:$0xff]  ;;  %v1836_v9 = vld [vmem:[%s2475_s1 + $0x28] sm:$0xff]  ;;  %s2482_s8 = sshll.u32 %s2491_s19, 2  ;;  %s1940_s9 = smul.u32 36, %s2491_s19 }
  0x15   : > { %v1846_v2 = vld [vmem:[%s2475_s1 + $0x78] sm:$0xff]  ;;  %1080 = vmatpush.bf16.msra.mxu1 %v1838_v1  ;;  %v1845_v6 = vld [vmem:[%s2475_s1 + $0x70] sm:$0xff]  ;;  %v1844_v10 = vld [vmem:[%s2475_s1 + $0x68] sm:$0xff]  ;;  %s2189_s18 = scalar_lea.vmem %s2476_s2, %s2482_s8  ;;  %s2485_s17 = sshll.u32 %s2491_s19, 2 }
  0x16   : > { %v1854_v3 = vld [vmem:[%s2475_s1 + $0xb8] sm:$0xff]  ;;  %1099 = vmatpush.bf16.msra.mxu2 %v1846_v2  ;;  %v1853_v7 = vld [vmem:[%s2475_s1 + $0xb0] sm:$0xff]  ;;  %v1852_v11 = vld [vmem:[%s2475_s1 + $0xa8] sm:$0xff]  ;;  %s2233_s8 = scalar_lea.vmem %s2474_s0, %s1940_s9  ;;  %s289_s9 = sand.u32 1, %s2038_s25  }
  0x17   : > { %1118 = vmatpush.bf16.msra.mxu3 %v1854_v3  ;;  %v1905_v12 = vld [vmem:[%s2477_s3] sm:$0xff]  ;;  %v1862_v16 = vld [vmem:[%s2475_s1 + $0xf8] sm:$0xff]  ;;  %v1861_v21 = vld [vmem:[%s2475_s1 + $0xf0] sm:$0xff]  ;;  %s1415_s23 = sshll.u32 %s289_s9, 4  ;;  %s2441_s21 = scalar_lea.vmem %s2481_s7, %s2485_s17 }
  0x18   : > { %542 = vmatpush.bf16.msra.mxu0 %v1907_v4  ;;  %v1835_v13 = vld [vmem:[%s2475_s1 + $0x20] sm:$0xff]  ;;  %v1834_v18 = vld [vmem:[%s2475_s1 + $0x18] sm:$0xff]  ;;  %v1833_v22 = vld [vmem:[%s2475_s1 + $0x10] sm:$0xff]  ;;  %s291_s15 = scalar_lea.vmem [#allocation2], %s1415_s23  ;;  %s1288_s22 = scalar_lea.sflag [#allocation3], %s289_s9 }
  0x19   : > { %1081 = vmatpush.bf16.msra.mxu1 %v1837_v5  ;;  %v1843_v14 = vld [vmem:[%s2475_s1 + $0x60] sm:$0xff]  ;;  %v1842_v19 = vld [vmem:[%s2475_s1 + $0x58] sm:$0xff]  ;;  %v1841_v23 = vld [vmem:[%s2475_s1 + $0x50] sm:$0xff]  ;;  %s1305_s16 = sshll.u32 %s291_s15, 4  ;;  %s1998_s19 = sshra.s32 %s1308_s28, 4  ;;  %s1306_s16 = int_to_ptr.vmem [resolvable:$true] %s1305_s16  ;;  %s1999_s19 = int_to_ptr.hbm [resolvable:$true] %s1998_s19 }
  0x1a   : > { %1100 = vmatpush.bf16.msra.mxu2 %v1845_v6  ;;  %v1851_v15 = vld [vmem:[%s2475_s1 + $0xa0] sm:$0xff]  ;;  %v1850_v20 = vld [vmem:[%s2475_s1 + $0x98] sm:$0xff]  ;;  %v1849_v24 = vld [vmem:[%s2475_s1 + $0x90] sm:$0xff]  ;;  %s2000_s23 = scalar_lea.hbm %s1999_s19, 16  ;;  %p2005_p0 = scmp.lt.s32.totalorder %s1999_s19, %s2480_s6 }
  0x1b   : > { %1119 = vmatpush.bf16.msra.mxu3 %v1853_v7  ;;  %v1903_v17 = vld [vmem:[%s2189_s18] sm:$0xff]  ;;  %v1860_v25 = vld [vmem:[%s2475_s1 + $0xe8] sm:$0xff]  ;;  %v1878_v37 = vld [vmem:[%s2475_s1 + $0x178] sm:$0xff]  ;;  %p2001_p11 = scmp.ne.s32.totalorder %s1999_s19, %s2000_s23  ;;  %p2006_p1 = scmp.lt.s32.totalorder %s2004_s13, %s2000_s23 }
  0x1c   : > { %543 = vmatpush.bf16.msra.mxu0 %v1906_v8  ;;  %v1832_v26 = vld [vmem:[%s2475_s1 + $0x8] sm:$0xff]  ;;  %v1859_v29 = vld [vmem:[%s2475_s1 + $0xe0] sm:$0xff]  ;;  %v1858_v38 = vld [vmem:[%s2475_s1 + $0xd8] sm:$0xff] }
  0x1d   : > { %1082 = vmatpush.bf16.msra.mxu1 %v1836_v9  ;;  %v1840_v27 = vld [vmem:[%s2475_s1 + $0x48] sm:$0xff]  ;;  %v1831_v30 = vld [vmem:[%s2475_s1] sm:$0xff]  ;;  %v1870_v44 = vld [vmem:[%s2475_s1 + $0x138] sm:$0xff]  ;;  %p2002_p12 = pnand %p2001_p11, %p2128_p5  ;;  %p2007_p2 = por %p2006_p1, %p2005_p0 }
  0x1e   : > { %1101 = vmatpush.bf16.msra.mxu2 %v1844_v10  ;;  %v1848_v28 = vld [vmem:[%s2475_s1 + $0x88] sm:$0xff]  ;;  %v1839_v31 = vld [vmem:[%s2475_s1 + $0x40] sm:$0xff]  ;;  %v1886_v46 = vld [vmem:[%s2475_s1 + $0x1b8] sm:$0xff] }
  0x1f   : > { %1120 = vmatpush.bf16.msra.mxu3 %v1852_v11  ;;  %v1847_v32 = vld [vmem:[%s2475_s1 + $0x80] sm:$0xff]  ;;  %v1452_v36 = vld [vmem:[%s2233_s8 + $0x24] sm:$0xf0]  ;;  %v1818_v40 = vld [vmem:[%s2233_s8 + $0x28] sm:$0xf0]  ;;  %p2003_p13 = pneg %p2002_p12 }
  0x20   : > { %544 = vmatpush.bf16.msra.mxu0 %v1905_v12  ;;  %v1450_v33 = vld [vmem:[%s2233_s8] sm:$0xf]  ;;  %v1817_v34 = vld [vmem:[%s2233_s8 + $0x20] sm:$0xf0]  ;;  %v1458_v39 = vld [vmem:[%s2233_s8 + $0x8] sm:$0xf] }
  0x21   : > { %1083 = vmatpush.bf16.msra.mxu1 %v1835_v13  ;;  %v1813_v35 = vld [vmem:[%s2233_s8 + $0x4] sm:$0xf]  ;;  %v1904_v41 = vld [vmem:[%s2189_s18 + $0x8] sm:$0xff]  ;;  %v1451_v42 = vor.u32 %v1817_v34, %v1450_v33  ;;  %v1459_v45 = vor.u32 %v1818_v40, %v1458_v39  ;;  %v1877_v47 = vld [vmem:[%s2475_s1 + $0x170] sm:$0xff]  ;;  %p2008_p3 = pnand %p2007_p2, %p2003_p13 }
  0x22   : > { %1102 = vmatpush.bf16.msra.mxu2 %v1843_v14  ;;  %v1455_v43 = vor.u32 %v1813_v35, %v1452_v36  ;;  %v1857_v48 = vld [vmem:[%s2475_s1 + $0xd0] sm:$0xff]  ;;  %v1876_v51 = vld [vmem:[%s2475_s1 + $0x168] sm:$0xff]  ;;  %v1875_v55 = vld [vmem:[%s2475_s1 + $0x160] sm:$0xff] }
  0x23   : > { %1121 = vmatpush.bf16.msra.mxu3 %v1851_v15  ;;  %1446 = vmatmul.msk.bf16.vlgmr.msra.gmra.mxu0 %vm530_vm0, %v1903_v17  ;;  %v1869_v49 = vld [vmem:[%s2475_s1 + $0x130] sm:$0xff]  ;;  %v1856_v52 = vld [vmem:[%s2475_s1 + $0xc8] sm:$0xff]  ;;  %v1855_v56 = vld [vmem:[%s2475_s1 + $0xc0] sm:$0xff] }
  0x24   : > { %1137 = vmatpush.bf16.msrb.mxu0 %v1862_v16  ;;  %v1885_v50 = vld [vmem:[%s2475_s1 + $0x1b0] sm:$0xff]  ;;  %v1868_v53 = vld [vmem:[%s2475_s1 + $0x128] sm:$0xff]  ;;  %v1867_v57 = vld [vmem:[%s2475_s1 + $0x120] sm:$0xff] }
  0x25   : > { %1084 = vmatpush.bf16.msra.mxu1 %v1834_v18  ;;  %v1884_v54 = vld [vmem:[%s2475_s1 + $0x1a8] sm:$0xff]  ;;  %v1460_v61 = vld [vmem:[%s2233_s8 + $0x2c] sm:$0xf0]  ;;  %v1894_v62 = vld [vmem:[%s2475_s1 + $0x1f8] sm:$0xff] }
  0x26   : > { %1103 = vmatpush.bf16.msra.mxu2 %v1842_v19  ;;  %v1486_v58 = vld [vmem:[%s2233_s8 + $0x48] sm:$0xf]  ;;  %v1826_v59 = vld [vmem:[%s2233_s8 + $0x68] sm:$0xf0]  ;;  %v1883_v63 = vld [vmem:[%s2475_s1 + $0x1a0] sm:$0xff] }
  0x27   : > { %1122 = vmatpush.bf16.msra.mxu3 %v1850_v20  ;;  %v1814_v60 = vld [vmem:[%s2233_s8 + $0xc] sm:$0xf]  ;;  %v1488_v1 = vld [vmem:[%s2233_s8 + $0x6c] sm:$0xf0]  ;;  %v1874_v2 = vld [vmem:[%s2475_s1 + $0x158] sm:$0xff]  ;;  %v1487_v5 = vor.u32 %v1826_v59, %v1486_v58 }
  0x28   : > { %1138 = vmatpush.bf16.msrb.mxu0 %v1861_v21  ;;  %v1822_v0 = vld [vmem:[%s2233_s8 + $0x4c] sm:$0xf]  ;;  %v1494_v3 = vld [vmem:[%s2233_s8 + $0x50] sm:$0xf]  ;;  %v1827_v4 = vld [vmem:[%s2233_s8 + $0x70] sm:$0xf0]  ;;  %v1463_v6 = vor.u32 %v1814_v60, %v1460_v61 }
  0x29   : > { %1085 = vmatpush.bf16.msra.mxu1 %v1833_v22  ;;  %v1491_v7 = vor.u32 %v1822_v0, %v1488_v1  ;;  %v1866_v8 = vld [vmem:[%s2475_s1 + $0x118] sm:$0xff]  ;;  %v1495_v9 = vor.u32 %v1827_v4, %v1494_v3  ;;  %v1893_v10 = vld [vmem:[%s2475_s1 + $0x1f0] sm:$0xff]  ;;  %v1892_v14 = vld [vmem:[%s2475_s1 + $0x1e8] sm:$0xff] }
  0x2a   : > { %1104 = vmatpush.bf16.msra.mxu2 %v1841_v23  ;;  %v1882_v11 = vld [vmem:[%s2475_s1 + $0x198] sm:$0xff]  ;;  %v1873_v12 = vld [vmem:[%s2475_s1 + $0x150] sm:$0xff]  ;;  %v1872_v16 = vld [vmem:[%s2475_s1 + $0x148] sm:$0xff] }
  0x2b   : > { %1123 = vmatpush.bf16.msra.mxu3 %v1849_v24  ;;  %v1865_v13 = vld [vmem:[%s2475_s1 + $0x110] sm:$0xff]  ;;  %v1864_v17 = vld [vmem:[%s2475_s1 + $0x108] sm:$0xff]  ;;  %v1891_v18 = vld [vmem:[%s2475_s1 + $0x1e0] sm:$0xff] }
  0x2c   : > { %1139 = vmatpush.bf16.msrb.mxu0 %v1860_v25  ;;  %v1881_v15 = vld [vmem:[%s2475_s1 + $0x190] sm:$0xff]  ;;  %v1880_v19 = vld [vmem:[%s2475_s1 + $0x188] sm:$0xff]  ;;  %v1871_v20 = vld [vmem:[%s2475_s1 + $0x140] sm:$0xff] }
  0x2d   : > { %1086 = vmatpush.bf16.msra.mxu1 %v1832_v26  ;;  %v1863_v21 = vld [vmem:[%s2475_s1 + $0x100] sm:$0xff]  ;;  %v1823_v22 = vld [vmem:[%s2233_s8 + $0x54] sm:$0xf]  ;;  %v1902_v23 = vld [vmem:[%s2475_s1 + $0x238] sm:$0xff] }
  0x2e   : > { %1105 = vmatpush.bf16.msra.mxu2 %v1840_v27  ;;  %v1496_v24 = vld [vmem:[%s2233_s8 + $0x74] sm:$0xf0]  ;;  %v1466_v25 = vld [vmem:[%s2233_s8 + $0x10] sm:$0xf]  ;;  %v1819_v26 = vld [vmem:[%s2233_s8 + $0x30] sm:$0xf0] }
  0x2f   : > { %1124 = vmatpush.bf16.msra.mxu3 %v1848_v28  ;;  %v1815_v27 = vld [vmem:[%s2233_s8 + $0x14] sm:$0xf]  ;;  %v1468_v28 = vld [vmem:[%s2233_s8 + $0x34] sm:$0xf0]  ;;  %v1499_v33 = vor.u32 %v1823_v22, %v1496_v24  ;;  %v1467_v34 = vor.u32 %v1819_v26, %v1466_v25  ;;  %v1900_v39 = vld [vmem:[%s2475_s1 + $0x228] sm:$0xff] }
  0x30   : > { %1140 = vmatpush.bf16.msrb.mxu0 %v1859_v29  ;;  %v1890_v29 = vld [vmem:[%s2475_s1 + $0x1d8] sm:$0xff]  ;;  %v1471_v35 = vor.u32 %v1815_v27, %v1468_v28  ;;  %v1888_v40 = vld [vmem:[%s2475_s1 + $0x1c8] sm:$0xff]  ;;  %v1895_v58 = vld [vmem:[%s2475_s1 + $0x200] sm:$0xff] }
  0x31   : > { %1087 = vmatpush.bf16.msra.mxu1 %v1831_v30  ;;  %v1879_v30 = vld [vmem:[%s2475_s1 + $0x180] sm:$0xff]  ;;  %v1512_v60 = vld [vmem:[%s2233_s8 + $0x84] sm:$0xf0]  ;;  %v1830_v0 = vld [vmem:[%s2233_s8 + $0x88] sm:$0xf0] }
  0x32   : > { %1106 = vmatpush.bf16.msra.mxu2 %v1839_v31  ;;  %v1474_v31 = vld [vmem:[%s2233_s8 + $0x18] sm:$0xf]  ;;  %v1825_v59 = vld [vmem:[%s2233_s8 + $0x64] sm:$0xf]  ;;  %v1482_v61 = vld [vmem:[%s2233_s8 + $0x20] sm:$0xf] }
  0x33   : > { %1125 = vmatpush.bf16.msra.mxu3 %v1847_v32  ;;  %1447 = vmatmul.msk.bf16.gmra.mxu0 %vm530_vm0, %v1904_v41  ;;  %v1820_v32 = vld [vmem:[%s2233_s8 + $0x38] sm:$0xf0]  ;;  %v1899_v41 = vld [vmem:[%s2475_s1 + $0x220] sm:$0xff]  ;;  %v1515_v1 = vor.u32 %v1825_v59, %v1512_v60 }
  0x34   : > { %1141 = vmatpush.bf16.msrb.mxu0 %v1858_v38  ;;  %1088 = vmatmul.bf16.vlgmr.msra.gmra.mxu1 %v1451_v42  ;;  %v1475_v36 = vor.u32 %v1820_v32, %v1474_v31  ;;  %v1889_v38 = vld [vmem:[%s2475_s1 + $0x1d0] sm:$0xff]  ;;  %v1887_v42 = vld [vmem:[%s2475_s1 + $0x1c0] sm:$0xff] }
  0x35   : > { %1107 = vmatmul.bf16.vlgmr.msra.gmra.mxu2 %v1455_v43  ;;  %1156 = vmatpush.bf16.msrb.mxu1 %v1870_v44  ;;  %v1502_v43 = vld [vmem:[%s2233_s8 + $0x58] sm:$0xf]  ;;  %v1828_v44 = vld [vmem:[%s2233_s8 + $0x78] sm:$0xf0] }
  0x36   : > { %1175 = vmatpush.bf16.msrb.mxu2 %v1878_v37  ;;  %1126 = vmatmul.bf16.vlgmr.msra.gmra.mxu3 %v1459_v45  ;;  %v1901_v37 = vld [vmem:[%s2475_s1 + $0x230] sm:$0xff]  ;;  %v1816_v45 = vld [vmem:[%s2233_s8 + $0x1c] sm:$0xf] }
  0x37   : > { %1194 = vmatpush.bf16.msrb.mxu3 %v1886_v46  ;;  %v1476_v46 = vld [vmem:[%s2233_s8 + $0x3c] sm:$0xf0] }
  0x38   : > { %1142 = vmatpush.bf16.msrb.mxu0 %v1857_v48  ;;  %v1504_v48 = vld [vmem:[%s2233_s8 + $0x7c] sm:$0xf0] }
  0x39   : > { %1157 = vmatpush.bf16.msrb.mxu1 %v1869_v49  ;;  %v1898_v49 = vld [vmem:[%s2475_s1 + $0x218] sm:$0xff] }
  0x3a   : > { %1176 = vmatpush.bf16.msrb.mxu2 %v1877_v47  ;;  %v1824_v47 = vld [vmem:[%s2233_s8 + $0x5c] sm:$0xf] }
  0x3b   : > { %1195 = vmatpush.bf16.msrb.mxu3 %v1885_v50  ;;  %v1510_v50 = vld [vmem:[%s2233_s8 + $0x60] sm:$0xf] }
  0x3c   : > { %1143 = vmatpush.bf16.msrb.mxu0 %v1856_v52  ;;  %v1503_v52 = vor.u32 %v1828_v44, %v1502_v43 }
  0x3d   : > { %1158 = vmatpush.bf16.msrb.mxu1 %v1868_v53  ;;  %v1479_v53 = vor.u32 %v1816_v45, %v1476_v46 }
  0x3e   : > { %1177 = vmatpush.bf16.msrb.mxu2 %v1876_v51  ;;  %v1829_v51 = vld [vmem:[%s2233_s8 + $0x80] sm:$0xf0] }
  0x3f   : > { %1196 = vmatpush.bf16.msrb.mxu3 %v1884_v54  ;;  %v1507_v54 = vor.u32 %v1824_v47, %v1504_v48 }
  0x40   : > { %1144 = vmatpush.bf16.msrb.mxu0 %v1855_v56  ;;  %v1897_v56 = vld [vmem:[%s2475_s1 + $0x210] sm:$0xff] }
  0x41   : > { %1159 = vmatpush.bf16.msrb.mxu1 %v1867_v57  ;;  %v1896_v57 = vld [vmem:[%s2475_s1 + $0x208] sm:$0xff] }
  0x42   : > { %1178 = vmatpush.bf16.msrb.mxu2 %v1875_v55  ;;  %v1511_v55 = vor.u32 %v1829_v51, %v1510_v50 }
  0x43   : > { %1197 = vmatpush.bf16.msrb.mxu3 %v1883_v63  ;;  %1145 = vmatmul.bf16.vlgmr.msrb.gmra.mxu0 %v1463_v6  ;;  %v1518_v63 = vld [vmem:[%s2233_s8 + $0x68] sm:$0xf] }
  0x44   : > { %1213 = vmatpush.bf16.msra.mxu0 %v1894_v62  ;;  %1093 = vmatmul.bf16.gmra.mxu1 %v1487_v5  ;;  %v1821_v62 = vld [vmem:[%s2233_s8 + $0x40] sm:$0xf0]  ;;  %v1519_v3 = vor.u32 %v1830_v0, %v1518_v63  ;;  %v1982_v63 = vld [vmem:[%s2478_s4] ss:$0 sm:$0xff] }
  0x45   : > { %1112 = vmatmul.bf16.gmra.mxu2 %v1491_v7  ;;  %1160 = vmatpush.bf16.msrb.mxu1 %v1866_v8 }
  0x46   : > { %1179 = vmatpush.bf16.msrb.mxu2 %v1874_v2  ;;  %1131 = vmatmul.bf16.gmra.mxu3 %v1495_v9  ;;  %v1483_v2 = vor.u32 %v1821_v62, %v1482_v61 }
  0x47   : > { %1198 = vmatpush.bf16.msrb.mxu3 %v1882_v11 }
  0x48   : > { %1214 = vmatpush.bf16.msra.mxu0 %v1893_v10 }
  0x49   : > { %1161 = vmatpush.bf16.msrb.mxu1 %v1865_v13 }
  0x4a   : > { %1180 = vmatpush.bf16.msrb.mxu2 %v1873_v12 }
  0x4b   : > { %1199 = vmatpush.bf16.msrb.mxu3 %v1881_v15 }
  0x4c   : > { %1215 = vmatpush.bf16.msra.mxu0 %v1892_v14 }
  0x4d   : > { %1162 = vmatpush.bf16.msrb.mxu1 %v1864_v17 }
  0x4e   : > { %1181 = vmatpush.bf16.msrb.mxu2 %v1872_v16 }
  0x4f   : > { %1200 = vmatpush.bf16.msrb.mxu3 %v1880_v19 }
  0x50   : > { %1216 = vmatpush.bf16.msra.mxu0 %v1891_v18 }
  0x51   : > { %1163 = vmatpush.bf16.msrb.mxu1 %v1863_v21 }
  0x52   : > { %1182 = vmatpush.bf16.msrb.mxu2 %v1871_v20 }
  0x53   : > { %1201 = vmatpush.bf16.msrb.mxu3 %v1879_v30  ;;  %1150 = vmatmul.bf16.gmra.mxu0 %v1499_v33 }
  0x54   : > { %1217 = vmatpush.bf16.msra.mxu0 %v1890_v29  ;;  %1164 = vmatmul.bf16.vlgmr.msrb.gmra.mxu1 %v1467_v34 }
  0x55   : > { %1232 = vmatpush.bf16.msra.mxu1 %v1902_v23  ;;  %1183 = vmatmul.bf16.vlgmr.msrb.gmra.mxu2 %v1471_v35 }
  0x56   : > { %1932 = vmatpush.bf16.msra.mxu2 %v1902_v23  ;;  %1202 = vmatmul.bf16.vlgmr.msrb.gmra.mxu3 %v1475_v36 }
  0x58   : > { %1218 = vmatpush.bf16.msra.mxu0 %v1889_v38 }
  0x59   : > { %1233 = vmatpush.bf16.msra.mxu1 %v1901_v37 }
  0x5a   : > { %1933 = vmatpush.bf16.msra.mxu2 %v1901_v37 }
  0x5c   : > { %1219 = vmatpush.bf16.msra.mxu0 %v1888_v40 }
  0x5d   : > { %1234 = vmatpush.bf16.msra.mxu1 %v1900_v39 }
  0x5e   : > { %1934 = vmatpush.bf16.msra.mxu2 %v1900_v39 }
  0x60   : > { %1220 = vmatpush.bf16.msra.mxu0 %v1887_v42 }
  0x61   : > { %1235 = vmatpush.bf16.msra.mxu1 %v1899_v41 }
  0x62   : > { %1935 = vmatpush.bf16.msra.mxu2 %v1899_v41 }
  0x63   : > { %1221 = vmatmul.bf16.vlgmr.msra.gmra.mxu0 %v1479_v53 }
  0x64   : > { %1169 = vmatmul.bf16.gmra.mxu1 %v1503_v52 }
  0x65   : > { %1236 = vmatpush.bf16.msra.mxu1 %v1898_v49  ;;  %1188 = vmatmul.bf16.gmra.mxu2 %v1507_v54 }
  0x66   : > { %1936 = vmatpush.bf16.msra.mxu2 %v1898_v49  ;;  %1207 = vmatmul.bf16.gmra.mxu3 %v1511_v55 }
  0x69   : > { %1237 = vmatpush.bf16.msra.mxu1 %v1897_v56 }
  0x6a   : > { %1937 = vmatpush.bf16.msra.mxu2 %v1897_v56 }
  0x6d   : > { %1238 = vmatpush.bf16.msra.mxu1 %v1896_v57 }
  0x6e   : > { %1938 = vmatpush.bf16.msra.mxu2 %v1896_v57 }
  0x71   : > { %1239 = vmatpush.bf16.msra.mxu1 %v1895_v58 }
  0x72   : > { %1939 = vmatpush.bf16.msra.mxu2 %v1895_v58 }
  0x73   : > { %1226 = vmatmul.bf16.gmra.mxu0 %v1515_v1 }
  0x74   : > { %1240 = vmatmul.bf16.vlgmr.msra.gmra.mxu1 %v1483_v2 }
  0x75   : > { %1245 = vmatmul.bf16.vlgmr.msra.gmra.mxu2 %v1519_v3 }
  0xa0   : > { %v546_v4 = vpop.f32.mrf.mxu0 }
  0xa8   : > { %v548_v5 = vpop.f32.mrf.mxu0 }
  0xb0   : > { %v551_v6 = vpop.f32.mrf.mxu0 }
  0xb1   : > { %v1089_v7 = vpop.f32.mrf.mxu1 }
  0xb2   : > { %v1090_v28 = vadd.f32 %v1089_v7, %v546_v4 }
  0xb8   : > { %v1108_v8 = vpop.f32.mrf.mxu2  ;;  %v553_v9 = vpop.f32.mrf.mxu0 }
  0xb9   : > { %v1091_v10 = vpop.f32.mrf.mxu1  ;;  %v1127_v11 = vpop.f32.mrf.mxu3  ;;  %v1109_v32 = vadd.f32 %v1108_v8, %v1090_v28 }
  0xba   : > { %v1092_v33 = vadd.f32 %v1091_v10, %v548_v5 }
  0xbb   : > { %v1128_v34 = vadd.f32 %v1127_v11, %v1109_v32 }
  0xc0   : > { %v1110_v12 = vpop.f32.mrf.mxu2  ;;  %v1146_v14 = vpop.f32.mrf.mxu0 }
  0xc1   : > { %v1094_v13 = vpop.f32.mrf.mxu1  ;;  %v1129_v15 = vpop.f32.mrf.mxu3  ;;  %v1111_v37 = vadd.f32 %v1110_v12, %v1092_v33  ;;  %v1147_v38 = vadd.f32 %v1146_v14, %v1128_v34 }
  0xc2   : > { %v1095_v36 = vadd.f32 %v1094_v13, %v551_v6  ;;  %v1983_v6 = vld [vmem:[%s2479_s5] ss:$0 sm:$0xff] }
  0xc3   : > { %v1130_v44 = vadd.f32 %v1129_v15, %v1111_v37 }
  0xc8   : > { %v1113_v16 = vpop.f32.mrf.mxu2  ;;  %v1148_v18 = vpop.f32.mrf.mxu0 }
  0xc9   : > { %v1096_v17 = vpop.f32.mrf.mxu1  ;;  %v1132_v19 = vpop.f32.mrf.mxu3  ;;  %v1114_v40 = vadd.f32 %v1113_v16, %v1095_v36  ;;  %v1149_v48 = vadd.f32 %v1148_v18, %v1130_v44 }
  0xca   : > { %v1097_v46 = vadd.f32 %v1096_v17, %v553_v9 }
  0xcb   : > { %v1133_v47 = vadd.f32 %v1132_v19, %v1114_v40 }
  0xd0   : > { %v1115_v20 = vpop.f32.mrf.mxu2  ;;  %v1151_v21 = vpop.f32.mrf.mxu0 }
  0xd1   : > { %v1165_v22 = vpop.f32.mrf.mxu1  ;;  %v1134_v23 = vpop.f32.mrf.mxu3  ;;  %v1116_v49 = vadd.f32 %v1115_v20, %v1097_v46  ;;  %v1152_v50 = vadd.f32 %v1151_v21, %v1133_v47 }
  0xd2   : > { %v1166_v43 = vadd.f32 %v1165_v22, %v1147_v38 }
  0xd3   : > { %v1135_v60 = vadd.f32 %v1134_v23, %v1116_v49 }
  0xd8   : > { %v1184_v24 = vpop.f32.mrf.mxu2  ;;  %v1153_v25 = vpop.f32.mrf.mxu0 }
  0xd9   : > { %v1167_v26 = vpop.f32.mrf.mxu1  ;;  %v1203_v27 = vpop.f32.mrf.mxu3  ;;  %v1185_v45 = vadd.f32 %v1184_v24, %v1166_v43  ;;  %v1154_v0 = vadd.f32 %v1153_v25, %v1135_v60 }
  0xda   : > { %v1168_v51 = vadd.f32 %v1167_v26, %v1149_v48 }
  0xdb   : > { %v1204_v52 = vadd.f32 %v1203_v27, %v1185_v45 }
  0xe0   : > { %v1186_v29 = vpop.f32.mrf.mxu2  ;;  %v1222_v31 = vpop.f32.mrf.mxu0 }
  0xe1   : > { %v1170_v30 = vpop.f32.mrf.mxu1  ;;  %v1205_v35 = vpop.f32.mrf.mxu3  ;;  %v1187_v57 = vadd.f32 %v1186_v29, %v1168_v51  ;;  %v1223_v58 = vadd.f32 %v1222_v31, %v1204_v52 }
  0xe2   : > { %v1171_v55 = vadd.f32 %v1170_v30, %v1152_v50 }
  0xe3   : > { %v1206_v1 = vadd.f32 %v1205_v35, %v1187_v57 }
  0xe8   : > { %v1189_v39 = vpop.f32.mrf.mxu2  ;;  %v1224_v42 = vpop.f32.mrf.mxu0 }
  0xe9   : > { %v1172_v41 = vpop.f32.mrf.mxu1  ;;  %v1208_v53 = vpop.f32.mrf.mxu3  ;;  %v1190_v61 = vadd.f32 %v1189_v39, %v1171_v55  ;;  %v1225_v4 = vadd.f32 %v1224_v42, %v1206_v1 }
  0xea   : > { %v1173_v2 = vadd.f32 %v1172_v41, %v1154_v0 }
  0xeb   : > { %v1209_v3 = vadd.f32 %v1208_v53, %v1190_v61 }
  0xf0   : > { %v1191_v54 = vpop.f32.mrf.mxu2  ;;  %v1227_v59 = vpop.f32.mrf.mxu0 }
  0xf1   : > { %v1241_v56 = vpop.f32.mrf.mxu1  ;;  %v1192_v8 = vadd.f32 %v1191_v54, %v1173_v2  ;;  %v1228_v9 = vadd.f32 %v1227_v59, %v1209_v3  ;;  %v1210_v11 = vpop.f32.mrf.mxu3 }
  0xf2   : > { %v1242_v62 = vadd.f32 %v1241_v56, %v1223_v58 }
  0xf3   : > { %v1211_v18 = vadd.f32 %v1210_v11, %v1192_v8 }
  0xf4   : > { %v1263_v5 = vmul.f32 %v1982_v63, %v1242_v62 }
  0xf6   : > { %v1271_v14 = vadd.f32 %v1983_v6, %v1263_v5 }
  0xf8   : > { %v1246_v7 = vpop.f32.mrf.mxu2  ;;  %v1229_v15 = vpop.f32.mrf.mxu0  ;;  %v1275_v22 = vmax.f32 %v1271_v14, 0.0 }
  0xf9   : > { %v1243_v10 = vpop.f32.mrf.mxu1  ;;  %v1247_v13 = vadd.f32 %v1246_v7, %v1228_v9  ;;  %v1230_v21 = vadd.f32 %v1229_v15, %v1211_v18 }
  0xfa   : > { %v1244_v12 = vadd.f32 %v1243_v10, %v1225_v4 }
  0xfb   : > { %v1265_v20 = vmul.f32 %v1982_v63, %v1247_v13 }
  0xfc   : > { %v1913_v16 = vpack.c.bf16 %v1244_v12, %v1242_v62  ;;  %v1264_v17 = vmul.f32 %v1982_v63, %v1244_v12 }
  0xfd   : > { %v1273_v27 = vadd.f32 %v1983_v6, %v1265_v20 }
  0xfe   : > { %1914 = vst [vmem:[%s291_s15] sm:$0xff] %v1913_v16   ;;  %v1272_v19 = vadd.f32 %v1983_v6, %v1264_v17 }
 0x100   : > { %v1276_v23 = vmax.f32 %v1272_v19, 0.0  ;;  %v1248_v24 = vpop.f32.mrf.mxu2 }
 0x101   : > { %v1249_v25 = vadd.f32 %v1248_v24, %v1230_v21 }
 0x102   : > { %v1923_v26 = vpack.c.bf16 %v1276_v23, %v1275_v22 }
 0x103   : > { %v1918_v28 = vpack.c.bf16 %v1249_v25, %v1247_v13  ;;  %v1266_v29 = vmul.f32 %v1982_v63, %v1249_v25 }
 0x104   : > { %1924 = vst [vmem:[%s2441_s21] sm:$0xff] %v1923_v26  }
 0x105   : > { %1930 = vst [vmem:[%s291_s15 + $0x8] sm:$0xff] %v1918_v28   ;;  %v1274_v30 = vadd.f32 %v1983_v6, %v1266_v29 }
 0x106   : > { %2011 = shalt.err (!%p2008_p3)
}
 0x107   : > { %s2048_s9 = smov 64   ;;  %s2049_s15 = smov 4   ;;  %v1277_v31 = vmax.f32 %v1273_v27, 0.0  ;;  %v1278_v32 = vmax.f32 %v1274_v30, 0.0 }
 0x108   : > { %1941 = dma.vmem_to_hbm [thread:$0]  (%p2128_p5), %s1306_s16, 256, %s1308_s28, %s1288_s22, %s2048_s9, %s2048_s9, %s2049_s15  }
 0x109   : > { %v1928_v33 = vpack.c.bf16 %v1278_v32, %v1277_v31 }
 0x10b   : > { %1931 = vst [vmem:[%s2441_s21 + $0x8] sm:$0xff] %v1928_v33  }
 0x10c PF: > { %p1947_p4 = scmp.ge.s32.totalorder %s2046_s27, 2  ;;  %s1326_s8 = sand.u32 1, %s2034_s24  }
 0x10d   : > { %s1327_s20 = scalar_lea.sflag [#allocation3], %s1326_s8 }
 0x10e   : > { %p1944_p7 = pnand %p1947_p4, %p2132_p6 }
 0x110   : > { %p1945_p8 = pneg %p1944_p7 }
 0x112   : > { %2029 = dma.done.wait (%p1945_p8), %s1327_s20, 256  }
 0x113   : > { %2031 = vsyncadd (%p1945_p8), %s1327_s20, 4294967040  ;;  %p18_p5 = scmp.ge.s32.totalorder %s2115_s30, 4   ;;  %s2486_s24 = smov %s2038_s25 }
 0x114   : > { %s2487_s25 = smov %s2042_s26  ;;  %s2488_s26 = smov %s2126_s10 }
 0x115   : > { %s2489_s27 = smov %s2115_s30  ;;  %20 = sbr.rel (!%p18_p5) target bundleno = 3 (0x3), region = 94 }
 0x11a   :  { %1341 = vsyncpa [#allocation3], 1 }
 0x11b   :  { %1343 = vsyncpa [#allocation3 + $0x1], 1 }

</bundles_post_ra>
